<compile_context>
chip_gen: v6e
topology: v6e:2x2x1
jax: 0.10.0
libtpu: 0.0.40
codegen_flags: <defaults>
</compile_context>

<pallas_src>
import functools

import jax
import jax.numpy as jnp
from jax.experimental import pallas as pl
from jax.experimental.pallas import tpu as pltpu  # noqa: F401  (kept for the scale-up TODO path)


# ------------------------- in-kernel helpers (operate on traced values) -------------------------

def _mxu_dot(a, b, dims=None):
    """MXU matmul: bf16 operands (casts are no-ops when already bf16), f32 accumulate."""
    a16 = a.astype(jnp.bfloat16)
    b16 = b.astype(jnp.bfloat16)
    if dims is None:
        return jnp.dot(a16, b16, preferred_element_type=jnp.float32)
    return jax.lax.dot_general(a16, b16, dims, preferred_element_type=jnp.float32)


def _ln(x, g, b, eps=1e-5):
    x = x.astype(jnp.float32)
    mu = jnp.mean(x, axis=-1, keepdims=True)
    var = jnp.mean((x - mu) ** 2, axis=-1, keepdims=True)
    return (x - mu) * jax.lax.rsqrt(var + eps) * g + b


def _gelu(x):
    # TODO(synk): HF BART uses exact (erf) GELU; tanh approximation kept (EUP-friendly).
    return jax.nn.gelu(x)


def _attention(q, k, v, wo, bo, *, H, Dh, scale, mask):
    """Multi-head attention on batch-folded (N, H*Dh) operands.

    The lane-axis concat of per-head outputs is fused into the output projection:
    concat_h(softmax(q_h k_h^T) v_h) @ Wo == sum_h (softmax(q_h k_h^T) v_h) @ Wo[h*Dh:(h+1)*Dh, :],
    so every MXU output tile is full 128 lanes and no XLU concat is emitted.
    `mask` (N, N) carries both the batch-block structure and (for the decoder) causality.
    """
    N = q.shape[0]
    acc = jnp.zeros((N, wo.shape[1]), jnp.float32)
    for h in range(H):  # static unroll; H is small and known at trace time
        sl = slice(h * Dh, (h + 1) * Dh)
        qh, kh, vh = q[:, sl], k[:, sl], v[:, sl]
        # contract over Dh via dot_general — no in-kernel transpose feeding the MXU.
        s = _mxu_dot(qh, kh, dims=(((1,), (1,)), ((), ()))) * scale + mask
        m = jnp.max(s, axis=-1, keepdims=True)
        p = jnp.exp(s - m)
        p = p * pl.reciprocal(jnp.sum(p, axis=-1, keepdims=True), approx=True)
        oh = _mxu_dot(p, vh)                       # (N, Dh) f32
        acc = acc + _mxu_dot(oh, wo[sl, :])        # fused "concat" -> full-lane accumulate
    return acc + bo


# ------------------------- the single fused Pallas kernel -------------------------

def _doc_encoder_lm_kernel(
    # activations / ids
    x_ref, y_ref, labels_ref, bid_row_ref, bid_col_ref,
    # encoder: embedding LN + one encoder layer
    e_lne_g, e_lne_b,
    e_wqkv, e_bqkv, e_wo, e_bo,
    e_ln1_g, e_ln1_b,
    e_w1, e_b1, e_w2, e_b2,
    e_ln2_g, e_ln2_b,
    # decoder: embedding LN + one decoder layer (self-attn, cross-attn, FFN)
    d_lne_g, d_lne_b,
    d_wqkv, d_bqkv, d_wo, d_bo,
    d_ln1_g, d_ln1_b,
    d_cwq, d_cbq, d_cwkv, d_cbkv, d_cwo, d_cbo,
    d_ln2_g, d_ln2_b,
    d_w1, d_b1, d_w2, d_b2,
    d_ln3_g, d_ln3_b,
    # tied LM head weight (V, D)
    emb_ref,
    # output
    loss_ref,
    *, H, Dh, scale, ignore_index,
):
    f32 = jnp.float32
    neg = jnp.float32(-1e9)
    N = x_ref.shape[0]
    D = H * Dh

    # ---- masks (in-kernel; only tiny (N,1)/(1,N) batch-id vectors come from HBM) ----
    row = jax.lax.broadcasted_iota(jnp.int32, (N, N), 0)
    col = jax.lax.broadcasted_iota(jnp.int32, (N, N), 1)
    same_batch = bid_row_ref[...] == bid_col_ref[...]                  # (N, N) block-diagonal
    enc_mask = jnp.where(same_batch, 0.0, neg).astype(f32)             # encoder self / cross attn
    dec_mask = jnp.where(same_batch & (row >= col), 0.0, neg).astype(f32)  # causal within batch

    # ---------------- encoder layer ----------------
    x = _ln(x_ref[...], e_lne_g[...], e_lne_b[...])                    # emb+pos already summed
    qkv = _mxu_dot(x, e_wqkv[...]) + e_bqkv[...]                       # fused Q|K|V (N, 3D)
    a = _attention(qkv[:, :D], qkv[:, D:2 * D], qkv[:, 2 * D:],
                   e_wo[...], e_bo[...], H=H, Dh=Dh, scale=scale, mask=enc_mask)
    x = _ln(x + a, e_ln1_g[...], e_ln1_b[...])                         # fused residual + LN
    ff = _mxu_dot(_gelu(_mxu_dot(x, e_w1[...]) + e_b1[...]), e_w2[...]) + e_b2[...]
    enc_out = _ln(x + ff, e_ln2_g[...], e_ln2_b[...])                  # stays in VMEM/vregs

    # ---------------- decoder layer ----------------
    y = _ln(y_ref[...], d_lne_g[...], d_lne_b[...])
    qkv = _mxu_dot(y, d_wqkv[...]) + d_bqkv[...]                       # fused self Q|K|V
    a = _attention(qkv[:, :D], qkv[:, D:2 * D], qkv[:, 2 * D:],
                   d_wo[...], d_bo[...], H=H, Dh=Dh, scale=scale, mask=dec_mask)
    y = _ln(y + a, d_ln1_g[...], d_ln1_b[...])

    q = _mxu_dot(y, d_cwq[...]) + d_cbq[...]                           # cross-attn query
    kv = _mxu_dot(enc_out, d_cwkv[...]) + d_cbkv[...]                  # fused cross K|V
    c = _attention(q, kv[:, :D], kv[:, D:],
                   d_cwo[...], d_cbo[...], H=H, Dh=Dh, scale=scale, mask=enc_mask)
    y = _ln(y + c, d_ln2_g[...], d_ln2_b[...])

    ff = _mxu_dot(_gelu(_mxu_dot(y, d_w1[...]) + d_b1[...]), d_w2[...]) + d_b2[...]
    hid = _ln(y + ff, d_ln3_g[...], d_ln3_b[...])                      # (N, D)

    # ---------------- tied LM head + cross-entropy (ignore_index = -100) ----------------
    # Contract over d_model against the (V, D) embedding: no wrapper-side transpose / copy.
    logits = _mxu_dot(hid, emb_ref[...], dims=(((1,), (1,)), ((), ())))  # (N, V) f32
    m = jnp.max(logits, axis=-1, keepdims=True)
    lse = jnp.log(jnp.sum(jnp.exp(logits - m), axis=-1, keepdims=True)) + m
    lab = labels_ref[...]                                               # (N, 1) int32
    vocab_ids = jax.lax.broadcasted_iota(jnp.int32, logits.shape, 1)
    tgt = jnp.sum(jnp.where(vocab_ids == lab, logits, 0.0), axis=-1, keepdims=True)
    valid = (lab != ignore_index).astype(f32)
    nll = (lse - tgt) * valid
    total = jnp.sum(nll, keepdims=True)                                 # (1, 1)
    count = jnp.maximum(jnp.sum(valid, keepdims=True), 1.0)             # (1, 1)
    # Scalar (1,1) VMEM output: lane-width-1 store is negligible at this size.
    loss_ref[...] = total / count


# ------------------------- model glue (plain JAX + one pallas_call) -------------------------

def doc_encoder_forward(params, input_ids, decoder_input_ids, labels, cfg):
    B, S = input_ids.shape
    D, H, F, V = cfg["d_model"], cfg["heads"], cfg["ffn"], cfg["vocab"]
    Dh = D // H
    N = B * S
    scale = 1.0 / (Dh ** 0.5)

    # TODO(synk): embedding gathers have no clean whole-table Pallas equivalent at this size;
    #             they stay in plain JAX (bf16 table -> bf16 kernel inputs).
    x = (jnp.take(params["emb"], input_ids, axis=0) + params["pos_emb"][:S][None]).reshape(N, D)
    y = (jnp.take(params["emb"], decoder_input_ids, axis=0) + params["dec_pos_emb"][:S][None]).reshape(N, D)
    labels2 = labels.reshape(N, 1).astype(jnp.int32)
    bid = jnp.repeat(jnp.arange(B, dtype=jnp.int32), S)
    bid_row = bid.reshape(N, 1)
    bid_col = bid.reshape(1, N)

    enc, dec = params["enc"], params["dec"]
    args = [
        x, y, labels2, bid_row, bid_col,
        params["ln_emb_g"], params["ln_emb_b"],
        enc["wqkv"], enc["bqkv"], enc["wo"], enc["bo"],
        enc["ln1_g"], enc["ln1_b"],
        enc["w1"], enc["b1"], enc["w2"], enc["b2"],
        enc["ln2_g"], enc["ln2_b"],
        params["dec_ln_emb_g"], params["dec_ln_emb_b"],
        dec["wqkv"], dec["bqkv"], dec["wo"], dec["bo"],
        dec["ln1_g"], dec["ln1_b"],
        dec["cross_wq"], dec["cross_bq"], dec["cross_wkv"], dec["cross_bkv"],
        dec["cross_wo"], dec["cross_bo"],
        dec["ln2_g"], dec["ln2_b"],
        dec["w1"], dec["b1"], dec["w2"], dec["b2"],
        dec["ln3_g"], dec["ln3_b"],
        params["emb"],
    ]

    kernel = functools.partial(_doc_encoder_lm_kernel,
                               H=H, Dh=Dh, scale=scale, ignore_index=-100)
    loss = pl.pallas_call(
        kernel,
        out_shape=jax.ShapeDtypeStruct((1, 1), jnp.float32),
        # Single grid step (grid=()): optimal on single-TensorCore v5e/v6e.
        # All operands are tiny whole-block VMEM residents (<1 MiB total).
        in_specs=[pl.BlockSpec(a.shape, lambda: (0, 0)) for a in args],
        out_specs=pl.BlockSpec((1, 1), lambda: (0, 0)),
    )(*args)
    return loss[0, 0]


# ------------------------- parameter init (bf16 weights, f32 LN/bias) -------------------------

def init_params(key, cfg):
    V, D, F, Smax = cfg["vocab"], cfg["d_model"], cfg["ffn"], cfg["max_pos"]
    wdt = jnp.bfloat16          # weights & embeddings live in HBM as bf16 (MXU-native)
    s = 0.02

    def dense(k, shape):
        return (jax.random.normal(k, shape, jnp.float32) * s).astype(wdt)

    def ln_pair():
        return jnp.ones((1, D), jnp.float32), jnp.zeros((1, D), jnp.float32)

    keys = jax.random.split(key, 8)

    def enc_layer(k):
        ks = jax.random.split(k, 6)
        g1, b1 = ln_pair(); g2, b2 = ln_pair()
        return {
            "wqkv": jnp.concatenate([dense(ks[0], (D, D)), dense(ks[1], (D, D)),
                                     dense(ks[2], (D, D))], axis=1),   # (D, 3D) fused QKV
            "bqkv": jnp.zeros((1, 3 * D), jnp.float32),
            "wo": dense(ks[3], (D, D)), "bo": jnp.zeros((1, D), jnp.float32),
            "ln1_g": g1, "ln1_b": b1,
            "w1": dense(ks[4], (D, F)), "b1": jnp.zeros((1, F), jnp.float32),
            "w2": dense(ks[5], (F, D)), "b2": jnp.zeros((1, D), jnp.float32),
            "ln2_g": g2, "ln2_b": b2,
        }

    def dec_layer(k):
        ks = jax.random.split(k, 10)
        g1, b1 = ln_pair(); g2, b2 = ln_pair(); g3, b3 = ln_pair()
        return {
            "wqkv": jnp.concatenate([dense(ks[0], (D, D)), dense(ks[1], (D, D)),
                                     dense(ks[2], (D, D))], axis=1),   # (D, 3D) fused self QKV
            "bqkv": jnp.zeros((1, 3 * D), jnp.float32),
            "wo": dense(ks[3], (D, D)), "bo": jnp.zeros((1, D), jnp.float32),
            "ln1_g": g1, "ln1_b": b1,
            "cross_wq": dense(ks[4], (D, D)), "cross_bq": jnp.zeros((1, D), jnp.float32),
            "cross_wkv": jnp.concatenate([dense(ks[5], (D, D)),
                                          dense(ks[6], (D, D))], axis=1),  # (D, 2D) fused KV
            "cross_bkv": jnp.zeros((1, 2 * D), jnp.float32),
            "cross_wo": dense(ks[7], (D, D)), "cross_bo": jnp.zeros((1, D), jnp.float32),
            "ln2_g": g2, "ln2_b": b2,
            "w1": dense(ks[8], (D, F)), "b1": jnp.zeros((1, F), jnp.float32),
            "w2": dense(ks[9], (F, D)), "b2": jnp.zeros((1, D), jnp.float32),
            "ln3_g": g3, "ln3_b": b3,
        }

    return {
        "emb": dense(keys[0], (V, D)),
        "pos_emb": dense(keys[1], (Smax, D)),
        "dec_pos_emb": dense(keys[2], (Smax, D)),
        "ln_emb_g": jnp.ones((1, D), jnp.float32),
        "ln_emb_b": jnp.zeros((1, D), jnp.float32),
        "dec_ln_emb_g": jnp.ones((1, D), jnp.float32),
        "dec_ln_emb_b": jnp.zeros((1, D), jnp.float32),
        "enc": enc_layer(keys[3]),
        "dec": dec_layer(keys[4]),
    }


# ------------------------- main -------------------------

if __name__ == "__main__":
    # lane-dense toy config: every matmul's last dim is a multiple of 128.
    cfg = {"vocab": 512, "d_model": 128, "heads": 4, "ffn": 256, "max_pos": 32}
    B, S = 2, 16

    key = jax.random.PRNGKey(0)
    k_param, k_in, k_dec, k_lab = jax.random.split(key, 4)
    params = init_params(k_param, cfg)

    input_ids = jax.random.randint(k_in, (B, S), 0, cfg["vocab"], jnp.int32)
    decoder_input_ids = jax.random.randint(k_dec, (B, S), 0, cfg["vocab"], jnp.int32)
    labels = jax.random.randint(k_lab, (B, S), 0, cfg["vocab"], jnp.int32)

    fwd = jax.jit(functools.partial(doc_encoder_forward, cfg=cfg))
    loss = jax.block_until_ready(fwd(params, input_ids, decoder_input_ids, labels))
    assert jnp.isfinite(loss), "loss is not finite"
    print("KERNEL_OK")
</pallas_src>

<mosaic_0001>
module attributes {stable_mosaic.version = 11 : i64} {
  func.func @_doc_encoder_lm_kernel(%arg0: memref<32x128xbf16, #tpu.memory_space<vmem>>, %arg1: memref<32x128xbf16, #tpu.memory_space<vmem>>, %arg2: memref<32x1xi32, #tpu.memory_space<vmem>>, %arg3: memref<32x1xi32, #tpu.memory_space<vmem>>, %arg4: memref<1x32xi32, #tpu.memory_space<vmem>>, %arg5: memref<1x128xf32, #tpu.memory_space<vmem>>, %arg6: memref<1x128xf32, #tpu.memory_space<vmem>>, %arg7: memref<128x384xbf16, #tpu.memory_space<vmem>>, %arg8: memref<1x384xf32, #tpu.memory_space<vmem>>, %arg9: memref<128x128xbf16, #tpu.memory_space<vmem>>, %arg10: memref<1x128xf32, #tpu.memory_space<vmem>>, %arg11: memref<1x128xf32, #tpu.memory_space<vmem>>, %arg12: memref<1x128xf32, #tpu.memory_space<vmem>>, %arg13: memref<128x256xbf16, #tpu.memory_space<vmem>>, %arg14: memref<1x256xf32, #tpu.memory_space<vmem>>, %arg15: memref<256x128xbf16, #tpu.memory_space<vmem>>, %arg16: memref<1x128xf32, #tpu.memory_space<vmem>>, %arg17: memref<1x128xf32, #tpu.memory_space<vmem>>, %arg18: memref<1x128xf32, #tpu.memory_space<vmem>>, %arg19: memref<1x128xf32, #tpu.memory_space<vmem>>, %arg20: memref<1x128xf32, #tpu.memory_space<vmem>>, %arg21: memref<128x384xbf16, #tpu.memory_space<vmem>>, %arg22: memref<1x384xf32, #tpu.memory_space<vmem>>, %arg23: memref<128x128xbf16, #tpu.memory_space<vmem>>, %arg24: memref<1x128xf32, #tpu.memory_space<vmem>>, %arg25: memref<1x128xf32, #tpu.memory_space<vmem>>, %arg26: memref<1x128xf32, #tpu.memory_space<vmem>>, %arg27: memref<128x128xbf16, #tpu.memory_space<vmem>>, %arg28: memref<1x128xf32, #tpu.memory_space<vmem>>, %arg29: memref<128x256xbf16, #tpu.memory_space<vmem>>, %arg30: memref<1x256xf32, #tpu.memory_space<vmem>>, %arg31: memref<128x128xbf16, #tpu.memory_space<vmem>>, %arg32: memref<1x128xf32, #tpu.memory_space<vmem>>, %arg33: memref<1x128xf32, #tpu.memory_space<vmem>>, %arg34: memref<1x128xf32, #tpu.memory_space<vmem>>, %arg35: memref<128x256xbf16, #tpu.memory_space<vmem>>, %arg36: memref<1x256xf32, #tpu.memory_space<vmem>>, %arg37: memref<256x128xbf16, #tpu.memory_space<vmem>>, %arg38: memref<1x128xf32, #tpu.memory_space<vmem>>, %arg39: memref<1x128xf32, #tpu.memory_space<vmem>>, %arg40: memref<1x128xf32, #tpu.memory_space<vmem>>, %arg41: memref<512x128xbf16, #tpu.memory_space<vmem>>, %arg42: memref<1x1xf32, #tpu.memory_space<vmem>>) attributes {dimension_semantics = [], scalar_prefetch = 0 : i64, scratch_operands = 0 : i64, tpu.core_type = #tpu.core_type<tc>} {
    %0 = tpu.iota {dimensions = array<i32: 0>} : vector<32x32xi32>
    %1 = tpu.iota {dimensions = array<i32: 1>} : vector<32x32xi32>
    %c0 = arith.constant 0 : index
    %c0_0 = arith.constant 0 : index
    %2 = vector.load %arg3[%c0, %c0_0] : memref<32x1xi32, #tpu.memory_space<vmem>>, vector<32x1xi32>
    %c0_1 = arith.constant 0 : index
    %c0_2 = arith.constant 0 : index
    %3 = vector.load %arg4[%c0_1, %c0_2] : memref<1x32xi32, #tpu.memory_space<vmem>>, vector<1x32xi32>
    %4 = vector.broadcast %2 : vector<32x1xi32> to vector<32x32xi32>
    %5 = vector.broadcast %3 : vector<1x32xi32> to vector<32x32xi32>
    %6 = arith.cmpi eq, %4, %5 : vector<32x32xi32>
    %cst = arith.constant 0.000000e+00 : f32
    %cst_3 = arith.constant -1.000000e+09 : f32
    %7 = vector.broadcast %cst : f32 to vector<32x32xf32>
    %8 = vector.broadcast %cst_3 : f32 to vector<32x32xf32>
    %9 = arith.select %6, %7, %8 : vector<32x32xi1>, vector<32x32xf32>
    %10 = arith.cmpi sge, %0, %1 : vector<32x32xi32>
    %11 = arith.andi %6, %10 : vector<32x32xi1>
    %cst_4 = arith.constant 0.000000e+00 : f32
    %cst_5 = arith.constant -1.000000e+09 : f32
    %12 = vector.broadcast %cst_4 : f32 to vector<32x32xf32>
    %13 = vector.broadcast %cst_5 : f32 to vector<32x32xf32>
    %14 = arith.select %11, %12, %13 : vector<32x32xi1>, vector<32x32xf32>
    %c0_6 = arith.constant 0 : index
    %c0_7 = arith.constant 0 : index
    %15 = vector.load %arg0[%c0_6, %c0_7] : memref<32x128xbf16, #tpu.memory_space<vmem>>, vector<32x128xbf16>
    %c0_8 = arith.constant 0 : index
    %c0_9 = arith.constant 0 : index
    %16 = vector.load %arg5[%c0_8, %c0_9] : memref<1x128xf32, #tpu.memory_space<vmem>>, vector<1x128xf32>
    %c0_10 = arith.constant 0 : index
    %c0_11 = arith.constant 0 : index
    %17 = vector.load %arg6[%c0_10, %c0_11] : memref<1x128xf32, #tpu.memory_space<vmem>>, vector<1x128xf32>
    %18 = arith.extf %15 : vector<32x128xbf16> to vector<32x128xf32>
    %cst_12 = arith.constant dense<0.000000e+00> : vector<32xf32>
    %19 = vector.multi_reduction <add>, %18, %cst_12 [1] : vector<32x128xf32> to vector<32xf32>
    %20 = vector.shape_cast %19 : vector<32xf32> to vector<32x1xf32>
    %cst_13 = arith.constant 1.280000e+02 : f32
    %21 = vector.broadcast %cst_13 : f32 to vector<32x1xf32>
    %22 = arith.divf %20, %21 : vector<32x1xf32>
    %23 = vector.broadcast %22 : vector<32x1xf32> to vector<32x128xf32>
    %24 = arith.subf %18, %23 : vector<32x128xf32>
    %25 = arith.mulf %24, %24 : vector<32x128xf32>
    %cst_14 = arith.constant dense<0.000000e+00> : vector<32xf32>
    %26 = vector.multi_reduction <add>, %25, %cst_14 [1] : vector<32x128xf32> to vector<32xf32>
    %27 = vector.shape_cast %26 : vector<32xf32> to vector<32x1xf32>
    %cst_15 = arith.constant 1.280000e+02 : f32
    %28 = vector.broadcast %cst_15 : f32 to vector<32x1xf32>
    %29 = arith.divf %27, %28 : vector<32x1xf32>
    %30 = vector.broadcast %22 : vector<32x1xf32> to vector<32x128xf32>
    %31 = arith.subf %18, %30 : vector<32x128xf32>
    %cst_16 = arith.constant 9.99999974E-6 : f32
    %32 = vector.broadcast %cst_16 : f32 to vector<32x1xf32>
    %33 = arith.addf %29, %32 : vector<32x1xf32>
    %34 = math.rsqrt %33 : vector<32x1xf32>
    %35 = vector.broadcast %34 : vector<32x1xf32> to vector<32x128xf32>
    %36 = arith.mulf %31, %35 : vector<32x128xf32>
    %37 = vector.broadcast %16 : vector<1x128xf32> to vector<32x128xf32>
    %38 = arith.mulf %36, %37 : vector<32x128xf32>
    %39 = vector.broadcast %17 : vector<1x128xf32> to vector<32x128xf32>
    %40 = arith.addf %38, %39 : vector<32x128xf32>
    %c0_17 = arith.constant 0 : index
    %c0_18 = arith.constant 0 : index
    %41 = vector.load %arg7[%c0_17, %c0_18] : memref<128x384xbf16, #tpu.memory_space<vmem>>, vector<128x384xbf16>
    %42 = arith.truncf %40 : vector<32x128xf32> to vector<32x128xbf16>
    %cst_19 = arith.constant dense<0.000000e+00> : vector<32x384xf32>
    %43 = tpu.matmul %42, %41, %cst_19 {dimension_numbers = #tpu.dot_dimension_numbers<[1], [0], [0], [1], [0, 0, 1, 1], [], []>} : vector<32x128xbf16>, vector<128x384xbf16>, vector<32x384xf32> -> vector<32x384xf32>
    %c0_20 = arith.constant 0 : index
    %c0_21 = arith.constant 0 : index
    %44 = vector.load %arg8[%c0_20, %c0_21] : memref<1x384xf32, #tpu.memory_space<vmem>>, vector<1x384xf32>
    %45 = vector.broadcast %44 : vector<1x384xf32> to vector<32x384xf32>
    %46 = arith.addf %43, %45 : vector<32x384xf32>
    %47 = vector.extract_strided_slice %46 {offsets = [0, 0], sizes = [32, 128], strides = [1, 1]} : vector<32x384xf32> to vector<32x128xf32>
    %48 = vector.extract_strided_slice %46 {offsets = [0, 128], sizes = [32, 128], strides = [1, 1]} : vector<32x384xf32> to vector<32x128xf32>
    %49 = vector.extract_strided_slice %46 {offsets = [0, 256], sizes = [32, 128], strides = [1, 1]} : vector<32x384xf32> to vector<32x128xf32>
    %c0_22 = arith.constant 0 : index
    %c0_23 = arith.constant 0 : index
    %50 = vector.load %arg9[%c0_22, %c0_23] : memref<128x128xbf16, #tpu.memory_space<vmem>>, vector<128x128xbf16>
    %c0_24 = arith.constant 0 : index
    %c0_25 = arith.constant 0 : index
    %51 = vector.load %arg10[%c0_24, %c0_25] : memref<1x128xf32, #tpu.memory_space<vmem>>, vector<1x128xf32>
    %cst_26 = arith.constant 0.000000e+00 : f32
    %52 = vector.broadcast %cst_26 : f32 to vector<32x128xf32>
    %53 = vector.extract_strided_slice %47 {offsets = [0, 0], sizes = [32, 32], strides = [1, 1]} : vector<32x128xf32> to vector<32x32xf32>
    %54 = vector.extract_strided_slice %48 {offsets = [0, 0], sizes = [32, 32], strides = [1, 1]} : vector<32x128xf32> to vector<32x32xf32>
    %55 = vector.extract_strided_slice %49 {offsets = [0, 0], sizes = [32, 32], strides = [1, 1]} : vector<32x128xf32> to vector<32x32xf32>
    %56 = arith.truncf %53 : vector<32x32xf32> to vector<32x32xbf16>
    %57 = arith.truncf %54 : vector<32x32xf32> to vector<32x32xbf16>
    %cst_27 = arith.constant dense<0.000000e+00> : vector<32x32xf32>
    %58 = tpu.matmul %56, %57, %cst_27 {dimension_numbers = #tpu.dot_dimension_numbers<[1], [1], [0], [0], [0, 0, 1, 0], [], []>} : vector<32x32xbf16>, vector<32x32xbf16>, vector<32x32xf32> -> vector<32x32xf32>
    %cst_28 = arith.constant 0.176776692 : f32
    %59 = vector.broadcast %cst_28 : f32 to vector<32x32xf32>
    %60 = arith.mulf %58, %59 : vector<32x32xf32>
    %61 = arith.addf %60, %9 : vector<32x32xf32>
    %cst_29 = arith.constant dense<0xFF800000> : vector<32xf32>
    %62 = vector.multi_reduction <maximumf>, %61, %cst_29 [1] : vector<32x32xf32> to vector<32xf32>
    %63 = vector.shape_cast %62 : vector<32xf32> to vector<32x1xf32>
    %64 = vector.broadcast %63 : vector<32x1xf32> to vector<32x32xf32>
    %65 = arith.subf %61, %64 : vector<32x32xf32>
    %66 = math.exp %65 : vector<32x32xf32>
    %cst_30 = arith.constant dense<0.000000e+00> : vector<32xf32>
    %67 = vector.multi_reduction <add>, %66, %cst_30 [1] : vector<32x32xf32> to vector<32xf32>
    %68 = vector.shape_cast %67 : vector<32xf32> to vector<32x1xf32>
    %69 = tpu.reciprocal %68 {approx = true} : vector<32x1xf32> -> vector<32x1xf32>
    %70 = vector.broadcast %69 : vector<32x1xf32> to vector<32x32xf32>
    %71 = arith.mulf %66, %70 : vector<32x32xf32>
    %72 = arith.truncf %71 : vector<32x32xf32> to vector<32x32xbf16>
    %73 = arith.truncf %55 : vector<32x32xf32> to vector<32x32xbf16>
    %cst_31 = arith.constant dense<0.000000e+00> : vector<32x32xf32>
    %74 = tpu.matmul %72, %73, %cst_31 {dimension_numbers = #tpu.dot_dimension_numbers<[1], [0], [0], [1], [0, 0, 1, 1], [], []>} : vector<32x32xbf16>, vector<32x32xbf16>, vector<32x32xf32> -> vector<32x32xf32>
    %75 = vector.extract_strided_slice %50 {offsets = [0, 0], sizes = [32, 128], strides = [1, 1]} : vector<128x128xbf16> to vector<32x128xbf16>
    %76 = arith.truncf %74 : vector<32x32xf32> to vector<32x32xbf16>
    %cst_32 = arith.constant dense<0.000000e+00> : vector<32x128xf32>
    %77 = tpu.matmul %76, %75, %cst_32 {dimension_numbers = #tpu.dot_dimension_numbers<[1], [0], [0], [1], [0, 0, 1, 1], [], []>} : vector<32x32xbf16>, vector<32x128xbf16>, vector<32x128xf32> -> vector<32x128xf32>
    %78 = arith.addf %52, %77 : vector<32x128xf32>
    %79 = vector.extract_strided_slice %47 {offsets = [0, 32], sizes = [32, 32], strides = [1, 1]} : vector<32x128xf32> to vector<32x32xf32>
    %80 = vector.extract_strided_slice %48 {offsets = [0, 32], sizes = [32, 32], strides = [1, 1]} : vector<32x128xf32> to vector<32x32xf32>
    %81 = vector.extract_strided_slice %49 {offsets = [0, 32], sizes = [32, 32], strides = [1, 1]} : vector<32x128xf32> to vector<32x32xf32>
    %82 = arith.truncf %79 : vector<32x32xf32> to vector<32x32xbf16>
    %83 = arith.truncf %80 : vector<32x32xf32> to vector<32x32xbf16>
    %cst_33 = arith.constant dense<0.000000e+00> : vector<32x32xf32>
    %84 = tpu.matmul %82, %83, %cst_33 {dimension_numbers = #tpu.dot_dimension_numbers<[1], [1], [0], [0], [0, 0, 1, 0], [], []>} : vector<32x32xbf16>, vector<32x32xbf16>, vector<32x32xf32> -> vector<32x32xf32>
    %cst_34 = arith.constant 0.176776692 : f32
    %85 = vector.broadcast %cst_34 : f32 to vector<32x32xf32>
    %86 = arith.mulf %84, %85 : vector<32x32xf32>
    %87 = arith.addf %86, %9 : vector<32x32xf32>
    %cst_35 = arith.constant dense<0xFF800000> : vector<32xf32>
    %88 = vector.multi_reduction <maximumf>, %87, %cst_35 [1] : vector<32x32xf32> to vector<32xf32>
    %89 = vector.shape_cast %88 : vector<32xf32> to vector<32x1xf32>
    %90 = vector.broadcast %89 : vector<32x1xf32> to vector<32x32xf32>
    %91 = arith.subf %87, %90 : vector<32x32xf32>
    %92 = math.exp %91 : vector<32x32xf32>
    %cst_36 = arith.constant dense<0.000000e+00> : vector<32xf32>
    %93 = vector.multi_reduction <add>, %92, %cst_36 [1] : vector<32x32xf32> to vector<32xf32>
    %94 = vector.shape_cast %93 : vector<32xf32> to vector<32x1xf32>
    %95 = tpu.reciprocal %94 {approx = true} : vector<32x1xf32> -> vector<32x1xf32>
    %96 = vector.broadcast %95 : vector<32x1xf32> to vector<32x32xf32>
    %97 = arith.mulf %92, %96 : vector<32x32xf32>
    %98 = arith.truncf %97 : vector<32x32xf32> to vector<32x32xbf16>
    %99 = arith.truncf %81 : vector<32x32xf32> to vector<32x32xbf16>
    %cst_37 = arith.constant dense<0.000000e+00> : vector<32x32xf32>
    %100 = tpu.matmul %98, %99, %cst_37 {dimension_numbers = #tpu.dot_dimension_numbers<[1], [0], [0], [1], [0, 0, 1, 1], [], []>} : vector<32x32xbf16>, vector<32x32xbf16>, vector<32x32xf32> -> vector<32x32xf32>
    %101 = vector.extract_strided_slice %50 {offsets = [32, 0], sizes = [32, 128], strides = [1, 1]} : vector<128x128xbf16> to vector<32x128xbf16>
    %102 = arith.truncf %100 : vector<32x32xf32> to vector<32x32xbf16>
    %cst_38 = arith.constant dense<0.000000e+00> : vector<32x128xf32>
    %103 = tpu.matmul %102, %101, %cst_38 {dimension_numbers = #tpu.dot_dimension_numbers<[1], [0], [0], [1], [0, 0, 1, 1], [], []>} : vector<32x32xbf16>, vector<32x128xbf16>, vector<32x128xf32> -> vector<32x128xf32>
    %104 = arith.addf %78, %103 : vector<32x128xf32>
    %105 = vector.extract_strided_slice %47 {offsets = [0, 64], sizes = [32, 32], strides = [1, 1]} : vector<32x128xf32> to vector<32x32xf32>
    %106 = vector.extract_strided_slice %48 {offsets = [0, 64], sizes = [32, 32], strides = [1, 1]} : vector<32x128xf32> to vector<32x32xf32>
    %107 = vector.extract_strided_slice %49 {offsets = [0, 64], sizes = [32, 32], strides = [1, 1]} : vector<32x128xf32> to vector<32x32xf32>
    %108 = arith.truncf %105 : vector<32x32xf32> to vector<32x32xbf16>
    %109 = arith.truncf %106 : vector<32x32xf32> to vector<32x32xbf16>
    %cst_39 = arith.constant dense<0.000000e+00> : vector<32x32xf32>
    %110 = tpu.matmul %108, %109, %cst_39 {dimension_numbers = #tpu.dot_dimension_numbers<[1], [1], [0], [0], [0, 0, 1, 0], [], []>} : vector<32x32xbf16>, vector<32x32xbf16>, vector<32x32xf32> -> vector<32x32xf32>
    %cst_40 = arith.constant 0.176776692 : f32
    %111 = vector.broadcast %cst_40 : f32 to vector<32x32xf32>
    %112 = arith.mulf %110, %111 : vector<32x32xf32>
    %113 = arith.addf %112, %9 : vector<32x32xf32>
    %cst_41 = arith.constant dense<0xFF800000> : vector<32xf32>
    %114 = vector.multi_reduction <maximumf>, %113, %cst_41 [1] : vector<32x32xf32> to vector<32xf32>
    %115 = vector.shape_cast %114 : vector<32xf32> to vector<32x1xf32>
    %116 = vector.broadcast %115 : vector<32x1xf32> to vector<32x32xf32>
    %117 = arith.subf %113, %116 : vector<32x32xf32>
    %118 = math.exp %117 : vector<32x32xf32>
    %cst_42 = arith.constant dense<0.000000e+00> : vector<32xf32>
    %119 = vector.multi_reduction <add>, %118, %cst_42 [1] : vector<32x32xf32> to vector<32xf32>
    %120 = vector.shape_cast %119 : vector<32xf32> to vector<32x1xf32>
    %121 = tpu.reciprocal %120 {approx = true} : vector<32x1xf32> -> vector<32x1xf32>
    %122 = vector.broadcast %121 : vector<32x1xf32> to vector<32x32xf32>
    %123 = arith.mulf %118, %122 : vector<32x32xf32>
    %124 = arith.truncf %123 : vector<32x32xf32> to vector<32x32xbf16>
    %125 = arith.truncf %107 : vector<32x32xf32> to vector<32x32xbf16>
    %cst_43 = arith.constant dense<0.000000e+00> : vector<32x32xf32>
    %126 = tpu.matmul %124, %125, %cst_43 {dimension_numbers = #tpu.dot_dimension_numbers<[1], [0], [0], [1], [0, 0, 1, 1], [], []>} : vector<32x32xbf16>, vector<32x32xbf16>, vector<32x32xf32> -> vector<32x32xf32>
    %127 = vector.extract_strided_slice %50 {offsets = [64, 0], sizes = [32, 128], strides = [1, 1]} : vector<128x128xbf16> to vector<32x128xbf16>
    %128 = arith.truncf %126 : vector<32x32xf32> to vector<32x32xbf16>
    %cst_44 = arith.constant dense<0.000000e+00> : vector<32x128xf32>
    %129 = tpu.matmul %128, %127, %cst_44 {dimension_numbers = #tpu.dot_dimension_numbers<[1], [0], [0], [1], [0, 0, 1, 1], [], []>} : vector<32x32xbf16>, vector<32x128xbf16>, vector<32x128xf32> -> vector<32x128xf32>
    %130 = arith.addf %104, %129 : vector<32x128xf32>
    %131 = vector.extract_strided_slice %47 {offsets = [0, 96], sizes = [32, 32], strides = [1, 1]} : vector<32x128xf32> to vector<32x32xf32>
    %132 = vector.extract_strided_slice %48 {offsets = [0, 96], sizes = [32, 32], strides = [1, 1]} : vector<32x128xf32> to vector<32x32xf32>
    %133 = vector.extract_strided_slice %49 {offsets = [0, 96], sizes = [32, 32], strides = [1, 1]} : vector<32x128xf32> to vector<32x32xf32>
    %134 = arith.truncf %131 : vector<32x32xf32> to vector<32x32xbf16>
    %135 = arith.truncf %132 : vector<32x32xf32> to vector<32x32xbf16>
    %cst_45 = arith.constant dense<0.000000e+00> : vector<32x32xf32>
    %136 = tpu.matmul %134, %135, %cst_45 {dimension_numbers = #tpu.dot_dimension_numbers<[1], [1], [0], [0], [0, 0, 1, 0], [], []>} : vector<32x32xbf16>, vector<32x32xbf16>, vector<32x32xf32> -> vector<32x32xf32>
    %cst_46 = arith.constant 0.176776692 : f32
    %137 = vector.broadcast %cst_46 : f32 to vector<32x32xf32>
    %138 = arith.mulf %136, %137 : vector<32x32xf32>
    %139 = arith.addf %138, %9 : vector<32x32xf32>
    %cst_47 = arith.constant dense<0xFF800000> : vector<32xf32>
    %140 = vector.multi_reduction <maximumf>, %139, %cst_47 [1] : vector<32x32xf32> to vector<32xf32>
    %141 = vector.shape_cast %140 : vector<32xf32> to vector<32x1xf32>
    %142 = vector.broadcast %141 : vector<32x1xf32> to vector<32x32xf32>
    %143 = arith.subf %139, %142 : vector<32x32xf32>
    %144 = math.exp %143 : vector<32x32xf32>
    %cst_48 = arith.constant dense<0.000000e+00> : vector<32xf32>
    %145 = vector.multi_reduction <add>, %144, %cst_48 [1] : vector<32x32xf32> to vector<32xf32>
    %146 = vector.shape_cast %145 : vector<32xf32> to vector<32x1xf32>
    %147 = tpu.reciprocal %146 {approx = true} : vector<32x1xf32> -> vector<32x1xf32>
    %148 = vector.broadcast %147 : vector<32x1xf32> to vector<32x32xf32>
    %149 = arith.mulf %144, %148 : vector<32x32xf32>
    %150 = arith.truncf %149 : vector<32x32xf32> to vector<32x32xbf16>
    %151 = arith.truncf %133 : vector<32x32xf32> to vector<32x32xbf16>
    %cst_49 = arith.constant dense<0.000000e+00> : vector<32x32xf32>
    %152 = tpu.matmul %150, %151, %cst_49 {dimension_numbers = #tpu.dot_dimension_numbers<[1], [0], [0], [1], [0, 0, 1, 1], [], []>} : vector<32x32xbf16>, vector<32x32xbf16>, vector<32x32xf32> -> vector<32x32xf32>
    %153 = vector.extract_strided_slice %50 {offsets = [96, 0], sizes = [32, 128], strides = [1, 1]} : vector<128x128xbf16> to vector<32x128xbf16>
    %154 = arith.truncf %152 : vector<32x32xf32> to vector<32x32xbf16>
    %cst_50 = arith.constant dense<0.000000e+00> : vector<32x128xf32>
    %155 = tpu.matmul %154, %153, %cst_50 {dimension_numbers = #tpu.dot_dimension_numbers<[1], [0], [0], [1], [0, 0, 1, 1], [], []>} : vector<32x32xbf16>, vector<32x128xbf16>, vector<32x128xf32> -> vector<32x128xf32>
    %156 = arith.addf %130, %155 : vector<32x128xf32>
    %157 = vector.broadcast %51 : vector<1x128xf32> to vector<32x128xf32>
    %158 = arith.addf %156, %157 : vector<32x128xf32>
    %159 = arith.addf %40, %158 : vector<32x128xf32>
    %c0_51 = arith.constant 0 : index
    %c0_52 = arith.constant 0 : index
    %160 = vector.load %arg11[%c0_51, %c0_52] : memref<1x128xf32, #tpu.memory_space<vmem>>, vector<1x128xf32>
    %c0_53 = arith.constant 0 : index
    %c0_54 = arith.constant 0 : index
    %161 = vector.load %arg12[%c0_53, %c0_54] : memref<1x128xf32, #tpu.memory_space<vmem>>, vector<1x128xf32>
    %cst_55 = arith.constant dense<0.000000e+00> : vector<32xf32>
    %162 = vector.multi_reduction <add>, %159, %cst_55 [1] : vector<32x128xf32> to vector<32xf32>
    %163 = vector.shape_cast %162 : vector<32xf32> to vector<32x1xf32>
    %cst_56 = arith.constant 1.280000e+02 : f32
    %164 = vector.broadcast %cst_56 : f32 to vector<32x1xf32>
    %165 = arith.divf %163, %164 : vector<32x1xf32>
    %166 = vector.broadcast %165 : vector<32x1xf32> to vector<32x128xf32>
    %167 = arith.subf %159, %166 : vector<32x128xf32>
    %168 = arith.mulf %167, %167 : vector<32x128xf32>
    %cst_57 = arith.constant dense<0.000000e+00> : vector<32xf32>
    %169 = vector.multi_reduction <add>, %168, %cst_57 [1] : vector<32x128xf32> to vector<32xf32>
    %170 = vector.shape_cast %169 : vector<32xf32> to vector<32x1xf32>
    %cst_58 = arith.constant 1.280000e+02 : f32
    %171 = vector.broadcast %cst_58 : f32 to vector<32x1xf32>
    %172 = arith.divf %170, %171 : vector<32x1xf32>
    %173 = vector.broadcast %165 : vector<32x1xf32> to vector<32x128xf32>
    %174 = arith.subf %159, %173 : vector<32x128xf32>
    %cst_59 = arith.constant 9.99999974E-6 : f32
    %175 = vector.broadcast %cst_59 : f32 to vector<32x1xf32>
    %176 = arith.addf %172, %175 : vector<32x1xf32>
    %177 = math.rsqrt %176 : vector<32x1xf32>
    %178 = vector.broadcast %177 : vector<32x1xf32> to vector<32x128xf32>
    %179 = arith.mulf %174, %178 : vector<32x128xf32>
    %180 = vector.broadcast %160 : vector<1x128xf32> to vector<32x128xf32>
    %181 = arith.mulf %179, %180 : vector<32x128xf32>
    %182 = vector.broadcast %161 : vector<1x128xf32> to vector<32x128xf32>
    %183 = arith.addf %181, %182 : vector<32x128xf32>
    %c0_60 = arith.constant 0 : index
    %c0_61 = arith.constant 0 : index
    %184 = vector.load %arg13[%c0_60, %c0_61] : memref<128x256xbf16, #tpu.memory_space<vmem>>, vector<128x256xbf16>
    %185 = arith.truncf %183 : vector<32x128xf32> to vector<32x128xbf16>
    %cst_62 = arith.constant dense<0.000000e+00> : vector<32x256xf32>
    %186 = tpu.matmul %185, %184, %cst_62 {dimension_numbers = #tpu.dot_dimension_numbers<[1], [0], [0], [1], [0, 0, 1, 1], [], []>} : vector<32x128xbf16>, vector<128x256xbf16>, vector<32x256xf32> -> vector<32x256xf32>
    %c0_63 = arith.constant 0 : index
    %c0_64 = arith.constant 0 : index
    %187 = vector.load %arg14[%c0_63, %c0_64] : memref<1x256xf32, #tpu.memory_space<vmem>>, vector<1x256xf32>
    %188 = vector.broadcast %187 : vector<1x256xf32> to vector<32x256xf32>
    %189 = arith.addf %186, %188 : vector<32x256xf32>
    %190 = arith.mulf %189, %189 : vector<32x256xf32>
    %191 = arith.mulf %189, %190 : vector<32x256xf32>
    %cst_65 = arith.constant 4.471500e-02 : f32
    %192 = vector.broadcast %cst_65 : f32 to vector<32x256xf32>
    %193 = arith.mulf %192, %191 : vector<32x256xf32>
    %194 = arith.addf %189, %193 : vector<32x256xf32>
    %cst_66 = arith.constant 0.797884583 : f32
    %195 = vector.broadcast %cst_66 : f32 to vector<32x256xf32>
    %196 = arith.mulf %195, %194 : vector<32x256xf32>
    %197 = math.tanh %196 : vector<32x256xf32>
    %cst_67 = arith.constant 1.000000e+00 : f32
    %198 = vector.broadcast %cst_67 : f32 to vector<32x256xf32>
    %199 = arith.addf %198, %197 : vector<32x256xf32>
    %cst_68 = arith.constant 5.000000e-01 : f32
    %200 = vector.broadcast %cst_68 : f32 to vector<32x256xf32>
    %201 = arith.mulf %200, %199 : vector<32x256xf32>
    %202 = arith.mulf %189, %201 : vector<32x256xf32>
    %c0_69 = arith.constant 0 : index
    %c0_70 = arith.constant 0 : index
    %203 = vector.load %arg15[%c0_69, %c0_70] : memref<256x128xbf16, #tpu.memory_space<vmem>>, vector<256x128xbf16>
    %204 = arith.truncf %202 : vector<32x256xf32> to vector<32x256xbf16>
    %cst_71 = arith.constant dense<0.000000e+00> : vector<32x128xf32>
    %205 = tpu.matmul %204, %203, %cst_71 {dimension_numbers = #tpu.dot_dimension_numbers<[1], [0], [0], [1], [0, 0, 1, 1], [], []>} : vector<32x256xbf16>, vector<256x128xbf16>, vector<32x128xf32> -> vector<32x128xf32>
    %c0_72 = arith.constant 0 : index
    %c0_73 = arith.constant 0 : index
    %206 = vector.load %arg16[%c0_72, %c0_73] : memref<1x128xf32, #tpu.memory_space<vmem>>, vector<1x128xf32>
    %207 = vector.broadcast %206 : vector<1x128xf32> to vector<32x128xf32>
    %208 = arith.addf %205, %207 : vector<32x128xf32>
    %209 = arith.addf %183, %208 : vector<32x128xf32>
    %c0_74 = arith.constant 0 : index
    %c0_75 = arith.constant 0 : index
    %210 = vector.load %arg17[%c0_74, %c0_75] : memref<1x128xf32, #tpu.memory_space<vmem>>, vector<1x128xf32>
    %c0_76 = arith.constant 0 : index
    %c0_77 = arith.constant 0 : index
    %211 = vector.load %arg18[%c0_76, %c0_77] : memref<1x128xf32, #tpu.memory_space<vmem>>, vector<1x128xf32>
    %cst_78 = arith.constant dense<0.000000e+00> : vector<32xf32>
    %212 = vector.multi_reduction <add>, %209, %cst_78 [1] : vector<32x128xf32> to vector<32xf32>
    %213 = vector.shape_cast %212 : vector<32xf32> to vector<32x1xf32>
    %cst_79 = arith.constant 1.280000e+02 : f32
    %214 = vector.broadcast %cst_79 : f32 to vector<32x1xf32>
    %215 = arith.divf %213, %214 : vector<32x1xf32>
    %216 = vector.broadcast %215 : vector<32x1xf32> to vector<32x128xf32>
    %217 = arith.subf %209, %216 : vector<32x128xf32>
    %218 = arith.mulf %217, %217 : vector<32x128xf32>
    %cst_80 = arith.constant dense<0.000000e+00> : vector<32xf32>
    %219 = vector.multi_reduction <add>, %218, %cst_80 [1] : vector<32x128xf32> to vector<32xf32>
    %220 = vector.shape_cast %219 : vector<32xf32> to vector<32x1xf32>
    %cst_81 = arith.constant 1.280000e+02 : f32
    %221 = vector.broadcast %cst_81 : f32 to vector<32x1xf32>
    %222 = arith.divf %220, %221 : vector<32x1xf32>
    %223 = vector.broadcast %215 : vector<32x1xf32> to vector<32x128xf32>
    %224 = arith.subf %209, %223 : vector<32x128xf32>
    %cst_82 = arith.constant 9.99999974E-6 : f32
    %225 = vector.broadcast %cst_82 : f32 to vector<32x1xf32>
    %226 = arith.addf %222, %225 : vector<32x1xf32>
    %227 = math.rsqrt %226 : vector<32x1xf32>
    %228 = vector.broadcast %227 : vector<32x1xf32> to vector<32x128xf32>
    %229 = arith.mulf %224, %228 : vector<32x128xf32>
    %230 = vector.broadcast %210 : vector<1x128xf32> to vector<32x128xf32>
    %231 = arith.mulf %229, %230 : vector<32x128xf32>
    %232 = vector.broadcast %211 : vector<1x128xf32> to vector<32x128xf32>
    %233 = arith.addf %231, %232 : vector<32x128xf32>
    %c0_83 = arith.constant 0 : index
    %c0_84 = arith.constant 0 : index
    %234 = vector.load %arg1[%c0_83, %c0_84] : memref<32x128xbf16, #tpu.memory_space<vmem>>, vector<32x128xbf16>
    %c0_85 = arith.constant 0 : index
    %c0_86 = arith.constant 0 : index
    %235 = vector.load %arg19[%c0_85, %c0_86] : memref<1x128xf32, #tpu.memory_space<vmem>>, vector<1x128xf32>
    %c0_87 = arith.constant 0 : index
    %c0_88 = arith.constant 0 : index
    %236 = vector.load %arg20[%c0_87, %c0_88] : memref<1x128xf32, #tpu.memory_space<vmem>>, vector<1x128xf32>
    %237 = arith.extf %234 : vector<32x128xbf16> to vector<32x128xf32>
    %cst_89 = arith.constant dense<0.000000e+00> : vector<32xf32>
    %238 = vector.multi_reduction <add>, %237, %cst_89 [1] : vector<32x128xf32> to vector<32xf32>
    %239 = vector.shape_cast %238 : vector<32xf32> to vector<32x1xf32>
    %cst_90 = arith.constant 1.280000e+02 : f32
    %240 = vector.broadcast %cst_90 : f32 to vector<32x1xf32>
    %241 = arith.divf %239, %240 : vector<32x1xf32>
    %242 = vector.broadcast %241 : vector<32x1xf32> to vector<32x128xf32>
    %243 = arith.subf %237, %242 : vector<32x128xf32>
    %244 = arith.mulf %243, %243 : vector<32x128xf32>
    %cst_91 = arith.constant dense<0.000000e+00> : vector<32xf32>
    %245 = vector.multi_reduction <add>, %244, %cst_91 [1] : vector<32x128xf32> to vector<32xf32>
    %246 = vector.shape_cast %245 : vector<32xf32> to vector<32x1xf32>
    %cst_92 = arith.constant 1.280000e+02 : f32
    %247 = vector.broadcast %cst_92 : f32 to vector<32x1xf32>
    %248 = arith.divf %246, %247 : vector<32x1xf32>
    %249 = vector.broadcast %241 : vector<32x1xf32> to vector<32x128xf32>
    %250 = arith.subf %237, %249 : vector<32x128xf32>
    %cst_93 = arith.constant 9.99999974E-6 : f32
    %251 = vector.broadcast %cst_93 : f32 to vector<32x1xf32>
    %252 = arith.addf %248, %251 : vector<32x1xf32>
    %253 = math.rsqrt %252 : vector<32x1xf32>
    %254 = vector.broadcast %253 : vector<32x1xf32> to vector<32x128xf32>
    %255 = arith.mulf %250, %254 : vector<32x128xf32>
    %256 = vector.broadcast %235 : vector<1x128xf32> to vector<32x128xf32>
    %257 = arith.mulf %255, %256 : vector<32x128xf32>
    %258 = vector.broadcast %236 : vector<1x128xf32> to vector<32x128xf32>
    %259 = arith.addf %257, %258 : vector<32x128xf32>
    %c0_94 = arith.constant 0 : index
    %c0_95 = arith.constant 0 : index
    %260 = vector.load %arg21[%c0_94, %c0_95] : memref<128x384xbf16, #tpu.memory_space<vmem>>, vector<128x384xbf16>
    %261 = arith.truncf %259 : vector<32x128xf32> to vector<32x128xbf16>
    %cst_96 = arith.constant dense<0.000000e+00> : vector<32x384xf32>
    %262 = tpu.matmul %261, %260, %cst_96 {dimension_numbers = #tpu.dot_dimension_numbers<[1], [0], [0], [1], [0, 0, 1, 1], [], []>} : vector<32x128xbf16>, vector<128x384xbf16>, vector<32x384xf32> -> vector<32x384xf32>
    %c0_97 = arith.constant 0 : index
    %c0_98 = arith.constant 0 : index
    %263 = vector.load %arg22[%c0_97, %c0_98] : memref<1x384xf32, #tpu.memory_space<vmem>>, vector<1x384xf32>
    %264 = vector.broadcast %263 : vector<1x384xf32> to vector<32x384xf32>
    %265 = arith.addf %262, %264 : vector<32x384xf32>
    %266 = vector.extract_strided_slice %265 {offsets = [0, 0], sizes = [32, 128], strides = [1, 1]} : vector<32x384xf32> to vector<32x128xf32>
    %267 = vector.extract_strided_slice %265 {offsets = [0, 128], sizes = [32, 128], strides = [1, 1]} : vector<32x384xf32> to vector<32x128xf32>
    %268 = vector.extract_strided_slice %265 {offsets = [0, 256], sizes = [32, 128], strides = [1, 1]} : vector<32x384xf32> to vector<32x128xf32>
    %c0_99 = arith.constant 0 : index
    %c0_100 = arith.constant 0 : index
    %269 = vector.load %arg23[%c0_99, %c0_100] : memref<128x128xbf16, #tpu.memory_space<vmem>>, vector<128x128xbf16>
    %c0_101 = arith.constant 0 : index
    %c0_102 = arith.constant 0 : index
    %270 = vector.load %arg24[%c0_101, %c0_102] : memref<1x128xf32, #tpu.memory_space<vmem>>, vector<1x128xf32>
    %cst_103 = arith.constant 0.000000e+00 : f32
    %271 = vector.broadcast %cst_103 : f32 to vector<32x128xf32>
    %272 = vector.extract_strided_slice %266 {offsets = [0, 0], sizes = [32, 32], strides = [1, 1]} : vector<32x128xf32> to vector<32x32xf32>
    %273 = vector.extract_strided_slice %267 {offsets = [0, 0], sizes = [32, 32], strides = [1, 1]} : vector<32x128xf32> to vector<32x32xf32>
    %274 = vector.extract_strided_slice %268 {offsets = [0, 0], sizes = [32, 32], strides = [1, 1]} : vector<32x128xf32> to vector<32x32xf32>
    %275 = arith.truncf %272 : vector<32x32xf32> to vector<32x32xbf16>
    %276 = arith.truncf %273 : vector<32x32xf32> to vector<32x32xbf16>
    %cst_104 = arith.constant dense<0.000000e+00> : vector<32x32xf32>
    %277 = tpu.matmul %275, %276, %cst_104 {dimension_numbers = #tpu.dot_dimension_numbers<[1], [1], [0], [0], [0, 0, 1, 0], [], []>} : vector<32x32xbf16>, vector<32x32xbf16>, vector<32x32xf32> -> vector<32x32xf32>
    %cst_105 = arith.constant 0.176776692 : f32
    %278 = vector.broadcast %cst_105 : f32 to vector<32x32xf32>
    %279 = arith.mulf %277, %278 : vector<32x32xf32>
    %280 = arith.addf %279, %14 : vector<32x32xf32>
    %cst_106 = arith.constant dense<0xFF800000> : vector<32xf32>
    %281 = vector.multi_reduction <maximumf>, %280, %cst_106 [1] : vector<32x32xf32> to vector<32xf32>
    %282 = vector.shape_cast %281 : vector<32xf32> to vector<32x1xf32>
    %283 = vector.broadcast %282 : vector<32x1xf32> to vector<32x32xf32>
    %284 = arith.subf %280, %283 : vector<32x32xf32>
    %285 = math.exp %284 : vector<32x32xf32>
    %cst_107 = arith.constant dense<0.000000e+00> : vector<32xf32>
    %286 = vector.multi_reduction <add>, %285, %cst_107 [1] : vector<32x32xf32> to vector<32xf32>
    %287 = vector.shape_cast %286 : vector<32xf32> to vector<32x1xf32>
    %288 = tpu.reciprocal %287 {approx = true} : vector<32x1xf32> -> vector<32x1xf32>
    %289 = vector.broadcast %288 : vector<32x1xf32> to vector<32x32xf32>
    %290 = arith.mulf %285, %289 : vector<32x32xf32>
    %291 = arith.truncf %290 : vector<32x32xf32> to vector<32x32xbf16>
    %292 = arith.truncf %274 : vector<32x32xf32> to vector<32x32xbf16>
    %cst_108 = arith.constant dense<0.000000e+00> : vector<32x32xf32>
    %293 = tpu.matmul %291, %292, %cst_108 {dimension_numbers = #tpu.dot_dimension_numbers<[1], [0], [0], [1], [0, 0, 1, 1], [], []>} : vector<32x32xbf16>, vector<32x32xbf16>, vector<32x32xf32> -> vector<32x32xf32>
    %294 = vector.extract_strided_slice %269 {offsets = [0, 0], sizes = [32, 128], strides = [1, 1]} : vector<128x128xbf16> to vector<32x128xbf16>
    %295 = arith.truncf %293 : vector<32x32xf32> to vector<32x32xbf16>
    %cst_109 = arith.constant dense<0.000000e+00> : vector<32x128xf32>
    %296 = tpu.matmul %295, %294, %cst_109 {dimension_numbers = #tpu.dot_dimension_numbers<[1], [0], [0], [1], [0, 0, 1, 1], [], []>} : vector<32x32xbf16>, vector<32x128xbf16>, vector<32x128xf32> -> vector<32x128xf32>
    %297 = arith.addf %271, %296 : vector<32x128xf32>
    %298 = vector.extract_strided_slice %266 {offsets = [0, 32], sizes = [32, 32], strides = [1, 1]} : vector<32x128xf32> to vector<32x32xf32>
    %299 = vector.extract_strided_slice %267 {offsets = [0, 32], sizes = [32, 32], strides = [1, 1]} : vector<32x128xf32> to vector<32x32xf32>
    %300 = vector.extract_strided_slice %268 {offsets = [0, 32], sizes = [32, 32], strides = [1, 1]} : vector<32x128xf32> to vector<32x32xf32>
    %301 = arith.truncf %298 : vector<32x32xf32> to vector<32x32xbf16>
    %302 = arith.truncf %299 : vector<32x32xf32> to vector<32x32xbf16>
    %cst_110 = arith.constant dense<0.000000e+00> : vector<32x32xf32>
    %303 = tpu.matmul %301, %302, %cst_110 {dimension_numbers = #tpu.dot_dimension_numbers<[1], [1], [0], [0], [0, 0, 1, 0], [], []>} : vector<32x32xbf16>, vector<32x32xbf16>, vector<32x32xf32> -> vector<32x32xf32>
    %cst_111 = arith.constant 0.176776692 : f32
    %304 = vector.broadcast %cst_111 : f32 to vector<32x32xf32>
    %305 = arith.mulf %303, %304 : vector<32x32xf32>
    %306 = arith.addf %305, %14 : vector<32x32xf32>
    %cst_112 = arith.constant dense<0xFF800000> : vector<32xf32>
    %307 = vector.multi_reduction <maximumf>, %306, %cst_112 [1] : vector<32x32xf32> to vector<32xf32>
    %308 = vector.shape_cast %307 : vector<32xf32> to vector<32x1xf32>
    %309 = vector.broadcast %308 : vector<32x1xf32> to vector<32x32xf32>
    %310 = arith.subf %306, %309 : vector<32x32xf32>
    %311 = math.exp %310 : vector<32x32xf32>
    %cst_113 = arith.constant dense<0.000000e+00> : vector<32xf32>
    %312 = vector.multi_reduction <add>, %311, %cst_113 [1] : vector<32x32xf32> to vector<32xf32>
    %313 = vector.shape_cast %312 : vector<32xf32> to vector<32x1xf32>
    %314 = tpu.reciprocal %313 {approx = true} : vector<32x1xf32> -> vector<32x1xf32>
    %315 = vector.broadcast %314 : vector<32x1xf32> to vector<32x32xf32>
    %316 = arith.mulf %311, %315 : vector<32x32xf32>
    %317 = arith.truncf %316 : vector<32x32xf32> to vector<32x32xbf16>
    %318 = arith.truncf %300 : vector<32x32xf32> to vector<32x32xbf16>
    %cst_114 = arith.constant dense<0.000000e+00> : vector<32x32xf32>
    %319 = tpu.matmul %317, %318, %cst_114 {dimension_numbers = #tpu.dot_dimension_numbers<[1], [0], [0], [1], [0, 0, 1, 1], [], []>} : vector<32x32xbf16>, vector<32x32xbf16>, vector<32x32xf32> -> vector<32x32xf32>
    %320 = vector.extract_strided_slice %269 {offsets = [32, 0], sizes = [32, 128], strides = [1, 1]} : vector<128x128xbf16> to vector<32x128xbf16>
    %321 = arith.truncf %319 : vector<32x32xf32> to vector<32x32xbf16>
    %cst_115 = arith.constant dense<0.000000e+00> : vector<32x128xf32>
    %322 = tpu.matmul %321, %320, %cst_115 {dimension_numbers = #tpu.dot_dimension_numbers<[1], [0], [0], [1], [0, 0, 1, 1], [], []>} : vector<32x32xbf16>, vector<32x128xbf16>, vector<32x128xf32> -> vector<32x128xf32>
    %323 = arith.addf %297, %322 : vector<32x128xf32>
    %324 = vector.extract_strided_slice %266 {offsets = [0, 64], sizes = [32, 32], strides = [1, 1]} : vector<32x128xf32> to vector<32x32xf32>
    %325 = vector.extract_strided_slice %267 {offsets = [0, 64], sizes = [32, 32], strides = [1, 1]} : vector<32x128xf32> to vector<32x32xf32>
    %326 = vector.extract_strided_slice %268 {offsets = [0, 64], sizes = [32, 32], strides = [1, 1]} : vector<32x128xf32> to vector<32x32xf32>
    %327 = arith.truncf %324 : vector<32x32xf32> to vector<32x32xbf16>
    %328 = arith.truncf %325 : vector<32x32xf32> to vector<32x32xbf16>
    %cst_116 = arith.constant dense<0.000000e+00> : vector<32x32xf32>
    %329 = tpu.matmul %327, %328, %cst_116 {dimension_numbers = #tpu.dot_dimension_numbers<[1], [1], [0], [0], [0, 0, 1, 0], [], []>} : vector<32x32xbf16>, vector<32x32xbf16>, vector<32x32xf32> -> vector<32x32xf32>
    %cst_117 = arith.constant 0.176776692 : f32
    %330 = vector.broadcast %cst_117 : f32 to vector<32x32xf32>
    %331 = arith.mulf %329, %330 : vector<32x32xf32>
    %332 = arith.addf %331, %14 : vector<32x32xf32>
    %cst_118 = arith.constant dense<0xFF800000> : vector<32xf32>
    %333 = vector.multi_reduction <maximumf>, %332, %cst_118 [1] : vector<32x32xf32> to vector<32xf32>
    %334 = vector.shape_cast %333 : vector<32xf32> to vector<32x1xf32>
    %335 = vector.broadcast %334 : vector<32x1xf32> to vector<32x32xf32>
    %336 = arith.subf %332, %335 : vector<32x32xf32>
    %337 = math.exp %336 : vector<32x32xf32>
    %cst_119 = arith.constant dense<0.000000e+00> : vector<32xf32>
    %338 = vector.multi_reduction <add>, %337, %cst_119 [1] : vector<32x32xf32> to vector<32xf32>
    %339 = vector.shape_cast %338 : vector<32xf32> to vector<32x1xf32>
    %340 = tpu.reciprocal %339 {approx = true} : vector<32x1xf32> -> vector<32x1xf32>
    %341 = vector.broadcast %340 : vector<32x1xf32> to vector<32x32xf32>
    %342 = arith.mulf %337, %341 : vector<32x32xf32>
    %343 = arith.truncf %342 : vector<32x32xf32> to vector<32x32xbf16>
    %344 = arith.truncf %326 : vector<32x32xf32> to vector<32x32xbf16>
    %cst_120 = arith.constant dense<0.000000e+00> : vector<32x32xf32>
    %345 = tpu.matmul %343, %344, %cst_120 {dimension_numbers = #tpu.dot_dimension_numbers<[1], [0], [0], [1], [0, 0, 1, 1], [], []>} : vector<32x32xbf16>, vector<32x32xbf16>, vector<32x32xf32> -> vector<32x32xf32>
    %346 = vector.extract_strided_slice %269 {offsets = [64, 0], sizes = [32, 128], strides = [1, 1]} : vector<128x128xbf16> to vector<32x128xbf16>
    %347 = arith.truncf %345 : vector<32x32xf32> to vector<32x32xbf16>
    %cst_121 = arith.constant dense<0.000000e+00> : vector<32x128xf32>
    %348 = tpu.matmul %347, %346, %cst_121 {dimension_numbers = #tpu.dot_dimension_numbers<[1], [0], [0], [1], [0, 0, 1, 1], [], []>} : vector<32x32xbf16>, vector<32x128xbf16>, vector<32x128xf32> -> vector<32x128xf32>
    %349 = arith.addf %323, %348 : vector<32x128xf32>
    %350 = vector.extract_strided_slice %266 {offsets = [0, 96], sizes = [32, 32], strides = [1, 1]} : vector<32x128xf32> to vector<32x32xf32>
    %351 = vector.extract_strided_slice %267 {offsets = [0, 96], sizes = [32, 32], strides = [1, 1]} : vector<32x128xf32> to vector<32x32xf32>
    %352 = vector.extract_strided_slice %268 {offsets = [0, 96], sizes = [32, 32], strides = [1, 1]} : vector<32x128xf32> to vector<32x32xf32>
    %353 = arith.truncf %350 : vector<32x32xf32> to vector<32x32xbf16>
    %354 = arith.truncf %351 : vector<32x32xf32> to vector<32x32xbf16>
    %cst_122 = arith.constant dense<0.000000e+00> : vector<32x32xf32>
    %355 = tpu.matmul %353, %354, %cst_122 {dimension_numbers = #tpu.dot_dimension_numbers<[1], [1], [0], [0], [0, 0, 1, 0], [], []>} : vector<32x32xbf16>, vector<32x32xbf16>, vector<32x32xf32> -> vector<32x32xf32>
    %cst_123 = arith.constant 0.176776692 : f32
    %356 = vector.broadcast %cst_123 : f32 to vector<32x32xf32>
    %357 = arith.mulf %355, %356 : vector<32x32xf32>
    %358 = arith.addf %357, %14 : vector<32x32xf32>
    %cst_124 = arith.constant dense<0xFF800000> : vector<32xf32>
    %359 = vector.multi_reduction <maximumf>, %358, %cst_124 [1] : vector<32x32xf32> to vector<32xf32>
    %360 = vector.shape_cast %359 : vector<32xf32> to vector<32x1xf32>
    %361 = vector.broadcast %360 : vector<32x1xf32> to vector<32x32xf32>
    %362 = arith.subf %358, %361 : vector<32x32xf32>
    %363 = math.exp %362 : vector<32x32xf32>
    %cst_125 = arith.constant dense<0.000000e+00> : vector<32xf32>
    %364 = vector.multi_reduction <add>, %363, %cst_125 [1] : vector<32x32xf32> to vector<32xf32>
    %365 = vector.shape_cast %364 : vector<32xf32> to vector<32x1xf32>
    %366 = tpu.reciprocal %365 {approx = true} : vector<32x1xf32> -> vector<32x1xf32>
    %367 = vector.broadcast %366 : vector<32x1xf32> to vector<32x32xf32>
    %368 = arith.mulf %363, %367 : vector<32x32xf32>
    %369 = arith.truncf %368 : vector<32x32xf32> to vector<32x32xbf16>
    %370 = arith.truncf %352 : vector<32x32xf32> to vector<32x32xbf16>
    %cst_126 = arith.constant dense<0.000000e+00> : vector<32x32xf32>
    %371 = tpu.matmul %369, %370, %cst_126 {dimension_numbers = #tpu.dot_dimension_numbers<[1], [0], [0], [1], [0, 0, 1, 1], [], []>} : vector<32x32xbf16>, vector<32x32xbf16>, vector<32x32xf32> -> vector<32x32xf32>
    %372 = vector.extract_strided_slice %269 {offsets = [96, 0], sizes = [32, 128], strides = [1, 1]} : vector<128x128xbf16> to vector<32x128xbf16>
    %373 = arith.truncf %371 : vector<32x32xf32> to vector<32x32xbf16>
    %cst_127 = arith.constant dense<0.000000e+00> : vector<32x128xf32>
    %374 = tpu.matmul %373, %372, %cst_127 {dimension_numbers = #tpu.dot_dimension_numbers<[1], [0], [0], [1], [0, 0, 1, 1], [], []>} : vector<32x32xbf16>, vector<32x128xbf16>, vector<32x128xf32> -> vector<32x128xf32>
    %375 = arith.addf %349, %374 : vector<32x128xf32>
    %376 = vector.broadcast %270 : vector<1x128xf32> to vector<32x128xf32>
    %377 = arith.addf %375, %376 : vector<32x128xf32>
    %378 = arith.addf %259, %377 : vector<32x128xf32>
    %c0_128 = arith.constant 0 : index
    %c0_129 = arith.constant 0 : index
    %379 = vector.load %arg25[%c0_128, %c0_129] : memref<1x128xf32, #tpu.memory_space<vmem>>, vector<1x128xf32>
    %c0_130 = arith.constant 0 : index
    %c0_131 = arith.constant 0 : index
    %380 = vector.load %arg26[%c0_130, %c0_131] : memref<1x128xf32, #tpu.memory_space<vmem>>, vector<1x128xf32>
    %cst_132 = arith.constant dense<0.000000e+00> : vector<32xf32>
    %381 = vector.multi_reduction <add>, %378, %cst_132 [1] : vector<32x128xf32> to vector<32xf32>
    %382 = vector.shape_cast %381 : vector<32xf32> to vector<32x1xf32>
    %cst_133 = arith.constant 1.280000e+02 : f32
    %383 = vector.broadcast %cst_133 : f32 to vector<32x1xf32>
    %384 = arith.divf %382, %383 : vector<32x1xf32>
    %385 = vector.broadcast %384 : vector<32x1xf32> to vector<32x128xf32>
    %386 = arith.subf %378, %385 : vector<32x128xf32>
    %387 = arith.mulf %386, %386 : vector<32x128xf32>
    %cst_134 = arith.constant dense<0.000000e+00> : vector<32xf32>
    %388 = vector.multi_reduction <add>, %387, %cst_134 [1] : vector<32x128xf32> to vector<32xf32>
    %389 = vector.shape_cast %388 : vector<32xf32> to vector<32x1xf32>
    %cst_135 = arith.constant 1.280000e+02 : f32
    %390 = vector.broadcast %cst_135 : f32 to vector<32x1xf32>
    %391 = arith.divf %389, %390 : vector<32x1xf32>
    %392 = vector.broadcast %384 : vector<32x1xf32> to vector<32x128xf32>
    %393 = arith.subf %378, %392 : vector<32x128xf32>
    %cst_136 = arith.constant 9.99999974E-6 : f32
    %394 = vector.broadcast %cst_136 : f32 to vector<32x1xf32>
    %395 = arith.addf %391, %394 : vector<32x1xf32>
    %396 = math.rsqrt %395 : vector<32x1xf32>
    %397 = vector.broadcast %396 : vector<32x1xf32> to vector<32x128xf32>
    %398 = arith.mulf %393, %397 : vector<32x128xf32>
    %399 = vector.broadcast %379 : vector<1x128xf32> to vector<32x128xf32>
    %400 = arith.mulf %398, %399 : vector<32x128xf32>
    %401 = vector.broadcast %380 : vector<1x128xf32> to vector<32x128xf32>
    %402 = arith.addf %400, %401 : vector<32x128xf32>
    %c0_137 = arith.constant 0 : index
    %c0_138 = arith.constant 0 : index
    %403 = vector.load %arg27[%c0_137, %c0_138] : memref<128x128xbf16, #tpu.memory_space<vmem>>, vector<128x128xbf16>
    %404 = arith.truncf %402 : vector<32x128xf32> to vector<32x128xbf16>
    %cst_139 = arith.constant dense<0.000000e+00> : vector<32x128xf32>
    %405 = tpu.matmul %404, %403, %cst_139 {dimension_numbers = #tpu.dot_dimension_numbers<[1], [0], [0], [1], [0, 0, 1, 1], [], []>} : vector<32x128xbf16>, vector<128x128xbf16>, vector<32x128xf32> -> vector<32x128xf32>
    %c0_140 = arith.constant 0 : index
    %c0_141 = arith.constant 0 : index
    %406 = vector.load %arg28[%c0_140, %c0_141] : memref<1x128xf32, #tpu.memory_space<vmem>>, vector<1x128xf32>
    %407 = vector.broadcast %406 : vector<1x128xf32> to vector<32x128xf32>
    %408 = arith.addf %405, %407 : vector<32x128xf32>
    %c0_142 = arith.constant 0 : index
    %c0_143 = arith.constant 0 : index
    %409 = vector.load %arg29[%c0_142, %c0_143] : memref<128x256xbf16, #tpu.memory_space<vmem>>, vector<128x256xbf16>
    %410 = arith.truncf %233 : vector<32x128xf32> to vector<32x128xbf16>
    %cst_144 = arith.constant dense<0.000000e+00> : vector<32x256xf32>
    %411 = tpu.matmul %410, %409, %cst_144 {dimension_numbers = #tpu.dot_dimension_numbers<[1], [0], [0], [1], [0, 0, 1, 1], [], []>} : vector<32x128xbf16>, vector<128x256xbf16>, vector<32x256xf32> -> vector<32x256xf32>
    %c0_145 = arith.constant 0 : index
    %c0_146 = arith.constant 0 : index
    %412 = vector.load %arg30[%c0_145, %c0_146] : memref<1x256xf32, #tpu.memory_space<vmem>>, vector<1x256xf32>
    %413 = vector.broadcast %412 : vector<1x256xf32> to vector<32x256xf32>
    %414 = arith.addf %411, %413 : vector<32x256xf32>
    %415 = vector.extract_strided_slice %414 {offsets = [0, 0], sizes = [32, 128], strides = [1, 1]} : vector<32x256xf32> to vector<32x128xf32>
    %416 = vector.extract_strided_slice %414 {offsets = [0, 128], sizes = [32, 128], strides = [1, 1]} : vector<32x256xf32> to vector<32x128xf32>
    %c0_147 = arith.constant 0 : index
    %c0_148 = arith.constant 0 : index
    %417 = vector.load %arg31[%c0_147, %c0_148] : memref<128x128xbf16, #tpu.memory_space<vmem>>, vector<128x128xbf16>
    %c0_149 = arith.constant 0 : index
    %c0_150 = arith.constant 0 : index
    %418 = vector.load %arg32[%c0_149, %c0_150] : memref<1x128xf32, #tpu.memory_space<vmem>>, vector<1x128xf32>
    %cst_151 = arith.constant 0.000000e+00 : f32
    %419 = vector.broadcast %cst_151 : f32 to vector<32x128xf32>
    %420 = vector.extract_strided_slice %408 {offsets = [0, 0], sizes = [32, 32], strides = [1, 1]} : vector<32x128xf32> to vector<32x32xf32>
    %421 = vector.extract_strided_slice %415 {offsets = [0, 0], sizes = [32, 32], strides = [1, 1]} : vector<32x128xf32> to vector<32x32xf32>
    %422 = vector.extract_strided_slice %416 {offsets = [0, 0], sizes = [32, 32], strides = [1, 1]} : vector<32x128xf32> to vector<32x32xf32>
    %423 = arith.truncf %420 : vector<32x32xf32> to vector<32x32xbf16>
    %424 = arith.truncf %421 : vector<32x32xf32> to vector<32x32xbf16>
    %cst_152 = arith.constant dense<0.000000e+00> : vector<32x32xf32>
    %425 = tpu.matmul %423, %424, %cst_152 {dimension_numbers = #tpu.dot_dimension_numbers<[1], [1], [0], [0], [0, 0, 1, 0], [], []>} : vector<32x32xbf16>, vector<32x32xbf16>, vector<32x32xf32> -> vector<32x32xf32>
    %cst_153 = arith.constant 0.176776692 : f32
    %426 = vector.broadcast %cst_153 : f32 to vector<32x32xf32>
    %427 = arith.mulf %425, %426 : vector<32x32xf32>
    %428 = arith.addf %427, %9 : vector<32x32xf32>
    %cst_154 = arith.constant dense<0xFF800000> : vector<32xf32>
    %429 = vector.multi_reduction <maximumf>, %428, %cst_154 [1] : vector<32x32xf32> to vector<32xf32>
    %430 = vector.shape_cast %429 : vector<32xf32> to vector<32x1xf32>
    %431 = vector.broadcast %430 : vector<32x1xf32> to vector<32x32xf32>
    %432 = arith.subf %428, %431 : vector<32x32xf32>
    %433 = math.exp %432 : vector<32x32xf32>
    %cst_155 = arith.constant dense<0.000000e+00> : vector<32xf32>
    %434 = vector.multi_reduction <add>, %433, %cst_155 [1] : vector<32x32xf32> to vector<32xf32>
    %435 = vector.shape_cast %434 : vector<32xf32> to vector<32x1xf32>
    %436 = tpu.reciprocal %435 {approx = true} : vector<32x1xf32> -> vector<32x1xf32>
    %437 = vector.broadcast %436 : vector<32x1xf32> to vector<32x32xf32>
    %438 = arith.mulf %433, %437 : vector<32x32xf32>
    %439 = arith.truncf %438 : vector<32x32xf32> to vector<32x32xbf16>
    %440 = arith.truncf %422 : vector<32x32xf32> to vector<32x32xbf16>
    %cst_156 = arith.constant dense<0.000000e+00> : vector<32x32xf32>
    %441 = tpu.matmul %439, %440, %cst_156 {dimension_numbers = #tpu.dot_dimension_numbers<[1], [0], [0], [1], [0, 0, 1, 1], [], []>} : vector<32x32xbf16>, vector<32x32xbf16>, vector<32x32xf32> -> vector<32x32xf32>
    %442 = vector.extract_strided_slice %417 {offsets = [0, 0], sizes = [32, 128], strides = [1, 1]} : vector<128x128xbf16> to vector<32x128xbf16>
    %443 = arith.truncf %441 : vector<32x32xf32> to vector<32x32xbf16>
    %cst_157 = arith.constant dense<0.000000e+00> : vector<32x128xf32>
    %444 = tpu.matmul %443, %442, %cst_157 {dimension_numbers = #tpu.dot_dimension_numbers<[1], [0], [0], [1], [0, 0, 1, 1], [], []>} : vector<32x32xbf16>, vector<32x128xbf16>, vector<32x128xf32> -> vector<32x128xf32>
    %445 = arith.addf %419, %444 : vector<32x128xf32>
    %446 = vector.extract_strided_slice %408 {offsets = [0, 32], sizes = [32, 32], strides = [1, 1]} : vector<32x128xf32> to vector<32x32xf32>
    %447 = vector.extract_strided_slice %415 {offsets = [0, 32], sizes = [32, 32], strides = [1, 1]} : vector<32x128xf32> to vector<32x32xf32>
    %448 = vector.extract_strided_slice %416 {offsets = [0, 32], sizes = [32, 32], strides = [1, 1]} : vector<32x128xf32> to vector<32x32xf32>
    %449 = arith.truncf %446 : vector<32x32xf32> to vector<32x32xbf16>
    %450 = arith.truncf %447 : vector<32x32xf32> to vector<32x32xbf16>
    %cst_158 = arith.constant dense<0.000000e+00> : vector<32x32xf32>
    %451 = tpu.matmul %449, %450, %cst_158 {dimension_numbers = #tpu.dot_dimension_numbers<[1], [1], [0], [0], [0, 0, 1, 0], [], []>} : vector<32x32xbf16>, vector<32x32xbf16>, vector<32x32xf32> -> vector<32x32xf32>
    %cst_159 = arith.constant 0.176776692 : f32
    %452 = vector.broadcast %cst_159 : f32 to vector<32x32xf32>
    %453 = arith.mulf %451, %452 : vector<32x32xf32>
    %454 = arith.addf %453, %9 : vector<32x32xf32>
    %cst_160 = arith.constant dense<0xFF800000> : vector<32xf32>
    %455 = vector.multi_reduction <maximumf>, %454, %cst_160 [1] : vector<32x32xf32> to vector<32xf32>
    %456 = vector.shape_cast %455 : vector<32xf32> to vector<32x1xf32>
    %457 = vector.broadcast %456 : vector<32x1xf32> to vector<32x32xf32>
    %458 = arith.subf %454, %457 : vector<32x32xf32>
    %459 = math.exp %458 : vector<32x32xf32>
    %cst_161 = arith.constant dense<0.000000e+00> : vector<32xf32>
    %460 = vector.multi_reduction <add>, %459, %cst_161 [1] : vector<32x32xf32> to vector<32xf32>
    %461 = vector.shape_cast %460 : vector<32xf32> to vector<32x1xf32>
    %462 = tpu.reciprocal %461 {approx = true} : vector<32x1xf32> -> vector<32x1xf32>
    %463 = vector.broadcast %462 : vector<32x1xf32> to vector<32x32xf32>
    %464 = arith.mulf %459, %463 : vector<32x32xf32>
    %465 = arith.truncf %464 : vector<32x32xf32> to vector<32x32xbf16>
    %466 = arith.truncf %448 : vector<32x32xf32> to vector<32x32xbf16>
    %cst_162 = arith.constant dense<0.000000e+00> : vector<32x32xf32>
    %467 = tpu.matmul %465, %466, %cst_162 {dimension_numbers = #tpu.dot_dimension_numbers<[1], [0], [0], [1], [0, 0, 1, 1], [], []>} : vector<32x32xbf16>, vector<32x32xbf16>, vector<32x32xf32> -> vector<32x32xf32>
    %468 = vector.extract_strided_slice %417 {offsets = [32, 0], sizes = [32, 128], strides = [1, 1]} : vector<128x128xbf16> to vector<32x128xbf16>
    %469 = arith.truncf %467 : vector<32x32xf32> to vector<32x32xbf16>
    %cst_163 = arith.constant dense<0.000000e+00> : vector<32x128xf32>
    %470 = tpu.matmul %469, %468, %cst_163 {dimension_numbers = #tpu.dot_dimension_numbers<[1], [0], [0], [1], [0, 0, 1, 1], [], []>} : vector<32x32xbf16>, vector<32x128xbf16>, vector<32x128xf32> -> vector<32x128xf32>
    %471 = arith.addf %445, %470 : vector<32x128xf32>
    %472 = vector.extract_strided_slice %408 {offsets = [0, 64], sizes = [32, 32], strides = [1, 1]} : vector<32x128xf32> to vector<32x32xf32>
    %473 = vector.extract_strided_slice %415 {offsets = [0, 64], sizes = [32, 32], strides = [1, 1]} : vector<32x128xf32> to vector<32x32xf32>
    %474 = vector.extract_strided_slice %416 {offsets = [0, 64], sizes = [32, 32], strides = [1, 1]} : vector<32x128xf32> to vector<32x32xf32>
    %475 = arith.truncf %472 : vector<32x32xf32> to vector<32x32xbf16>
    %476 = arith.truncf %473 : vector<32x32xf32> to vector<32x32xbf16>
    %cst_164 = arith.constant dense<0.000000e+00> : vector<32x32xf32>
    %477 = tpu.matmul %475, %476, %cst_164 {dimension_numbers = #tpu.dot_dimension_numbers<[1], [1], [0], [0], [0, 0, 1, 0], [], []>} : vector<32x32xbf16>, vector<32x32xbf16>, vector<32x32xf32> -> vector<32x32xf32>
    %cst_165 = arith.constant 0.176776692 : f32
    %478 = vector.broadcast %cst_165 : f32 to vector<32x32xf32>
    %479 = arith.mulf %477, %478 : vector<32x32xf32>
    %480 = arith.addf %479, %9 : vector<32x32xf32>
    %cst_166 = arith.constant dense<0xFF800000> : vector<32xf32>
    %481 = vector.multi_reduction <maximumf>, %480, %cst_166 [1] : vector<32x32xf32> to vector<32xf32>
    %482 = vector.shape_cast %481 : vector<32xf32> to vector<32x1xf32>
    %483 = vector.broadcast %482 : vector<32x1xf32> to vector<32x32xf32>
    %484 = arith.subf %480, %483 : vector<32x32xf32>
    %485 = math.exp %484 : vector<32x32xf32>
    %cst_167 = arith.constant dense<0.000000e+00> : vector<32xf32>
    %486 = vector.multi_reduction <add>, %485, %cst_167 [1] : vector<32x32xf32> to vector<32xf32>
    %487 = vector.shape_cast %486 : vector<32xf32> to vector<32x1xf32>
    %488 = tpu.reciprocal %487 {approx = true} : vector<32x1xf32> -> vector<32x1xf32>
    %489 = vector.broadcast %488 : vector<32x1xf32> to vector<32x32xf32>
    %490 = arith.mulf %485, %489 : vector<32x32xf32>
    %491 = arith.truncf %490 : vector<32x32xf32> to vector<32x32xbf16>
    %492 = arith.truncf %474 : vector<32x32xf32> to vector<32x32xbf16>
    %cst_168 = arith.constant dense<0.000000e+00> : vector<32x32xf32>
    %493 = tpu.matmul %491, %492, %cst_168 {dimension_numbers = #tpu.dot_dimension_numbers<[1], [0], [0], [1], [0, 0, 1, 1], [], []>} : vector<32x32xbf16>, vector<32x32xbf16>, vector<32x32xf32> -> vector<32x32xf32>
    %494 = vector.extract_strided_slice %417 {offsets = [64, 0], sizes = [32, 128], strides = [1, 1]} : vector<128x128xbf16> to vector<32x128xbf16>
    %495 = arith.truncf %493 : vector<32x32xf32> to vector<32x32xbf16>
    %cst_169 = arith.constant dense<0.000000e+00> : vector<32x128xf32>
    %496 = tpu.matmul %495, %494, %cst_169 {dimension_numbers = #tpu.dot_dimension_numbers<[1], [0], [0], [1], [0, 0, 1, 1], [], []>} : vector<32x32xbf16>, vector<32x128xbf16>, vector<32x128xf32> -> vector<32x128xf32>
    %497 = arith.addf %471, %496 : vector<32x128xf32>
    %498 = vector.extract_strided_slice %408 {offsets = [0, 96], sizes = [32, 32], strides = [1, 1]} : vector<32x128xf32> to vector<32x32xf32>
    %499 = vector.extract_strided_slice %415 {offsets = [0, 96], sizes = [32, 32], strides = [1, 1]} : vector<32x128xf32> to vector<32x32xf32>
    %500 = vector.extract_strided_slice %416 {offsets = [0, 96], sizes = [32, 32], strides = [1, 1]} : vector<32x128xf32> to vector<32x32xf32>
    %501 = arith.truncf %498 : vector<32x32xf32> to vector<32x32xbf16>
    %502 = arith.truncf %499 : vector<32x32xf32> to vector<32x32xbf16>
    %cst_170 = arith.constant dense<0.000000e+00> : vector<32x32xf32>
    %503 = tpu.matmul %501, %502, %cst_170 {dimension_numbers = #tpu.dot_dimension_numbers<[1], [1], [0], [0], [0, 0, 1, 0], [], []>} : vector<32x32xbf16>, vector<32x32xbf16>, vector<32x32xf32> -> vector<32x32xf32>
    %cst_171 = arith.constant 0.176776692 : f32
    %504 = vector.broadcast %cst_171 : f32 to vector<32x32xf32>
    %505 = arith.mulf %503, %504 : vector<32x32xf32>
    %506 = arith.addf %505, %9 : vector<32x32xf32>
    %cst_172 = arith.constant dense<0xFF800000> : vector<32xf32>
    %507 = vector.multi_reduction <maximumf>, %506, %cst_172 [1] : vector<32x32xf32> to vector<32xf32>
    %508 = vector.shape_cast %507 : vector<32xf32> to vector<32x1xf32>
    %509 = vector.broadcast %508 : vector<32x1xf32> to vector<32x32xf32>
    %510 = arith.subf %506, %509 : vector<32x32xf32>
    %511 = math.exp %510 : vector<32x32xf32>
    %cst_173 = arith.constant dense<0.000000e+00> : vector<32xf32>
    %512 = vector.multi_reduction <add>, %511, %cst_173 [1] : vector<32x32xf32> to vector<32xf32>
    %513 = vector.shape_cast %512 : vector<32xf32> to vector<32x1xf32>
    %514 = tpu.reciprocal %513 {approx = true} : vector<32x1xf32> -> vector<32x1xf32>
    %515 = vector.broadcast %514 : vector<32x1xf32> to vector<32x32xf32>
    %516 = arith.mulf %511, %515 : vector<32x32xf32>
    %517 = arith.truncf %516 : vector<32x32xf32> to vector<32x32xbf16>
    %518 = arith.truncf %500 : vector<32x32xf32> to vector<32x32xbf16>
    %cst_174 = arith.constant dense<0.000000e+00> : vector<32x32xf32>
    %519 = tpu.matmul %517, %518, %cst_174 {dimension_numbers = #tpu.dot_dimension_numbers<[1], [0], [0], [1], [0, 0, 1, 1], [], []>} : vector<32x32xbf16>, vector<32x32xbf16>, vector<32x32xf32> -> vector<32x32xf32>
    %520 = vector.extract_strided_slice %417 {offsets = [96, 0], sizes = [32, 128], strides = [1, 1]} : vector<128x128xbf16> to vector<32x128xbf16>
    %521 = arith.truncf %519 : vector<32x32xf32> to vector<32x32xbf16>
    %cst_175 = arith.constant dense<0.000000e+00> : vector<32x128xf32>
    %522 = tpu.matmul %521, %520, %cst_175 {dimension_numbers = #tpu.dot_dimension_numbers<[1], [0], [0], [1], [0, 0, 1, 1], [], []>} : vector<32x32xbf16>, vector<32x128xbf16>, vector<32x128xf32> -> vector<32x128xf32>
    %523 = arith.addf %497, %522 : vector<32x128xf32>
    %524 = vector.broadcast %418 : vector<1x128xf32> to vector<32x128xf32>
    %525 = arith.addf %523, %524 : vector<32x128xf32>
    %526 = arith.addf %402, %525 : vector<32x128xf32>
    %c0_176 = arith.constant 0 : index
    %c0_177 = arith.constant 0 : index
    %527 = vector.load %arg33[%c0_176, %c0_177] : memref<1x128xf32, #tpu.memory_space<vmem>>, vector<1x128xf32>
    %c0_178 = arith.constant 0 : index
    %c0_179 = arith.constant 0 : index
    %528 = vector.load %arg34[%c0_178, %c0_179] : memref<1x128xf32, #tpu.memory_space<vmem>>, vector<1x128xf32>
    %cst_180 = arith.constant dense<0.000000e+00> : vector<32xf32>
    %529 = vector.multi_reduction <add>, %526, %cst_180 [1] : vector<32x128xf32> to vector<32xf32>
    %530 = vector.shape_cast %529 : vector<32xf32> to vector<32x1xf32>
    %cst_181 = arith.constant 1.280000e+02 : f32
    %531 = vector.broadcast %cst_181 : f32 to vector<32x1xf32>
    %532 = arith.divf %530, %531 : vector<32x1xf32>
    %533 = vector.broadcast %532 : vector<32x1xf32> to vector<32x128xf32>
    %534 = arith.subf %526, %533 : vector<32x128xf32>
    %535 = arith.mulf %534, %534 : vector<32x128xf32>
    %cst_182 = arith.constant dense<0.000000e+00> : vector<32xf32>
    %536 = vector.multi_reduction <add>, %535, %cst_182 [1] : vector<32x128xf32> to vector<32xf32>
    %537 = vector.shape_cast %536 : vector<32xf32> to vector<32x1xf32>
    %cst_183 = arith.constant 1.280000e+02 : f32
    %538 = vector.broadcast %cst_183 : f32 to vector<32x1xf32>
    %539 = arith.divf %537, %538 : vector<32x1xf32>
    %540 = vector.broadcast %532 : vector<32x1xf32> to vector<32x128xf32>
    %541 = arith.subf %526, %540 : vector<32x128xf32>
    %cst_184 = arith.constant 9.99999974E-6 : f32
    %542 = vector.broadcast %cst_184 : f32 to vector<32x1xf32>
    %543 = arith.addf %539, %542 : vector<32x1xf32>
    %544 = math.rsqrt %543 : vector<32x1xf32>
    %545 = vector.broadcast %544 : vector<32x1xf32> to vector<32x128xf32>
    %546 = arith.mulf %541, %545 : vector<32x128xf32>
    %547 = vector.broadcast %527 : vector<1x128xf32> to vector<32x128xf32>
    %548 = arith.mulf %546, %547 : vector<32x128xf32>
    %549 = vector.broadcast %528 : vector<1x128xf32> to vector<32x128xf32>
    %550 = arith.addf %548, %549 : vector<32x128xf32>
    %c0_185 = arith.constant 0 : index
    %c0_186 = arith.constant 0 : index
    %551 = vector.load %arg35[%c0_185, %c0_186] : memref<128x256xbf16, #tpu.memory_space<vmem>>, vector<128x256xbf16>
    %552 = arith.truncf %550 : vector<32x128xf32> to vector<32x128xbf16>
    %cst_187 = arith.constant dense<0.000000e+00> : vector<32x256xf32>
    %553 = tpu.matmul %552, %551, %cst_187 {dimension_numbers = #tpu.dot_dimension_numbers<[1], [0], [0], [1], [0, 0, 1, 1], [], []>} : vector<32x128xbf16>, vector<128x256xbf16>, vector<32x256xf32> -> vector<32x256xf32>
    %c0_188 = arith.constant 0 : index
    %c0_189 = arith.constant 0 : index
    %554 = vector.load %arg36[%c0_188, %c0_189] : memref<1x256xf32, #tpu.memory_space<vmem>>, vector<1x256xf32>
    %555 = vector.broadcast %554 : vector<1x256xf32> to vector<32x256xf32>
    %556 = arith.addf %553, %555 : vector<32x256xf32>
    %557 = arith.mulf %556, %556 : vector<32x256xf32>
    %558 = arith.mulf %556, %557 : vector<32x256xf32>
    %cst_190 = arith.constant 4.471500e-02 : f32
    %559 = vector.broadcast %cst_190 : f32 to vector<32x256xf32>
    %560 = arith.mulf %559, %558 : vector<32x256xf32>
    %561 = arith.addf %556, %560 : vector<32x256xf32>
    %cst_191 = arith.constant 0.797884583 : f32
    %562 = vector.broadcast %cst_191 : f32 to vector<32x256xf32>
    %563 = arith.mulf %562, %561 : vector<32x256xf32>
    %564 = math.tanh %563 : vector<32x256xf32>
    %cst_192 = arith.constant 1.000000e+00 : f32
    %565 = vector.broadcast %cst_192 : f32 to vector<32x256xf32>
    %566 = arith.addf %565, %564 : vector<32x256xf32>
    %cst_193 = arith.constant 5.000000e-01 : f32
    %567 = vector.broadcast %cst_193 : f32 to vector<32x256xf32>
    %568 = arith.mulf %567, %566 : vector<32x256xf32>
    %569 = arith.mulf %556, %568 : vector<32x256xf32>
    %c0_194 = arith.constant 0 : index
    %c0_195 = arith.constant 0 : index
    %570 = vector.load %arg37[%c0_194, %c0_195] : memref<256x128xbf16, #tpu.memory_space<vmem>>, vector<256x128xbf16>
    %571 = arith.truncf %569 : vector<32x256xf32> to vector<32x256xbf16>
    %cst_196 = arith.constant dense<0.000000e+00> : vector<32x128xf32>
    %572 = tpu.matmul %571, %570, %cst_196 {dimension_numbers = #tpu.dot_dimension_numbers<[1], [0], [0], [1], [0, 0, 1, 1], [], []>} : vector<32x256xbf16>, vector<256x128xbf16>, vector<32x128xf32> -> vector<32x128xf32>
    %c0_197 = arith.constant 0 : index
    %c0_198 = arith.constant 0 : index
    %573 = vector.load %arg38[%c0_197, %c0_198] : memref<1x128xf32, #tpu.memory_space<vmem>>, vector<1x128xf32>
    %574 = vector.broadcast %573 : vector<1x128xf32> to vector<32x128xf32>
    %575 = arith.addf %572, %574 : vector<32x128xf32>
    %576 = arith.addf %550, %575 : vector<32x128xf32>
    %c0_199 = arith.constant 0 : index
    %c0_200 = arith.constant 0 : index
    %577 = vector.load %arg39[%c0_199, %c0_200] : memref<1x128xf32, #tpu.memory_space<vmem>>, vector<1x128xf32>
    %c0_201 = arith.constant 0 : index
    %c0_202 = arith.constant 0 : index
    %578 = vector.load %arg40[%c0_201, %c0_202] : memref<1x128xf32, #tpu.memory_space<vmem>>, vector<1x128xf32>
    %cst_203 = arith.constant dense<0.000000e+00> : vector<32xf32>
    %579 = vector.multi_reduction <add>, %576, %cst_203 [1] : vector<32x128xf32> to vector<32xf32>
    %580 = vector.shape_cast %579 : vector<32xf32> to vector<32x1xf32>
    %cst_204 = arith.constant 1.280000e+02 : f32
    %581 = vector.broadcast %cst_204 : f32 to vector<32x1xf32>
    %582 = arith.divf %580, %581 : vector<32x1xf32>
    %583 = vector.broadcast %582 : vector<32x1xf32> to vector<32x128xf32>
    %584 = arith.subf %576, %583 : vector<32x128xf32>
    %585 = arith.mulf %584, %584 : vector<32x128xf32>
    %cst_205 = arith.constant dense<0.000000e+00> : vector<32xf32>
    %586 = vector.multi_reduction <add>, %585, %cst_205 [1] : vector<32x128xf32> to vector<32xf32>
    %587 = vector.shape_cast %586 : vector<32xf32> to vector<32x1xf32>
    %cst_206 = arith.constant 1.280000e+02 : f32
    %588 = vector.broadcast %cst_206 : f32 to vector<32x1xf32>
    %589 = arith.divf %587, %588 : vector<32x1xf32>
    %590 = vector.broadcast %582 : vector<32x1xf32> to vector<32x128xf32>
    %591 = arith.subf %576, %590 : vector<32x128xf32>
    %cst_207 = arith.constant 9.99999974E-6 : f32
    %592 = vector.broadcast %cst_207 : f32 to vector<32x1xf32>
    %593 = arith.addf %589, %592 : vector<32x1xf32>
    %594 = math.rsqrt %593 : vector<32x1xf32>
    %595 = vector.broadcast %594 : vector<32x1xf32> to vector<32x128xf32>
    %596 = arith.mulf %591, %595 : vector<32x128xf32>
    %597 = vector.broadcast %577 : vector<1x128xf32> to vector<32x128xf32>
    %598 = arith.mulf %596, %597 : vector<32x128xf32>
    %599 = vector.broadcast %578 : vector<1x128xf32> to vector<32x128xf32>
    %600 = arith.addf %598, %599 : vector<32x128xf32>
    %c0_208 = arith.constant 0 : index
    %c0_209 = arith.constant 0 : index
    %601 = vector.load %arg41[%c0_208, %c0_209] : memref<512x128xbf16, #tpu.memory_space<vmem>>, vector<512x128xbf16>
    %602 = arith.truncf %600 : vector<32x128xf32> to vector<32x128xbf16>
    %cst_210 = arith.constant dense<0.000000e+00> : vector<32x512xf32>
    %603 = tpu.matmul %602, %601, %cst_210 {dimension_numbers = #tpu.dot_dimension_numbers<[1], [1], [0], [0], [0, 0, 1, 0], [], []>} : vector<32x128xbf16>, vector<512x128xbf16>, vector<32x512xf32> -> vector<32x512xf32>
    %cst_211 = arith.constant dense<0xFF800000> : vector<32xf32>
    %604 = vector.multi_reduction <maximumf>, %603, %cst_211 [1] : vector<32x512xf32> to vector<32xf32>
    %605 = vector.shape_cast %604 : vector<32xf32> to vector<32x1xf32>
    %606 = vector.broadcast %605 : vector<32x1xf32> to vector<32x512xf32>
    %607 = arith.subf %603, %606 : vector<32x512xf32>
    %608 = math.exp %607 : vector<32x512xf32>
    %cst_212 = arith.constant dense<0.000000e+00> : vector<32xf32>
    %609 = vector.multi_reduction <add>, %608, %cst_212 [1] : vector<32x512xf32> to vector<32xf32>
    %610 = vector.shape_cast %609 : vector<32xf32> to vector<32x1xf32>
    %611 = math.log %610 : vector<32x1xf32>
    %612 = arith.addf %611, %605 : vector<32x1xf32>
    %c0_213 = arith.constant 0 : index
    %c0_214 = arith.constant 0 : index
    %613 = vector.load %arg2[%c0_213, %c0_214] : memref<32x1xi32, #tpu.memory_space<vmem>>, vector<32x1xi32>
    %614 = tpu.iota {dimensions = array<i32: 1>} : vector<32x512xi32>
    %615 = vector.broadcast %613 : vector<32x1xi32> to vector<32x512xi32>
    %616 = arith.cmpi eq, %614, %615 : vector<32x512xi32>
    %cst_215 = arith.constant 0.000000e+00 : f32
    %617 = vector.broadcast %cst_215 : f32 to vector<32x512xf32>
    %618 = arith.select %616, %603, %617 : vector<32x512xi1>, vector<32x512xf32>
    %cst_216 = arith.constant dense<0.000000e+00> : vector<32xf32>
    %619 = vector.multi_reduction <add>, %618, %cst_216 [1] : vector<32x512xf32> to vector<32xf32>
    %620 = vector.shape_cast %619 : vector<32xf32> to vector<32x1xf32>
    %c-100_i32 = arith.constant -100 : i32
    %621 = vector.broadcast %c-100_i32 : i32 to vector<32x1xi32>
    %622 = arith.cmpi ne, %613, %621 : vector<32x1xi32>
    %623 = arith.extui %622 : vector<32x1xi1> to vector<32x1xi32>
    %624 = arith.sitofp %623 : vector<32x1xi32> to vector<32x1xf32>
    %625 = arith.subf %612, %620 : vector<32x1xf32>
    %626 = arith.mulf %625, %624 : vector<32x1xf32>
    %627 = vector.shape_cast %626 : vector<32x1xf32> to vector<1x32x1xf32>
    %cst_217 = arith.constant dense<0.000000e+00> : vector<1xf32>
    %628 = vector.multi_reduction <add>, %627, %cst_217 [1, 2] : vector<1x32x1xf32> to vector<1xf32>
    %629 = vector.shape_cast %628 : vector<1xf32> to vector<1x1x1xf32>
    %630 = vector.extract %629[0, 0, 0] : f32 from vector<1x1x1xf32>
    %631 = vector.broadcast %630 : f32 to vector<1x1xf32>
    %632 = vector.shape_cast %624 : vector<32x1xf32> to vector<1x32x1xf32>
    %cst_218 = arith.constant dense<0.000000e+00> : vector<1xf32>
    %633 = vector.multi_reduction <add>, %632, %cst_218 [1, 2] : vector<1x32x1xf32> to vector<1xf32>
    %634 = vector.shape_cast %633 : vector<1xf32> to vector<1x1x1xf32>
    %635 = vector.extract %634[0, 0, 0] : f32 from vector<1x1x1xf32>
    %636 = vector.broadcast %635 : f32 to vector<1x1xf32>
    %cst_219 = arith.constant 1.000000e+00 : f32
    %637 = vector.broadcast %cst_219 : f32 to vector<1x1xf32>
    %638 = arith.maximumf %636, %637 : vector<1x1xf32>
    %639 = arith.divf %631, %638 : vector<1x1xf32>
    %c0_220 = arith.constant 0 : index
    %c0_221 = arith.constant 0 : index
    %640 = vector.load %arg42[%c0_220, %c0_221] : memref<1x1xf32, #tpu.memory_space<vmem>>, vector<1x1xf32>
    tpu.vector_store %arg42[%c0_220, %c0_221], %639 {strides = array<i32>} : memref<1x1xf32, #tpu.memory_space<vmem>>, vector<1x1xf32>,
    return
  }
}

</mosaic_0001>

<bundles_post_ra>
// kernel: doc_encoder_forward.1
= control target key start
LH: loop header
LB: loop body
LE: loop exit
PB: predicated region body
PF: predicated region fallthrough
CT: control target
= control target key end

     0   :  { %s8862_s6 = smov 1   ;;  %s8863_s10 = smov 2   ;;  %s10451_s0 = inlined_call_operand.smem [shape: u32[43], index: -1, kind: input, shape index: {}] }
   0x1   :  { %s8955_s5 = sld [smem:[%s10451_s0]]   ;;  %s8864_s14 = smov 3  }
   0x2   :  { %s8960_s9 = sld [smem:[%s10451_s0 + %s8862_s6]]   ;;  %s8865_s18 = smov 4  }
   0x3   :  { %s8965_s13 = sld [smem:[%s10451_s0 + %s8863_s10]]   ;;  %s8866_s22 = smov 5  }
   0x4   :  { %s8970_s17 = sld [smem:[%s10451_s0 + %s8864_s14]]   ;;  %s8867_s26 = smov 6  }
   0x5   :  { %s8975_s21 = sld [smem:[%s10451_s0 + %s8865_s18]]   ;;  %s8868_s30 = smov 7  }
   0x6   :  { %s8980_s25 = sld [smem:[%s10451_s0 + %s8866_s22]]   ;;  %s8869_s4 = smov 8  }
   0x7   :  { %10458 = sst [smem:[#allocation68_spill]] %s8955_s5  ;;  %s8870_s10 = smov 9  }
   0x8   :  { %10459 = sst [smem:[#allocation69_spill]] %s8960_s9  ;;  %s8871_s15 = smov 10  }
   0x9   :  { %10460 = sst [smem:[#allocation70_spill]] %s8965_s13  ;;  %s8872_s20 = smov 11  }
   0xa   :  { %10461 = sst [smem:[#allocation71_spill]] %s8970_s17  ;;  %s8874_s1 = smov 13  }
   0xb   :  { %10462 = sst [smem:[#allocation72_spill]] %s8975_s21  ;;  %s8875_s7 = smov 14  }
   0xc   :  { %10463 = sst [smem:[#allocation73_spill]] %s8980_s25  ;;  %s8877_s22 = smov 16  }
   0xd   :  { %s8985_s29 = sld [smem:[%s10451_s0 + %s8867_s26]]   ;;  %s8873_s26 = smov 12  }
   0xe   :  { %s8990_s3 = sld [smem:[%s10451_s0 + %s8868_s30]]   ;;  %s8878_s28 = smov 17  }
   0xf   :  { %s8995_s8 = sld [smem:[%s10451_s0 + %s8869_s4]]  }
  0x10   :  { %s9000_s14 = sld [smem:[%s10451_s0 + %s8870_s10]]  }
  0x11   :  { %s9005_s19 = sld [smem:[%s10451_s0 + %s8871_s15]]   ;;  %s8876_s15 = smov 15  }
  0x12   :  { %s9010_s24 = sld [smem:[%s10451_s0 + %s8872_s20]]  }
  0x13   :  { %10464 = sst [smem:[#allocation74_spill]] %s8985_s29 }
  0x14   :  { %10465 = sst [smem:[#allocation75_spill]] %s8990_s3 }
  0x15   :  { %10466 = sst [smem:[#allocation76_spill]] %s8995_s8 }
  0x16   :  { %s9015_s30 = sld [smem:[%s10451_s0 + %s8873_s26]]  }
  0x17   :  { %10467 = sst [smem:[#allocation77_spill]] %s9005_s19 }
  0x18   :  { %s9020_s6 = sld [smem:[%s10451_s0 + %s8874_s1]]  }
  0x19   :  { %s9025_s12 = sld [smem:[%s10451_s0 + %s8875_s7]]   ;;  %s8879_s7 = smov 18  }
  0x1a   :  { %s9030_s20 = sld [smem:[%s10451_s0 + %s8876_s15]]   ;;  %s8880_s15 = smov 19  }
  0x1b   :  { %s9035_s27 = sld [smem:[%s10451_s0 + %s8877_s22]]   ;;  %s8881_s22 = smov 20  }
  0x1c   :  { %10468 = sst [smem:[#allocation78_spill]] %s9015_s30 }
  0x1d   :  { %s9040_s4 = sld [smem:[%s10451_s0 + %s8878_s28]]   ;;  %s8882_s28 = smov 21  }
  0x1e   :  { %10469 = sst [smem:[#allocation79_spill]] %s9020_s6 }
  0x1f   :  { %s9045_s13 = sld [smem:[%s10451_s0 + %s8879_s7]]   ;;  %s8883_s7 = smov 22  }
  0x20   :  { %10470 = sst [smem:[#allocation80_spill]] %s9030_s20 }
  0x21   :  { %s9050_s6 = sld [smem:[%s10451_s0 + %s8880_s15]]   ;;  %s8884_s15 = smov 23  }
  0x22   :  { %s9055_s9 = sld [smem:[%s10451_s0 + %s8881_s22]]   ;;  %s8885_s22 = smov 24  }
  0x23   :  { %10471 = sst [smem:[#allocation81_spill]] %s9040_s4 }
  0x24   :  { %s9060_s21 = sld [smem:[%s10451_s0 + %s8882_s28]]   ;;  %s8886_s28 = smov 25  }
  0x25   :  { %s9065_s8 = sld [smem:[%s10451_s0 + %s8883_s7]]   ;;  %s8887_s7 = smov 26  }
  0x26   :  { %s9070_s17 = sld [smem:[%s10451_s0 + %s8884_s15]]   ;;  %s8888_s15 = smov 27  }
  0x27   :  { %10472 = sst [smem:[#allocation82_spill]] %s9050_s6 }
  0x28   :  { %s9075_s25 = sld [smem:[%s10451_s0 + %s8885_s22]]   ;;  %s8889_s22 = smov 28  }
  0x29   :  { %s9080_s3 = sld [smem:[%s10451_s0 + %s8886_s28]]   ;;  %s8890_s28 = smov 29  }
  0x2a   :  { %10473 = sst [smem:[#allocation83_spill]] %s9060_s21 }
  0x2b   :  { %10474 = sst [smem:[#allocation84_spill]] %s9065_s8 }
  0x2c   :  { %s9085_s8 = sld [smem:[%s10451_s0 + %s8887_s7]]   ;;  %s8891_s7 = smov 30  }
  0x2d   :  { %s9090_s5 = sld [smem:[%s10451_s0 + %s8888_s15]]   ;;  %s8892_s15 = smov 31  }
  0x2e   :  { %10475 = sst [smem:[#allocation85_spill]] %s9075_s25 }
  0x2f   :  { %s9095_s25 = sld [smem:[%s10451_s0 + %s8889_s22]]   ;;  %s8893_s22 = smov 32  }
  0x30   :  { %s9100_s21 = sld [smem:[%s10451_s0 + %s8890_s28]]   ;;  %s8894_s28 = smov 33  }
  0x31   :  { %s9110_s6 = sld [smem:[%s10451_s0 + %s8892_s15]]   ;;  %s8896_s15 = smov 35  }
  0x32   :  { %10476 = sst [smem:[#allocation86_spill]] %s9085_s8 }
  0x33   :  { %s9105_s8 = sld [smem:[%s10451_s0 + %s8891_s7]]   ;;  %s8895_s7 = smov 34  }
  0x34   :  { %s9120_s4 = sld [smem:[%s10451_s0 + %s8894_s28]]   ;;  %s8898_s28 = smov 37  }
  0x35   :  { %10477 = sst [smem:[#allocation87_spill]] %s9095_s25 }
  0x36   :  { %s9115_s25 = sld [smem:[%s10451_s0 + %s8893_s22]]   ;;  %s8897_s22 = smov 36  }
  0x37   :  { %s9130_s20 = sld [smem:[%s10451_s0 + %s8896_s15]]   ;;  %s8900_s15 = smov 39  }
  0x38   :  { %s9140_s30 = sld [smem:[%s10451_s0 + %s8898_s28]]   ;;  %s8902_s28 = smov 41  }
  0x39   :  { %10478 = sst [smem:[#allocation88_spill]] %s9105_s8 }
  0x3a   :  { %s9125_s8 = sld [smem:[%s10451_s0 + %s8895_s7]]   ;;  %s8899_s7 = smov 38  }
  0x3b   :  { %s9150_s19 = sld [smem:[%s10451_s0 + %s8900_s15]]  }
  0x3c   :  { %10479 = sst [smem:[#allocation89_spill]] %s9115_s25 }
  0x3d   :  { %s9135_s25 = sld [smem:[%s10451_s0 + %s8897_s22]]   ;;  %s8901_s22 = smov 40  }
  0x3e   :  { %s9160_s29 = sld [smem:[%s10451_s0 + %s8902_s28]]  }
  0x40   :  { %10480 = sst [smem:[#allocation90_spill]] %s9125_s8 }
  0x41   :  { %s9145_s8 = sld [smem:[%s10451_s0 + %s8899_s7]]   ;;  %s8903_s7 = smov 42  }
  0x43   :  { %10481 = sst [smem:[#allocation91_spill]] %s9135_s25 }
  0x44   :  { %s9155_s25 = sld [smem:[%s10451_s0 + %s8901_s22]]  }
  0x47   :  { %10482 = sst [smem:[#allocation92_spill]] %s9145_s8 }
  0x48   :  { %s9165_s8 = sld [smem:[%s10451_s0 + %s8903_s7]]  }
  0x49   :  { %90 = vsyncpa [#allocation3], 0 }
  0x4a   :  { %91 = vsyncpa [#allocation6], 0 }
  0x4b   :  { %92 = vsyncpa [#allocation9], 0 }
  0x4c   :  { %93 = vsyncpa [#allocation12], 0 }
  0x4d   :  { %94 = vsyncpa [#allocation15], 0 }
  0x4e   :  { %95 = vsyncpa [#allocation18], 0 }
  0x4f   :  { %96 = vsyncpa [#allocation21], 0 }
  0x50   :  { %97 = vsyncpa [#allocation24], 0 }
  0x51   :  { %98 = vsyncpa [#allocation27], 0 }
  0x52   :  { %99 = vsyncpa [#allocation30], 0 }
  0x53   :  { %100 = vsyncpa [#allocation33], 0 }
  0x54   :  { %101 = vsyncpa [#allocation36], 0 }
  0x55   :  { %102 = vsyncpa [#allocation39], 0 }
  0x56   :  { %103 = vsyncpa [#allocation42], 0 }
  0x57   :  { %104 = vsyncpa [#allocation45], 0 }
  0x58   :  { %105 = vsyncpa [#allocation48], 0 }
  0x59   :  { %106 = vsyncpa [#allocation4], 0  ;;  %s8904_s15 = smov [#allocation5]  }
  0x5a   :  { %s138_s0 = sshll.u32 %s8904_s15, 4  ;;  %s139_s0 = int_to_ptr.vmem [resolvable:$true] %s138_s0 }
  0x5b   :  { %s8196_s16 = scalar_lea.vmem %s139_s0, 1024  ;;  %p8201_p1 = scmp.lt.s32.totalorder %s139_s0, %s139_s0 }
  0x5c   :  { %p8197_p0 = scmp.ne.s32.totalorder %s139_s0, %s8196_s16  ;;  %p8202_p2 = scmp.lt.s32.totalorder %s8196_s16, %s8196_s16 }
  0x5e   :  { %p8203_p3 = por %p8202_p2, %p8201_p1 }
  0x60   :  { %p8204_p4 = pnand %p8203_p3, %p8197_p0 }
  0x62   :  { %8207 = shalt.err (!%p8204_p4)
}
  0x63   :  { %s8905_s18 = smov 64   ;;  %s8906_s22 = smov 4  }
  0x64   :  { %144 = dma.hbm_to_vmem [thread:$0]  %s9000_s14, 1024, %s139_s0, [#allocation6], %s8905_s18, %s8905_s18, %s8906_s22  }
  0x65   :  { %s8907_s23 = smov [#allocation8]   ;;  %s8908_s28 = smov [#allocation11]  }
  0x66   :  { %s161_s26 = sshll.u32 %s8907_s23, 4  ;;  %s183_s1 = sshll.u32 %s8908_s28, 4  ;;  %s162_s26 = int_to_ptr.vmem [resolvable:$true] %s161_s26  ;;  %s184_s1 = int_to_ptr.vmem [resolvable:$true] %s183_s1 }
  0x67   :  { %s8216_s2 = scalar_lea.vmem %s162_s26, 16  ;;  %s8220_s7 = scalar_lea.vmem %s162_s26, 32 }
  0x68   :  { %p8217_p5 = scmp.ne.s32.totalorder %s162_s26, %s8216_s2  ;;  %p8221_p6 = scmp.lt.s32.totalorder %s162_s26, %s162_s26 }
  0x69   :  { %p8222_p7 = scmp.lt.s32.totalorder %s8220_s7, %s8216_s2 }
  0x6b   :  { %p8223_p8 = por %p8222_p7, %p8221_p6 }
  0x6d   :  { %p8224_p9 = pnand %p8223_p8, %p8217_p5 }
  0x6f   :  { %8227 = shalt.err (!%p8224_p9)
}
  0x70   :  { %164 = dma.hbm_to_vmem [thread:$0]  %s9010_s24, 16, %s162_s26, [#allocation9]  }
  0x71   :  { %s8236_s10 = scalar_lea.vmem %s184_s1, 32  ;;  %p8241_p11 = scmp.lt.s32.totalorder %s184_s1, %s184_s1 }
  0x72   :  { %p8237_p10 = scmp.ne.s32.totalorder %s184_s1, %s8236_s10  ;;  %p8242_p12 = scmp.lt.s32.totalorder %s8236_s10, %s8236_s10 }
  0x74   :  { %p8243_p13 = por %p8242_p12, %p8241_p11 }
  0x76   :  { %p8244_p0 = pnand %p8243_p13, %p8237_p10 }
  0x78   :  { %8247 = shalt.err (!%p8244_p0)
}
  0x79   :  { %186 = dma.hbm_to_vmem [thread:$0]  %s9025_s12, 32, %s184_s1, [#allocation12]  }
  0x7a   :  { %s8909_s14 = smov [#allocation14]   ;;  %s8910_s15 = smov [#allocation17]  }
  0x7b   :  { %s205_s11 = sshll.u32 %s8909_s14, 4  ;;  %s225_s0 = sshll.u32 %s8910_s15, 4  ;;  %s206_s11 = int_to_ptr.vmem [resolvable:$true] %s205_s11  ;;  %s226_s0 = int_to_ptr.vmem [resolvable:$true] %s225_s0 }
  0x7c   :  { %s8256_s16 = scalar_lea.vmem %s206_s11, 16  ;;  %s8260_s23 = scalar_lea.vmem %s206_s11, 32 }
  0x7d   :  { %p8257_p1 = scmp.ne.s32.totalorder %s206_s11, %s8256_s16  ;;  %p8261_p2 = scmp.lt.s32.totalorder %s206_s11, %s206_s11 }
  0x7e   :  { %p8262_p3 = scmp.lt.s32.totalorder %s8260_s23, %s8256_s16 }
  0x80   :  { %p8263_p4 = por %p8262_p3, %p8261_p2 }
  0x82   :  { %p8264_p5 = pnand %p8263_p4, %p8257_p1 }
  0x84   :  { %8267 = shalt.err (!%p8264_p5)
}
  0x85   :  { %208 = dma.hbm_to_vmem [thread:$0]  %s9035_s27, 16, %s206_s11, [#allocation15]  }
  0x86   :  { %s8276_s24 = scalar_lea.vmem %s226_s0, 16  ;;  %s8280_s26 = scalar_lea.vmem %s226_s0, 32 }
  0x87   :  { %p8277_p6 = scmp.ne.s32.totalorder %s226_s0, %s8276_s24  ;;  %p8281_p7 = scmp.lt.s32.totalorder %s226_s0, %s226_s0 }
  0x88   :  { %p8282_p8 = scmp.lt.s32.totalorder %s8280_s26, %s8276_s24 }
  0x8a   :  { %p8283_p9 = por %p8282_p8, %p8281_p7 }
  0x8c   :  { %p8284_p10 = pnand %p8283_p9, %p8277_p6 }
  0x8e   :  { %8287 = shalt.err (!%p8284_p10)
}
  0x8f   :  { %228 = dma.hbm_to_vmem [thread:$0]  %s9045_s13, 16, %s226_s0, [#allocation18]  }
  0x90   :  { %s8911_s12 = smov [#allocation20]   ;;  %s8912_s1 = smov [#allocation23]  }
  0x91   :  { %s245_s28 = sshll.u32 %s8911_s12, 4  ;;  %s268_s2 = sshll.u32 %s8912_s1, 4  ;;  %s246_s28 = int_to_ptr.vmem [resolvable:$true] %s245_s28  ;;  %s269_s2 = int_to_ptr.vmem [resolvable:$true] %s268_s2 }
  0x92   :  { %s8296_s7 = scalar_lea.vmem %s246_s28, 16  ;;  %s8300_s10 = scalar_lea.vmem %s246_s28, 32 }
  0x93   :  { %p8297_p11 = scmp.ne.s32.totalorder %s246_s28, %s8296_s7  ;;  %p8301_p12 = scmp.lt.s32.totalorder %s246_s28, %s246_s28 }
  0x94   :  { %p8302_p13 = scmp.lt.s32.totalorder %s8300_s10, %s8296_s7 }
  0x96   :  { %p8303_p0 = por %p8302_p13, %p8301_p12 }
  0x98   :  { %p8304_p1 = pnand %p8303_p0, %p8297_p11 }
  0x9a   :  { %8307 = shalt.err (!%p8304_p1)
}
  0x9b   :  { %248 = dma.hbm_to_vmem [thread:$0]  %s9055_s9, 16, %s246_s28, [#allocation21]  }
  0x9c   :  { %s8316_s27 = scalar_lea.vmem %s269_s2, 1024  ;;  %p8321_p3 = scmp.lt.s32.totalorder %s269_s2, %s269_s2 }
  0x9d   :  { %p8317_p2 = scmp.ne.s32.totalorder %s269_s2, %s8316_s27  ;;  %p8322_p4 = scmp.lt.s32.totalorder %s8316_s27, %s8316_s27 }
  0x9f   :  { %p8323_p5 = por %p8322_p4, %p8321_p3 }
  0xa1   :  { %p8324_p6 = pnand %p8323_p5, %p8317_p2 }
  0xa3   :  { %8327 = shalt.err (!%p8324_p6)
}
  0xa4   :  { %274 = dma.hbm_to_vmem [thread:$0]  %s9070_s17, 1024, %s269_s2, [#allocation24], %s8905_s18, %s8905_s18, %s8906_s22  }
  0xa5   :  { %s8913_s13 = smov [#allocation26]   ;;  %s8914_s11 = smov [#allocation29]  }
  0xa6   :  { %s291_s14 = sshll.u32 %s8913_s13, 4  ;;  %s310_s15 = sshll.u32 %s8914_s11, 4  ;;  %s292_s14 = int_to_ptr.vmem [resolvable:$true] %s291_s14  ;;  %s311_s15 = int_to_ptr.vmem [resolvable:$true] %s310_s15 }
  0xa7   :  { %s8336_s0 = scalar_lea.vmem %s292_s14, 16  ;;  %s8340_s9 = scalar_lea.vmem %s292_s14, 32 }
  0xa8   :  { %p8337_p7 = scmp.ne.s32.totalorder %s292_s14, %s8336_s0  ;;  %p8341_p8 = scmp.lt.s32.totalorder %s292_s14, %s292_s14 }
  0xa9   :  { %p8342_p9 = scmp.lt.s32.totalorder %s8340_s9, %s8336_s0 }
  0xab   :  { %p8343_p10 = por %p8342_p9, %p8341_p8 }
  0xad   :  { %p8344_p11 = pnand %p8343_p10, %p8337_p7 }
  0xaf   :  { %8347 = shalt.err (!%p8344_p11)
}
  0xb0   :  { %294 = dma.hbm_to_vmem [thread:$0]  %s9080_s3, 16, %s292_s14, [#allocation27]  }
  0xb1   :  { %s8356_s16 = scalar_lea.vmem %s311_s15, 1024  ;;  %p8361_p13 = scmp.lt.s32.totalorder %s311_s15, %s311_s15 }
  0xb2   :  { %p8357_p12 = scmp.ne.s32.totalorder %s311_s15, %s8356_s16  ;;  %p8362_p0 = scmp.lt.s32.totalorder %s8356_s16, %s8356_s16 }
  0xb4   :  { %p8363_p1 = por %p8362_p0, %p8361_p13 }
  0xb6   :  { %p8364_p2 = pnand %p8363_p1, %p8357_p12 }
  0xb8   :  { %8367 = shalt.err (!%p8364_p2)
}
  0xb9   :  { %316 = dma.hbm_to_vmem [thread:$0]  %s9090_s5, 1024, %s311_s15, [#allocation30], %s8905_s18, %s8905_s18, %s8906_s22  }
  0xba   :  { %s8915_s17 = smov [#allocation32]  }
  0xbb   :  { %s332_s23 = sshll.u32 %s8915_s17, 4  ;;  %s333_s23 = int_to_ptr.vmem [resolvable:$true] %s332_s23 }
  0xbc   :  { %s8376_s24 = scalar_lea.vmem %s333_s23, 2048  ;;  %p8381_p4 = scmp.lt.s32.totalorder %s333_s23, %s333_s23 }
  0xbd   :  { %p8377_p3 = scmp.ne.s32.totalorder %s333_s23, %s8376_s24  ;;  %p8382_p5 = scmp.lt.s32.totalorder %s8376_s24, %s8376_s24 }
  0xbf   :  { %p8383_p6 = por %p8382_p5, %p8381_p4 }
  0xc1   :  { %p8384_p7 = pnand %p8383_p6, %p8377_p3 }
  0xc3   :  { %8387 = shalt.err (!%p8384_p7)
}
  0xc4   :  { %s8916_s3 = smov 128   ;;  %s8917_s26 = smov 8  }
  0xc5   :  { %338 = dma.hbm_to_vmem [thread:$0]  %s9100_s21, 2048, %s333_s23, [#allocation33], %s8916_s3, %s8916_s3, %s8917_s26  }
  0xc6   :  { %s8918_s12 = smov [#allocation35]   ;;  %s8919_s5 = smov [#allocation38]  }
  0xc7   :  { %s354_s28 = sshll.u32 %s8918_s12, 4  ;;  %s377_s1 = sshll.u32 %s8919_s5, 4  ;;  %s355_s28 = int_to_ptr.vmem [resolvable:$true] %s354_s28  ;;  %s378_s1 = int_to_ptr.vmem [resolvable:$true] %s377_s1 }
  0xc8   :  { %s8396_s2 = scalar_lea.vmem %s355_s28, 1024  ;;  %p8401_p9 = scmp.lt.s32.totalorder %s355_s28, %s355_s28 }
  0xc9   :  { %p8397_p8 = scmp.ne.s32.totalorder %s355_s28, %s8396_s2  ;;  %p8402_p10 = scmp.lt.s32.totalorder %s8396_s2, %s8396_s2 }
  0xcb   :  { %p8403_p11 = por %p8402_p10, %p8401_p9 }
  0xcd   :  { %p8404_p12 = pnand %p8403_p11, %p8397_p8 }
  0xcf   :  { %8407 = shalt.err (!%p8404_p12)
}
  0xd0   :  { %360 = dma.hbm_to_vmem [thread:$0]  %s9110_s6, 1024, %s355_s28, [#allocation36], %s8905_s18, %s8905_s18, %s8906_s22  }
  0xd1   :  { %s8416_s7 = scalar_lea.vmem %s378_s1, 16  ;;  %s8420_s21 = scalar_lea.vmem %s378_s1, 32 }
  0xd2   :  { %p8417_p13 = scmp.ne.s32.totalorder %s378_s1, %s8416_s7  ;;  %p8421_p0 = scmp.lt.s32.totalorder %s378_s1, %s378_s1 }
  0xd3   :  { %p8422_p1 = scmp.lt.s32.totalorder %s8420_s21, %s8416_s7 }
  0xd5   :  { %p8423_p2 = por %p8422_p1, %p8421_p0 }
  0xd7   :  { %p8424_p3 = pnand %p8423_p2, %p8417_p13 }
  0xd9   :  { %8427 = shalt.err (!%p8424_p3)
}
  0xda   :  { %380 = dma.hbm_to_vmem [thread:$0]  %s9120_s4, 16, %s378_s1, [#allocation39]  }
  0xdb   :  { %s8920_s10 = smov [#allocation41]   ;;  %s8921_s13 = smov [#allocation44]  }
  0xdc   :  { %s396_s27 = sshll.u32 %s8920_s10, 4  ;;  %s418_s14 = sshll.u32 %s8921_s13, 4  ;;  %s397_s27 = int_to_ptr.vmem [resolvable:$true] %s396_s27  ;;  %s419_s14 = int_to_ptr.vmem [resolvable:$true] %s418_s14 }
  0xdd   :  { %s8436_s11 = scalar_lea.vmem %s397_s27, 2048  ;;  %p8441_p5 = scmp.lt.s32.totalorder %s397_s27, %s397_s27 }
  0xde   :  { %p8437_p4 = scmp.ne.s32.totalorder %s397_s27, %s8436_s11  ;;  %p8442_p6 = scmp.lt.s32.totalorder %s8436_s11, %s8436_s11 }
  0xe0   :  { %p8443_p7 = por %p8442_p6, %p8441_p5 }
  0xe2   :  { %p8444_p8 = pnand %p8443_p7, %p8437_p4 }
  0xe4   :  { %8447 = shalt.err (!%p8444_p8)
}
  0xe5   :  { %402 = dma.hbm_to_vmem [thread:$0]  %s9130_s20, 2048, %s397_s27, [#allocation42], %s8916_s3, %s8916_s3, %s8917_s26  }
  0xe6   :  { %s8456_s6 = scalar_lea.vmem %s419_s14, 2048  ;;  %p8461_p10 = scmp.lt.s32.totalorder %s419_s14, %s419_s14 }
  0xe7   :  { %p8457_p9 = scmp.ne.s32.totalorder %s419_s14, %s8456_s6  ;;  %p8462_p11 = scmp.lt.s32.totalorder %s8456_s6, %s8456_s6 }
  0xe9   :  { %p8463_p12 = por %p8462_p11, %p8461_p10 }
  0xeb   :  { %p8464_p13 = pnand %p8463_p12, %p8457_p9 }
  0xed   :  { %8467 = shalt.err (!%p8464_p13)
}
  0xee   :  { %424 = dma.hbm_to_vmem [thread:$0]  %s9140_s30, 2048, %s419_s14, [#allocation45], %s8905_s18, %s8905_s18, %s8906_s22  }
  0xef   :  { %s8922_s4 = smov [#allocation47]   ;;  %s8923_s0 = smov [#allocation2]  }
  0xf0   :  { %s441_s15 = sshll.u32 %s8922_s4, 4  ;;  %s125_s9 = sshll.u32 %s8923_s0, 4  ;;  %s442_s15 = int_to_ptr.vmem [resolvable:$true] %s441_s15  ;;  %s126_s9 = int_to_ptr.vmem [resolvable:$true] %s125_s9 }
  0xf1   :  { %s8476_s16 = scalar_lea.vmem %s442_s15, 16  ;;  %s8480_s20 = scalar_lea.vmem %s442_s15, 32 }
  0xf2   :  { %p8477_p0 = scmp.ne.s32.totalorder %s442_s15, %s8476_s16  ;;  %p8481_p1 = scmp.lt.s32.totalorder %s442_s15, %s442_s15 }
  0xf3   :  { %p8482_p2 = scmp.lt.s32.totalorder %s8480_s20, %s8476_s16 }
  0xf5   :  { %p8483_p3 = por %p8482_p2, %p8481_p1 }
  0xf7   :  { %p8484_p4 = pnand %p8483_p3, %p8477_p0 }
  0xf9   :  { %8487 = shalt.err (!%p8484_p4)
}
  0xfa   :  { %444 = dma.hbm_to_vmem [thread:$0]  %s9150_s19, 16, %s442_s15, [#allocation48]  }
  0xfb   :  { %s8496_s17 = scalar_lea.vmem %s126_s9, 16  ;;  %s8500_s23 = scalar_lea.vmem %s126_s9, 32 }
  0xfc   :  { %p8497_p5 = scmp.ne.s32.totalorder %s126_s9, %s8496_s17  ;;  %p8501_p6 = scmp.lt.s32.totalorder %s126_s9, %s126_s9 }
  0xfd   :  { %p8502_p7 = scmp.lt.s32.totalorder %s8500_s23, %s8496_s17 }
  0xff   :  { %p8503_p8 = por %p8502_p7, %p8501_p6 }
 0x101   :  { %p8504_p9 = pnand %p8503_p8, %p8497_p5 }
 0x103   :  { %8507 = shalt.err (!%p8504_p9)
}
 0x104   :  { %s10483_s30 = sld [smem:[#allocation74_spill]]  ;;  %s8924_s24 = smov [#allocation7]  }
 0x105   :  { %s151_s3 = sshll.u32 %s8924_s24, 4  ;;  %s8925_s26 = smov [#allocation10]   ;;  %s152_s3 = int_to_ptr.vmem [resolvable:$true] %s151_s3 }
 0x106   :  { %s171_s12 = sshll.u32 %s8925_s26, 4  ;;  %s8516_s28 = scalar_lea.vmem %s152_s3, 16  ;;  %s172_s12 = int_to_ptr.vmem [resolvable:$true] %s171_s12 }
 0x107   :  { %p8517_p10 = scmp.ne.s32.totalorder %s152_s3, %s8516_s28  ;;  %s8520_s5 = scalar_lea.vmem %s152_s3, 32 }
 0x108   :  { %p8521_p11 = scmp.lt.s32.totalorder %s152_s3, %s152_s3  ;;  %p8522_p12 = scmp.lt.s32.totalorder %s8520_s5, %s8516_s28 }
 0x10a   :  { %128 = dma.hbm_to_vmem [thread:$0]  %s10483_s30, 16, %s126_s9, [#allocation3]  }
 0x10b   :  { %p8523_p13 = por %p8522_p12, %p8521_p11 }
 0x10d   :  { %p8524_p0 = pnand %p8523_p13, %p8517_p10 }
 0x10f   :  { %8527 = shalt.err (!%p8524_p0)
}
 0x110   :  { %s10484_s19 = sld [smem:[#allocation77_spill]]  ;;  %s8536_s1 = scalar_lea.vmem %s172_s12, 16 }
 0x111   :  { %p8537_p1 = scmp.ne.s32.totalorder %s172_s12, %s8536_s1  ;;  %s8540_s2 = scalar_lea.vmem %s172_s12, 32 }
 0x112   :  { %p8541_p2 = scmp.lt.s32.totalorder %s172_s12, %s172_s12  ;;  %p8542_p3 = scmp.lt.s32.totalorder %s8540_s2, %s8536_s1 }
 0x114   :  { %p8543_p4 = por %p8542_p3, %p8541_p2 }
 0x116   :  { %154 = dma.hbm_to_vmem [thread:$0]  %s10484_s19, 16, %s152_s3, [#allocation6]  }
 0x117   :  { %p8544_p5 = pnand %p8543_p4, %p8537_p1 }
 0x119   :  { %8547 = shalt.err (!%p8544_p5)
}
 0x11a   :  { %s10485_s7 = sld [smem:[#allocation78_spill]]  ;;  %s8926_s21 = smov [#allocation13]  }
 0x11b   :  { %s192_s10 = sshll.u32 %s8926_s21, 4  ;;  %s8927_s27 = smov [#allocation16]   ;;  %s193_s10 = int_to_ptr.vmem [resolvable:$true] %s192_s10 }
 0x11c   :  { %s215_s13 = sshll.u32 %s8927_s27, 4  ;;  %s8556_s14 = scalar_lea.vmem %s193_s10, 2048  ;;  %s216_s13 = int_to_ptr.vmem [resolvable:$true] %s215_s13 }
 0x11d   :  { %p8557_p6 = scmp.ne.s32.totalorder %s193_s10, %s8556_s14  ;;  %p8561_p7 = scmp.lt.s32.totalorder %s193_s10, %s193_s10 }
 0x11e   :  { %p8562_p8 = scmp.lt.s32.totalorder %s8556_s14, %s8556_s14 }
 0x120   :  { %174 = dma.hbm_to_vmem [thread:$0]  %s10485_s7, 16, %s172_s12, [#allocation9]  }
 0x121   :  { %p8563_p9 = por %p8562_p8, %p8561_p7 }
 0x123   :  { %p8564_p10 = pnand %p8563_p9, %p8557_p6 }
 0x125   :  { %8567 = shalt.err (!%p8564_p10)
}
 0x126   :  { %s10486_s11 = sld [smem:[#allocation80_spill]]  ;;  %s8576_s6 = scalar_lea.vmem %s216_s13, 16 }
 0x127   :  { %p8577_p11 = scmp.ne.s32.totalorder %s216_s13, %s8576_s6  ;;  %s8580_s4 = scalar_lea.vmem %s216_s13, 32 }
 0x128   :  { %p8581_p12 = scmp.lt.s32.totalorder %s216_s13, %s216_s13  ;;  %p8582_p13 = scmp.lt.s32.totalorder %s8580_s4, %s8576_s6 }
 0x12a   :  { %p8583_p0 = por %p8582_p13, %p8581_p12 }
 0x12c   :  { %198 = dma.hbm_to_vmem [thread:$0]  %s10486_s11, 2048, %s193_s10, [#allocation12], %s8905_s18, %s8905_s18, %s8906_s22  }
 0x12d   :  { %p8584_p1 = pnand %p8583_p0, %p8577_p11 }
 0x12f   :  { %8587 = shalt.err (!%p8584_p1)
}
 0x130   :  { %s10487_s15 = sld [smem:[#allocation81_spill]]  ;;  %s8928_s0 = smov [#allocation19]  }
 0x131   :  { %s235_s9 = sshll.u32 %s8928_s0, 4  ;;  %s8929_s16 = smov [#allocation22]   ;;  %s236_s9 = int_to_ptr.vmem [resolvable:$true] %s235_s9 }
 0x132   :  { %s254_s20 = sshll.u32 %s8929_s16, 4  ;;  %s8596_s17 = scalar_lea.vmem %s236_s9, 16  ;;  %s255_s20 = int_to_ptr.vmem [resolvable:$true] %s254_s20 }
 0x133   :  { %p8597_p2 = scmp.ne.s32.totalorder %s236_s9, %s8596_s17  ;;  %s8600_s23 = scalar_lea.vmem %s236_s9, 32 }
 0x134   :  { %p8601_p3 = scmp.lt.s32.totalorder %s236_s9, %s236_s9  ;;  %p8602_p4 = scmp.lt.s32.totalorder %s8600_s23, %s8596_s17 }
 0x136   :  { %218 = dma.hbm_to_vmem [thread:$0]  %s10487_s15, 16, %s216_s13, [#allocation15]  }
 0x137   :  { %p8603_p5 = por %p8602_p4, %p8601_p3 }
 0x139   :  { %p8604_p6 = pnand %p8603_p5, %p8597_p2 }
 0x13b   :  { %8607 = shalt.err (!%p8604_p6)
}
 0x13c   :  { %s10488_s22 = sld [smem:[#allocation82_spill]]  ;;  %s8616_s30 = scalar_lea.vmem %s255_s20, 3072 }
 0x13d   :  { %p8617_p7 = scmp.ne.s32.totalorder %s255_s20, %s8616_s30  ;;  %p8621_p8 = scmp.lt.s32.totalorder %s255_s20, %s255_s20 }
 0x13e   :  { %p8622_p9 = scmp.lt.s32.totalorder %s8616_s30, %s8616_s30 }
 0x140   :  { %p8623_p10 = por %p8622_p9, %p8621_p8 }
 0x142   :  { %238 = dma.hbm_to_vmem [thread:$0]  %s10488_s22, 16, %s236_s9, [#allocation18]  }
 0x143   :  { %p8624_p11 = pnand %p8623_p10, %p8617_p7 }
 0x145   :  { %8627 = shalt.err (!%p8624_p11)
}
 0x146   :  { %s8930_s24 = smov 192   ;;  %s10489_s3 = sld [smem:[#allocation83_spill]] }
 0x147   :  { %s8931_s26 = smov 12   ;;  %s8932_s12 = smov [#allocation25]  }
 0x148   :  { %s281_s28 = sshll.u32 %s8932_s12, 4  ;;  %s8933_s5 = smov [#allocation28]   ;;  %s282_s28 = int_to_ptr.vmem [resolvable:$true] %s281_s28 }
 0x149   :  { %s301_s19 = sshll.u32 %s8933_s5, 4  ;;  %s8636_s1 = scalar_lea.vmem %s282_s28, 16  ;;  %s302_s19 = int_to_ptr.vmem [resolvable:$true] %s301_s19 }
 0x14a   :  { %p8637_p12 = scmp.ne.s32.totalorder %s282_s28, %s8636_s1  ;;  %s8640_s2 = scalar_lea.vmem %s282_s28, 32 }
 0x14b   :  { %p8641_p13 = scmp.lt.s32.totalorder %s282_s28, %s282_s28  ;;  %p8642_p0 = scmp.lt.s32.totalorder %s8640_s2, %s8636_s1 }
 0x14c   :  { %260 = dma.hbm_to_vmem [thread:$0]  %s10489_s3, 3072, %s255_s20, [#allocation21], %s8930_s24, %s8930_s24, %s8931_s26  }
 0x14d   :  { %p8643_p1 = por %p8642_p0, %p8641_p13 }
 0x14f   :  { %p8644_p2 = pnand %p8643_p1, %p8637_p12 }
 0x151   :  { %8647 = shalt.err (!%p8644_p2)
}
 0x152   :  { %s10490_s7 = sld [smem:[#allocation85_spill]]  ;;  %s8656_s21 = scalar_lea.vmem %s302_s19, 16 }
 0x153   :  { %p8657_p3 = scmp.ne.s32.totalorder %s302_s19, %s8656_s21  ;;  %s8660_s10 = scalar_lea.vmem %s302_s19, 32 }
 0x154   :  { %p8661_p4 = scmp.lt.s32.totalorder %s302_s19, %s302_s19  ;;  %p8662_p5 = scmp.lt.s32.totalorder %s8660_s10, %s8656_s21 }
 0x156   :  { %p8663_p6 = por %p8662_p5, %p8661_p4 }
 0x158   :  { %284 = dma.hbm_to_vmem [thread:$0]  %s10490_s7, 16, %s282_s28, [#allocation24]  }
 0x159   :  { %p8664_p7 = pnand %p8663_p6, %p8657_p3 }
 0x15b   :  { %8667 = shalt.err (!%p8664_p7)
}
 0x15c   :  { %s10491_s27 = sld [smem:[#allocation86_spill]]  ;;  %s8934_s13 = smov [#allocation31]  }
 0x15d   :  { %s323_s14 = sshll.u32 %s8934_s13, 4  ;;  %s8935_s11 = smov [#allocation34]   ;;  %s324_s14 = int_to_ptr.vmem [resolvable:$true] %s323_s14 }
 0x15e   :  { %s345_s6 = sshll.u32 %s8935_s11, 4  ;;  %s8676_s4 = scalar_lea.vmem %s324_s14, 16  ;;  %s346_s6 = int_to_ptr.vmem [resolvable:$true] %s345_s6 }
 0x15f   :  { %p8677_p8 = scmp.ne.s32.totalorder %s324_s14, %s8676_s4  ;;  %s8680_s15 = scalar_lea.vmem %s324_s14, 32 }
 0x160   :  { %p8681_p9 = scmp.lt.s32.totalorder %s324_s14, %s324_s14  ;;  %p8682_p10 = scmp.lt.s32.totalorder %s8680_s15, %s8676_s4 }
 0x162   :  { %304 = dma.hbm_to_vmem [thread:$0]  %s10491_s27, 16, %s302_s19, [#allocation27]  }
 0x163   :  { %p8683_p11 = por %p8682_p10, %p8681_p9 }
 0x165   :  { %p8684_p12 = pnand %p8683_p11, %p8677_p8 }
 0x167   :  { %8687 = shalt.err (!%p8684_p12)
}
 0x168   :  { %s10492_s0 = sld [smem:[#allocation87_spill]]  ;;  %s8696_s9 = scalar_lea.vmem %s346_s6, 32 }
 0x169   :  { %p8697_p13 = scmp.ne.s32.totalorder %s346_s6, %s8696_s9  ;;  %p8701_p0 = scmp.lt.s32.totalorder %s346_s6, %s346_s6 }
 0x16a   :  { %p8702_p1 = scmp.lt.s32.totalorder %s8696_s9, %s8696_s9 }
 0x16c   :  { %p8703_p2 = por %p8702_p1, %p8701_p0 }
 0x16e   :  { %326 = dma.hbm_to_vmem [thread:$0]  %s10492_s0, 16, %s324_s14, [#allocation30]  }
 0x16f   :  { %p8704_p3 = pnand %p8703_p2, %p8697_p13 }
 0x171   :  { %8707 = shalt.err (!%p8704_p3)
}
 0x172   :  { %s10493_s16 = sld [smem:[#allocation88_spill]]  ;;  %s8936_s20 = smov [#allocation37]  }
 0x173   :  { %s367_s17 = sshll.u32 %s8936_s20, 4  ;;  %s8937_s23 = smov [#allocation40]   ;;  %s368_s17 = int_to_ptr.vmem [resolvable:$true] %s367_s17 }
 0x174   :  { %s387_s22 = sshll.u32 %s8937_s23, 4  ;;  %s8716_s30 = scalar_lea.vmem %s368_s17, 16  ;;  %s388_s22 = int_to_ptr.vmem [resolvable:$true] %s387_s22 }
 0x175   :  { %p8717_p4 = scmp.ne.s32.totalorder %s368_s17, %s8716_s30  ;;  %s8720_s24 = scalar_lea.vmem %s368_s17, 32 }
 0x176   :  { %p8721_p5 = scmp.lt.s32.totalorder %s368_s17, %s368_s17  ;;  %p8722_p6 = scmp.lt.s32.totalorder %s8720_s24, %s8716_s30 }
 0x178   :  { %348 = dma.hbm_to_vmem [thread:$0]  %s10493_s16, 32, %s346_s6, [#allocation33]  }
 0x179   :  { %p8723_p7 = por %p8722_p6, %p8721_p5 }
 0x17b   :  { %p8724_p8 = pnand %p8723_p7, %p8717_p4 }
 0x17d   :  { %8727 = shalt.err (!%p8724_p8)
}
 0x17e   :  { %s10494_s3 = sld [smem:[#allocation89_spill]]  ;;  %s8736_s26 = scalar_lea.vmem %s388_s22, 16 }
 0x17f   :  { %p8737_p9 = scmp.ne.s32.totalorder %s388_s22, %s8736_s26  ;;  %s8740_s12 = scalar_lea.vmem %s388_s22, 32 }
 0x180   :  { %p8741_p10 = scmp.lt.s32.totalorder %s388_s22, %s388_s22  ;;  %p8742_p11 = scmp.lt.s32.totalorder %s8740_s12, %s8736_s26 }
 0x182   :  { %p8743_p12 = por %p8742_p11, %p8741_p10 }
 0x184   :  { %370 = dma.hbm_to_vmem [thread:$0]  %s10494_s3, 16, %s368_s17, [#allocation36]  }
 0x185   :  { %p8744_p13 = pnand %p8743_p12, %p8737_p9 }
 0x187   :  { %8747 = shalt.err (!%p8744_p13)
}
 0x188   :  { %s10495_s28 = sld [smem:[#allocation90_spill]]  ;;  %s8938_s5 = smov [#allocation43]  }
 0x189   :  { %s409_s19 = sshll.u32 %s8938_s5, 4  ;;  %s8939_s1 = smov [#allocation46]   ;;  %s410_s19 = int_to_ptr.vmem [resolvable:$true] %s409_s19 }
 0x18a   :  { %s431_s2 = sshll.u32 %s8939_s1, 4  ;;  %s8756_s7 = scalar_lea.vmem %s410_s19, 32  ;;  %s432_s2 = int_to_ptr.vmem [resolvable:$true] %s431_s2 }
 0x18b   :  { %p8757_p0 = scmp.ne.s32.totalorder %s410_s19, %s8756_s7  ;;  %p8761_p1 = scmp.lt.s32.totalorder %s410_s19, %s410_s19 }
 0x18c   :  { %p8762_p2 = scmp.lt.s32.totalorder %s8756_s7, %s8756_s7 }
 0x18e   :  { %390 = dma.hbm_to_vmem [thread:$0]  %s10495_s28, 16, %s388_s22, [#allocation39]  }
 0x18f   :  { %p8763_p3 = por %p8762_p2, %p8761_p1 }
 0x191   :  { %p8764_p4 = pnand %p8763_p3, %p8757_p0 }
 0x193   :  { %8767 = shalt.err (!%p8764_p4)
}
 0x194   :  { %s10496_s21 = sld [smem:[#allocation91_spill]]  ;;  %s8776_s10 = scalar_lea.vmem %s432_s2, 16 }
 0x195   :  { %p8777_p5 = scmp.ne.s32.totalorder %s432_s2, %s8776_s10  ;;  %s8780_s27 = scalar_lea.vmem %s432_s2, 32 }
 0x196   :  { %p8781_p6 = scmp.lt.s32.totalorder %s432_s2, %s432_s2  ;;  %p8782_p7 = scmp.lt.s32.totalorder %s8780_s27, %s8776_s10 }
 0x198   :  { %p8783_p8 = por %p8782_p7, %p8781_p6 }
 0x19a   :  { %412 = dma.hbm_to_vmem [thread:$0]  %s10496_s21, 32, %s410_s19, [#allocation42]  }
 0x19b   :  { %p8784_p9 = pnand %p8783_p8, %p8777_p5 }
 0x19d   :  { %8787 = shalt.err (!%p8784_p9)
}
 0x19e   :  { %s10497_s13 = sld [smem:[#allocation92_spill]]  ;;  %s8940_s14 = smov [#allocation49]  }
 0x19f   :  { %s451_s11 = sshll.u32 %s8940_s14, 4  ;;  %s452_s11 = int_to_ptr.vmem [resolvable:$true] %s451_s11 }
 0x1a0   :  { %s8796_s6 = scalar_lea.vmem %s452_s11, 16  ;;  %s8800_s4 = scalar_lea.vmem %s452_s11, 32 }
 0x1a1   :  { %p8797_p10 = scmp.ne.s32.totalorder %s452_s11, %s8796_s6  ;;  %p8801_p11 = scmp.lt.s32.totalorder %s452_s11, %s452_s11 }
 0x1a2   :  { %p8802_p12 = scmp.lt.s32.totalorder %s8800_s4, %s8796_s6 }
 0x1a4   :  { %434 = dma.hbm_to_vmem [thread:$0]  %s10497_s13, 16, %s432_s2, [#allocation45]  }
 0x1a5   :  { %p8803_p13 = por %p8802_p12, %p8801_p11 }
 0x1a7   :  { %p8804_p0 = pnand %p8803_p13, %p8797_p10 }
 0x1a9   :  { %8807 = shalt.err (!%p8804_p0)
}
 0x1aa   :  { %454 = dma.hbm_to_vmem [thread:$0]  %s9155_s25, 16, %s452_s11, [#allocation48]  }
 0x1ab   :  { %8828 = dma.done.wait [#allocation3], 16  }
 0x1ac   :  { %8829 = vsyncadd [#allocation3], 4294967280 }
 0x1ad   :  { %8830 = dma.done.wait [#allocation6], 1040  }
 0x1ae   :  { %8831 = vsyncadd [#allocation6], 4294966256 }
 0x1af   :  { %8832 = dma.done.wait [#allocation9], 32  }
 0x1b0   :  { %8833 = vsyncadd [#allocation9], 4294967264 }
 0x1b1   :  { %8834 = dma.done.wait [#allocation12], 2080  }
 0x1b2   :  { %8835 = vsyncadd [#allocation12], 4294965216 }
 0x1b3   :  { %8836 = dma.done.wait [#allocation15], 32  }
 0x1b4   :  { %8837 = vsyncadd [#allocation15], 4294967264 }
 0x1b5   :  { %8838 = dma.done.wait [#allocation18], 32  }
 0x1b6   :  { %8839 = vsyncadd [#allocation18], 4294967264 }
 0x1b7   :  { %8840 = dma.done.wait [#allocation21], 3088  }
 0x1b8   :  { %8841 = vsyncadd [#allocation21], 4294964208 }
 0x1b9   :  { %8842 = dma.done.wait [#allocation24], 1040  }
 0x1ba   :  { %8843 = vsyncadd [#allocation24], 4294966256 }
 0x1bb   :  { %8844 = dma.done.wait [#allocation27], 32  }
 0x1bc   :  { %8845 = vsyncadd [#allocation27], 4294967264 }
 0x1bd   :  { %8846 = dma.done.wait [#allocation30], 1040  }
 0x1be   :  { %8847 = vsyncadd [#allocation30], 4294966256 }
 0x1bf   :  { %8848 = dma.done.wait [#allocation33], 2080  }
 0x1c0   :  { %8849 = vsyncadd [#allocation33], 4294965216 }
 0x1c1   :  { %8850 = dma.done.wait [#allocation36], 1040  }
 0x1c2   :  { %8851 = vsyncadd [#allocation36], 4294966256 }
 0x1c3   :  { %8852 = dma.done.wait [#allocation39], 32  }
 0x1c4   :  { %8853 = vsyncadd [#allocation39], 4294967264 }
 0x1c5   :  { %8854 = dma.done.wait [#allocation42], 2080  }
 0x1c6   :  { %8855 = vsyncadd [#allocation42], 4294965216 }
 0x1c7   :  { %8856 = dma.done.wait [#allocation45], 2064  }
 0x1c8   :  { %8857 = vsyncadd [#allocation45], 4294965232 }
 0x1c9   :  { %8858 = dma.done.wait [#allocation48], 32  }
 0x1ca   :  { %8859 = vsyncadd [#allocation48], 4294967264  ;;  %s10498_s25 = sld [smem:[#allocation68_spill]]  ;;  %v8941_v41 = vmov 0   ;;  %vm976_vm0 = vcmask 261120   ;;  %s8943_s17 = smov 96  }
 0x1cb   :  { %s10499_s15 = sld [smem:[#allocation75_spill]]  ;;  %885 = vmatprep.mubr.bf16.mxu0 %v8941_v41  ;;  %7633 = vset.pattern.permute.xlu1 %v8941_v41  ;;  %s8944_s23 = smov 32  }
 0x1cc   :  { %7632 = vset.pattern.permute.xlu0 %v8941_v41  ;;  %s10500_s0 = sld [smem:[#allocation73_spill]]  ;;  %s8946_s26 = smov [#allocation50]  }
 0x1cd   :  { %s10501_s9 = sld [smem:[#allocation71_spill]]  ;;  %s6528_s12 = sshll.u32 %s8946_s26, 4  ;;  %s6529_s12 = int_to_ptr.vmem [resolvable:$true] %s6528_s12 }
 0x1ce   :  { %s10502_s16 = sld [smem:[#allocation76_spill]]  ;;  %s8808_s28 = scalar_lea.vmem %s6529_s12, 16 }
 0x1cf   :  { %s10503_s20 = sld [smem:[#allocation72_spill]]  ;;  %p8809_p1 = scmp.ne.s32.totalorder %s6529_s12, %s8808_s28 }
 0x1d0   :  { %v6884_v0 = vld [vmem:[%s10498_s25] sm:$0xff]   ;;  %v6899_v1 = vld [vmem:[%s10498_s25 + $0x8] sm:$0xff]   ;;  %s10504_s22 = sld [smem:[#allocation69_spill]]  ;;  %s8812_s5 = scalar_lea.vmem %s6529_s12, 32 }
 0x1d1   :  { %v6885_v2 = vunpack.c.l.bf16 %v6884_v0  ;;  %v6889_v3 = vunpack.c.l.bf16 %v6899_v1  ;;  %v6886_v4 = vunpack.c.h.bf16 %v6884_v0  ;;  %v6890_v5 = vunpack.c.h.bf16 %v6899_v1  ;;  %v7634_v6 = vld [vmem:[%s10499_s15 + $0xac] ss:$12 sps:$4 sm:$0xff]   ;;  %v7636_v7 = vld [vmem:[%s10499_s15 + $0xa8] ss:$12 sps:$4 sm:$0xff]   ;;  %v7639_v25 = vld [vmem:[%s10499_s15 + $0xb0] ss:$12 sps:$4 sm:$0xff]   ;;  %p8813_p2 = scmp.lt.s32.totalorder %s6529_s12, %s6529_s12  ;;  %p8814_p3 = scmp.lt.s32.totalorder %s8812_s5, %s8808_s28 }
 0x1d2   :  { %853 = vmatprep.subr.bf16.mxu0 %v7634_v6  ;;  %v7637_v24 = vld [vmem:[%s10499_s15 + $0x94] ss:$12 sps:$4 sm:$0xff]   ;;  %v7640_v26 = vld [vmem:[%s10499_s15 + $0x90] ss:$12 sps:$4 sm:$0xff]   ;;  %7171 = vmatprep.subr.bf16.mxu1 %v7639_v25  ;;  %v7643_v28 = vld [vmem:[%s10499_s15 + $0x98] ss:$12 sps:$4 sm:$0xff]  }
 0x1d3   :  { %609 = vadd.xlane.f32.xlu0 %v6885_v2  ;;  %613 = vadd.xlane.f32.xlu1 %v6889_v3  ;;  %v7641_v27 = vld [vmem:[%s10499_s15 + $0x7c] ss:$12 sps:$4 sm:$0xff]   ;;  %v7644_v29 = vld [vmem:[%s10499_s15 + $0x78] ss:$12 sps:$4 sm:$0xff]   ;;  %v7647_v31 = vld [vmem:[%s10499_s15 + $0x80] ss:$12 sps:$4 sm:$0xff]   ;;  %p8815_p4 = por %p8814_p3, %p8813_p2 }
 0x1d4   :  { %854 = vmatpush1.bf16.msra.mxu0 %v7636_v7  ;;  %7172 = vmatpush3.bf16.msra.mxu1 %v7639_v25  ;;  %v7645_v30 = vld [vmem:[%s10499_s15 + $0x64] ss:$12 sps:$4 sm:$0xff]   ;;  %v7648_v32 = vld [vmem:[%s10499_s15 + $0x60] ss:$12 sps:$4 sm:$0xff]   ;;  %v7651_v34 = vld [vmem:[%s10499_s15 + $0x68] ss:$12 sps:$4 sm:$0xff]  }
 0x1d5   :  { %855 = vmatprep.subr.bf16.mxu0 %v7637_v24  ;;  %7173 = vmatprep.subr.bf16.mxu1 %v7643_v28  ;;  %v7649_v33 = vld [vmem:[%s10499_s15 + $0x4c] ss:$12 sps:$4 sm:$0xff]   ;;  %v7652_v35 = vld [vmem:[%s10499_s15 + $0x48] ss:$12 sps:$4 sm:$0xff]   ;;  %v7655_v37 = vld [vmem:[%s10499_s15 + $0x50] ss:$12 sps:$4 sm:$0xff]   ;;  %p8816_p5 = pnand %p8815_p4, %p8809_p1 }
 0x1d6   :  { %v7653_v36 = vld [vmem:[%s10499_s15 + $0x34] ss:$12 sps:$4 sm:$0xff]   ;;  %v7656_v38 = vld [vmem:[%s10499_s15 + $0x30] ss:$12 sps:$4 sm:$0xff]   ;;  %v7659_v40 = vld [vmem:[%s10499_s15 + $0x38] ss:$12 sps:$4 sm:$0xff]  }
 0x1d7   :  { %611 = vadd.xlane.f32.xlu0 %v6886_v4  ;;  %615 = vadd.xlane.f32.xlu1 %v6890_v5  ;;  %v7657_v39 = vld [vmem:[%s10499_s15 + $0x1c] ss:$12 sps:$4 sm:$0xff]   ;;  %v7660_v42 = vld [vmem:[%s10499_s15 + $0x18] ss:$12 sps:$4 sm:$0xff]   ;;  %v7663_v44 = vld [vmem:[%s10499_s15 + $0x20] ss:$12 sps:$4 sm:$0xff]  }
 0x1d8   :  { %856 = vmatpush1.bf16.msra.mxu0 %v7640_v26  ;;  %7174 = vmatpush3.bf16.msra.mxu1 %v7643_v28  ;;  %v7661_v43 = vld [vmem:[%s10499_s15 + $0x4] ss:$12 sps:$4 sm:$0xff]   ;;  %v7664_v45 = vld [vmem:[%s10499_s15] ss:$12 sps:$4 sm:$0xff]   ;;  %v7665_v46 = vld [vmem:[%s10499_s15 + $0x8] ss:$12 sps:$4 sm:$0xff]  }
 0x1d9   :  { %857 = vmatprep.subr.bf16.mxu0 %v7641_v27  ;;  %7175 = vmatprep.subr.bf16.mxu1 %v7647_v31  ;;  %v6595_v61 = vld [vmem:[%s10500_s0] ss:$0 sm:$0xff]  ;;  %s10505_s30 = sld [smem:[#allocation79_spill]] }
 0x1da   :  { %s10506_s24 = sld [smem:[#allocation84_spill]] }
 0x1dc   :  { %858 = vmatpush1.bf16.msra.mxu0 %v7644_v29  ;;  %7176 = vmatpush3.bf16.msra.mxu1 %v7647_v31 }
 0x1dd   :  { %859 = vmatprep.subr.bf16.mxu0 %v7645_v30  ;;  %7177 = vmatprep.subr.bf16.mxu1 %v7651_v34 }
 0x1e0   :  { %860 = vmatpush1.bf16.msra.mxu0 %v7648_v32  ;;  %7178 = vmatpush3.bf16.msra.mxu1 %v7651_v34 }
 0x1e1   :  { %861 = vmatprep.subr.bf16.mxu0 %v7649_v33  ;;  %7179 = vmatprep.subr.bf16.mxu1 %v7655_v37 }
 0x1e4   :  { %862 = vmatpush1.bf16.msra.mxu0 %v7652_v35  ;;  %7180 = vmatpush3.bf16.msra.mxu1 %v7655_v37 }
 0x1e5   :  { %863 = vmatprep.subr.bf16.mxu0 %v7653_v36  ;;  %7181 = vmatprep.subr.bf16.mxu1 %v7659_v40 }
 0x1e8   :  { %864 = vmatpush1.bf16.msra.mxu0 %v7656_v38  ;;  %7182 = vmatpush3.bf16.msra.mxu1 %v7659_v40 }
 0x1e9   :  { %865 = vmatprep.subr.bf16.mxu0 %v7657_v39  ;;  %7183 = vmatprep.subr.bf16.mxu1 %v7663_v44 }
 0x1ec   :  { %866 = vmatpush1.bf16.msra.mxu0 %v7660_v42  ;;  %7184 = vmatpush3.bf16.msra.mxu1 %v7663_v44 }
 0x1ed   :  { %867 = vmatprep.subr.bf16.mxu0 %v7661_v43  ;;  %7185 = vmatprep.subr.bf16.mxu1 %v7665_v46 }
 0x1f0   :  { %868 = vmatpush1.bf16.msra.mxu0 %v7664_v45  ;;  %7186 = vmatpush3.bf16.msra.mxu1 %v7665_v46 }
 0x25c   :  { %v610_v8 = vpop.xlane.xlu0 %609  ;;  %v614_v9 = vpop.xlane.xlu1 %613 }
 0x25d   :  { %v618_v10 = vmul.f32 0.0078125, %v610_v8  ;;  %v620_v11 = vmul.f32 0.0078125, %v614_v9 }
 0x25f   :  { %v9226_v12 = vsub.f32 %v6885_v2, %v618_v10  ;;  %v9228_v13 = vsub.f32 %v6889_v3, %v620_v11  ;;  %v6596_v2 = vld [vmem:[#allocation2] ss:$0 sm:$0xff] }
 0x260   :  { %v612_v14 = vpop.xlane.xlu0 %611  ;;  %v616_v15 = vpop.xlane.xlu1 %615 }
 0x261   :  { %v619_v16 = vmul.f32 0.0078125, %v612_v14  ;;  %v626_v17 = vmul.f32 %v9226_v12, %v9226_v12  ;;  %v621_v18 = vmul.f32 0.0078125, %v616_v15  ;;  %v628_v19 = vmul.f32 %v9228_v13, %v9228_v13  ;;  %v559_v15 = vld [vmem:[%s10501_s9 + $0x8] sm:$0xff] }
 0x263   :  { %630 = vadd.xlane.f32.xlu0 %v626_v17  ;;  %v9234_v20 = vsub.f32 %v6886_v4, %v619_v16  ;;  %v9236_v21 = vsub.f32 %v6890_v5, %v621_v18  ;;  %v558_v16 = vld [vmem:[%s10501_s9] sm:$0xff]  ;;  %v560_v17 = vld [vmem:[%s10501_s9 + $0x10] sm:$0xff]  ;;  %v561_v18 = vld [vmem:[%s10501_s9 + $0x18] sm:$0xff] }
 0x265   :  { %v627_v22 = vmul.f32 %v9234_v20, %v9234_v20  ;;  %v629_v23 = vmul.f32 %v9236_v21, %v9236_v21 }
 0x267   :  { %634 = vadd.xlane.f32.xlu0 %v628_v19  ;;  %632 = vadd.xlane.f32.xlu1 %v627_v22  ;;  %v551_v19 = vlaneseq  ;;  %v708_v22 = vld [vmem:[%s10502_s16] sm:$0x7] }
 0x26b   :  { %636 = vadd.xlane.f32.xlu1 %v629_v23 }
 0x27c   :  { %567 = vperm.xlu1 %7633, %v559_v15  }
 0x27d   :  { %564 = vperm.xlu0 %7632, %v558_v16  }
 0x280   :  { %570 = vperm.xlu1 %7633, %v560_v17  }
 0x284   :  { %573 = vperm.xlu1 %7633, %v561_v18  }
 0x2ec   :  { %v631_v47 = vpop.xlane.xlu0 %630 }
 0x2ed   :  { %v638_v48 = vmul.f32 0.0078125, %v631_v47 }
 0x2ef   :  { %v642_v49 = vadd.f32 1e-05, %v638_v48 }
 0x2f0   :  { %v633_v50 = vpop.xlane.xlu1 %632  ;;  %v635_v51 = vpop.xlane.xlu0 %634 }
 0x2f1   :  { %7866 = vrsqrt.f32 %v642_v49  ;;  %v639_v52 = vmul.f32 0.0078125, %v633_v50  ;;  %v640_v53 = vmul.f32 0.0078125, %v635_v51 }
 0x2f3   :  { %v643_v54 = vadd.f32 1e-05, %v639_v52  ;;  %v644_v55 = vadd.f32 1e-05, %v640_v53 }
 0x2f4   :  { %v637_v56 = vpop.xlane.xlu1 %636 }
 0x2f5   :  { %7868 = vrsqrt.f32 %v643_v54  ;;  %v641_v57 = vmul.f32 0.0078125, %v637_v56 }
 0x2f6   :  { %7870 = vrsqrt.f32 %v644_v55 }
 0x2f7   :  { %v645_v58 = vadd.f32 1e-05, %v641_v57 }
 0x2f9   :  { %7872 = vrsqrt.f32 %v645_v58 }
 0x2fe   :  { %v7867_v59 = vpop.eup %7866 }
 0x2ff   :  { %v650_v60 = vmul.f32 %v7867_v59, %v9226_v12 }
 0x301   :  { %v660_v1 = vmul.f32 %v6595_v61, %v650_v60 }
 0x302   :  { %v7869_v62 = vpop.eup %7868 }
 0x303   :  { %v7871_v63 = vpop.eup %7870  ;;  %v651_v0 = vmul.f32 %v7869_v62, %v9234_v20  ;;  %v9271_v6 = vadd.f32 %v6596_v2, %v660_v1  ;;  %v9290_v20 = vshrl.u32 %v551_v19, 7  ;;  %v9334_v62 = vpop.permute.xlu0 %564 }
 0x304   :  { %v652_v3 = vmul.f32 %v7871_v63, %v9228_v13 }
 0x305   :  { %v661_v4 = vmul.f32 %v6595_v61, %v651_v0  ;;  %v720_v25 = vsub.s32 2, %v9290_v20  ;;  %v9303_v37 = vsub.s32 1, %v9290_v20  ;;  %v9339_v0 = vld [vmem:[%s10503_s20] ss:$0 sm:$0xff] }
 0x306   :  { %v7873_v5 = vpop.eup %7872  ;;  %v662_v9 = vmul.f32 %v6595_v61, %v652_v3  ;;  %vm579_vm1 = vcmp.eq.s32.totalorder %v9334_v62, %v9339_v0  ;;  %v8942_v3 = vmov -1e+09  }
 0x307   :  { %v9273_v7 = vadd.f32 %v6596_v2, %v661_v4  ;;  %v653_v8 = vmul.f32 %v7873_v5, %v9236_v21  ;;  %v9293_v21 = vsub.s32 0, %v9290_v20  ;;  %v721_v31 = vrot.slane %v708_v22, %v720_v25 }
 0x308   :  { %v9278_v12 = vadd.f32 %v6596_v2, %v662_v9  ;;  %v717_v47 = vrot.slane %v708_v22, %v9303_v37  ;;  %v9349_v4 = vsel %vm579_vm1, 0.0, %v8942_v3 }
 0x309   :  { %v706_v10 = vpack.c.bf16 %v9273_v7, %v9271_v6  ;;  %v663_v11 = vmul.f32 %v6595_v61, %v653_v8  ;;  %v713_v24 = vrot.slane %v708_v22, %v9293_v21  ;;  %v9332_v61 = vpop.permute.xlu1 %567 }
 0x30a   :  { %vm580_vm3 = vcmp.eq.s32.totalorder %v9332_v61, %v9339_v0 }
 0x30b   :  { %886 = vmatmul.mubr.bf16.vlgmr.msra.gmra.mxu0 %v706_v10  ;;  %7187 = vmatprep.mubr.bf16.mxu1 %v706_v10  ;;  %v9280_v13 = vadd.f32 %v6596_v2, %v663_v11 }
 0x30c   :  { %895 = vmatprep.mubr.bf16.mxu0 %v8941_v41 }
 0x30d   :  { %v707_v14 = vpack.c.bf16 %v9280_v13, %v9278_v12  ;;  %v9336_v63 = vpop.permute.xlu1 %570 }
 0x30e   :  { %vm581_vm2 = vcmp.eq.s32.totalorder %v9336_v63, %v9339_v0 }
 0x30f   :  { %7188 = vmatmul.mubr.bf16.vlgmr.msra.gmra.mxu1 %v707_v14  ;;  %v9357_v10 = vsel %vm581_vm2, 0.0, %v8942_v3 }
 0x311   :  { %v9351_v9 = vpop.permute.xlu1 %573 }
 0x312   :  { %vm582_vm4 = vcmp.eq.s32.totalorder %v9351_v9, %v9339_v0 }
 0x313   :  { %896 = vmatmul.mubr.bf16.gmra.mxu0 %v707_v14 }
 0x3cb   :  { %v887_v23 = vpop.f32.mrf.mxu0 }
 0x3cc   :  { %v888_v29 = vadd.f32 %v887_v23, %v713_v24  ;;  %v9370_v23 = vsel %vm580_vm3, 0.0, %v8942_v3 }
 0x3cd   :  { %v889_v26 = vpop.f32.mrf.mxu0 }
 0x3ce   :  { %v890_v53 = vadd.f32 %v889_v26, %v717_v47  ;;  %v9377_v26 = vsel %vm582_vm4, 0.0, %v8942_v3 }
 0x3cf   :  { %v891_v27 = vpop.f32.mrf.mxu0  ;;  %v7189_v28 = vpop.f32.mrf.mxu1 }
 0x3d0   :  { %v892_v30 = vadd.f32 %v891_v27, %v713_v24  ;;  %v949_v38 = vadd.f32 %v7189_v28, %v721_v31 }
 0x3d1   :  { %v893_v32 = vpop.f32.mrf.mxu0  ;;  %v940_v33 = vpop.f32.mrf.mxu1 }
 0x3d2   :  { %v9300_v34 = vpack.c.bf16 %v892_v30, %v888_v29  ;;  %v941_v43 = vadd.f32 %v940_v33, %v721_v31  ;;  %v894_v50 = vadd.f32 %v893_v32, %v717_v47 }
 0x3d3   :  { %v897_v35 = vpop.f32.mrf.mxu0  ;;  %v7190_v36 = vpop.f32.mrf.mxu1 }
 0x3d4   :  { %v952_v39 = vadd.f32 %v7190_v36, %v721_v31  ;;  %7195 = vmatprep.mubr.msk.bf16.mxu0 %vm976_vm0, %v9300_v34  ;;  %v9318_v55 = vpack.c.bf16 %v894_v50, %v890_v53  ;;  %v898_v59 = vadd.f32 %v897_v35, %v713_v24 }
 0x3d5   :  { %v899_v40 = vpop.f32.mrf.mxu0  ;;  %v943_v42 = vpop.f32.mrf.mxu1 }
 0x3d6   :  { %v9307_v44 = vpack.c.bf16 %v952_v39, %v949_v38  ;;  %v944_v45 = vadd.f32 %v943_v42, %v721_v31  ;;  %v900_v51 = vadd.f32 %v899_v40, %v717_v47  ;;  %v984_v57 = vsel %vm976_vm0, %v9318_v55, 0 }
 0x3d7   :  { %v901_v46 = vpop.f32.mrf.mxu0 }
 0x3d8   :  { %v9310_v48 = vpack.c.bf16 %v944_v45, %v941_v43  ;;  %7199 = vmatprep.subr.bf16.mxu1 %v9307_v44  ;;  %v902_v58 = vadd.f32 %v901_v46, %v713_v24 }
 0x3d9   :  { %v903_v49 = vpop.f32.mrf.mxu0  ;;  %7200 = vmatpush3.bf16.msra.mxu1 %v9307_v44 }
 0x3da   :  { %v904_v52 = vadd.f32 %v903_v49, %v717_v47  ;;  %7201 = vmatprep.subr.bf16.mxu1 %v9310_v48  ;;  %v9328_v60 = vpack.c.bf16 %v902_v58, %v898_v59 }
 0x3dc   :  { %v9315_v54 = vpack.c.bf16 %v904_v52, %v900_v51 }
 0x3dd   :  { %7202 = vmatpush3.bf16.msra.mxu1 %v9310_v48 }
 0x3de   :  { %7519 = vmatprep.subr.msk.bf16.mxu0 %vm976_vm0, %v9315_v54  ;;  %v987_v56 = vsel %vm976_vm0, %v9315_v54, 0 }
 0x3df   :  { %7192 = vmatpush3.bf16.xpose.msra.mxu0 %v987_v56 }
 0x3e0   :  { %7520 = vmatprep.subr.msk.bf16.mxu0 %vm976_vm0, %v9318_v55 }
 0x3e7   :  { %7194 = vmatpush3.bf16.xpose.msra.mxu0 %v984_v57 }
 0x3ee   :  { %7196 = vmatmul.mubr.msk.bf16.vlgmr.msra.gmra.mxu0 %vm976_vm0, %v9328_v60 }
 0x4ae   :  { %v7197_v1 = vpop.f32.mrf.mxu0 }
 0x4af   :  { %v1040_v5 = vmul.f32 0.17677669, %v7197_v1 }
 0x4b0   :  { %v1023_v2 = vpop.f32.mrf.mxu0 }
 0x4b1   :  { %v1038_v8 = vmul.f32 0.17677669, %v1023_v2  ;;  %v1044_v22 = vadd.f32 %v1040_v5, %v9357_v10 }
 0x4b2   :  { %v7198_v11 = vpop.f32.mrf.mxu0 }
 0x4b3   :  { %v1042_v14 = vadd.f32 %v1038_v8, %v9349_v4  ;;  %v1041_v16 = vmul.f32 0.17677669, %v7198_v11  ;;  %v1052_v28 = vsel %vm976_vm0, %v1044_v22, -inf }
 0x4b4   :  { %v1026_v15 = vpop.f32.mrf.mxu0 }
 0x4b5   :  { %v1039_v17 = vmul.f32 0.17677669, %v1026_v15  ;;  %v1046_v18 = vsel %vm976_vm0, %v1042_v14, -inf  ;;  %v1045_v29 = vadd.f32 %v1041_v16, %v9377_v26 }
 0x4b6   :  { %1047 = vmax.xlane.f32.xlu1 %v1046_v18 }
 0x4b7   :  { %v1043_v24 = vadd.f32 %v1039_v17, %v9370_v23  ;;  %v1055_v30 = vsel %vm976_vm0, %v1045_v29, -inf }
 0x4b9   :  { %v1049_v27 = vsel %vm976_vm0, %v1043_v24, -inf }
 0x4ba   :  { %1050 = vmax.xlane.f32.xlu0 %v1049_v27  ;;  %1053 = vmax.xlane.f32.xlu1 %v1052_v28 }
 0x4be   :  { %1056 = vmax.xlane.f32.xlu1 %v1055_v30 }
 0x53f   :  { %v1048_v31 = vpop.xlane.xlu1 %1047 }
 0x540   :  { %v1058_v32 = vsub.f32 %v1042_v14, %v1048_v31 }
 0x542   :  { %v1062_v33 = vmul.f32 1.442695, %v1058_v32 }
 0x543   :  { %v1054_v35 = vpop.xlane.xlu1 %1053  ;;  %v1051_v36 = vpop.xlane.xlu0 %1050 }
 0x544   :  { %7874 = vpow2.f32 %v1062_v33  ;;  %v1060_v38 = vsub.f32 %v1044_v22, %v1054_v35  ;;  %v1059_v39 = vsub.f32 %v1043_v24, %v1051_v36  ;;  %v7666_v33 = vld [vmem:[#allocation5 + $0x8] sm:$0xff]   ;;  %v7667_v35 = vld [vmem:[#allocation5] sm:$0xff]  }
 0x546   :  { %v1066_v40 = vmul.f32 1.442695, %v1060_v38  ;;  %v1064_v42 = vmul.f32 1.442695, %v1059_v39 }
 0x547   :  { %v1057_v43 = vpop.xlane.xlu1 %1056 }
 0x548   :  { %7876 = vpow2.f32 %v1066_v40  ;;  %v1061_v45 = vsub.f32 %v1045_v29, %v1057_v43 }
 0x549   :  { %7878 = vpow2.f32 %v1064_v42 }
 0x54a   :  { %v1068_v46 = vmul.f32 1.442695, %v1061_v45 }
 0x54c   :  { %7880 = vpow2.f32 %v1068_v46 }
 0x551   :  { %v7875_v47 = vpop.eup %7874 }
 0x552   :  { %v1070_v49 = vsel %vm976_vm0, %v7875_v47, 0.0 }
 0x553   :  { %1071 = vadd.xlane.f32.xlu1 %v1070_v49 }
 0x555   :  { %v7877_v50 = vpop.eup %7876 }
 0x556   :  { %v7879_v51 = vpop.eup %7878  ;;  %v1076_v52 = vsel %vm976_vm0, %v7877_v50, 0.0 }
 0x557   :  { %1077 = vadd.xlane.f32.xlu0 %v1076_v52  ;;  %v1073_v53 = vsel %vm976_vm0, %v7879_v51, 0.0 }
 0x558   :  { %1074 = vadd.xlane.f32.xlu1 %v1073_v53 }
 0x559   :  { %v7881_v56 = vpop.eup %7880 }
 0x55a   :  { %v1079_v57 = vsel %vm976_vm0, %v7881_v56, 0.0 }
 0x55c   :  { %1080 = vadd.xlane.f32.xlu1 %v1079_v57 }
 0x56d   :  { %1159 = vrot.lane.b32.xlu1 %v9318_v55, %s8943_s17  ;;  %1161 = vrot.lane.b32.xlu0 %v9315_v54, %s8943_s17 }
 0x571   :  { %1153 = vrot.lane.b32.xlu1 %v9300_v34, %s8943_s17  ;;  %1155 = vrot.lane.b32.xlu0 %v9328_v60, %s8943_s17 }
 0x5dc   :  { %v1072_v58 = vpop.xlane.xlu1 %1071 }
 0x5dd   :  { %7882 = vrcp.f32 %v1072_v58 }
 0x5e0   :  { %v1078_v59 = vpop.xlane.xlu0 %1077 }
 0x5e1   :  { %v1075_v1 = vpop.xlane.xlu1 %1074 }
 0x5e2   :  { %7884 = vrcp.f32 %v1075_v1 }
 0x5e3   :  { %7886 = vrcp.f32 %v1078_v59 }
 0x5e4   :  { %v1162_v2 = vpop.permute.xlu0 %1161 }
 0x5e5   :  { %v1081_v5 = vpop.xlane.xlu1 %1080  ;;  %7521 = vmatprep.subr.msk.bf16.mxu1 %vm976_vm0, %v1162_v2  ;;  %v1173_v30 = vsel %vm976_vm0, %v1162_v2, 0 }
 0x5e6   :  { %7888 = vrcp.f32 %v1081_v5 }
 0x5e8   :  { %v1156_v32 = vpop.permute.xlu0 %1155 }
 0x5e9   :  { %v1160_v17 = vpop.permute.xlu1 %1159 }
 0x5ea   :  { %v7883_v8 = vpop.eup %7882  ;;  %v1170_v31 = vsel %vm976_vm0, %v1160_v17, 0 }
 0x5eb   :  { %v1086_v14 = vmul.f32 %v7883_v8, %v7875_v47 }
 0x5ed   :  { %v1154_v29 = vpop.permute.xlu1 %1153 }
 0x5ef   :  { %v7885_v11 = vpop.eup %7884 }
 0x5f0   :  { %v1087_v15 = vmul.f32 %v7885_v11, %v7879_v51  ;;  %v7887_v16 = vpop.eup %7886 }
 0x5f1   :  { %v1088_v24 = vmul.f32 %v7887_v16, %v7877_v50 }
 0x5f2   :  { %v1090_v18 = vpack.c.bf16 %v1087_v15, %v1086_v14 }
 0x5f3   :  { %v7889_v22 = vpop.eup %7888 }
 0x5f4   :  { %7203 = vmatprep.mubr.msk.bf16.mxu1 %vm976_vm0, %v1090_v18  ;;  %v1089_v27 = vmul.f32 %v7889_v22, %v7881_v56 }
 0x5f6   :  { %v1091_v28 = vpack.c.bf16 %v1089_v27, %v1088_v24 }
 0x5f8   :  { %7204 = vmatmul.mubr.msk.bf16.vlgmr.msra.gmra.mxu1 %vm976_vm0, %v1091_v28 }
 0x5f9   :  { %7208 = vmatpush3.bf16.xpose.msra.mxu1 %v1173_v30  ;;  %7211 = vmatprep.mubr.msk.bf16.mxu1 %vm976_vm0, %v1154_v29 }
 0x5fa   :  { %7522 = vmatprep.subr.msk.bf16.mxu1 %vm976_vm0, %v1160_v17 }
 0x601   :  { %7210 = vmatpush3.bf16.xpose.msra.mxu1 %v1170_v31 }
 0x602   :  { %7231 = vmatprep.subr.bf16.mxu1 %v7666_v33 }
 0x608   :  { %7212 = vmatmul.mubr.msk.bf16.vlgmr.msra.gmra.mxu1 %vm976_vm0, %v1156_v32 }
 0x609   :  { %7232 = vmatpush3.bf16.msra.mxu1 %v7666_v33 }
 0x60a   :  { %7233 = vmatprep.subr.bf16.mxu1 %v7667_v35 }
 0x60d   :  { %7234 = vmatpush3.bf16.msra.mxu1 %v7667_v35 }
 0x6b8   :  { %v7205_v36 = vpop.f32.mrf.mxu1 }
 0x6ba   :  { %v1134_v38 = vpop.f32.mrf.mxu1 }
 0x6bc   :  { %v7206_v39 = vpop.f32.mrf.mxu1 }
 0x6bd   :  { %v1150_v43 = vpack.c.bf16 %v7206_v39, %v7205_v36 }
 0x6be   :  { %v1137_v40 = vpop.f32.mrf.mxu1 }
 0x6bf   :  { %v1149_v42 = vpack.c.bf16 %v1137_v40, %v1134_v38 }
 0x6c1   :  { %7235 = vmatprep.mubr.msk.bf16.mxu1 %vm976_vm0, %v1149_v42 }
 0x6c2   :  { %7236 = vmatmul.mubr.msk.bf16.vlgmr.msra.gmra.mxu1 %vm976_vm0, %v1150_v43 }
 0x6c8   :  { %v7213_v45 = vpop.f32.mrf.mxu1 }
 0x6c9   :  { %v1226_v53 = vmul.f32 0.17677669, %v7213_v45 }
 0x6ca   :  { %v1209_v46 = vpop.f32.mrf.mxu1 }
 0x6cb   :  { %v1224_v47 = vmul.f32 0.17677669, %v1209_v46  ;;  %v1230_v5 = vadd.f32 %v1226_v53, %v9357_v10 }
 0x6cc   :  { %v7214_v49 = vpop.f32.mrf.mxu1 }
 0x6cd   :  { %v1227_v50 = vmul.f32 0.17677669, %v7214_v49  ;;  %v1228_v51 = vadd.f32 %v1224_v47, %v9349_v4  ;;  %v1238_v8 = vsel %vm976_vm0, %v1230_v5, -inf  ;;  %v7668_v47 = vld [vmem:[#allocation5 + $0x18] sm:$0xff]  }
 0x6ce   :  { %v1212_v52 = vpop.f32.mrf.mxu1 }
 0x6cf   :  { %v1225_v56 = vmul.f32 0.17677669, %v1212_v52  ;;  %v1232_v57 = vsel %vm976_vm0, %v1228_v51, -inf  ;;  %v1231_v58 = vadd.f32 %v1227_v50, %v9377_v26 }
 0x6d0   :  { %1233 = vmax.xlane.f32.xlu1 %v1232_v57 }
 0x6d1   :  { %v1229_v59 = vadd.f32 %v1225_v56, %v9370_v23  ;;  %v1241_v1 = vsel %vm976_vm0, %v1231_v58, -inf }
 0x6d3   :  { %v1235_v2 = vsel %vm976_vm0, %v1229_v59, -inf }
 0x6d4   :  { %1242 = vmax.xlane.f32.xlu1 %v1241_v1  ;;  %1236 = vmax.xlane.f32.xlu0 %v1235_v2 }
 0x6d8   :  { %1239 = vmax.xlane.f32.xlu0 %v1238_v8 }
 0x759   :  { %v1234_v11 = vpop.xlane.xlu1 %1233 }
 0x75a   :  { %v1244_v18 = vsub.f32 %v1228_v51, %v1234_v11 }
 0x75c   :  { %v1248_v29 = vmul.f32 1.442695, %v1244_v18 }
 0x75d   :  { %v1243_v14 = vpop.xlane.xlu1 %1242  ;;  %v1237_v15 = vpop.xlane.xlu0 %1236 }
 0x75e   :  { %v1247_v16 = vsub.f32 %v1231_v58, %v1243_v14  ;;  %v1245_v17 = vsub.f32 %v1229_v59, %v1237_v15  ;;  %v7669_v59 = vld [vmem:[#allocation5 + $0x10] sm:$0xff]  }
 0x760   :  { %v1254_v22 = vmul.f32 1.442695, %v1247_v16  ;;  %v1250_v24 = vmul.f32 1.442695, %v1245_v17 }
 0x761   :  { %v1240_v27 = vpop.xlane.xlu0 %1239 }
 0x762   :  { %7890 = vpow2.f32 %v1254_v22  ;;  %v1246_v28 = vsub.f32 %v1230_v5, %v1240_v27 }
 0x763   :  { %7892 = vpow2.f32 %v1250_v24 }
 0x764   :  { %v1252_v30 = vmul.f32 1.442695, %v1246_v28 }
 0x766   :  { %7894 = vpow2.f32 %v1252_v30 }
 0x767   :  { %7896 = vpow2.f32 %v1248_v29 }
 0x76f   :  { %v7891_v31 = vpop.eup %7890 }
 0x770   :  { %v1265_v32 = vsel %vm976_vm0, %v7891_v31, 0.0  ;;  %v7893_v33 = vpop.eup %7892 }
 0x771   :  { %1266 = vadd.xlane.f32.xlu1 %v1265_v32  ;;  %v1259_v36 = vsel %vm976_vm0, %v7893_v33, 0.0 }
 0x773   :  { %v7895_v35 = vpop.eup %7894 }
 0x774   :  { %v1262_v38 = vsel %vm976_vm0, %v7895_v35, 0.0  ;;  %v7897_v39 = vpop.eup %7896 }
 0x775   :  { %1260 = vadd.xlane.f32.xlu1 %v1259_v36  ;;  %1263 = vadd.xlane.f32.xlu0 %v1262_v38  ;;  %v1256_v40 = vsel %vm976_vm0, %v7897_v39, 0.0 }
 0x779   :  { %1257 = vadd.xlane.f32.xlu0 %v1256_v40 }
 0x786   :  { %1280 = vrot.lane.b32.xlu1 %v9310_v48, %s8943_s17 }
 0x78a   :  { %1483 = vrot.lane.b32.xlu1 %v9315_v54, %s8905_s18 }
 0x78e   :  { %1477 = vrot.lane.b32.xlu1 %v9300_v34, %s8905_s18 }
 0x78f   :  { %1282 = vrot.lane.b32.xlu0 %v9307_v44, %s8943_s17 }
 0x792   :  { %1740 = vrot.lane.b32.xlu1 %v9315_v54, %s8944_s23 }
 0x793   :  { %1481 = vrot.lane.b32.xlu0 %v9318_v55, %s8905_s18 }
 0x796   :  { %1734 = vrot.lane.b32.xlu1 %v9300_v34, %s8944_s23 }
 0x797   :  { %1479 = vrot.lane.b32.xlu0 %v9328_v60, %s8905_s18 }
 0x79b   :  { %1738 = vrot.lane.b32.xlu0 %v9318_v55, %s8944_s23 }
 0x79f   :  { %1736 = vrot.lane.b32.xlu0 %v9328_v60, %s8944_s23 }
 0x7fa   :  { %v1267_v42 = vpop.xlane.xlu1 %1266 }
 0x7fe   :  { %v1261_v43 = vpop.xlane.xlu1 %1260  ;;  %v1264_v45 = vpop.xlane.xlu0 %1263 }
 0x7ff   :  { %7898 = vrcp.f32 %v1264_v45 }
 0x800   :  { %7900 = vrcp.f32 %v1261_v43 }
 0x801   :  { %7902 = vrcp.f32 %v1267_v42 }
 0x802   :  { %v1258_v54 = vpop.xlane.xlu0 %1257  ;;  %v1281_v34 = vpop.permute.xlu1 %1280 }
 0x803   :  { %7904 = vrcp.f32 %v1258_v54 }
 0x806   :  { %v1283_v46 = vpop.permute.xlu0 %1282  ;;  %v1484_v1 = vpop.permute.xlu1 %1483 }
 0x807   :  { %7215 = vmatprep.subr.bf16.mxu0 %v1283_v46  ;;  %v1495_v17 = vsel %vm976_vm0, %v1484_v1, 0 }
 0x808   :  { %7216 = vmatpush3.bf16.msra.mxu0 %v1283_v46 }
 0x809   :  { %7217 = vmatprep.subr.bf16.mxu0 %v1281_v34 }
 0x80a   :  { %v1478_v16 = vpop.permute.xlu1 %1477  ;;  %v1482_v18 = vpop.permute.xlu0 %1481 }
 0x80b   :  { %v1492_v22 = vsel %vm976_vm0, %v1482_v18, 0 }
 0x80c   :  { %7218 = vmatpush3.bf16.msra.mxu0 %v1281_v34  ;;  %v7899_v49 = vpop.eup %7898 }
 0x80d   :  { %7223 = vmatprep.subr.bf16.mxu0 %v7668_v47  ;;  %v7901_v55 = vpop.eup %7900  ;;  %v1274_v51 = vmul.f32 %v7899_v49, %v7895_v35 }
 0x80e   :  { %v7903_v50 = vpop.eup %7902  ;;  %v1273_v53 = vmul.f32 %v7901_v55, %v7893_v33  ;;  %v1741_v24 = vpop.permute.xlu1 %1740 }
 0x80f   :  { %v1275_v56 = vmul.f32 %v7903_v50, %v7891_v31  ;;  %v1480_v27 = vpop.permute.xlu0 %1479  ;;  %v1752_v29 = vsel %vm976_vm0, %v1741_v24, 0 }
 0x810   :  { %v7905_v60 = vpop.eup %7904 }
 0x811   :  { %v1272_v52 = vmul.f32 %v7905_v60, %v7897_v39  ;;  %v1277_v58 = vpack.c.bf16 %v1275_v56, %v1274_v51 }
 0x812   :  { %v1735_v28 = vpop.permute.xlu1 %1734 }
 0x813   :  { %v1276_v57 = vpack.c.bf16 %v1273_v53, %v1272_v52  ;;  %v1739_v30 = vpop.permute.xlu0 %1738 }
 0x814   :  { %v1749_v31 = vsel %vm976_vm0, %v1739_v30, 0 }
 0x815   :  { %7219 = vmatprep.mubr.msk.bf16.mxu0 %vm976_vm0, %v1276_v57 }
 0x816   :  { %7220 = vmatmul.mubr.msk.bf16.vlgmr.msra.gmra.mxu0 %vm976_vm0, %v1277_v58 }
 0x817   :  { %7224 = vmatpush3.bf16.msra.mxu0 %v7668_v47  ;;  %v1737_v32 = vpop.permute.xlu0 %1736 }
 0x818   :  { %7225 = vmatprep.subr.bf16.mxu0 %v7669_v59 }
 0x81b   :  { %7226 = vmatpush3.bf16.msra.mxu0 %v7669_v59 }
 0x81c   :  { %7523 = vmatprep.subr.msk.bf16.mxu0 %vm976_vm0, %v1484_v1 }
 0x8d6   :  { %v7221_v2 = vpop.f32.mrf.mxu0 }
 0x8d8   :  { %v1326_v5 = vpop.f32.mrf.mxu0 }
 0x8da   :  { %v7222_v8 = vpop.f32.mrf.mxu0 }
 0x8db   :  { %v1342_v15 = vpack.c.bf16 %v7222_v8, %v7221_v2 }
 0x8dc   :  { %v1329_v11 = vpop.f32.mrf.mxu0 }
 0x8dd   :  { %v1341_v14 = vpack.c.bf16 %v1329_v11, %v1326_v5 }
 0x8df   :  { %7227 = vmatprep.mubr.msk.bf16.mxu0 %vm976_vm0, %v1341_v14 }
 0x8e0   :  { %7228 = vmatmul.mubr.msk.bf16.vlgmr.msra.gmra.mxu0 %vm976_vm0, %v1342_v15 }
 0x8e1   :  { %7240 = vmatpush3.bf16.xpose.msra.mxu0 %v1495_v17  ;;  %7243 = vmatprep.mubr.msk.bf16.mxu0 %vm976_vm0, %v1478_v16 }
 0x8e2   :  { %7524 = vmatprep.subr.msk.bf16.mxu0 %vm976_vm0, %v1482_v18 }
 0x8e9   :  { %7242 = vmatpush3.bf16.xpose.msra.mxu0 %v1492_v22 }
 0x8ea   :  { %7525 = vmatprep.subr.msk.bf16.mxu0 %vm976_vm0, %v1741_v24 }
 0x8f0   :  { %7244 = vmatmul.mubr.msk.bf16.vlgmr.msra.gmra.mxu0 %vm976_vm0, %v1480_v27 }
 0x8f1   :  { %7264 = vmatpush3.bf16.xpose.msra.mxu0 %v1752_v29  ;;  %7267 = vmatprep.mubr.msk.bf16.mxu0 %vm976_vm0, %v1735_v28 }
 0x8f2   :  { %7526 = vmatprep.subr.msk.bf16.mxu0 %vm976_vm0, %v1739_v30 }
 0x8f9   :  { %7266 = vmatpush3.bf16.xpose.msra.mxu0 %v1749_v31 }
 0x900   :  { %7268 = vmatmul.mubr.msk.bf16.vlgmr.msra.gmra.mxu0 %vm976_vm0, %v1737_v32 }
 0x901   :  { %2213 = vmatprep.mubr.bf16.mxu0 %v8941_v41 }
 0x9a0   :  { %v9454_v33 = vpop.f32.mrf.mxu0 }
 0x9a2   :  { %v9456_v35 = vpop.f32.mrf.mxu0 }
 0x9a4   :  { %v9458_v36 = vpop.f32.mrf.mxu0 }
 0x9a6   :  { %v9460_v38 = vpop.f32.mrf.mxu0 }
 0x9b0   :  { %v7245_v39 = vpop.f32.mrf.mxu0 }
 0x9b1   :  { %v1548_v34 = vmul.f32 0.17677669, %v7245_v39 }
 0x9b2   :  { %v1531_v40 = vpop.f32.mrf.mxu0 }
 0x9b3   :  { %v1546_v42 = vmul.f32 0.17677669, %v1531_v40  ;;  %v1552_v52 = vadd.f32 %v1548_v34, %v9357_v10 }
 0x9b4   :  { %v7246_v43 = vpop.f32.mrf.mxu0 }
 0x9b5   :  { %v1549_v45 = vmul.f32 0.17677669, %v7246_v43  ;;  %v1550_v54 = vadd.f32 %v1546_v42, %v9349_v4  ;;  %v1560_v53 = vsel %vm976_vm0, %v1552_v52, -inf }
 0x9b6   :  { %v1534_v46 = vpop.f32.mrf.mxu0 }
 0x9b7   :  { %v1547_v47 = vmul.f32 0.17677669, %v1534_v46  ;;  %v1554_v49 = vsel %vm976_vm0, %v1550_v54, -inf  ;;  %v1553_v55 = vadd.f32 %v1549_v45, %v9377_v26 }
 0x9b8   :  { %1555 = vmax.xlane.f32.xlu1 %v1554_v49 }
 0x9b9   :  { %v1551_v50 = vadd.f32 %v1547_v47, %v9370_v23  ;;  %v1563_v60 = vsel %vm976_vm0, %v1553_v55, -inf }
 0x9bb   :  { %v1557_v51 = vsel %vm976_vm0, %v1551_v50, -inf }
 0x9bc   :  { %1564 = vmax.xlane.f32.xlu1 %v1563_v60  ;;  %1558 = vmax.xlane.f32.xlu0 %v1557_v51 }
 0x9c0   :  { %1561 = vmax.xlane.f32.xlu0 %v1560_v53  ;;  %v7269_v31 = vpop.f32.mrf.mxu0 }
 0x9c1   :  { %v1805_v46 = vmul.f32 0.17677669, %v7269_v31 }
 0x9c2   :  { %v1788_v32 = vpop.f32.mrf.mxu0 }
 0x9c3   :  { %v1803_v40 = vmul.f32 0.17677669, %v1788_v32  ;;  %v1809_v60 = vadd.f32 %v1805_v46, %v9357_v10 }
 0x9c4   :  { %v7270_v39 = vpop.f32.mrf.mxu0 }
 0x9c5   :  { %v1806_v43 = vmul.f32 0.17677669, %v7270_v39  ;;  %v1817_v51 = vsel %vm976_vm0, %v1809_v60, -inf }
 0x9c6   :  { %v1791_v42 = vpop.f32.mrf.mxu0 }
 0x9c7   :  { %v1804_v45 = vmul.f32 0.17677669, %v1791_v42  ;;  %v1810_v47 = vadd.f32 %v1806_v43, %v9377_v26 }
 0x9c9   :  { %v1808_v49 = vadd.f32 %v1804_v45, %v9370_v23 }
 0xa41   :  { %v1556_v56 = vpop.xlane.xlu1 %1555 }
 0xa42   :  { %v1566_v2 = vsub.f32 %v1550_v54, %v1556_v56  ;;  %v1807_v54 = vadd.f32 %v1803_v40, %v9349_v4 }
 0xa44   :  { %v1570_v15 = vmul.f32 1.442695, %v1566_v2  ;;  %v1811_v34 = vsel %vm976_vm0, %v1807_v54, -inf }
 0xa45   :  { %v1565_v57 = vpop.xlane.xlu1 %1564  ;;  %v1559_v58 = vpop.xlane.xlu0 %1558 }
 0xa46   :  { %v1569_v59 = vsub.f32 %v1553_v55, %v1565_v57  ;;  %v1567_v1 = vsub.f32 %v1551_v50, %v1559_v58  ;;  %v1820_v55 = vsel %vm976_vm0, %v1810_v47, -inf  ;;  %v1814_v50 = vsel %vm976_vm0, %v1808_v49, -inf }
 0xa48   :  { %v1576_v5 = vmul.f32 1.442695, %v1569_v59  ;;  %v1572_v8 = vmul.f32 1.442695, %v1567_v1 }
 0xa49   :  { %v1562_v11 = vpop.xlane.xlu0 %1561 }
 0xa4a   :  { %7906 = vpow2.f32 %v1576_v5  ;;  %v1568_v14 = vsub.f32 %v1552_v52, %v1562_v11 }
 0xa4b   :  { %7908 = vpow2.f32 %v1572_v8 }
 0xa4c   :  { %v1574_v16 = vmul.f32 1.442695, %v1568_v14 }
 0xa4e   :  { %7910 = vpow2.f32 %v1574_v16 }
 0xa4f   :  { %7912 = vpow2.f32 %v1570_v15 }
 0xa57   :  { %v7907_v17 = vpop.eup %7906 }
 0xa58   :  { %v1587_v18 = vsel %vm976_vm0, %v7907_v17, 0.0  ;;  %v7909_v22 = vpop.eup %7908 }
 0xa59   :  { %1588 = vadd.xlane.f32.xlu1 %v1587_v18  ;;  %v1581_v27 = vsel %vm976_vm0, %v7909_v22, 0.0 }
 0xa5b   :  { %v7911_v24 = vpop.eup %7910 }
 0xa5c   :  { %v1584_v28 = vsel %vm976_vm0, %v7911_v24, 0.0  ;;  %v7913_v29 = vpop.eup %7912 }
 0xa5d   :  { %1582 = vadd.xlane.f32.xlu1 %v1581_v27  ;;  %1585 = vadd.xlane.f32.xlu0 %v1584_v28  ;;  %v1578_v30 = vsel %vm976_vm0, %v7913_v29, 0.0 }
 0xa61   :  { %1579 = vadd.xlane.f32.xlu0 %v1578_v30 }
 0xa6e   :  { %1600 = vrot.lane.b32.xlu1 %v9310_v48, %s8905_s18 }
 0xa77   :  { %1602 = vrot.lane.b32.xlu0 %v9307_v44, %s8905_s18 }
 0xa92   :  { %1812 = vmax.xlane.f32.xlu1 %v1811_v34 }
 0xa96   :  { %1821 = vmax.xlane.f32.xlu1 %v1820_v55  ;;  %1815 = vmax.xlane.f32.xlu0 %v1814_v50 }
 0xa9a   :  { %1818 = vmax.xlane.f32.xlu0 %v1817_v51  ;;  %v7671_v51 = vld [vmem:[#allocation5 + $0x20] sm:$0xff]  }
 0xae2   :  { %v1589_v52 = vpop.xlane.xlu1 %1588 }
 0xae6   :  { %v1583_v53 = vpop.xlane.xlu1 %1582  ;;  %v1586_v56 = vpop.xlane.xlu0 %1585 }
 0xae7   :  { %7914 = vrcp.f32 %v1586_v56 }
 0xae8   :  { %7916 = vrcp.f32 %v1583_v53 }
 0xae9   :  { %7918 = vrcp.f32 %v1589_v52  ;;  %v7237_v52 = vpop.f32.mrf.mxu1 }
 0xaea   :  { %v1580_v57 = vpop.xlane.xlu0 %1579  ;;  %v1601_v59 = vpop.permute.xlu1 %1600 }
 0xaeb   :  { %7920 = vrcp.f32 %v1580_v57  ;;  %v1462_v53 = vpop.f32.mrf.mxu1 }
 0xaed   :  { %v7238_v56 = vpop.f32.mrf.mxu1 }
 0xaee   :  { %v1603_v58 = vpop.permute.xlu0 %1602 }
 0xaef   :  { %7247 = vmatprep.subr.bf16.mxu1 %v1603_v58  ;;  %v1465_v57 = vpop.f32.mrf.mxu1 }
 0xaf0   :  { %7248 = vmatpush3.bf16.msra.mxu1 %v1603_v58 }
 0xaf1   :  { %7249 = vmatprep.subr.bf16.mxu1 %v1601_v59 }
 0xaf4   :  { %7250 = vmatpush3.bf16.msra.mxu1 %v1601_v59  ;;  %v7915_v1 = vpop.eup %7914 }
 0xaf5   :  { %v7917_v2 = vpop.eup %7916  ;;  %v1596_v11 = vmul.f32 %v7915_v1, %v7911_v24 }
 0xaf6   :  { %v7919_v5 = vpop.eup %7918  ;;  %v1595_v15 = vmul.f32 %v7917_v2, %v7909_v22 }
 0xaf7   :  { %v1597_v16 = vmul.f32 %v7919_v5, %v7907_v17 }
 0xaf8   :  { %v7921_v8 = vpop.eup %7920 }
 0xaf9   :  { %v1594_v14 = vmul.f32 %v7921_v8, %v7913_v29  ;;  %v1599_v27 = vpack.c.bf16 %v1597_v16, %v1596_v11 }
 0xafb   :  { %v1598_v18 = vpack.c.bf16 %v1595_v15, %v1594_v14 }
 0xafd   :  { %7251 = vmatprep.mubr.msk.bf16.mxu1 %vm976_vm0, %v1598_v18 }
 0xafe   :  { %7252 = vmatmul.mubr.msk.bf16.vlgmr.msra.gmra.mxu1 %vm976_vm0, %v1599_v27 }
 0xb1b   :  { %v1813_v28 = vpop.xlane.xlu1 %1812 }
 0xb1c   :  { %v1823_v40 = vsub.f32 %v1807_v54, %v1813_v28 }
 0xb1e   :  { %v1827_v29 = vmul.f32 1.442695, %v1823_v40 }
 0xb1f   :  { %v1822_v30 = vpop.xlane.xlu1 %1821  ;;  %v1816_v31 = vpop.xlane.xlu0 %1815 }
 0xb20   :  { %v1826_v32 = vsub.f32 %v1810_v47, %v1822_v30  ;;  %v1824_v39 = vsub.f32 %v1808_v49, %v1816_v31 }
 0xb22   :  { %v1833_v42 = vmul.f32 1.442695, %v1826_v32  ;;  %v1829_v43 = vmul.f32 1.442695, %v1824_v39 }
 0xb23   :  { %v1819_v45 = vpop.xlane.xlu0 %1818 }
 0xb24   :  { %7922 = vpow2.f32 %v1833_v42  ;;  %v1825_v24 = vsub.f32 %v1809_v60, %v1819_v45  ;;  %v7670_v60 = vld [vmem:[#allocation5 + $0x28] sm:$0xff]   ;;  %v7672_v45 = vld [vmem:[#allocation5 + $0x38] sm:$0xff]  }
 0xb25   :  { %7924 = vpow2.f32 %v1829_v43  ;;  %7255 = vmatprep.subr.bf16.mxu1 %v7670_v60 }
 0xb26   :  { %v1831_v17 = vmul.f32 1.442695, %v1825_v24  ;;  %7256 = vmatpush3.bf16.msra.mxu1 %v7670_v60  ;;  %v7673_v24 = vld [vmem:[#allocation5 + $0x30] sm:$0xff]  }
 0xb27   :  { %7257 = vmatprep.subr.bf16.mxu1 %v7671_v51 }
 0xb28   :  { %7926 = vpow2.f32 %v1831_v17 }
 0xb29   :  { %7928 = vpow2.f32 %v1827_v29  ;;  %v1471_v29 = vadd.f32 %v7237_v52, %v9454_v33 }
 0xb2a   :  { %7258 = vmatpush3.bf16.msra.mxu1 %v7671_v51 }
 0xb31   :  { %v7923_v22 = vpop.eup %7922 }
 0xb32   :  { %v1844_v46 = vsel %vm976_vm0, %v7923_v22, 0.0  ;;  %v7925_v34 = vpop.eup %7924 }
 0xb33   :  { %1845 = vadd.xlane.f32.xlu1 %v1844_v46  ;;  %v1838_v47 = vsel %vm976_vm0, %v7925_v34, 0.0  ;;  %v1463_v46 = vadd.f32 %v1462_v53, %v9456_v35  ;;  %v6653_v53 = vld [vmem:[#allocation7] ss:$0 sm:$0xff] }
 0xb35   :  { %v7927_v55 = vpop.eup %7926 }
 0xb36   :  { %v1841_v54 = vsel %vm976_vm0, %v7927_v55, 0.0  ;;  %v7929_v49 = vpop.eup %7928 }
 0xb37   :  { %1839 = vadd.xlane.f32.xlu1 %v1838_v47  ;;  %1842 = vadd.xlane.f32.xlu0 %v1841_v54  ;;  %v1835_v50 = vsel %vm976_vm0, %v7929_v49, 0.0 }
 0xb3b   :  { %1836 = vadd.xlane.f32.xlu0 %v1835_v50 }
 0xb48   :  { %1857 = vrot.lane.b32.xlu1 %v9310_v48, %s8944_s23 }
 0xb51   :  { %1859 = vrot.lane.b32.xlu0 %v9307_v44, %s8944_s23 }
 0xbbc   :  { %v1846_v58 = vpop.xlane.xlu1 %1845 }
 0xbbe   :  { %v7253_v59 = vpop.f32.mrf.mxu1 }
 0xbc0   :  { %v1646_v1 = vpop.f32.mrf.mxu1  ;;  %v1840_v2 = vpop.xlane.xlu1 %1839 }
 0xbc1   :  { %v1843_v5 = vpop.xlane.xlu0 %1842 }
 0xbc2   :  { %v7254_v8 = vpop.f32.mrf.mxu1  ;;  %7930 = vrcp.f32 %v1843_v5 }
 0xbc3   :  { %7932 = vrcp.f32 %v1840_v2  ;;  %v1662_v48 = vpack.c.bf16 %v7254_v8, %v7253_v59 }
 0xbc4   :  { %v1649_v11 = vpop.f32.mrf.mxu1  ;;  %7934 = vrcp.f32 %v1846_v58  ;;  %v1858_v16 = vpop.permute.xlu1 %1857 }
 0xbc5   :  { %v1661_v14 = vpack.c.bf16 %v1649_v11, %v1646_v1  ;;  %v1837_v15 = vpop.xlane.xlu0 %1836 }
 0xbc6   :  { %7936 = vrcp.f32 %v1837_v15 }
 0xbc7   :  { %7259 = vmatprep.mubr.msk.bf16.mxu1 %vm976_vm0, %v1661_v14 }
 0xbc8   :  { %7260 = vmatmul.mubr.msk.bf16.vlgmr.msra.gmra.mxu1 %vm976_vm0, %v1662_v48 }
 0xbc9   :  { %v1860_v44 = vpop.permute.xlu0 %1859 }
 0xbca   :  { %7271 = vmatprep.subr.bf16.mxu1 %v1860_v44 }
 0xbcb   :  { %7272 = vmatpush3.bf16.msra.mxu1 %v1860_v44 }
 0xbcc   :  { %7273 = vmatprep.subr.bf16.mxu1 %v1858_v16 }
 0xbcf   :  { %7274 = vmatpush3.bf16.msra.mxu1 %v1858_v16  ;;  %v7931_v18 = vpop.eup %7930  ;;  %v6892_v16 = vld [vmem:[%s10504_s22] sm:$0xff]  }
 0xbd0   :  { %v7933_v27 = vpop.eup %7932  ;;  %v1853_v31 = vmul.f32 %v7931_v18, %v7927_v55  ;;  %7279 = vmatprep.subr.bf16.mxu1 %v7672_v45 }
 0xbd1   :  { %v7935_v28 = vpop.eup %7934  ;;  %v1852_v39 = vmul.f32 %v7933_v27, %v7925_v34 }
 0xbd2   :  { %v1854_v40 = vmul.f32 %v7935_v28, %v7923_v22  ;;  %v1474_v22 = vadd.f32 %v7238_v56, %v9458_v36 }
 0xbd3   :  { %v7937_v30 = vpop.eup %7936 }
 0xbd4   :  { %v1851_v32 = vmul.f32 %v7937_v30, %v7929_v49  ;;  %v1856_v43 = vpack.c.bf16 %v1854_v40, %v1853_v31  ;;  %v1466_v49 = vadd.f32 %v1465_v57, %v9460_v38  ;;  %v6894_v30 = vunpack.c.h.bf16 %v6892_v16  ;;  %v6900_v31 = vld [vmem:[%s10504_s22 + $0x8] sm:$0xff]  }
 0xbd5   :  { %v6897_v40 = vunpack.c.l.bf16 %v6900_v31 }
 0xbd6   :  { %v1855_v42 = vpack.c.bf16 %v1852_v39, %v1851_v32  ;;  %v6893_v39 = vunpack.c.l.bf16 %v6892_v16  ;;  %v7685_v16 = vld [vmem:[%s10505_s30 + $0x44] ss:$8 sps:$4 sm:$0xff]  }
 0xbd8   :  { %7275 = vmatprep.mubr.msk.bf16.mxu1 %vm976_vm0, %v1855_v42  ;;  %v7674_v42 = vld [vmem:[%s10505_s30 + $0x70] ss:$8 sps:$4 sm:$0xff]  }
 0xbd9   :  { %7276 = vmatmul.mubr.msk.bf16.vlgmr.msra.gmra.mxu1 %vm976_vm0, %v1856_v43  ;;  %v7676_v43 = vld [vmem:[%s10505_s30 + $0x74] ss:$8 sps:$4 sm:$0xff]  }
 0xbda   :  { %7280 = vmatpush3.bf16.msra.mxu1 %v7672_v45  ;;  %2181 = vmatprep.subr.bf16.mxu0 %v7676_v43 }
 0xbdb   :  { %7281 = vmatprep.subr.bf16.mxu1 %v7673_v24  ;;  %2182 = vmatpush1.bf16.msra.mxu0 %v7674_v42  ;;  %v7700_v42 = vld [vmem:[#allocation22 + $0xac] ss:$12 sps:$4 sm:$0xff]  }
 0xbde   :  { %7282 = vmatpush3.bf16.msra.mxu1 %v7673_v24 }
 0xc88   :  { %v7261_v17 = vpop.f32.mrf.mxu1 }
 0xc89   :  { %v1732_v55 = vadd.f32 %v7261_v17, %v1471_v29 }
 0xc8a   :  { %v1715_v34 = vpop.f32.mrf.mxu1 }
 0xc8b   :  { %v1730_v47 = vadd.f32 %v1715_v34, %v1463_v46 }
 0xc8c   :  { %v7262_v54 = vpop.f32.mrf.mxu1 }
 0xc8d   :  { %v1733_v50 = vadd.f32 %v7262_v54, %v1474_v22 }
 0xc8e   :  { %v1718_v60 = vpop.f32.mrf.mxu1 }
 0xc8f   :  { %v1731_v51 = vadd.f32 %v1718_v60, %v1466_v49 }
 0xc99   :  { %v7277_v58 = vpop.f32.mrf.mxu1 }
 0xc9b   :  { %v1903_v59 = vpop.f32.mrf.mxu1 }
 0xc9d   :  { %v7278_v1 = vpop.f32.mrf.mxu1 }
 0xc9e   :  { %v1919_v33 = vpack.c.bf16 %v7278_v1, %v7277_v58 }
 0xc9f   :  { %v1906_v2 = vpop.f32.mrf.mxu1 }
 0xca0   :  { %v1918_v5 = vpack.c.bf16 %v1906_v2, %v1903_v59 }
 0xca2   :  { %7283 = vmatprep.mubr.msk.bf16.mxu1 %vm976_vm0, %v1918_v5 }
 0xca3   :  { %7284 = vmatmul.mubr.msk.bf16.vlgmr.msra.gmra.mxu1 %vm976_vm0, %v1919_v33 }
 0xd63   :  { %v7285_v35 = vpop.f32.mrf.mxu1 }
 0xd64   :  { %v1989_v11 = vadd.f32 %v7285_v35, %v1732_v55 }
 0xd65   :  { %v1972_v36 = vpop.f32.mrf.mxu1 }
 0xd66   :  { %v1987_v52 = vadd.f32 %v1972_v36, %v1730_v47  ;;  %v1999_v18 = vadd.f32 %v6653_v53, %v1989_v11 }
 0xd67   :  { %v7286_v56 = vpop.f32.mrf.mxu1 }
 0xd68   :  { %v1997_v38 = vadd.f32 %v6653_v53, %v1987_v52  ;;  %v1990_v57 = vadd.f32 %v7286_v56, %v1733_v50  ;;  %v2003_v32 = vadd.f32 %v1999_v18, %v9278_v12  ;;  %v7679_v56 = vld [vmem:[%s10505_s30 + $0x64] ss:$8 sps:$4 sm:$0xff]   ;;  %v7683_v18 = vld [vmem:[%s10505_s30 + $0x40] ss:$8 sps:$4 sm:$0xff]  }
 0xd69   :  { %v1975_v8 = vpop.f32.mrf.mxu1  ;;  %2183 = vmatprep.subr.bf16.mxu0 %v7679_v56  ;;  %v6655_v56 = vld [vmem:[#allocation10] ss:$0 sm:$0xff] }
 0xd6a   :  { %v2000_v14 = vadd.f32 %v6653_v53, %v1990_v57  ;;  %v1988_v15 = vadd.f32 %v1975_v8, %v1731_v51  ;;  %v2001_v48 = vadd.f32 %v1997_v38, %v9271_v6  ;;  %v6898_v6 = vunpack.c.h.bf16 %v6900_v31  ;;  %v7677_v8 = vld [vmem:[%s10505_s30 + $0x60] ss:$8 sps:$4 sm:$0xff]  }
 0xd6b   :  { %2184 = vmatpush1.bf16.msra.mxu0 %v7677_v8  ;;  %v7689_v31 = vld [vmem:[%s10505_s30 + $0x20] ss:$8 sps:$4 sm:$0xff]  }
 0xd6c   :  { %v1998_v44 = vadd.f32 %v6653_v53, %v1988_v15  ;;  %2007 = vadd.xlane.f32.xlu1 %v2001_v48  ;;  %v2004_v27 = vadd.f32 %v2000_v14, %v9280_v13  ;;  %v7682_v15 = vld [vmem:[%s10505_s30 + $0x54] ss:$8 sps:$4 sm:$0xff]  }
 0xd6d   :  { %2185 = vmatprep.subr.bf16.mxu0 %v7682_v15 }
 0xd6e   :  { %v2002_v28 = vadd.f32 %v1998_v44, %v9273_v7  ;;  %v7680_v44 = vld [vmem:[%s10505_s30 + $0x50] ss:$8 sps:$4 sm:$0xff]  }
 0xd6f   :  { %2186 = vmatpush1.bf16.msra.mxu0 %v7680_v44 }
 0xd70   :  { %2013 = vadd.xlane.f32.xlu1 %v2004_v27  ;;  %2009 = vadd.xlane.f32.xlu0 %v2002_v28 }
 0xd71   :  { %2187 = vmatprep.subr.bf16.mxu0 %v7685_v16  ;;  %v7698_v16 = vld [vmem:[#allocation22 + $0xa8] ss:$12 sps:$4 sm:$0xff]  }
 0xd73   :  { %2188 = vmatpush1.bf16.msra.mxu0 %v7683_v18 }
 0xd74   :  { %2011 = vadd.xlane.f32.xlu0 %v2003_v32  ;;  %2576 = vadd.xlane.f32.xlu1 %v6894_v30 }
 0xd78   :  { %2574 = vadd.xlane.f32.xlu0 %v6893_v39  ;;  %2580 = vadd.xlane.f32.xlu1 %v6898_v6 }
 0xd7c   :  { %2578 = vadd.xlane.f32.xlu0 %v6897_v40 }
 0xdf5   :  { %v2008_v13 = vpop.xlane.xlu1 %2007 }
 0xdf6   :  { %v2015_v7 = vmul.f32 0.0078125, %v2008_v13 }
 0xdf8   :  { %v9514_v45 = vsub.f32 %v2001_v48, %v2015_v7 }
 0xdf9   :  { %v2014_v24 = vpop.xlane.xlu1 %2013  ;;  %v2010_v29 = vpop.xlane.xlu0 %2009 }
 0xdfa   :  { %v2018_v17 = vmul.f32 0.0078125, %v2014_v24  ;;  %v2016_v12 = vmul.f32 0.0078125, %v2010_v29  ;;  %v2023_v46 = vmul.f32 %v9514_v45, %v9514_v45 }
 0xdfc   :  { %2027 = vadd.xlane.f32.xlu0 %v2023_v46  ;;  %v9518_v55 = vsub.f32 %v2002_v28, %v2016_v12  ;;  %v9522_v50 = vsub.f32 %v2004_v27, %v2018_v17  ;;  %v7688_v27 = vld [vmem:[%s10505_s30 + $0x34] ss:$8 sps:$4 sm:$0xff]   ;;  %v7686_v28 = vld [vmem:[%s10505_s30 + $0x30] ss:$8 sps:$4 sm:$0xff]  }
 0xdfd   :  { %v2012_v34 = vpop.xlane.xlu0 %2011  ;;  %v2577_v22 = vpop.xlane.xlu1 %2576  ;;  %2189 = vmatprep.subr.bf16.mxu0 %v7688_v27 }
 0xdfe   :  { %v2017_v47 = vmul.f32 0.0078125, %v2012_v34  ;;  %v2024_v54 = vmul.f32 %v9518_v55, %v9518_v55  ;;  %v2583_v49 = vmul.f32 0.0078125, %v2577_v22  ;;  %v2026_v2 = vmul.f32 %v9522_v50, %v9522_v50  ;;  %2190 = vmatpush1.bf16.msra.mxu0 %v7686_v28 }
 0xe00   :  { %2029 = vadd.xlane.f32.xlu1 %v2024_v54  ;;  %v9524_v60 = vsub.f32 %v2003_v32, %v2017_v47  ;;  %v9526_v51 = vsub.f32 %v6894_v30, %v2583_v49  ;;  %v7691_v30 = vld [vmem:[%s10505_s30 + $0x24] ss:$8 sps:$4 sm:$0xff]   ;;  %v7694_v32 = vld [vmem:[%s10505_s30 + $0x14] ss:$8 sps:$4 sm:$0xff]  }
 0xe01   :  { %v2575_v58 = vpop.xlane.xlu0 %2574  ;;  %v2581_v59 = vpop.xlane.xlu1 %2580  ;;  %2191 = vmatprep.subr.bf16.mxu0 %v7691_v30  ;;  %v7703_v30 = vld [vmem:[#allocation22 + $0x94] ss:$12 sps:$4 sm:$0xff]  }
 0xe02   :  { %v2582_v1 = vmul.f32 0.0078125, %v2575_v58  ;;  %v2025_v5 = vmul.f32 %v9524_v60, %v9524_v60  ;;  %v2585_v33 = vmul.f32 0.0078125, %v2581_v59  ;;  %v2591_v35 = vmul.f32 %v9526_v51, %v9526_v51  ;;  %2192 = vmatpush1.bf16.msra.mxu0 %v7689_v31  ;;  %v6654_v59 = vld [vmem:[#allocation8] ss:$0 sm:$0xff] }
 0xe03   :  { %2193 = vmatprep.subr.bf16.mxu0 %v7694_v32 }
 0xe04   :  { %2033 = vadd.xlane.f32.xlu1 %v2026_v2  ;;  %2031 = vadd.xlane.f32.xlu0 %v2025_v5  ;;  %v9534_v36 = vsub.f32 %v6893_v39, %v2582_v1  ;;  %v9536_v52 = vsub.f32 %v6898_v6, %v2585_v33  ;;  %v7692_v39 = vld [vmem:[%s10505_s30 + $0x10] ss:$8 sps:$4 sm:$0xff]   ;;  %v7697_v6 = vld [vmem:[%s10505_s30 + $0x4] ss:$8 sps:$4 sm:$0xff]  }
 0xe05   :  { %v2579_v53 = vpop.xlane.xlu0 %2578 }
 0xe06   :  { %v2584_v38 = vmul.f32 0.0078125, %v2579_v53  ;;  %v2590_v57 = vmul.f32 %v9534_v36, %v9534_v36  ;;  %v2593_v11 = vmul.f32 %v9536_v52, %v9536_v52  ;;  %2194 = vmatpush1.bf16.msra.mxu0 %v7692_v39 }
 0xe07   :  { %2195 = vmatprep.subr.bf16.mxu0 %v7697_v6 }
 0xe08   :  { %2596 = vadd.xlane.f32.xlu1 %v2591_v35  ;;  %2594 = vadd.xlane.f32.xlu0 %v2590_v57  ;;  %v9544_v14 = vsub.f32 %v6897_v40, %v2584_v38  ;;  %v7695_v40 = vld [vmem:[%s10505_s30] ss:$8 sps:$4 sm:$0xff]  }
 0xe0a   :  { %v2592_v48 = vmul.f32 %v9544_v14, %v9544_v14  ;;  %2196 = vmatpush1.bf16.msra.mxu0 %v7695_v40  ;;  %v7701_v40 = vld [vmem:[#allocation22 + $0x90] ss:$12 sps:$4 sm:$0xff]  }
 0xe0b   :  { %2817 = vmatprep.subr.bf16.mxu0 %v7700_v42 }
 0xe0c   :  { %2600 = vadd.xlane.f32.xlu1 %v2593_v11  ;;  %2598 = vadd.xlane.f32.xlu0 %v2592_v48 }
 0xe85   :  { %v2028_v43 = vpop.xlane.xlu0 %2027 }
 0xe86   :  { %v2035_v13 = vmul.f32 0.0078125, %v2028_v43 }
 0xe88   :  { %v2039_v7 = vadd.f32 1e-05, %v2035_v13 }
 0xe89   :  { %v2030_v24 = vpop.xlane.xlu1 %2029 }
 0xe8a   :  { %7938 = vrsqrt.f32 %v2039_v7  ;;  %v2036_v29 = vmul.f32 0.0078125, %v2030_v24  ;;  %v7704_v7 = vld [vmem:[#allocation22 + $0x78] ss:$12 sps:$4 sm:$0xff]  }
 0xe8c   :  { %v2040_v17 = vadd.f32 1e-05, %v2036_v29 }
 0xe8d   :  { %v2034_v12 = vpop.xlane.xlu1 %2033  ;;  %v2032_v46 = vpop.xlane.xlu0 %2031 }
 0xe8e   :  { %7940 = vrsqrt.f32 %v2040_v17  ;;  %v2038_v34 = vmul.f32 0.0078125, %v2034_v12  ;;  %v2037_v22 = vmul.f32 0.0078125, %v2032_v46  ;;  %v7709_v17 = vld [vmem:[#allocation22 + $0x64] ss:$12 sps:$4 sm:$0xff]   ;;  %v7707_v12 = vld [vmem:[#allocation22 + $0x60] ss:$12 sps:$4 sm:$0xff]  }
 0xe8f   :  { %v7712_v46 = vld [vmem:[#allocation22 + $0x4c] ss:$12 sps:$4 sm:$0xff]  }
 0xe90   :  { %v2042_v47 = vadd.f32 1e-05, %v2038_v34  ;;  %v2041_v54 = vadd.f32 1e-05, %v2037_v22  ;;  %v7710_v34 = vld [vmem:[#allocation22 + $0x48] ss:$12 sps:$4 sm:$0xff]  }
 0xe91   :  { %v2597_v1 = vpop.xlane.xlu1 %2596  ;;  %v2595_v5 = vpop.xlane.xlu0 %2594 }
 0xe92   :  { %7942 = vrsqrt.f32 %v2042_v47  ;;  %v2603_v53 = vmul.f32 0.0078125, %v2597_v1  ;;  %v2602_v38 = vmul.f32 0.0078125, %v2595_v5  ;;  %v7715_v47 = vld [vmem:[#allocation22 + $0x34] ss:$12 sps:$4 sm:$0xff]   ;;  %v7718_v1 = vld [vmem:[#allocation22 + $0x1c] ss:$12 sps:$4 sm:$0xff]  }
 0xe93   :  { %7944 = vrsqrt.f32 %v2041_v54  ;;  %v7716_v5 = vld [vmem:[#allocation22 + $0x18] ss:$12 sps:$4 sm:$0xff]  }
 0xe94   :  { %v2606_v27 = vadd.f32 1e-05, %v2602_v38 }
 0xe95   :  { %v2601_v28 = vpop.xlane.xlu1 %2600  ;;  %v2599_v32 = vpop.xlane.xlu0 %2598 }
 0xe96   :  { %v2605_v6 = vmul.f32 0.0078125, %v2601_v28 }
 0xe97   :  { %v7939_v49 = vpop.eup %7938 }
 0xe98   :  { %v2047_v58 = vmul.f32 %v7939_v49, %v9514_v45  ;;  %v2607_v45 = vadd.f32 1e-05, %v2603_v53  ;;  %v2609_v13 = vadd.f32 1e-05, %v2605_v6  ;;  %v7713_v49 = vld [vmem:[#allocation22 + $0x30] ss:$12 sps:$4 sm:$0xff]  }
 0xe99   :  { %v7728_v6 = vld [vmem:[#allocation13 + $0x60] sm:$0xff]  }
 0xe9a   :  { %v2057_v35 = vmul.f32 %v6654_v59, %v2047_v58  ;;  %7946 = vrsqrt.f32 %v2607_v45 }
 0xe9b   :  { %v7941_v2 = vpop.eup %7940  ;;  %7948 = vrsqrt.f32 %v2606_v27 }
 0xe9c   :  { %v2048_v33 = vmul.f32 %v7941_v2, %v9518_v55  ;;  %v9562_v15 = vadd.f32 %v6655_v56, %v2057_v35  ;;  %7950 = vrsqrt.f32 %v2609_v13  ;;  %v6691_v2 = vld [vmem:[#allocation19] ss:$0 sm:$0xff]  ;;  %v7721_v35 = vld [vmem:[#allocation22 + $0x4] ss:$12 sps:$4 sm:$0xff]  }
 0xe9d   :  { %v7732_v13 = vld [vmem:[#allocation13 + $0x50] sm:$0xff]  }
 0xe9e   :  { %v2058_v57 = vmul.f32 %v6654_v59, %v2048_v33 }
 0xe9f   :  { %v7943_v8 = vpop.eup %7942 }
 0xea0   :  { %v7945_v11 = vpop.eup %7944  ;;  %v9564_v48 = vadd.f32 %v6655_v56, %v2058_v57  ;;  %v2050_v44 = vmul.f32 %v7943_v8, %v9522_v50  ;;  %v2604_v50 = vmul.f32 0.0078125, %v2599_v32  ;;  %v6692_v57 = vld [vmem:[#allocation20] ss:$0 sm:$0xff]  ;;  %v7719_v8 = vld [vmem:[#allocation22] ss:$12 sps:$4 sm:$0xff]  }
 0xea1   :  { %v2049_v18 = vmul.f32 %v7945_v11, %v9524_v60  ;;  %v7706_v60 = vld [vmem:[#allocation22 + $0x7c] ss:$12 sps:$4 sm:$0xff]  }
 0xea2   :  { %v2087_v55 = vpack.c.bf16 %v9564_v48, %v9562_v15  ;;  %v2060_v31 = vmul.f32 %v6654_v59, %v2050_v44  ;;  %v2608_v24 = vadd.f32 1e-05, %v2604_v50  ;;  %v7726_v32 = vld [vmem:[#allocation13 + $0x68] sm:$0xff]   ;;  %v7730_v50 = vld [vmem:[#allocation13 + $0x58] sm:$0xff]  }
 0xea3   :  { %v2059_v39 = vmul.f32 %v6654_v59, %v2049_v18 }
 0xea4   :  { %2214 = vmatmul.mubr.bf16.vlgmr.msra.gmra.mxu0 %v2087_v55  ;;  %v9573_v43 = vadd.f32 %v6655_v56, %v2060_v31  ;;  %7952 = vrsqrt.f32 %v2608_v24  ;;  %v7723_v55 = vld [vmem:[#allocation13 + $0x38] sm:$0xff]   ;;  %v7725_v31 = vld [vmem:[#allocation13 + $0x30] sm:$0xff]   ;;  %v7734_v24 = vld [vmem:[#allocation13 + $0x48] sm:$0xff]  }
 0xea5   :  { %2818 = vmatpush1.bf16.msra.mxu0 %v7698_v16  ;;  %2223 = vmatprep.mubr.bf16.mxu0 %v8941_v41  ;;  %v9571_v42 = vadd.f32 %v6655_v56, %v2059_v39  ;;  %v7727_v39 = vld [vmem:[#allocation13 + $0x28] sm:$0xff]  }
 0xea6   :  { %2819 = vmatprep.subr.bf16.mxu0 %v7703_v30  ;;  %v7724_v30 = vld [vmem:[#allocation13 + $0x70] sm:$0xff]  }
 0xea7   :  { %v2088_v29 = vpack.c.bf16 %v9573_v43, %v9571_v42  ;;  %v7947_v22 = vpop.eup %7946 }
 0xea8   :  { %v7949_v54 = vpop.eup %7948  ;;  %v2615_v58 = vmul.f32 %v7947_v22, %v9526_v51 }
 0xea9   :  { %2820 = vmatpush1.bf16.msra.mxu0 %v7701_v40  ;;  %v2614_v59 = vmul.f32 %v7949_v54, %v9534_v36  ;;  %v7951_v33 = vpop.eup %7950  ;;  %v7729_v40 = vld [vmem:[#allocation13 + $0x20] sm:$0xff]  }
 0xeaa   :  { %2821 = vmatprep.subr.bf16.mxu0 %v7706_v60  ;;  %v2625_v56 = vmul.f32 %v6691_v2, %v2615_v58  ;;  %v2617_v44 = vmul.f32 %v7951_v33, %v9536_v52  ;;  %v7722_v52 = vld [vmem:[#allocation13 + $0x78] sm:$0xff]  }
 0xeab   :  { %v2624_v53 = vmul.f32 %v6691_v2, %v2614_v59  ;;  %6959 = vmatprep.subr.bf16.mxu1 %v7722_v52  ;;  %v7731_v60 = vld [vmem:[#allocation13 + $0x18] sm:$0xff]  }
 0xeac   :  { %2224 = vmatmul.mubr.bf16.gmra.mxu0 %v2088_v29  ;;  %v9582_v51 = vadd.f32 %v6692_v57, %v2625_v56  ;;  %v2627_v18 = vmul.f32 %v6691_v2, %v2617_v44  ;;  %6960 = vmatpush3.bf16.msra.mxu1 %v7723_v55  ;;  %v7735_v29 = vld [vmem:[#allocation13 + $0x8] sm:$0xff]  }
 0xead   :  { %2822 = vmatpush1.bf16.msra.mxu0 %v7704_v7  ;;  %2849 = vmatprep.mubr.bf16.mxu0 %v8941_v41  ;;  %v9580_v11 = vadd.f32 %v6692_v57, %v2624_v53  ;;  %v7733_v7 = vld [vmem:[#allocation13 + $0x10] sm:$0xff]  }
 0xeae   :  { %2823 = vmatprep.subr.bf16.mxu0 %v7709_v17  ;;  %v9594_v28 = vadd.f32 %v6692_v57, %v2627_v18  ;;  %6961 = vmatprep.subr.bf16.mxu1 %v7724_v30  ;;  %v7736_v17 = vld [vmem:[#allocation13 + $0x40] sm:$0xff]  }
 0xeaf   :  { %v9588_v45 = vpack.c.bf16 %v9582_v51, %v9580_v11 }
 0xeb0   :  { %6962 = vmatpush3.bf16.msra.mxu1 %v7725_v31 }
 0xeb1   :  { %2824 = vmatpush1.bf16.msra.mxu0 %v7707_v12  ;;  %v7953_v38 = vpop.eup %7952  ;;  %6963 = vmatprep.subr.bf16.mxu1 %v7726_v32  ;;  %v7737_v12 = vld [vmem:[#allocation13] sm:$0xff]  }
 0xeb2   :  { %2825 = vmatprep.subr.bf16.mxu0 %v7712_v46  ;;  %v2616_v36 = vmul.f32 %v7953_v38, %v9544_v14  ;;  %v9601_v46 = vld [vmem:[#allocation22 + $0xb0] ss:$12 sps:$4 sm:$0xff]  }
 0xeb4   :  { %v2626_v16 = vmul.f32 %v6691_v2, %v2616_v36  ;;  %6964 = vmatpush3.bf16.msra.mxu1 %v7727_v39 }
 0xeb5   :  { %2826 = vmatpush1.bf16.msra.mxu0 %v7710_v34  ;;  %6965 = vmatprep.subr.bf16.mxu1 %v7728_v6  ;;  %v2089_v34 = vld [vmem:[#allocation11] sm:$0x3] }
 0xeb6   :  { %2827 = vmatprep.subr.bf16.mxu0 %v7715_v47  ;;  %v9592_v27 = vadd.f32 %v6692_v57, %v2626_v16  ;;  %v2094_v22 = vrot.slane %v2089_v34, %v9293_v21  ;;  %v2098_v47 = vrot.slane %v2089_v34, %v9303_v37 }
 0xeb8   :  { %v9598_v14 = vpack.c.bf16 %v9594_v28, %v9592_v27  ;;  %6966 = vmatpush3.bf16.msra.mxu1 %v7729_v40 }
 0xeb9   :  { %2828 = vmatpush1.bf16.msra.mxu0 %v7713_v49  ;;  %6967 = vmatprep.subr.bf16.mxu1 %v7730_v50 }
 0xeba   :  { %2829 = vmatprep.subr.bf16.mxu0 %v7718_v1 }
 0xebc   :  { %6968 = vmatpush3.bf16.msra.mxu1 %v7731_v60 }
 0xebd   :  { %2830 = vmatpush1.bf16.msra.mxu0 %v7716_v5  ;;  %6969 = vmatprep.subr.bf16.mxu1 %v7732_v13 }
 0xebe   :  { %2831 = vmatprep.subr.bf16.mxu0 %v7721_v35 }
 0xec0   :  { %6970 = vmatpush3.bf16.msra.mxu1 %v7733_v7 }
 0xec1   :  { %2832 = vmatpush1.bf16.msra.mxu0 %v7719_v8  ;;  %6971 = vmatprep.subr.bf16.mxu1 %v7734_v24 }
 0xec4   :  { %2850 = vmatmul.mubr.bf16.vlgmr.msra.gmra.mxu0 %v9588_v45  ;;  %6972 = vmatpush3.bf16.msra.mxu1 %v7735_v29 }
 0xec5   :  { %2859 = vmatprep.mubr.bf16.mxu0 %v8941_v41  ;;  %6973 = vmatprep.subr.bf16.mxu1 %v7736_v17 }
 0xec8   :  { %6974 = vmatpush3.bf16.msra.mxu1 %v7737_v12 }
 0xec9   :  { %7287 = vmatprep.subr.bf16.mxu1 %v9601_v46 }
 0xecc   :  { %2860 = vmatmul.mubr.bf16.gmra.mxu0 %v9598_v14 }
 0xf64   :  { %v2215_v54 = vpop.f32.mrf.mxu0 }
 0xf65   :  { %v9606_v49 = vadd.f32 %v2215_v54, %v2094_v22 }
 0xf66   :  { %v2217_v58 = vpop.f32.mrf.mxu0 }
 0xf67   :  { %v2234_v59 = vmul.f32 %v9606_v49, %v9606_v49  ;;  %v9610_v1 = vadd.f32 %v2217_v58, %v2098_v47 }
 0xf68   :  { %v2219_v2 = vpop.f32.mrf.mxu0 }
 0xf69   :  { %v2242_v5 = vmul.f32 %v2234_v59, %v9606_v49  ;;  %v2235_v33 = vmul.f32 %v9610_v1, %v9610_v1  ;;  %v9615_v35 = vadd.f32 %v2219_v2, %v2094_v22 }
 0xf6a   :  { %v2221_v53 = vpop.f32.mrf.mxu0 }
 0xf6b   :  { %v2250_v56 = vmul.f32 0.044715, %v2242_v5  ;;  %v2243_v38 = vmul.f32 %v2235_v33, %v9610_v1  ;;  %v2236_v57 = vmul.f32 %v9615_v35, %v9615_v35  ;;  %v9620_v8 = vadd.f32 %v2221_v53, %v2098_v47 }
 0xf6c   :  { %v2225_v36 = vpop.f32.mrf.mxu0 }
 0xf6d   :  { %v2258_v44 = vadd.f32 %v2250_v56, %v9606_v49  ;;  %v2251_v16 = vmul.f32 0.044715, %v2243_v38  ;;  %v2244_v18 = vmul.f32 %v2236_v57, %v9615_v35  ;;  %v2237_v52 = vmul.f32 %v9620_v8, %v9620_v8 }
 0xf6e   :  { %v9626_v55 = vadd.f32 %v2225_v36, %v2094_v22  ;;  %v2227_v30 = vpop.f32.mrf.mxu0 }
 0xf6f   :  { %v2266_v31 = vmul.f32 0.7978846, %v2258_v44  ;;  %v2259_v32 = vadd.f32 %v2251_v16, %v9610_v1  ;;  %v2252_v39 = vmul.f32 0.044715, %v2244_v18  ;;  %v2245_v6 = vmul.f32 %v2237_v52, %v9620_v8 }
 0xf70   :  { %v2238_v40 = vmul.f32 %v9626_v55, %v9626_v55  ;;  %v9632_v50 = vadd.f32 %v2227_v30, %v2098_v47  ;;  %v2229_v60 = vpop.f32.mrf.mxu0 }
 0xf71   :  { %v2267_v13 = vmul.f32 0.7978846, %v2259_v32  ;;  %v2260_v7 = vadd.f32 %v2252_v39, %v9615_v35  ;;  %v2253_v24 = vmul.f32 0.044715, %v2245_v6  ;;  %7954 = vtanh.f32 %v2266_v31 }
 0xf72   :  { %v2246_v29 = vmul.f32 %v2238_v40, %v9626_v55  ;;  %v2239_v17 = vmul.f32 %v9632_v50, %v9632_v50  ;;  %v9638_v12 = vadd.f32 %v2229_v60, %v2094_v22  ;;  %v2231_v34 = vpop.f32.mrf.mxu0 }
 0xf73   :  { %7956 = vtanh.f32 %v2267_v13  ;;  %v2268_v54 = vmul.f32 0.7978846, %v2260_v7  ;;  %v2261_v58 = vadd.f32 %v2253_v24, %v9620_v8  ;;  %v9641_v59 = vadd.f32 %v2231_v34, %v2098_v47  ;;  %v9655_v24 = vld [vmem:[%s10506_s24] sm:$0x7] }
 0xf74   :  { %v2254_v2 = vmul.f32 0.044715, %v2246_v29  ;;  %v2247_v5 = vmul.f32 %v2239_v17, %v9632_v50  ;;  %v2240_v33 = vmul.f32 %v9638_v12, %v9638_v12 }
 0xf75   :  { %7958 = vtanh.f32 %v2268_v54  ;;  %v2269_v53 = vmul.f32 0.7978846, %v2261_v58  ;;  %v2241_v56 = vmul.f32 %v9641_v59, %v9641_v59  ;;  %v9659_v58 = vrot.slane %v9655_v24, %v9293_v21 }
 0xf76   :  { %v2262_v22 = vadd.f32 %v2254_v2, %v9626_v55  ;;  %v2255_v38 = vmul.f32 0.044715, %v2247_v5  ;;  %v2248_v57 = vmul.f32 %v2240_v33, %v9638_v12 }
 0xf77   :  { %7960 = vtanh.f32 %v2269_v53  ;;  %v2249_v47 = vmul.f32 %v2241_v56, %v9641_v59 }
 0xf78   :  { %v2270_v36 = vmul.f32 0.7978846, %v2262_v22  ;;  %v2263_v44 = vadd.f32 %v2255_v38, %v9632_v50  ;;  %v2256_v16 = vmul.f32 0.044715, %v2248_v57 }
 0xf79   :  { %v2257_v18 = vmul.f32 0.044715, %v2249_v47 }
 0xf7a   :  { %7962 = vtanh.f32 %v2270_v36  ;;  %v2271_v52 = vmul.f32 0.7978846, %v2263_v44  ;;  %v2264_v30 = vadd.f32 %v2256_v16, %v9638_v12 }
 0xf7b   :  { %v2265_v31 = vadd.f32 %v2257_v18, %v9641_v59 }
 0xf7c   :  { %7964 = vtanh.f32 %v2271_v52  ;;  %v2272_v32 = vmul.f32 0.7978846, %v2264_v30 }
 0xf7d   :  { %v2273_v39 = vmul.f32 0.7978846, %v2265_v31 }
 0xf7e   :  { %7966 = vtanh.f32 %v2272_v32  ;;  %v7955_v6 = vpop.eup %7954 }
 0xf7f   :  { %7968 = vtanh.f32 %v2273_v39  ;;  %v2282_v7 = vadd.f32 1.0, %v7955_v6 }
 0xf80   :  { %v7957_v40 = vpop.eup %7956 }
 0xf81   :  { %v2283_v60 = vadd.f32 1.0, %v7957_v40  ;;  %v2290_v33 = vmul.f32 0.5, %v2282_v7  ;;  %v7739_v7 = vld [vmem:[#allocation22 + $0x98] ss:$12 sps:$4 sm:$0xff]  }
 0xf82   :  { %v7959_v13 = vpop.eup %7958 }
 0xf83   :  { %v2284_v29 = vadd.f32 1.0, %v7959_v13  ;;  %v2291_v5 = vmul.f32 0.5, %v2283_v60  ;;  %v2298_v52 = vmul.f32 %v2290_v33, %v9606_v49 }
 0xf84   :  { %v7961_v17 = vpop.eup %7960  ;;  %v2851_v34 = vpop.f32.mrf.mxu0 }
 0xf85   :  { %v2292_v54 = vmul.f32 0.5, %v2284_v29  ;;  %v2285_v2 = vadd.f32 1.0, %v7961_v17  ;;  %v2852_v36 = vadd.f32 %v2851_v34, %v9659_v58  ;;  %v2299_v16 = vmul.f32 %v2291_v5, %v9610_v1  ;;  %v7740_v5 = vld [vmem:[#allocation22 + $0x80] ss:$12 sps:$4 sm:$0xff]  }
 0xf86   :  { %v2853_v53 = vpop.f32.mrf.mxu0 }
 0xf87   :  { %v7963_v56 = vpop.eup %7962  ;;  %v2293_v22 = vmul.f32 0.5, %v2285_v2  ;;  %v2300_v38 = vmul.f32 %v2292_v54, %v9615_v35 }
 0xf88   :  { %v2855_v57 = vpop.f32.mrf.mxu0  ;;  %v2286_v32 = vadd.f32 1.0, %v7963_v56  ;;  %v2681_v56 = vrot.slane %v9655_v24, %v9303_v37 }
 0xf89   :  { %v7965_v47 = vpop.eup %7964  ;;  %v2856_v44 = vadd.f32 %v2855_v57, %v9659_v58  ;;  %v2301_v18 = vmul.f32 %v2293_v22, %v9620_v8  ;;  %v2338_v13 = vpack.c.bf16 %v2300_v38, %v2298_v52 }
 0xf8a   :  { %v2857_v30 = vpop.f32.mrf.mxu0  ;;  %v2287_v31 = vadd.f32 1.0, %v7965_v47  ;;  %v2294_v49 = vmul.f32 0.5, %v2286_v32  ;;  %v2854_v52 = vadd.f32 %v2853_v53, %v2681_v56 }
 0xf8b   :  { %v7967_v39 = vpop.eup %7966  ;;  %v9667_v6 = vpack.c.bf16 %v2856_v44, %v2852_v36  ;;  %v2339_v40 = vpack.c.bf16 %v2301_v18, %v2299_v16  ;;  %v2858_v36 = vadd.f32 %v2857_v30, %v2681_v56  ;;  %v7744_v30 = vld [vmem:[#allocation22 + $0x20] ss:$12 sps:$4 sm:$0xff]  }
 0xf8c   :  { %v7969_v35 = vpop.eup %7968  ;;  %v2861_v60 = vpop.f32.mrf.mxu0  ;;  %v2288_v29 = vadd.f32 1.0, %v7967_v39  ;;  %v2295_v8 = vmul.f32 0.5, %v2287_v31  ;;  %v2302_v47 = vmul.f32 %v2294_v49, %v9626_v55 }
 0xf8d   :  { %7311 = vmatprep.mubr.msk.bf16.mxu0 %vm976_vm0, %v9667_v6  ;;  %2477 = vmatprep.mubr.bf16.mxu1 %v2339_v40  ;;  %v2289_v1 = vadd.f32 1.0, %v7969_v35  ;;  %v9680_v32 = vpack.c.bf16 %v2858_v36, %v2854_v52  ;;  %v7745_v40 = vld [vmem:[#allocation22 + $0x8] ss:$12 sps:$4 sm:$0xff]  }
 0xf8e   :  { %v2863_v17 = vpop.f32.mrf.mxu0  ;;  %2478 = vmatmul.mubr.bf16.vlgmr.msra.gmra.mxu1 %v2338_v13  ;;  %v2296_v34 = vmul.f32 0.5, %v2288_v29  ;;  %v2303_v22 = vmul.f32 %v2295_v8, %v9632_v50  ;;  %v7742_v50 = vld [vmem:[#allocation22 + $0x50] ss:$12 sps:$4 sm:$0xff]  }
 0xf8f   :  { %7288 = vmatpush3.bf16.msra.mxu1 %v9601_v46  ;;  %v2297_v54 = vmul.f32 0.5, %v2289_v1  ;;  %v2864_v44 = vadd.f32 %v2863_v17, %v2681_v56  ;;  %v2947_v53 = vsel %vm976_vm0, %v9680_v32, 0 }
 0xf90   :  { %v2865_v2 = vpop.f32.mrf.mxu0  ;;  %7289 = vmatprep.subr.bf16.mxu1 %v7739_v7  ;;  %v2304_v33 = vmul.f32 %v2296_v34, %v9638_v12  ;;  %v7741_v12 = vld [vmem:[#allocation22 + $0x68] ss:$12 sps:$4 sm:$0xff]  }
 0xf91   :  { %v2305_v38 = vmul.f32 %v2297_v54, %v9641_v59  ;;  %v7743_v59 = vld [vmem:[#allocation22 + $0x38] ss:$12 sps:$4 sm:$0xff]   ;;  %v2866_v39 = vadd.f32 %v2865_v2, %v9659_v58 }
 0xf92   :  { %v2867_v57 = vpop.f32.mrf.mxu0  ;;  %v2340_v18 = vpack.c.bf16 %v2304_v33, %v2302_v47  ;;  %v553_v33 = vadd.s32 8, %v9290_v20 }
 0xf93   :  { %v2868_v16 = vadd.f32 %v2867_v57, %v2681_v56  ;;  %7290 = vmatpush3.bf16.msra.mxu1 %v7739_v7  ;;  %v2341_v46 = vpack.c.bf16 %v2305_v38, %v2303_v22  ;;  %v555_v56 = vadd.s32 24, %v9290_v20 }
 0xf94   :  { %7291 = vmatprep.subr.bf16.mxu1 %v7740_v5 }
 0xf95   :  { %v9678_v31 = vpack.c.bf16 %v2868_v16, %v2864_v44  ;;  %2485 = vmatprep.mubr.bf16.mxu1 %v2341_v46 }
 0xf96   :  { %2486 = vmatmul.mubr.bf16.gmra.mxu1 %v2340_v18 }
 0xf97   :  { %7292 = vmatpush3.bf16.msra.mxu1 %v7740_v5  ;;  %7527 = vmatprep.subr.msk.bf16.mxu0 %vm976_vm0, %v9678_v31  ;;  %v2950_v55 = vsel %vm976_vm0, %v9678_v31, 0  ;;  %v9707_v5 = vand.u32 127, %v551_v19 }
 0xf98   :  { %7303 = vmatprep.mubr.bf16.mxu1 %v9588_v45  ;;  %7308 = vmatpush3.bf16.xpose.msra.mxu0 %v2950_v55  ;;  %v2862_v45 = vadd.f32 %v2861_v60, %v9659_v58  ;;  %v2685_v55 = vrot.slane %v9655_v24, %v720_v25 }
 0xf99   :  { %7528 = vmatprep.subr.msk.bf16.mxu0 %vm976_vm0, %v9680_v32  ;;  %7293 = vmatprep.subr.bf16.mxu1 %v7741_v12  ;;  %vm587_vm5 = vcmp.ge.s32.totalorder %v9290_v20, %v9707_v5  ;;  %vm588_vm8 = vcmp.ge.s32.totalorder %v553_v33, %v9707_v5  ;;  %vm590_vm10 = vcmp.ge.s32.totalorder %v555_v56, %v9707_v5 }
 0xf9a   :  { %v9693_v35 = vpack.c.bf16 %v2866_v39, %v2862_v45  ;;  %vm591_vm7 = vmand %vm579_vm1, %vm587_vm5 }
 0xf9b   :  { %7294 = vmatpush3.bf16.msra.mxu1 %v7741_v12  ;;  %v9724_v47 = vsel %vm591_vm7, 0.0, %v8942_v3  ;;  %vm592_vm11 = vmand %vm580_vm3, %vm588_vm8 }
 0xf9c   :  { %7295 = vmatprep.subr.bf16.mxu1 %v7742_v50  ;;  %vm594_vm12 = vmand %vm582_vm4, %vm590_vm10  ;;  %v9739_v61 = vsel %vm592_vm11, 0.0, %v8942_v3 }
 0xf9d   :  { %v9746_v0 = vsel %vm594_vm12, 0.0, %v8942_v3 }
 0xf9f   :  { %7296 = vmatpush3.bf16.msra.mxu1 %v7742_v50 }
 0xfa0   :  { %7310 = vmatpush3.bf16.xpose.msra.mxu0 %v2947_v53  ;;  %7297 = vmatprep.subr.bf16.mxu1 %v7743_v59 }
 0xfa3   :  { %7298 = vmatpush3.bf16.msra.mxu1 %v7743_v59 }
 0xfa4   :  { %7299 = vmatprep.subr.bf16.mxu1 %v7744_v30 }
 0xfa7   :  { %7300 = vmatpush3.bf16.msra.mxu1 %v7744_v30  ;;  %7312 = vmatmul.mubr.msk.bf16.vlgmr.msra.gmra.mxu0 %vm976_vm0, %v9693_v35 }
 0xfa8   :  { %7301 = vmatprep.subr.bf16.mxu1 %v7745_v40 }
 0xfab   :  { %7302 = vmatpush3.bf16.msra.mxu1 %v7745_v40 }
 0xfae   :  { %7304 = vmatmul.mubr.bf16.vlgmr.msra.gmra.mxu1 %v9598_v14  ;;  %v554_v14 = vadd.s32 16, %v9290_v20 }
 0xfb0   :  { %vm589_vm6 = vcmp.ge.s32.totalorder %v554_v14, %v9707_v5 }
 0xfb1   :  { %vm593_vm9 = vmand %vm581_vm2, %vm589_vm6 }
 0xfb2   :  { %v9731_v44 = vsel %vm593_vm9, 0.0, %v8942_v3 }
0x104e   :  { %v6975_v13 = vpop.f32.mrf.mxu1 }
0x1050   :  { %v6976_v7 = vpop.f32.mrf.mxu1 }
0x1051   :  { %v9698_v29 = vadd.f32 %v6976_v7, %v6975_v13 }
0x1052   :  { %v6978_v1 = vpop.f32.mrf.mxu1 }
0x1054   :  { %v6979_v8 = vpop.f32.mrf.mxu1 }
0x1055   :  { %v9700_v58 = vadd.f32 %v6979_v8, %v6978_v1 }
0x1056   :  { %v6981_v60 = vpop.f32.mrf.mxu1 }
0x1058   :  { %v6982_v17 = vpop.f32.mrf.mxu1 }
0x1059   :  { %v9702_v49 = vadd.f32 %v6982_v17, %v6981_v60 }
0x105a   :  { %v6984_v34 = vpop.f32.mrf.mxu1 }
0x105c   :  { %v6985_v54 = vpop.f32.mrf.mxu1 }
0x105d   :  { %v9704_v2 = vadd.f32 %v6985_v54, %v6984_v34 }
0x1067   :  { %v7313_v22 = vpop.f32.mrf.mxu0 }
0x1068   :  { %v3003_v38 = vmul.f32 0.17677669, %v7313_v22 }
0x1069   :  { %v2986_v19 = vpop.f32.mrf.mxu0 }
0x106a   :  { %v3001_v57 = vmul.f32 0.17677669, %v2986_v19  ;;  %v3007_v12 = vadd.f32 %v3003_v38, %v9731_v44 }
0x106b   :  { %v7314_v36 = vpop.f32.mrf.mxu0 }
0x106c   :  { %v3005_v62 = vadd.f32 %v3001_v57, %v9724_v47  ;;  %v3004_v63 = vmul.f32 0.17677669, %v7314_v36  ;;  %v3015_v53 = vsel %vm976_vm0, %v3007_v12, -inf }
0x106d   :  { %v2989_v16 = vpop.f32.mrf.mxu0 }
0x106e   :  { %v3002_v46 = vmul.f32 0.17677669, %v2989_v16  ;;  %v7305_v18 = vpop.f32.mrf.mxu1  ;;  %v3009_v52 = vsel %vm976_vm0, %v3005_v62, -inf  ;;  %v3008_v39 = vadd.f32 %v3004_v63, %v9746_v0 }
0x106f   :  { %3010 = vmax.xlane.f32.xlu0 %v3009_v52  ;;  %v2913_v45 = vadd.f32 %v7305_v18, %v2685_v55 }
0x1070   :  { %v2904_v50 = vpop.f32.mrf.mxu1  ;;  %v3006_v59 = vadd.f32 %v3002_v46, %v9739_v61  ;;  %v3018_v7 = vsel %vm976_vm0, %v3008_v39, -inf }
0x1071   :  { %v2905_v25 = vadd.f32 %v2904_v50, %v2685_v55 }
0x1072   :  { %v7306_v9 = vpop.f32.mrf.mxu1  ;;  %v3012_v30 = vsel %vm976_vm0, %v3006_v59, -inf }
0x1073   :  { %v2916_v40 = vadd.f32 %v7306_v9, %v2685_v55  ;;  %3016 = vmax.xlane.f32.xlu0 %v3015_v53  ;;  %3013 = vmax.xlane.f32.xlu1 %v3012_v30 }
0x1074   :  { %v2907_v20 = vpop.f32.mrf.mxu1 }
0x1075   :  { %v9751_v24 = vpack.c.bf16 %v2916_v40, %v2913_v45  ;;  %v2908_v13 = vadd.f32 %v2907_v20, %v2685_v55 }
0x1077   :  { %v9754_v3 = vpack.c.bf16 %v2908_v13, %v2905_v25  ;;  %7315 = vmatprep.subr.bf16.mxu1 %v9751_v24  ;;  %3019 = vmax.xlane.f32.xlu1 %v3018_v7 }
0x1078   :  { %7316 = vmatpush3.bf16.msra.mxu1 %v9751_v24 }
0x1079   :  { %7317 = vmatprep.subr.bf16.mxu1 %v9754_v3 }
0x107c   :  { %7318 = vmatpush3.bf16.msra.mxu1 %v9754_v3 }
0x10f8   :  { %v3011_v1 = vpop.xlane.xlu0 %3010 }
0x10f9   :  { %v3021_v8 = vsub.f32 %v3005_v62, %v3011_v1 }
0x10fb   :  { %v3025_v14 = vmul.f32 1.442695, %v3021_v8 }
0x10fc   :  { %v3017_v60 = vpop.xlane.xlu0 %3016  ;;  %v3014_v17 = vpop.xlane.xlu1 %3013 }
0x10fd   :  { %v3023_v34 = vsub.f32 %v3007_v12, %v3017_v60  ;;  %v3022_v54 = vsub.f32 %v3006_v59, %v3014_v17 }
0x10ff   :  { %v3029_v33 = vmul.f32 1.442695, %v3023_v34  ;;  %v3027_v56 = vmul.f32 1.442695, %v3022_v54 }
0x1100   :  { %v3020_v22 = vpop.xlane.xlu1 %3019 }
0x1101   :  { %7970 = vpow2.f32 %v3029_v33  ;;  %v3024_v19 = vsub.f32 %v3008_v39, %v3020_v22  ;;  %v7747_v33 = vld [vmem:[#allocation23] sm:$0xff]  }
0x1102   :  { %7972 = vpow2.f32 %v3027_v56 }
0x1103   :  { %7974 = vpow2.f32 %v3025_v14  ;;  %v3031_v38 = vmul.f32 1.442695, %v3024_v19  ;;  %v7746_v14 = vld [vmem:[#allocation23 + $0x8] sm:$0xff]  }
0x1105   :  { %7976 = vpow2.f32 %v3031_v38 }
0x110e   :  { %v7971_v57 = vpop.eup %7970 }
0x110f   :  { %v7973_v36 = vpop.eup %7972  ;;  %v3039_v16 = vsel %vm976_vm0, %v7971_v57, 0.0 }
0x1110   :  { %v7975_v63 = vpop.eup %7974  ;;  %3040 = vadd.xlane.f32.xlu0 %v3039_v16  ;;  %v3036_v62 = vsel %vm976_vm0, %v7973_v36, 0.0 }
0x1111   :  { %3037 = vadd.xlane.f32.xlu1 %v3036_v62  ;;  %v3033_v18 = vsel %vm976_vm0, %v7975_v63, 0.0 }
0x1112   :  { %v7977_v46 = vpop.eup %7976 }
0x1113   :  { %v3042_v52 = vsel %vm976_vm0, %v7977_v46, 0.0 }
0x1114   :  { %3034 = vadd.xlane.f32.xlu0 %v3033_v18 }
0x1115   :  { %3043 = vadd.xlane.f32.xlu1 %v3042_v52 }
0x1126   :  { %3122 = vrot.lane.b32.xlu1 %v9680_v32, %s8943_s17 }
0x112a   :  { %3116 = vrot.lane.b32.xlu1 %v9667_v6, %s8943_s17  ;;  %3124 = vrot.lane.b32.xlu0 %v9678_v31, %s8943_s17 }
0x112e   :  { %3118 = vrot.lane.b32.xlu0 %v9693_v35, %s8943_s17 }
0x1199   :  { %v3041_v12 = vpop.xlane.xlu0 %3040 }
0x119a   :  { %v3038_v55 = vpop.xlane.xlu1 %3037 }
0x119b   :  { %7978 = vrcp.f32 %v3038_v55 }
0x119c   :  { %7980 = vrcp.f32 %v3041_v12 }
0x119d   :  { %v3035_v50 = vpop.xlane.xlu0 %3034 }
0x119e   :  { %7982 = vrcp.f32 %v3035_v50  ;;  %v3044_v59 = vpop.xlane.xlu1 %3043 }
0x119f   :  { %7984 = vrcp.f32 %v3044_v59 }
0x11a1   :  { %v3125_v9 = vpop.permute.xlu0 %3124 }
0x11a2   :  { %7529 = vmatprep.subr.msk.bf16.mxu1 %vm976_vm0, %v3125_v9  ;;  %v3123_v45 = vpop.permute.xlu1 %3122  ;;  %v3136_v17 = vsel %vm976_vm0, %v3125_v9, 0 }
0x11a3   :  { %v3133_v34 = vsel %vm976_vm0, %v3123_v45, 0 }
0x11a5   :  { %v3119_v54 = vpop.permute.xlu0 %3118 }
0x11a6   :  { %v3117_v60 = vpop.permute.xlu1 %3116 }
0x11a8   :  { %v7979_v53 = vpop.eup %7978 }
0x11a9   :  { %v7981_v30 = vpop.eup %7980  ;;  %v3050_v25 = vmul.f32 %v7979_v53, %v7973_v36 }
0x11aa   :  { %v3051_v13 = vmul.f32 %v7981_v30, %v7971_v57 }
0x11ab   :  { %v7983_v39 = vpop.eup %7982 }
0x11ac   :  { %v7985_v40 = vpop.eup %7984  ;;  %v3049_v20 = vmul.f32 %v7983_v39, %v7975_v63 }
0x11ad   :  { %v3052_v7 = vmul.f32 %v7985_v40, %v7977_v46 }
0x11ae   :  { %v3053_v1 = vpack.c.bf16 %v3050_v25, %v3049_v20 }
0x11af   :  { %v3054_v8 = vpack.c.bf16 %v3052_v7, %v3051_v13 }
0x11b0   :  { %7319 = vmatprep.mubr.msk.bf16.mxu1 %vm976_vm0, %v3053_v1 }
0x11b1   :  { %7320 = vmatmul.mubr.msk.bf16.vlgmr.msra.gmra.mxu1 %vm976_vm0, %v3054_v8 }
0x11b2   :  { %7324 = vmatpush3.bf16.xpose.msra.mxu1 %v3136_v17  ;;  %7327 = vmatprep.mubr.msk.bf16.mxu1 %vm976_vm0, %v3117_v60 }
0x11b3   :  { %7530 = vmatprep.subr.msk.bf16.mxu1 %vm976_vm0, %v3123_v45 }
0x11ba   :  { %7326 = vmatpush3.bf16.xpose.msra.mxu1 %v3133_v34 }
0x11bb   :  { %7347 = vmatprep.subr.bf16.mxu1 %v7746_v14 }
0x11c1   :  { %7328 = vmatmul.mubr.msk.bf16.vlgmr.msra.gmra.mxu1 %vm976_vm0, %v3119_v54 }
0x11c2   :  { %7348 = vmatpush3.bf16.msra.mxu1 %v7746_v14 }
0x11c3   :  { %7349 = vmatprep.subr.bf16.mxu1 %v7747_v33 }
0x11c6   :  { %7350 = vmatpush3.bf16.msra.mxu1 %v7747_v33 }
0x1271   :  { %v7321_v56 = vpop.f32.mrf.mxu1 }
0x1273   :  { %v3097_v22 = vpop.f32.mrf.mxu1 }
0x1275   :  { %v7322_v19 = vpop.f32.mrf.mxu1 }
0x1276   :  { %v3113_v36 = vpack.c.bf16 %v7322_v19, %v7321_v56 }
0x1277   :  { %v3100_v38 = vpop.f32.mrf.mxu1 }
0x1278   :  { %v3112_v57 = vpack.c.bf16 %v3100_v38, %v3097_v22 }
0x127a   :  { %7351 = vmatprep.mubr.msk.bf16.mxu1 %vm976_vm0, %v3112_v57 }
0x127b   :  { %7352 = vmatmul.mubr.msk.bf16.vlgmr.msra.gmra.mxu1 %vm976_vm0, %v3113_v36 }
0x1281   :  { %v7329_v16 = vpop.f32.mrf.mxu1 }
0x1282   :  { %v3189_v55 = vmul.f32 0.17677669, %v7329_v16 }
0x1283   :  { %v3172_v63 = vpop.f32.mrf.mxu1 }
0x1284   :  { %v3187_v62 = vmul.f32 0.17677669, %v3172_v63  ;;  %v3193_v45 = vadd.f32 %v3189_v55, %v9731_v44 }
0x1285   :  { %v7330_v46 = vpop.f32.mrf.mxu1 }
0x1286   :  { %v3190_v18 = vmul.f32 0.17677669, %v7330_v46  ;;  %v3191_v52 = vadd.f32 %v3187_v62, %v9724_v47  ;;  %v3201_v40 = vsel %vm976_vm0, %v3193_v45, -inf }
0x1287   :  { %v3175_v12 = vpop.f32.mrf.mxu1 }
0x1288   :  { %v3194_v50 = vadd.f32 %v3190_v18, %v9746_v0  ;;  %v3188_v59 = vmul.f32 0.17677669, %v3175_v12  ;;  %v3195_v9 = vsel %vm976_vm0, %v3191_v52, -inf  ;;  %v7748_v12 = vld [vmem:[#allocation23 + $0x18] sm:$0xff]  }
0x1289   :  { %3196 = vmax.xlane.f32.xlu1 %v3195_v9 }
0x128a   :  { %v3192_v53 = vadd.f32 %v3188_v59, %v9739_v61  ;;  %v3204_v30 = vsel %vm976_vm0, %v3194_v50, -inf }
0x128c   :  { %v3198_v39 = vsel %vm976_vm0, %v3192_v53, -inf }
0x128d   :  { %3205 = vmax.xlane.f32.xlu1 %v3204_v30  ;;  %3199 = vmax.xlane.f32.xlu0 %v3198_v39 }
0x1291   :  { %3202 = vmax.xlane.f32.xlu0 %v3201_v40  ;;  %v7749_v40 = vld [vmem:[#allocation23 + $0x10] sm:$0xff]  }
0x1312   :  { %v3197_v20 = vpop.xlane.xlu1 %3196 }
0x1313   :  { %v3207_v8 = vsub.f32 %v3191_v52, %v3197_v20 }
0x1315   :  { %v3211_v14 = vmul.f32 1.442695, %v3207_v8 }
0x1316   :  { %v3206_v25 = vpop.xlane.xlu1 %3205  ;;  %v3200_v13 = vpop.xlane.xlu0 %3199 }
0x1317   :  { %v3210_v7 = vsub.f32 %v3194_v50, %v3206_v25  ;;  %v3208_v1 = vsub.f32 %v3192_v53, %v3200_v13 }
0x1319   :  { %v3217_v60 = vmul.f32 1.442695, %v3210_v7  ;;  %v3213_v17 = vmul.f32 1.442695, %v3208_v1 }
0x131a   :  { %v3203_v34 = vpop.xlane.xlu0 %3202 }
0x131b   :  { %7986 = vpow2.f32 %v3217_v60  ;;  %v3209_v54 = vsub.f32 %v3193_v45, %v3203_v34 }
0x131c   :  { %7988 = vpow2.f32 %v3213_v17 }
0x131d   :  { %v3215_v33 = vmul.f32 1.442695, %v3209_v54 }
0x131f   :  { %7990 = vpow2.f32 %v3215_v33 }
0x1320   :  { %7992 = vpow2.f32 %v3211_v14 }
0x1328   :  { %v7987_v56 = vpop.eup %7986 }
0x1329   :  { %v3228_v22 = vsel %vm976_vm0, %v7987_v56, 0.0  ;;  %v7989_v19 = vpop.eup %7988 }
0x132a   :  { %3229 = vadd.xlane.f32.xlu1 %v3228_v22  ;;  %v3222_v57 = vsel %vm976_vm0, %v7989_v19, 0.0 }
0x132c   :  { %v7991_v38 = vpop.eup %7990 }
0x132d   :  { %v3225_v36 = vsel %vm976_vm0, %v7991_v38, 0.0  ;;  %v7993_v16 = vpop.eup %7992 }
0x132e   :  { %3223 = vadd.xlane.f32.xlu1 %v3222_v57  ;;  %3226 = vadd.xlane.f32.xlu0 %v3225_v36  ;;  %v3219_v63 = vsel %vm976_vm0, %v7993_v16, 0.0 }
0x1332   :  { %3220 = vadd.xlane.f32.xlu0 %v3219_v63 }
0x133f   :  { %3243 = vrot.lane.b32.xlu1 %v9754_v3, %s8943_s17 }
0x1343   :  { %3446 = vrot.lane.b32.xlu1 %v9678_v31, %s8905_s18 }
0x1347   :  { %3440 = vrot.lane.b32.xlu1 %v9667_v6, %s8905_s18 }
0x1348   :  { %3245 = vrot.lane.b32.xlu0 %v9751_v24, %s8943_s17 }
0x134b   :  { %3703 = vrot.lane.b32.xlu1 %v9678_v31, %s8944_s23 }
0x134c   :  { %3444 = vrot.lane.b32.xlu0 %v9680_v32, %s8905_s18 }
0x134f   :  { %3697 = vrot.lane.b32.xlu1 %v9667_v6, %s8944_s23 }
0x1350   :  { %3442 = vrot.lane.b32.xlu0 %v9693_v35, %s8905_s18 }
0x1354   :  { %3701 = vrot.lane.b32.xlu0 %v9680_v32, %s8944_s23 }
0x1358   :  { %3699 = vrot.lane.b32.xlu0 %v9693_v35, %s8944_s23 }
0x13b3   :  { %v3230_v62 = vpop.xlane.xlu1 %3229 }
0x13b7   :  { %v3224_v46 = vpop.xlane.xlu1 %3223  ;;  %v3227_v18 = vpop.xlane.xlu0 %3226 }
0x13b8   :  { %7994 = vrcp.f32 %v3227_v18 }
0x13b9   :  { %7996 = vrcp.f32 %v3224_v46 }
0x13ba   :  { %7998 = vrcp.f32 %v3230_v62 }
0x13bb   :  { %v3221_v31 = vpop.xlane.xlu0 %3220  ;;  %v3244_v6 = vpop.permute.xlu1 %3243 }
0x13bc   :  { %8000 = vrcp.f32 %v3221_v31 }
0x13bf   :  { %v3246_v52 = vpop.permute.xlu0 %3245  ;;  %v3447_v20 = vpop.permute.xlu1 %3446 }
0x13c0   :  { %7331 = vmatprep.subr.bf16.mxu0 %v3246_v52  ;;  %v3458_v34 = vsel %vm976_vm0, %v3447_v20, 0 }
0x13c1   :  { %7332 = vmatpush3.bf16.msra.mxu0 %v3246_v52 }
0x13c2   :  { %7333 = vmatprep.subr.bf16.mxu0 %v3244_v6 }
0x13c3   :  { %v3441_v17 = vpop.permute.xlu1 %3440  ;;  %v3445_v54 = vpop.permute.xlu0 %3444 }
0x13c4   :  { %v3455_v14 = vsel %vm976_vm0, %v3445_v54, 0 }
0x13c5   :  { %7334 = vmatpush3.bf16.msra.mxu0 %v3244_v6  ;;  %v7995_v55 = vpop.eup %7994 }
0x13c6   :  { %7339 = vmatprep.subr.bf16.mxu0 %v7748_v12  ;;  %v7997_v32 = vpop.eup %7996  ;;  %v3237_v59 = vmul.f32 %v7995_v55, %v7991_v38 }
0x13c7   :  { %v7999_v50 = vpop.eup %7998  ;;  %v3236_v53 = vmul.f32 %v7997_v32, %v7989_v19  ;;  %v3704_v33 = vpop.permute.xlu1 %3703 }
0x13c8   :  { %v3238_v30 = vmul.f32 %v7999_v50, %v7987_v56  ;;  %v3443_v56 = vpop.permute.xlu0 %3442  ;;  %v3715_v19 = vsel %vm976_vm0, %v3704_v33, 0 }
0x13c9   :  { %v8001_v35 = vpop.eup %8000 }
0x13ca   :  { %v3235_v9 = vmul.f32 %v8001_v35, %v7993_v16  ;;  %v3240_v45 = vpack.c.bf16 %v3238_v30, %v3237_v59 }
0x13cb   :  { %v3698_v22 = vpop.permute.xlu1 %3697 }
0x13cc   :  { %v3239_v39 = vpack.c.bf16 %v3236_v53, %v3235_v9  ;;  %v3702_v38 = vpop.permute.xlu0 %3701 }
0x13cd   :  { %v3712_v57 = vsel %vm976_vm0, %v3702_v38, 0 }
0x13ce   :  { %7335 = vmatprep.mubr.msk.bf16.mxu0 %vm976_vm0, %v3239_v39 }
0x13cf   :  { %7336 = vmatmul.mubr.msk.bf16.vlgmr.msra.gmra.mxu0 %vm976_vm0, %v3240_v45 }
0x13d0   :  { %7340 = vmatpush3.bf16.msra.mxu0 %v7748_v12  ;;  %v3700_v36 = vpop.permute.xlu0 %3699 }
0x13d1   :  { %7341 = vmatprep.subr.bf16.mxu0 %v7749_v40 }
0x13d4   :  { %7342 = vmatpush3.bf16.msra.mxu0 %v7749_v40 }
0x13d5   :  { %7531 = vmatprep.subr.msk.bf16.mxu0 %vm976_vm0, %v3447_v20 }
0x148f   :  { %v7337_v25 = vpop.f32.mrf.mxu0 }
0x1491   :  { %v3289_v13 = vpop.f32.mrf.mxu0 }
0x1493   :  { %v7338_v7 = vpop.f32.mrf.mxu0 }
0x1494   :  { %v3305_v60 = vpack.c.bf16 %v7338_v7, %v7337_v25 }
0x1495   :  { %v3292_v1 = vpop.f32.mrf.mxu0 }
0x1496   :  { %v3304_v8 = vpack.c.bf16 %v3292_v1, %v3289_v13 }
0x1498   :  { %7343 = vmatprep.mubr.msk.bf16.mxu0 %vm976_vm0, %v3304_v8 }
0x1499   :  { %7344 = vmatmul.mubr.msk.bf16.vlgmr.msra.gmra.mxu0 %vm976_vm0, %v3305_v60 }
0x149a   :  { %7356 = vmatpush3.bf16.xpose.msra.mxu0 %v3458_v34  ;;  %7359 = vmatprep.mubr.msk.bf16.mxu0 %vm976_vm0, %v3441_v17 }
0x149b   :  { %7532 = vmatprep.subr.msk.bf16.mxu0 %vm976_vm0, %v3445_v54 }
0x14a2   :  { %7358 = vmatpush3.bf16.xpose.msra.mxu0 %v3455_v14 }
0x14a3   :  { %7533 = vmatprep.subr.msk.bf16.mxu0 %vm976_vm0, %v3704_v33 }
0x14a9   :  { %7360 = vmatmul.mubr.msk.bf16.vlgmr.msra.gmra.mxu0 %vm976_vm0, %v3443_v56 }
0x14aa   :  { %7380 = vmatpush3.bf16.xpose.msra.mxu0 %v3715_v19  ;;  %7383 = vmatprep.mubr.msk.bf16.mxu0 %vm976_vm0, %v3698_v22 }
0x14ab   :  { %7534 = vmatprep.subr.msk.bf16.mxu0 %vm976_vm0, %v3702_v38 }
0x14b2   :  { %7382 = vmatpush3.bf16.xpose.msra.mxu0 %v3712_v57 }
0x14b9   :  { %7384 = vmatmul.mubr.msk.bf16.vlgmr.msra.gmra.mxu0 %vm976_vm0, %v3700_v36 }
0x1559   :  { %v9830_v16 = vpop.f32.mrf.mxu0 }
0x155b   :  { %v9832_v63 = vpop.f32.mrf.mxu0 }
0x155d   :  { %v9834_v62 = vpop.f32.mrf.mxu0 }
0x155f   :  { %v9836_v46 = vpop.f32.mrf.mxu0 }
0x1569   :  { %v7361_v18 = vpop.f32.mrf.mxu0 }
0x156a   :  { %v3511_v50 = vmul.f32 0.17677669, %v7361_v18 }
0x156b   :  { %v3494_v31 = vpop.f32.mrf.mxu0 }
0x156c   :  { %v3509_v52 = vmul.f32 0.17677669, %v3494_v31  ;;  %v3515_v30 = vadd.f32 %v3511_v50, %v9731_v44 }
0x156d   :  { %v7362_v6 = vpop.f32.mrf.mxu0 }
0x156e   :  { %v3513_v12 = vadd.f32 %v3509_v52, %v9724_v47  ;;  %v3512_v55 = vmul.f32 0.17677669, %v7362_v6  ;;  %v3523_v40 = vsel %vm976_vm0, %v3515_v30, -inf }
0x156f   :  { %v3497_v32 = vpop.f32.mrf.mxu0 }
0x1570   :  { %v3516_v35 = vadd.f32 %v3512_v55, %v9746_v0  ;;  %v3510_v59 = vmul.f32 0.17677669, %v3497_v32  ;;  %v3517_v9 = vsel %vm976_vm0, %v3513_v12, -inf }
0x1571   :  { %3518 = vmax.xlane.f32.xlu1 %v3517_v9 }
0x1572   :  { %v3514_v53 = vadd.f32 %v3510_v59, %v9739_v61  ;;  %v3526_v39 = vsel %vm976_vm0, %v3516_v35, -inf }
0x1574   :  { %v3520_v45 = vsel %vm976_vm0, %v3514_v53, -inf }
0x1575   :  { %3527 = vmax.xlane.f32.xlu1 %v3526_v39  ;;  %3521 = vmax.xlane.f32.xlu0 %v3520_v45 }
0x1579   :  { %3524 = vmax.xlane.f32.xlu0 %v3523_v40  ;;  %v7385_v52 = vpop.f32.mrf.mxu0 }
0x157a   :  { %v3768_v9 = vmul.f32 0.17677669, %v7385_v52 }
0x157b   :  { %v3751_v6 = vpop.f32.mrf.mxu0 }
0x157c   :  { %v3766_v55 = vmul.f32 0.17677669, %v3751_v6  ;;  %v3772_v45 = vadd.f32 %v3768_v9, %v9731_v44 }
0x157e   :  { %v3770_v50 = vadd.f32 %v3766_v55, %v9724_v47  ;;  %v3780_v47 = vsel %vm976_vm0, %v3772_v45, -inf }
0x1580   :  { %v3774_v39 = vsel %vm976_vm0, %v3770_v50, -inf }
0x15fa   :  { %v3519_v20 = vpop.xlane.xlu1 %3518 }
0x15fb   :  { %v3529_v8 = vsub.f32 %v3513_v12, %v3519_v20  ;;  %v7386_v12 = vpop.f32.mrf.mxu0 }
0x15fd   :  { %v3533_v14 = vmul.f32 1.442695, %v3529_v8  ;;  %v3754_v32 = vpop.f32.mrf.mxu0 }
0x15fe   :  { %v3528_v25 = vpop.xlane.xlu1 %3527  ;;  %v3522_v13 = vpop.xlane.xlu0 %3521  ;;  %v3767_v59 = vmul.f32 0.17677669, %v3754_v32 }
0x15ff   :  { %v3532_v7 = vsub.f32 %v3516_v35, %v3528_v25  ;;  %v3530_v1 = vsub.f32 %v3514_v53, %v3522_v13  ;;  %v3769_v35 = vmul.f32 0.17677669, %v7386_v12 }
0x1601   :  { %v3539_v60 = vmul.f32 1.442695, %v3532_v7  ;;  %v3535_v17 = vmul.f32 1.442695, %v3530_v1  ;;  %v3773_v53 = vadd.f32 %v3769_v35, %v9746_v0 }
0x1602   :  { %v3525_v34 = vpop.xlane.xlu0 %3524 }
0x1603   :  { %8002 = vpow2.f32 %v3539_v60  ;;  %v3531_v54 = vsub.f32 %v3515_v30, %v3525_v34  ;;  %v3771_v30 = vadd.f32 %v3767_v59, %v9739_v61  ;;  %v3783_v40 = vsel %vm976_vm0, %v3773_v53, -inf }
0x1604   :  { %8004 = vpow2.f32 %v3535_v17 }
0x1605   :  { %v3537_v33 = vmul.f32 1.442695, %v3531_v54  ;;  %v3777_v20 = vsel %vm976_vm0, %v3771_v30, -inf }
0x1607   :  { %8006 = vpow2.f32 %v3537_v33 }
0x1608   :  { %8008 = vpow2.f32 %v3533_v14 }
0x1610   :  { %v8003_v56 = vpop.eup %8002 }
0x1611   :  { %v3550_v22 = vsel %vm976_vm0, %v8003_v56, 0.0  ;;  %v8005_v19 = vpop.eup %8004 }
0x1612   :  { %3551 = vadd.xlane.f32.xlu1 %v3550_v22  ;;  %v3544_v57 = vsel %vm976_vm0, %v8005_v19, 0.0 }
0x1614   :  { %v8007_v38 = vpop.eup %8006 }
0x1615   :  { %v3547_v36 = vsel %vm976_vm0, %v8007_v38, 0.0  ;;  %v8009_v18 = vpop.eup %8008 }
0x1616   :  { %3545 = vadd.xlane.f32.xlu1 %v3544_v57  ;;  %3548 = vadd.xlane.f32.xlu0 %v3547_v36  ;;  %v3541_v31 = vsel %vm976_vm0, %v8009_v18, 0.0 }
0x161a   :  { %3542 = vadd.xlane.f32.xlu0 %v3541_v31 }
0x1627   :  { %3563 = vrot.lane.b32.xlu1 %v9754_v3, %s8905_s18 }
0x1630   :  { %3565 = vrot.lane.b32.xlu0 %v9751_v24, %s8905_s18 }
0x164b   :  { %3775 = vmax.xlane.f32.xlu1 %v3774_v39 }
0x164f   :  { %3784 = vmax.xlane.f32.xlu1 %v3783_v40  ;;  %3778 = vmax.xlane.f32.xlu0 %v3777_v20  ;;  %v7750_v20 = vld [vmem:[#allocation23 + $0x28] sm:$0xff]  }
0x1653   :  { %3781 = vmax.xlane.f32.xlu0 %v3780_v47  ;;  %v7751_v47 = vld [vmem:[#allocation23 + $0x20] sm:$0xff]  }
0x169b   :  { %v3552_v25 = vpop.xlane.xlu1 %3551 }
0x169f   :  { %v3546_v13 = vpop.xlane.xlu1 %3545  ;;  %v3549_v7 = vpop.xlane.xlu0 %3548 }
0x16a0   :  { %8010 = vrcp.f32 %v3549_v7 }
0x16a1   :  { %8012 = vrcp.f32 %v3546_v13 }
0x16a2   :  { %8014 = vrcp.f32 %v3552_v25  ;;  %v6672_v25 = vld [vmem:[#allocation14] ss:$0 sm:$0xff] }
0x16a3   :  { %v3543_v61 = vpop.xlane.xlu0 %3542  ;;  %v3564_v44 = vpop.permute.xlu1 %3563  ;;  %v2480_v13 = vadd.f32 %v9698_v29, %v6672_v25  ;;  %v2483_v7 = vadd.f32 %v9700_v58, %v6672_v25 }
0x16a4   :  { %8016 = vrcp.f32 %v3543_v61  ;;  %v2491_v61 = vadd.f32 %v9704_v2, %v6672_v25 }
0x16a7   :  { %v3566_v0 = vpop.permute.xlu0 %3565 }
0x16a8   :  { %7363 = vmatprep.subr.bf16.mxu1 %v3566_v0 }
0x16a9   :  { %7364 = vmatpush3.bf16.msra.mxu1 %v3566_v0  ;;  %v9882_v0 = vadd.f32 %v2480_v13, %v9562_v15  ;;  %v7353_v15 = vpop.f32.mrf.mxu1 }
0x16aa   :  { %7365 = vmatprep.subr.bf16.mxu1 %v3564_v44 }
0x16ab   :  { %v3425_v58 = vpop.f32.mrf.mxu1 }
0x16ad   :  { %7366 = vmatpush3.bf16.msra.mxu1 %v3564_v44  ;;  %v8011_v1 = vpop.eup %8010  ;;  %v2488_v44 = vadd.f32 %v9702_v49, %v6672_v25  ;;  %v7354_v2 = vpop.f32.mrf.mxu1 }
0x16ae   :  { %v8013_v8 = vpop.eup %8012  ;;  %v3559_v34 = vmul.f32 %v8011_v1, %v8007_v38  ;;  %7371 = vmatprep.subr.bf16.mxu1 %v7750_v20  ;;  %v9887_v1 = vadd.f32 %v2491_v61, %v9573_v43 }
0x16af   :  { %v8015_v60 = vpop.eup %8014  ;;  %v3558_v14 = vmul.f32 %v8013_v8, %v8005_v19  ;;  %v9895_v29 = vadd.f32 %v2488_v44, %v9571_v42 }
0x16b0   :  { %v3560_v33 = vmul.f32 %v8015_v60, %v8003_v56 }
0x16b1   :  { %v8017_v17 = vpop.eup %8016 }
0x16b2   :  { %v3557_v54 = vmul.f32 %v8017_v17, %v8009_v18  ;;  %v3562_v57 = vpack.c.bf16 %v3560_v33, %v3559_v34 }
0x16b4   :  { %v3561_v22 = vpack.c.bf16 %v3558_v14, %v3557_v54 }
0x16b6   :  { %7367 = vmatprep.mubr.msk.bf16.mxu1 %vm976_vm0, %v3561_v22 }
0x16b7   :  { %7368 = vmatmul.mubr.msk.bf16.vlgmr.msra.gmra.mxu1 %vm976_vm0, %v3562_v57 }
0x16b8   :  { %7372 = vmatpush3.bf16.msra.mxu1 %v7750_v20 }
0x16b9   :  { %7373 = vmatprep.subr.bf16.mxu1 %v7751_v47 }
0x16bc   :  { %7374 = vmatpush3.bf16.msra.mxu1 %v7751_v47 }
0x16d4   :  { %v3776_v36 = vpop.xlane.xlu1 %3775 }
0x16d5   :  { %v3786_v55 = vsub.f32 %v3770_v50, %v3776_v36 }
0x16d7   :  { %v3790_v18 = vmul.f32 1.442695, %v3786_v55 }
0x16d8   :  { %v3785_v31 = vpop.xlane.xlu1 %3784  ;;  %v3779_v52 = vpop.xlane.xlu0 %3778 }
0x16d9   :  { %v3789_v6 = vsub.f32 %v3773_v53, %v3785_v31  ;;  %v3787_v12 = vsub.f32 %v3771_v30, %v3779_v52 }
0x16db   :  { %v3796_v32 = vmul.f32 1.442695, %v3789_v6  ;;  %v3792_v35 = vmul.f32 1.442695, %v3787_v12 }
0x16dc   :  { %v3782_v59 = vpop.xlane.xlu0 %3781 }
0x16dd   :  { %8018 = vpow2.f32 %v3796_v32  ;;  %v3788_v38 = vsub.f32 %v3772_v45, %v3782_v59 }
0x16de   :  { %8020 = vpow2.f32 %v3792_v35 }
0x16df   :  { %v3794_v56 = vmul.f32 1.442695, %v3788_v38  ;;  %v7752_v38 = vld [vmem:[#allocation23 + $0x38] sm:$0xff]  }
0x16e1   :  { %8022 = vpow2.f32 %v3794_v56  ;;  %v3434_v56 = vadd.f32 %v7353_v15, %v9830_v16 }
0x16e2   :  { %8024 = vpow2.f32 %v3790_v18  ;;  %v7753_v18 = vld [vmem:[#allocation23 + $0x30] sm:$0xff]  }
0x16ea   :  { %v9864_v19 = vpop.eup %8018 }
0x16eb   :  { %v3807_v9 = vsel %vm976_vm0, %v9864_v19, 0.0  ;;  %v9868_v39 = vpop.eup %8020 }
0x16ec   :  { %3808 = vadd.xlane.f32.xlu1 %v3807_v9  ;;  %v3801_v50 = vsel %vm976_vm0, %v9868_v39, 0.0 }
0x16ee   :  { %v8023_v53 = vpop.eup %8022 }
0x16ef   :  { %v3804_v30 = vsel %vm976_vm0, %v8023_v53, 0.0  ;;  %v8025_v45 = vpop.eup %8024 }
0x16f0   :  { %3802 = vadd.xlane.f32.xlu1 %v3801_v50  ;;  %3805 = vadd.xlane.f32.xlu0 %v3804_v30  ;;  %v3798_v40 = vsel %vm976_vm0, %v8025_v45, 0.0 }
0x16f4   :  { %3799 = vadd.xlane.f32.xlu0 %v3798_v40 }
0x1701   :  { %3820 = vrot.lane.b32.xlu1 %v9754_v3, %s8944_s23  ;;  %v9890_v3 = vadd.f32 %v2483_v7, %v9564_v48 }
0x170a   :  { %3822 = vrot.lane.b32.xlu0 %v9751_v24, %s8944_s23  ;;  %v3428_v24 = vpop.f32.mrf.mxu1 }
0x170b   :  { %v3429_v40 = vadd.f32 %v3428_v24, %v9836_v46  ;;  %v6749_v24 = vld [vmem:[#allocation25] ss:$0 sm:$0xff] }
0x1725   :  { %2500 = vadd.xlane.f32.xlu1 %v9882_v0 }
0x1729   :  { %2506 = vadd.xlane.f32.xlu1 %v9887_v1  ;;  %2502 = vadd.xlane.f32.xlu0 %v9890_v3 }
0x172d   :  { %2504 = vadd.xlane.f32.xlu0 %v9895_v29 }
0x1775   :  { %v3809_v49 = vpop.xlane.xlu1 %3808 }
0x1777   :  { %v7369_v8 = vpop.f32.mrf.mxu1 }
0x1779   :  { %v3609_v43 = vpop.f32.mrf.mxu1  ;;  %v3803_v60 = vpop.xlane.xlu1 %3802 }
0x177a   :  { %v3806_v17 = vpop.xlane.xlu0 %3805 }
0x177b   :  { %v7370_v48 = vpop.f32.mrf.mxu1  ;;  %8026 = vrcp.f32 %v3806_v17 }
0x177c   :  { %8028 = vrcp.f32 %v3803_v60  ;;  %v3625_v42 = vpack.c.bf16 %v7370_v48, %v7369_v8 }
0x177d   :  { %v3612_v34 = vpop.f32.mrf.mxu1  ;;  %8030 = vrcp.f32 %v3809_v49  ;;  %v3821_v22 = vpop.permute.xlu1 %3820 }
0x177e   :  { %v3624_v54 = vpack.c.bf16 %v3612_v34, %v3609_v43  ;;  %v3800_v14 = vpop.xlane.xlu0 %3799 }
0x177f   :  { %8032 = vrcp.f32 %v3800_v14 }
0x1780   :  { %7375 = vmatprep.mubr.msk.bf16.mxu1 %vm976_vm0, %v3624_v54 }
0x1781   :  { %7376 = vmatmul.mubr.msk.bf16.vlgmr.msra.gmra.mxu1 %vm976_vm0, %v3625_v42 }
0x1782   :  { %v3823_v33 = vpop.permute.xlu0 %3822 }
0x1783   :  { %7387 = vmatprep.subr.bf16.mxu1 %v3823_v33 }
0x1784   :  { %7388 = vmatpush3.bf16.msra.mxu1 %v3823_v33 }
0x1785   :  { %7389 = vmatprep.subr.bf16.mxu1 %v3821_v22 }
0x1788   :  { %7390 = vmatpush3.bf16.msra.mxu1 %v3821_v22  ;;  %v8027_v57 = vpop.eup %8026 }
0x1789   :  { %v8029_v36 = vpop.eup %8028  ;;  %v3816_v6 = vmul.f32 %v8027_v57, %v8023_v53  ;;  %7395 = vmatprep.subr.bf16.mxu1 %v7752_v38  ;;  %v3426_v53 = vadd.f32 %v3425_v58, %v9832_v63 }
0x178a   :  { %v8031_v31 = vpop.eup %8030  ;;  %v3815_v55 = vmul.f32 %v8029_v36, %v9868_v39 }
0x178b   :  { %v3817_v32 = vmul.f32 %v8031_v31, %v9864_v19  ;;  %v3437_v19 = vadd.f32 %v7354_v2, %v9834_v62 }
0x178c   :  { %v8033_v52 = vpop.eup %8032 }
0x178d   :  { %v3814_v12 = vmul.f32 %v8033_v52, %v8025_v45  ;;  %v3819_v59 = vpack.c.bf16 %v3817_v32, %v3816_v6 }
0x178f   :  { %v3818_v35 = vpack.c.bf16 %v3815_v55, %v3814_v12 }
0x1791   :  { %7391 = vmatprep.mubr.msk.bf16.mxu1 %vm976_vm0, %v3818_v35 }
0x1792   :  { %7392 = vmatmul.mubr.msk.bf16.vlgmr.msra.gmra.mxu1 %vm976_vm0, %v3819_v59  ;;  %v7756_v59 = vld [vmem:[#allocation32 + $0x74] ss:$8 sps:$4 sm:$0xff]  }
0x1793   :  { %7396 = vmatpush3.bf16.msra.mxu1 %v7752_v38  ;;  %v7754_v38 = vld [vmem:[#allocation32 + $0x70] ss:$8 sps:$4 sm:$0xff]  }
0x1794   :  { %7397 = vmatprep.subr.bf16.mxu1 %v7753_v18 }
0x1797   :  { %7398 = vmatpush3.bf16.msra.mxu1 %v7753_v18  ;;  %v7757_v18 = vld [vmem:[#allocation32 + $0x60] ss:$8 sps:$4 sm:$0xff]  }
0x1798   :  { %4266 = vmatprep.subr.bf16.mxu1 %v7756_v59  ;;  %v7782_v59 = vld [vmem:[#allocation29 + $0x18] sm:$0xff]  }
0x17ae   :  { %v2501_v58 = vpop.xlane.xlu1 %2500 }
0x17af   :  { %v2508_v60 = vmul.f32 0.0078125, %v2501_v58 }
0x17b1   :  { %v9913_v22 = vsub.f32 %v9882_v0, %v2508_v60 }
0x17b2   :  { %v2503_v62 = vpop.xlane.xlu0 %2502  ;;  %v2507_v36 = vpop.xlane.xlu1 %2506 }
0x17b3   :  { %v2509_v57 = vmul.f32 0.0078125, %v2503_v62  ;;  %v2511_v55 = vmul.f32 0.0078125, %v2507_v36  ;;  %v2516_v0 = vmul.f32 %v9913_v22, %v9913_v22 }
0x17b5   :  { %v9918_v32 = vsub.f32 %v9890_v3, %v2509_v57 }
0x17b6   :  { %v2505_v42 = vpop.xlane.xlu0 %2504 }
0x17b7   :  { %v2510_v31 = vmul.f32 0.0078125, %v2505_v42 }
0x1841   :  { %v7377_v9 = vpop.f32.mrf.mxu1 }
0x1842   :  { %v3695_v39 = vadd.f32 %v7377_v9, %v3434_v56  ;;  %v7760_v56 = vld [vmem:[#allocation32 + $0x50] ss:$8 sps:$4 sm:$0xff]   ;;  %v7765_v9 = vld [vmem:[#allocation32 + $0x44] ss:$8 sps:$4 sm:$0xff]  }
0x1843   :  { %v3678_v50 = vpop.f32.mrf.mxu1 }
0x1844   :  { %v3693_v30 = vadd.f32 %v3678_v50, %v3426_v53  ;;  %v7763_v53 = vld [vmem:[#allocation32 + $0x40] ss:$8 sps:$4 sm:$0xff]   ;;  %v7768_v50 = vld [vmem:[#allocation32 + $0x34] ss:$8 sps:$4 sm:$0xff]  }
0x1845   :  { %v7378_v45 = vpop.f32.mrf.mxu1 }
0x1846   :  { %v3696_v20 = vadd.f32 %v7378_v45, %v3437_v19  ;;  %v7771_v19 = vld [vmem:[#allocation32 + $0x24] ss:$8 sps:$4 sm:$0xff]   ;;  %v7774_v45 = vld [vmem:[#allocation32 + $0x14] ss:$8 sps:$4 sm:$0xff]  }
0x1847   :  { %v3681_v47 = vpop.f32.mrf.mxu1 }
0x1848   :  { %v3694_v25 = vadd.f32 %v3681_v47, %v3429_v40  ;;  %v7772_v40 = vld [vmem:[#allocation32 + $0x10] ss:$8 sps:$4 sm:$0xff]   ;;  %v7775_v47 = vld [vmem:[#allocation32] ss:$8 sps:$4 sm:$0xff]  }
0x1852   :  { %v7393_v13 = vpop.f32.mrf.mxu1 }
0x1854   :  { %v3866_v7 = vpop.f32.mrf.mxu1 }
0x1856   :  { %v7394_v61 = vpop.f32.mrf.mxu1 }
0x1857   :  { %v3882_v16 = vpack.c.bf16 %v7394_v61, %v7393_v13 }
0x1858   :  { %v3869_v44 = vpop.f32.mrf.mxu1 }
0x1859   :  { %v3881_v49 = vpack.c.bf16 %v3869_v44, %v3866_v7 }
0x185b   :  { %7399 = vmatprep.mubr.msk.bf16.mxu1 %vm976_vm0, %v3881_v49 }
0x185c   :  { %7400 = vmatmul.mubr.msk.bf16.vlgmr.msra.gmra.mxu1 %vm976_vm0, %v3882_v16 }
0x185d   :  { %4298 = vmatprep.mubr.bf16.mxu1 %v8941_v41  ;;  %4267 = vmatpush1.bf16.msra.mxu1 %v7754_v38 }
0x191c   :  { %v7401_v63 = vpop.f32.mrf.mxu1 }
0x191d   :  { %v3952_v46 = vadd.f32 %v7401_v63, %v3695_v39  ;;  %v7766_v39 = vld [vmem:[#allocation32 + $0x30] ss:$8 sps:$4 sm:$0xff]  }
0x191e   :  { %v3935_v15 = vpop.f32.mrf.mxu1 }
0x191f   :  { %v3950_v2 = vadd.f32 %v3935_v15, %v3693_v30  ;;  %v3962_v48 = vadd.f32 %v6749_v24, %v3952_v46  ;;  %v7769_v30 = vld [vmem:[#allocation32 + $0x20] ss:$8 sps:$4 sm:$0xff]  }
0x1920   :  { %v7402_v8 = vpop.f32.mrf.mxu1 }
0x1921   :  { %v3960_v43 = vadd.f32 %v6749_v24, %v3950_v2  ;;  %v3953_v34 = vadd.f32 %v7402_v8, %v3696_v20  ;;  %v3966_v6 = vadd.f32 %v3962_v48, %v9592_v27  ;;  %v9927_v27 = vsub.f32 %v9887_v1, %v2511_v55  ;;  %v7762_v1 = vld [vmem:[#allocation32 + $0x54] ss:$8 sps:$4 sm:$0xff]   ;;  %v7777_v20 = vld [vmem:[#allocation32 + $0x4] ss:$8 sps:$4 sm:$0xff]  }
0x1922   :  { %v3938_v17 = vpop.f32.mrf.mxu1 }
0x1923   :  { %v3951_v54 = vadd.f32 %v3938_v17, %v3694_v25  ;;  %v3964_v14 = vadd.f32 %v3960_v43, %v9580_v11  ;;  %v3963_v52 = vadd.f32 %v6749_v24, %v3953_v34  ;;  %v9921_v11 = vsub.f32 %v9895_v29, %v2510_v31 }
0x1924   :  { %v2519_v29 = vmul.f32 %v9927_v27, %v9927_v27 }
0x1925   :  { %v3961_v33 = vadd.f32 %v6749_v24, %v3951_v54  ;;  %3970 = vadd.xlane.f32.xlu0 %v3964_v14  ;;  %v3967_v35 = vadd.f32 %v3963_v52, %v9594_v28  ;;  %v2518_v3 = vmul.f32 %v9921_v11, %v9921_v11  ;;  %v7759_v28 = vld [vmem:[#allocation32 + $0x64] ss:$8 sps:$4 sm:$0xff]   ;;  %v7778_v52 = vld [vmem:[#allocation29 + $0x38] sm:$0xff]  }
0x1926   :  { %4268 = vmatprep.subr.bf16.mxu1 %v7759_v28  ;;  %7403 = vmatprep.subr.bf16.mxu0 %v7778_v52 }
0x1927   :  { %v3965_v12 = vadd.f32 %v3961_v33, %v9582_v51  ;;  %v2517_v51 = vmul.f32 %v9918_v32, %v9918_v32  ;;  %4269 = vmatpush1.bf16.msra.mxu1 %v7757_v18  ;;  %7404 = vmatpush3.bf16.msra.mxu0 %v7778_v52 }
0x1928   :  { %4270 = vmatprep.subr.bf16.mxu1 %v7762_v1  ;;  %v6690_v1 = vld [vmem:[#allocation17] ss:$0 sm:$0xff] }
0x1929   :  { %3974 = vadd.xlane.f32.xlu0 %v3966_v6  ;;  %3972 = vadd.xlane.f32.xlu1 %v3965_v12 }
0x192b   :  { %4271 = vmatpush1.bf16.msra.mxu1 %v7760_v56 }
0x192c   :  { %4272 = vmatprep.subr.bf16.mxu1 %v7765_v9 }
0x192d   :  { %2520 = vadd.xlane.f32.xlu0 %v2516_v0  ;;  %3976 = vadd.xlane.f32.xlu1 %v3967_v35  ;;  %v7780_v0 = vld [vmem:[#allocation29 + $0x28] sm:$0xff]  }
0x192f   :  { %4273 = vmatpush1.bf16.msra.mxu1 %v7763_v53  ;;  %v7783_v53 = vld [vmem:[#allocation29 + $0x10] sm:$0xff]  }
0x1930   :  { %4274 = vmatprep.subr.bf16.mxu1 %v7768_v50 }
0x1931   :  { %2522 = vadd.xlane.f32.xlu1 %v2517_v51  ;;  %2524 = vadd.xlane.f32.xlu0 %v2518_v3  ;;  %v6689_v51 = vld [vmem:[#allocation16] ss:$0 sm:$0xff]  ;;  %v7781_v3 = vld [vmem:[#allocation29 + $0x20] sm:$0xff]  }
0x1933   :  { %4275 = vmatpush1.bf16.msra.mxu1 %v7766_v39 }
0x1934   :  { %4276 = vmatprep.subr.bf16.mxu1 %v7771_v19 }
0x1935   :  { %2526 = vadd.xlane.f32.xlu1 %v2519_v29 }
0x1937   :  { %4277 = vmatpush1.bf16.msra.mxu1 %v7769_v30 }
0x1938   :  { %4278 = vmatprep.subr.bf16.mxu1 %v7774_v45 }
0x193b   :  { %4279 = vmatpush1.bf16.msra.mxu1 %v7772_v40 }
0x193c   :  { %4280 = vmatprep.subr.bf16.mxu1 %v7777_v20 }
0x193f   :  { %4281 = vmatpush1.bf16.msra.mxu1 %v7775_v47  ;;  %v7785_v47 = vld [vmem:[#allocation29] sm:$0xff]  }
0x19ae   :  { %v3971_v25 = vpop.xlane.xlu0 %3970 }
0x19af   :  { %v3978_v13 = vmul.f32 0.0078125, %v3971_v25 }
0x19b1   :  { %v9935_v7 = vsub.f32 %v3964_v14, %v3978_v13 }
0x19b2   :  { %v3973_v61 = vpop.xlane.xlu1 %3972  ;;  %v3975_v44 = vpop.xlane.xlu0 %3974 }
0x19b3   :  { %v3979_v49 = vmul.f32 0.0078125, %v3973_v61  ;;  %v3980_v16 = vmul.f32 0.0078125, %v3975_v44  ;;  %v3986_v63 = vmul.f32 %v9935_v7, %v9935_v7 }
0x19b5   :  { %v9939_v62 = vsub.f32 %v3965_v12, %v3979_v49  ;;  %v9941_v15 = vsub.f32 %v3966_v6, %v3980_v16  ;;  %3990 = vadd.xlane.f32.xlu0 %v3986_v63  ;;  %v7779_v12 = vld [vmem:[#allocation29 + $0x30] sm:$0xff]  }
0x19b6   :  { %v3977_v58 = vpop.xlane.xlu1 %3976  ;;  %v2521_v46 = vpop.xlane.xlu0 %2520  ;;  %7405 = vmatprep.subr.bf16.mxu0 %v7779_v12 }
0x19b7   :  { %v3981_v2 = vmul.f32 0.0078125, %v3977_v58  ;;  %v2528_v24 = vmul.f32 0.0078125, %v2521_v46  ;;  %v3987_v8 = vmul.f32 %v9939_v62, %v9939_v62  ;;  %v3988_v43 = vmul.f32 %v9941_v15, %v9941_v15  ;;  %7406 = vmatpush3.bf16.msra.mxu0 %v7779_v12 }
0x19b8   :  { %7407 = vmatprep.subr.bf16.mxu0 %v7780_v0 }
0x19b9   :  { %v9947_v60 = vsub.f32 %v3967_v35, %v3981_v2  ;;  %v2532_v17 = vadd.f32 1e-05, %v2528_v24  ;;  %3992 = vadd.xlane.f32.xlu1 %v3987_v8  ;;  %3994 = vadd.xlane.f32.xlu0 %v3988_v43 }
0x19ba   :  { %v2523_v48 = vpop.xlane.xlu1 %2522  ;;  %v2525_v34 = vpop.xlane.xlu0 %2524 }
0x19bb   :  { %8034 = vrsqrt.f32 %v2532_v17  ;;  %v2529_v54 = vmul.f32 0.0078125, %v2523_v48  ;;  %v2530_v14 = vmul.f32 0.0078125, %v2525_v34  ;;  %v3989_v42 = vmul.f32 %v9947_v60, %v9947_v60  ;;  %7408 = vmatpush3.bf16.msra.mxu0 %v7780_v0  ;;  %v6750_v48 = vld [vmem:[#allocation26] ss:$0 sm:$0xff] }
0x19bc   :  { %7409 = vmatprep.subr.bf16.mxu0 %v7781_v3 }
0x19bd   :  { %v2533_v33 = vadd.f32 1e-05, %v2529_v54  ;;  %v2534_v57 = vadd.f32 1e-05, %v2530_v14  ;;  %3996 = vadd.xlane.f32.xlu1 %v3989_v42 }
0x19be   :  { %v2527_v36 = vpop.xlane.xlu1 %2526 }
0x19bf   :  { %8036 = vrsqrt.f32 %v2533_v33  ;;  %v2531_v31 = vmul.f32 0.0078125, %v2527_v36  ;;  %7410 = vmatpush3.bf16.msra.mxu0 %v7781_v3  ;;  %v6751_v33 = vld [vmem:[#allocation28] ss:$0 sm:$0xff] }
0x19c0   :  { %8038 = vrsqrt.f32 %v2534_v57  ;;  %7411 = vmatprep.subr.bf16.mxu0 %v7782_v59 }
0x19c1   :  { %v2535_v6 = vadd.f32 1e-05, %v2531_v31 }
0x19c3   :  { %8040 = vrsqrt.f32 %v2535_v6  ;;  %7412 = vmatpush3.bf16.msra.mxu0 %v7782_v59 }
0x19c4   :  { %7413 = vmatprep.subr.bf16.mxu0 %v7783_v53 }
0x19c7   :  { %7414 = vmatpush3.bf16.msra.mxu0 %v7783_v53 }
0x19c8   :  { %v8035_v55 = vpop.eup %8034 }
0x19c9   :  { %v2540_v35 = vmul.f32 %v8035_v55, %v9913_v22 }
0x19cb   :  { %v2550_v28 = vmul.f32 %v6689_v51, %v2540_v35 }
0x19cc   :  { %v8037_v29 = vpop.eup %8036 }
0x19cd   :  { %v2541_v38 = vmul.f32 %v8037_v29, %v9918_v32  ;;  %v8039_v18 = vpop.eup %8038  ;;  %v2560_v39 = vadd.f32 %v6690_v1, %v2550_v28  ;;  %v7784_v32 = vld [vmem:[#allocation29 + $0x8] sm:$0xff]  }
0x19ce   :  { %v2542_v22 = vmul.f32 %v8039_v18, %v9921_v11  ;;  %7415 = vmatprep.subr.bf16.mxu0 %v7784_v32 }
0x19cf   :  { %v2551_v56 = vmul.f32 %v6689_v51, %v2541_v38  ;;  %7416 = vmatpush3.bf16.msra.mxu0 %v7784_v32 }
0x19d0   :  { %v8041_v9 = vpop.eup %8040  ;;  %v2552_v40 = vmul.f32 %v6689_v51, %v2542_v22  ;;  %7417 = vmatprep.subr.bf16.mxu0 %v7785_v47 }
0x19d1   :  { %v2561_v50 = vadd.f32 %v6690_v1, %v2551_v56  ;;  %v2543_v19 = vmul.f32 %v8041_v9, %v9927_v27 }
0x19d2   :  { %v2562_v25 = vadd.f32 %v6690_v1, %v2552_v40 }
0x19d3   :  { %v4172_v30 = vpack.c.bf16 %v2561_v50, %v2560_v39  ;;  %v2553_v45 = vmul.f32 %v6689_v51, %v2543_v19  ;;  %7418 = vmatpush3.bf16.msra.mxu0 %v7785_v47  ;;  %v4174_v51 = vld [vmem:[#allocation34] sm:$0x3] }
0x19d4   :  { %v4179_v29 = vrot.slane %v4174_v51, %v9293_v21  ;;  %v4183_v39 = vrot.slane %v4174_v51, %v9303_v37 }
0x19d5   :  { %4299 = vmatmul.mubr.bf16.vlgmr.msra.gmra.mxu1 %v4172_v30  ;;  %v2563_v20 = vadd.f32 %v6690_v1, %v2553_v45 }
0x19d6   :  { %4308 = vmatprep.mubr.bf16.mxu1 %v8941_v41 }
0x19d7   :  { %v4173_v13 = vpack.c.bf16 %v2563_v20, %v2562_v25 }
0x19dd   :  { %4309 = vmatmul.mubr.bf16.gmra.mxu1 %v4173_v13 }
0x1a3e   :  { %v3991_v11 = vpop.xlane.xlu0 %3990 }
0x1a3f   :  { %v3998_v27 = vmul.f32 0.0078125, %v3991_v11 }
0x1a41   :  { %v4002_v61 = vadd.f32 1e-05, %v3998_v27 }
0x1a42   :  { %v3993_v44 = vpop.xlane.xlu1 %3992  ;;  %v3995_v49 = vpop.xlane.xlu0 %3994 }
0x1a43   :  { %8042 = vrsqrt.f32 %v4002_v61  ;;  %v3999_v16 = vmul.f32 0.0078125, %v3993_v44  ;;  %v4000_v63 = vmul.f32 0.0078125, %v3995_v49  ;;  %v6752_v44 = vld [vmem:[#allocation31] ss:$0 sm:$0xff] }
0x1a45   :  { %v4003_v58 = vadd.f32 1e-05, %v3999_v16  ;;  %v4004_v46 = vadd.f32 1e-05, %v4000_v63 }
0x1a46   :  { %v3997_v2 = vpop.xlane.xlu1 %3996 }
0x1a47   :  { %8044 = vrsqrt.f32 %v4003_v58  ;;  %v4001_v24 = vmul.f32 0.0078125, %v3997_v2 }
0x1a48   :  { %8046 = vrsqrt.f32 %v4004_v46 }
0x1a49   :  { %v4005_v8 = vadd.f32 1e-05, %v4001_v24 }
0x1a4b   :  { %8048 = vrsqrt.f32 %v4005_v8 }
0x1a50   :  { %v8043_v43 = vpop.eup %8042 }
0x1a51   :  { %v4010_v17 = vmul.f32 %v8043_v43, %v9935_v7 }
0x1a53   :  { %v4020_v42 = vmul.f32 %v6750_v48, %v4010_v17 }
0x1a54   :  { %v8045_v34 = vpop.eup %8044 }
0x1a55   :  { %v8047_v54 = vpop.eup %8046  ;;  %v4011_v14 = vmul.f32 %v8045_v34, %v9939_v62  ;;  %v9959_v52 = vadd.f32 %v6751_v33, %v4020_v42 }
0x1a56   :  { %v4012_v57 = vmul.f32 %v8047_v54, %v9941_v15 }
0x1a57   :  { %v4021_v36 = vmul.f32 %v6750_v48, %v4011_v14 }
0x1a58   :  { %v8049_v31 = vpop.eup %8048  ;;  %v4022_v55 = vmul.f32 %v6750_v48, %v4012_v57 }
0x1a59   :  { %v9961_v6 = vadd.f32 %v6751_v33, %v4021_v36  ;;  %v4013_v12 = vmul.f32 %v8049_v31, %v9947_v60 }
0x1a5a   :  { %v9966_v35 = vadd.f32 %v6751_v33, %v4022_v55 }
0x1a5b   :  { %v4050_v7 = vpack.c.bf16 %v9961_v6, %v9959_v52  ;;  %v4023_v0 = vmul.f32 %v6750_v48, %v4013_v12 }
0x1a5d   :  { %7419 = vmatprep.mubr.bf16.mxu0 %v4050_v7  ;;  %v9968_v62 = vadd.f32 %v6751_v33, %v4023_v0 }
0x1a5f   :  { %v4051_v15 = vpack.c.bf16 %v9968_v62, %v9966_v35 }
0x1a61   :  { %7420 = vmatmul.mubr.bf16.vlgmr.msra.gmra.mxu0 %v4051_v15 }
0x1a95   :  { %v4300_v3 = vpop.f32.mrf.mxu1 }
0x1a96   :  { %v4301_v38 = vadd.f32 %v4300_v3, %v4179_v29 }
0x1a97   :  { %v4302_v59 = vpop.f32.mrf.mxu1 }
0x1a98   :  { %v4303_v20 = vadd.f32 %v4302_v59, %v4183_v39 }
0x1a99   :  { %v4304_v60 = vpop.f32.mrf.mxu1 }
0x1a9a   :  { %v4305_v28 = vadd.f32 %v4304_v60, %v4179_v29 }
0x1a9b   :  { %v4306_v18 = vpop.f32.mrf.mxu1 }
0x1a9c   :  { %v9973_v1 = vpack.c.bf16 %v4305_v28, %v4301_v38  ;;  %v4307_v30 = vadd.f32 %v4306_v18, %v4183_v39 }
0x1a9d   :  { %v4310_v56 = vpop.f32.mrf.mxu1 }
0x1a9e   :  { %4522 = vrot.lane.b32.xlu1 %v9973_v1, %s8943_s17  ;;  %v4311_v50 = vadd.f32 %v4310_v56, %v4179_v29  ;;  %v9988_v13 = vpack.c.bf16 %v4307_v30, %v4303_v20  ;;  %v4347_v11 = vsel %vm976_vm0, %v9973_v1, 0 }
0x1a9f   :  { %v4312_v9 = vpop.f32.mrf.mxu1 }
0x1aa0   :  { %v4313_v45 = vadd.f32 %v4312_v9, %v4183_v39 }
0x1aa1   :  { %v4314_v53 = vpop.f32.mrf.mxu1 }
0x1aa2   :  { %v4315_v22 = vadd.f32 %v4314_v53, %v4179_v29 }
0x1aa3   :  { %v4316_v19 = vpop.f32.mrf.mxu1 }
0x1aa4   :  { %v9978_v32 = vpack.c.bf16 %v4315_v22, %v4311_v50  ;;  %v4317_v40 = vadd.f32 %v4316_v19, %v4183_v39 }
0x1aa6   :  { %v9980_v47 = vpack.c.bf16 %v4317_v40, %v4313_v45  ;;  %4524 = vrot.lane.b32.xlu0 %v9978_v32, %s8943_s17  ;;  %7535 = vmatprep.subr.msk.bf16.mxu0 %vm976_vm0, %v9978_v32  ;;  %v4350_v25 = vsel %vm976_vm0, %v9978_v32, 0 }
0x1aa7   :  { %7424 = vmatpush3.bf16.xpose.msra.mxu0 %v4350_v25 }
0x1aa8   :  { %7536 = vmatprep.subr.msk.bf16.mxu0 %vm976_vm0, %v9973_v1  ;;  %7431 = vmatprep.subr.bf16.mxu1 %v9980_v47 }
0x1aa9   :  { %7432 = vmatpush3.bf16.msra.mxu1 %v9980_v47 }
0x1aaa   :  { %7433 = vmatprep.subr.bf16.mxu1 %v9988_v13 }
0x1aad   :  { %7434 = vmatpush3.bf16.msra.mxu1 %v9988_v13 }
0x1aaf   :  { %7426 = vmatpush3.bf16.xpose.msra.mxu0 %v4347_v11 }
0x1b10   :  { %v4523_v48 = vpop.permute.xlu1 %4522 }
0x1b11   :  { %v4533_v34 = vsel %vm976_vm0, %v4523_v48, 0 }
0x1b18   :  { %v4525_v27 = vpop.permute.xlu0 %4524 }
0x1b19   :  { %7537 = vmatprep.subr.msk.bf16.mxu0 %vm976_vm0, %v4525_v27  ;;  %v4536_v17 = vsel %vm976_vm0, %v4525_v27, 0 }
0x1b21   :  { %v7421_v61 = vpop.f32.mrf.mxu0 }
0x1b22   :  { %v4150_v63 = vadd.f32 %v7421_v61, %v6752_v44 }
0x1b23   :  { %v4141_v49 = vpop.f32.mrf.mxu0 }
0x1b24   :  { %v4142_v2 = vadd.f32 %v6752_v44, %v4141_v49 }
0x1b25   :  { %v7422_v16 = vpop.f32.mrf.mxu0 }
0x1b26   :  { %v4153_v58 = vadd.f32 %v7422_v16, %v6752_v44 }
0x1b27   :  { %v4144_v46 = vpop.f32.mrf.mxu0 }
0x1b28   :  { %v9999_v24 = vpack.c.bf16 %v4153_v58, %v4150_v63  ;;  %v4145_v8 = vadd.f32 %v6752_v44, %v4144_v46 }
0x1b2a   :  { %v10001_v43 = vpack.c.bf16 %v4145_v8, %v4142_v2  ;;  %4518 = vrot.lane.b32.xlu0 %v9999_v24, %s8943_s17 }
0x1b2c   :  { %4516 = vrot.lane.b32.xlu1 %v10001_v43, %s8943_s17  ;;  %7427 = vmatprep.mubr.msk.bf16.mxu0 %vm976_vm0, %v10001_v43 }
0x1b2d   :  { %7428 = vmatmul.mubr.msk.bf16.vlgmr.msra.gmra.mxu0 %vm976_vm0, %v9999_v24 }
0x1b2e   :  { %7440 = vmatpush3.bf16.xpose.msra.mxu0 %v4536_v17 }
0x1b2f   :  { %7538 = vmatprep.subr.msk.bf16.mxu0 %vm976_vm0, %v4523_v48 }
0x1b36   :  { %7442 = vmatpush3.bf16.xpose.msra.mxu0 %v4533_v34 }
0x1b9c   :  { %v4519_v14 = vpop.permute.xlu0 %4518 }
0x1b9e   :  { %v4517_v54 = vpop.permute.xlu1 %4516 }
0x1b9f   :  { %7443 = vmatprep.mubr.msk.bf16.mxu0 %vm976_vm0, %v4517_v54 }
0x1ba0   :  { %7444 = vmatmul.mubr.msk.bf16.vlgmr.msra.gmra.mxu0 %vm976_vm0, %v4519_v14 }
0x1bed   :  { %v7429_v42 = vpop.f32.mrf.mxu0 }
0x1bee   :  { %v4403_v7 = vmul.f32 0.17677669, %v7429_v42 }
0x1bef   :  { %v4386_v33 = vpop.f32.mrf.mxu0 }
0x1bf0   :  { %v4401_v57 = vmul.f32 0.17677669, %v4386_v33  ;;  %v4407_v29 = vadd.f32 %v4403_v7, %v9357_v10 }
0x1bf1   :  { %v7430_v36 = vpop.f32.mrf.mxu0 }
0x1bf2   :  { %v4405_v31 = vadd.f32 %v4401_v57, %v9349_v4  ;;  %v4404_v12 = vmul.f32 0.17677669, %v7430_v36  ;;  %v4415_v38 = vsel %vm976_vm0, %v4407_v29, -inf }
0x1bf3   :  { %v4389_v55 = vpop.f32.mrf.mxu0 }
0x1bf4   :  { %v4408_v0 = vadd.f32 %v4404_v12, %v9377_v26  ;;  %v4402_v15 = vmul.f32 0.17677669, %v4389_v55  ;;  %v4409_v51 = vsel %vm976_vm0, %v4405_v31, -inf }
0x1bf5   :  { %4410 = vmax.xlane.f32.xlu1 %v4409_v51 }
0x1bf6   :  { %v4406_v3 = vadd.f32 %v4402_v15, %v9370_v23  ;;  %v4418_v59 = vsel %vm976_vm0, %v4408_v0, -inf }
0x1bf8   :  { %v4412_v60 = vsel %vm976_vm0, %v4406_v3, -inf }
0x1bf9   :  { %4419 = vmax.xlane.f32.xlu1 %v4418_v59  ;;  %4413 = vmax.xlane.f32.xlu0 %v4412_v60 }
0x1bfd   :  { %4416 = vmax.xlane.f32.xlu0 %v4415_v38 }
0x1c60   :  { %v7445_v28 = vpop.f32.mrf.mxu0 }
0x1c61   :  { %v4589_v56 = vmul.f32 0.17677669, %v7445_v28 }
0x1c62   :  { %v4572_v18 = vpop.f32.mrf.mxu0 }
0x1c63   :  { %v4587_v9 = vmul.f32 0.17677669, %v4572_v18  ;;  %v4593_v22 = vadd.f32 %v4589_v56, %v9357_v10 }
0x1c64   :  { %v7446_v53 = vpop.f32.mrf.mxu0 }
0x1c65   :  { %v4591_v39 = vadd.f32 %v4587_v9, %v9349_v4  ;;  %v4590_v19 = vmul.f32 0.17677669, %v7446_v53  ;;  %v4601_v25 = vsel %vm976_vm0, %v4593_v22, -inf }
0x1c66   :  { %v4575_v50 = vpop.f32.mrf.mxu0 }
0x1c67   :  { %v4588_v30 = vmul.f32 0.17677669, %v4575_v50  ;;  %v4595_v45 = vsel %vm976_vm0, %v4591_v39, -inf  ;;  %v4594_v20 = vadd.f32 %v4590_v19, %v9377_v26 }
0x1c68   :  { %4596 = vmax.xlane.f32.xlu0 %v4595_v45 }
0x1c69   :  { %v4592_v40 = vadd.f32 %v4588_v30, %v9370_v23  ;;  %v4604_v27 = vsel %vm976_vm0, %v4594_v20, -inf }
0x1c6b   :  { %v4598_v11 = vsel %vm976_vm0, %v4592_v40, -inf }
0x1c6c   :  { %4602 = vmax.xlane.f32.xlu0 %v4601_v25  ;;  %4599 = vmax.xlane.f32.xlu1 %v4598_v11 }
0x1c70   :  { %4605 = vmax.xlane.f32.xlu1 %v4604_v27 }
0x1c7e   :  { %v4411_v61 = vpop.xlane.xlu1 %4410 }
0x1c7f   :  { %v4421_v58 = vsub.f32 %v4405_v31, %v4411_v61 }
0x1c81   :  { %v4425_v48 = vmul.f32 1.442695, %v4421_v58 }
0x1c82   :  { %v4420_v44 = vpop.xlane.xlu1 %4419  ;;  %v4414_v49 = vpop.xlane.xlu0 %4413 }
0x1c83   :  { %v4424_v16 = vsub.f32 %v4408_v0, %v4420_v44  ;;  %v4422_v63 = vsub.f32 %v4406_v3, %v4414_v49 }
0x1c85   :  { %v4431_v46 = vmul.f32 1.442695, %v4424_v16  ;;  %v4427_v2 = vmul.f32 1.442695, %v4422_v63 }
0x1c86   :  { %v4417_v8 = vpop.xlane.xlu0 %4416 }
0x1c87   :  { %8050 = vpow2.f32 %v4431_v46  ;;  %v4423_v17 = vsub.f32 %v4407_v29, %v4417_v8 }
0x1c88   :  { %8052 = vpow2.f32 %v4427_v2 }
0x1c89   :  { %v4429_v34 = vmul.f32 1.442695, %v4423_v17 }
0x1c8b   :  { %8054 = vpow2.f32 %v4429_v34 }
0x1c8c   :  { %8056 = vpow2.f32 %v4425_v48 }
0x1c94   :  { %v10032_v54 = vpop.eup %8050 }
0x1c95   :  { %v4442_v14 = vsel %vm976_vm0, %v10032_v54, 0.0  ;;  %v8053_v42 = vpop.eup %8052 }
0x1c96   :  { %4443 = vadd.xlane.f32.xlu1 %v4442_v14  ;;  %v4436_v57 = vsel %vm976_vm0, %v8053_v42, 0.0 }
0x1c98   :  { %v8055_v33 = vpop.eup %8054 }
0x1c99   :  { %v4439_v36 = vsel %vm976_vm0, %v8055_v33, 0.0  ;;  %v8057_v31 = vpop.eup %8056 }
0x1c9a   :  { %4437 = vadd.xlane.f32.xlu1 %v4436_v57  ;;  %4440 = vadd.xlane.f32.xlu0 %v4439_v36  ;;  %v4433_v12 = vsel %vm976_vm0, %v8057_v31, 0.0 }
0x1c9e   :  { %4434 = vadd.xlane.f32.xlu0 %v4433_v12 }
0x1cf1   :  { %v4597_v55 = vpop.xlane.xlu0 %4596 }
0x1cf2   :  { %v4607_v7 = vsub.f32 %v4591_v39, %v4597_v55 }
0x1cf4   :  { %v4611_v59 = vmul.f32 1.442695, %v4607_v7 }
0x1cf5   :  { %v4600_v0 = vpop.xlane.xlu1 %4599  ;;  %v4603_v15 = vpop.xlane.xlu0 %4602 }
0x1cf6   :  { %v4609_v51 = vsub.f32 %v4593_v22, %v4603_v15  ;;  %v4608_v3 = vsub.f32 %v4592_v40, %v4600_v0  ;;  %v7787_v15 = vld [vmem:[#allocation35 + $0x10] sm:$0xff]  }
0x1cf8   :  { %v4615_v29 = vmul.f32 1.442695, %v4609_v51  ;;  %v4613_v28 = vmul.f32 1.442695, %v4608_v3 }
0x1cf9   :  { %v4606_v60 = vpop.xlane.xlu1 %4605 }
0x1cfa   :  { %v4610_v38 = vsub.f32 %v4594_v20, %v4606_v60  ;;  %8058 = vpow2.f32 %v4615_v29 }
0x1cfb   :  { %8060 = vpow2.f32 %v4611_v59 }
0x1cfc   :  { %v4617_v18 = vmul.f32 1.442695, %v4610_v38 }
0x1cfe   :  { %8062 = vpow2.f32 %v4617_v18 }
0x1cff   :  { %8064 = vpow2.f32 %v4613_v28 }
0x1d07   :  { %v10039_v56 = vpop.eup %8058 }
0x1d08   :  { %v4625_v9 = vsel %vm976_vm0, %v10039_v56, 0.0  ;;  %v10043_v53 = vpop.eup %8060 }
0x1d09   :  { %4626 = vadd.xlane.f32.xlu0 %v4625_v9  ;;  %v4619_v19 = vsel %vm976_vm0, %v10043_v53, 0.0 }
0x1d0b   :  { %v10045_v39 = vpop.eup %8062 }
0x1d0c   :  { %v4628_v50 = vsel %vm976_vm0, %v10045_v39, 0.0  ;;  %v10049_v22 = vpop.eup %8064 }
0x1d0d   :  { %4629 = vadd.xlane.f32.xlu1 %v4628_v50  ;;  %4620 = vadd.xlane.f32.xlu0 %v4619_v19  ;;  %v4622_v30 = vsel %vm976_vm0, %v10049_v22, 0.0 }
0x1d11   :  { %4623 = vadd.xlane.f32.xlu1 %v4622_v30 }
0x1d1f   :  { %v4444_v45 = vpop.xlane.xlu1 %4443 }
0x1d22   :  { %4643 = vrot.lane.b32.xlu1 %v9988_v13, %s8943_s17 }
0x1d23   :  { %v4438_v40 = vpop.xlane.xlu1 %4437  ;;  %v4441_v20 = vpop.xlane.xlu0 %4440  ;;  %4645 = vrot.lane.b32.xlu0 %v9980_v47, %s8943_s17 }
0x1d24   :  { %8066 = vrcp.f32 %v4441_v20 }
0x1d25   :  { %8068 = vrcp.f32 %v4438_v40 }
0x1d26   :  { %4846 = vrot.lane.b32.xlu1 %v9978_v32, %s8905_s18  ;;  %8070 = vrcp.f32 %v4444_v45 }
0x1d27   :  { %v4435_v25 = vpop.xlane.xlu0 %4434  ;;  %4844 = vrot.lane.b32.xlu0 %v9973_v1, %s8905_s18 }
0x1d28   :  { %8072 = vrcp.f32 %v4435_v25 }
0x1d2a   :  { %4840 = vrot.lane.b32.xlu1 %v10001_v43, %s8905_s18 }
0x1d2b   :  { %4842 = vrot.lane.b32.xlu0 %v9999_v24, %s8905_s18 }
0x1d2e   :  { %5103 = vrot.lane.b32.xlu1 %v9978_v32, %s8944_s23 }
0x1d2f   :  { %5101 = vrot.lane.b32.xlu0 %v9973_v1, %s8944_s23  ;;  %v7788_v1 = vld [vmem:[#allocation35 + $0x8] sm:$0xff]  }
0x1d30   :  { %7463 = vmatprep.subr.bf16.mxu0 %v7788_v1 }
0x1d31   :  { %v8067_v11 = vpop.eup %8066  ;;  %7464 = vmatpush3.bf16.msra.mxu0 %v7788_v1 }
0x1d32   :  { %5097 = vrot.lane.b32.xlu1 %v10001_v43, %s8944_s23  ;;  %v8069_v27 = vpop.eup %8068  ;;  %v4451_v49 = vmul.f32 %v8067_v11, %v8055_v33  ;;  %v7789_v43 = vld [vmem:[#allocation35] sm:$0xff]  }
0x1d33   :  { %v8071_v61 = vpop.eup %8070  ;;  %5099 = vrot.lane.b32.xlu0 %v9999_v24, %s8944_s23  ;;  %v4450_v63 = vmul.f32 %v8069_v27, %v8053_v42  ;;  %7465 = vmatprep.subr.bf16.mxu0 %v7789_v43 }
0x1d34   :  { %v4452_v58 = vmul.f32 %v8071_v61, %v10032_v54  ;;  %v7786_v54 = vld [vmem:[#allocation35 + $0x18] sm:$0xff]  }
0x1d35   :  { %v8073_v44 = vpop.eup %8072  ;;  %7466 = vmatpush3.bf16.msra.mxu0 %v7789_v43 }
0x1d36   :  { %v4449_v16 = vmul.f32 %v8073_v44, %v8057_v31  ;;  %v4454_v32 = vpack.c.bf16 %v4452_v58, %v4451_v49 }
0x1d38   :  { %v4453_v46 = vpack.c.bf16 %v4450_v63, %v4449_v16 }
0x1d3a   :  { %7435 = vmatprep.mubr.msk.bf16.mxu1 %vm976_vm0, %v4453_v46 }
0x1d3b   :  { %7436 = vmatmul.mubr.msk.bf16.vlgmr.msra.gmra.mxu1 %vm976_vm0, %v4454_v32 }
0x1d92   :  { %v4627_v2 = vpop.xlane.xlu0 %4626 }
0x1d96   :  { %v4630_v24 = vpop.xlane.xlu1 %4629  ;;  %v4621_v8 = vpop.xlane.xlu0 %4620 }
0x1d97   :  { %8074 = vrcp.f32 %v4630_v24 }
0x1d98   :  { %8076 = vrcp.f32 %v4621_v8 }
0x1d99   :  { %8078 = vrcp.f32 %v4627_v2 }
0x1d9a   :  { %v4624_v17 = vpop.xlane.xlu1 %4623  ;;  %v4646_v48 = vpop.permute.xlu0 %4645 }
0x1d9b   :  { %8080 = vrcp.f32 %v4624_v17  ;;  %7447 = vmatprep.subr.bf16.mxu1 %v4646_v48 }
0x1d9c   :  { %7448 = vmatpush3.bf16.msra.mxu1 %v4646_v48 }
0x1d9e   :  { %v4644_v34 = vpop.permute.xlu1 %4643  ;;  %v4845_v30 = vpop.permute.xlu0 %4844 }
0x1d9f   :  { %7449 = vmatprep.subr.bf16.mxu1 %v4644_v34  ;;  %v4855_v45 = vsel %vm976_vm0, %v4845_v30, 0 }
0x1da0   :  { %7450 = vmatpush3.bf16.msra.mxu1 %v4644_v34 }
0x1da1   :  { %7455 = vmatprep.subr.bf16.mxu1 %v7786_v54 }
0x1da2   :  { %v4847_v51 = vpop.permute.xlu1 %4846  ;;  %v4843_v20 = vpop.permute.xlu0 %4842 }
0x1da4   :  { %v8075_v14 = vpop.eup %8074 }
0x1da5   :  { %v8077_v42 = vpop.eup %8076  ;;  %v4638_v36 = vmul.f32 %v8075_v14, %v10045_v39 }
0x1da6   :  { %v8079_v33 = vpop.eup %8078  ;;  %v4635_v31 = vmul.f32 %v8077_v42, %v10043_v53  ;;  %v4841_v19 = vpop.permute.xlu1 %4840 }
0x1da7   :  { %v4637_v55 = vmul.f32 %v8079_v33, %v10039_v56  ;;  %v5102_v27 = vpop.permute.xlu0 %5101 }
0x1da8   :  { %v8081_v57 = vpop.eup %8080  ;;  %v5112_v61 = vsel %vm976_vm0, %v5102_v27, 0 }
0x1da9   :  { %v4636_v12 = vmul.f32 %v8081_v57, %v10049_v22  ;;  %v4640_v0 = vpack.c.bf16 %v4638_v36, %v4637_v55  ;;  %v4858_v22 = vsel %vm976_vm0, %v4847_v51, 0 }
0x1daa   :  { %v5104_v40 = vpop.permute.xlu1 %5103 }
0x1dab   :  { %v4639_v7 = vpack.c.bf16 %v4636_v12, %v4635_v31  ;;  %v5115_v25 = vsel %vm976_vm0, %v5104_v40, 0  ;;  %v5100_v44 = vpop.permute.xlu0 %5099 }
0x1dad   :  { %7451 = vmatprep.mubr.msk.bf16.mxu1 %vm976_vm0, %v4639_v7 }
0x1dae   :  { %7452 = vmatmul.mubr.msk.bf16.vlgmr.msra.gmra.mxu1 %vm976_vm0, %v4640_v0  ;;  %v5098_v11 = vpop.permute.xlu1 %5097 }
0x1daf   :  { %7456 = vmatpush3.bf16.msra.mxu1 %v7786_v54 }
0x1db0   :  { %7457 = vmatprep.subr.bf16.mxu1 %v7787_v15 }
0x1db3   :  { %7458 = vmatpush3.bf16.msra.mxu1 %v7787_v15 }
0x1db4   :  { %7539 = vmatprep.subr.msk.bf16.mxu1 %vm976_vm0, %v4847_v51 }
0x1dfb   :  { %v7437_v3 = vpop.f32.mrf.mxu1 }
0x1dfd   :  { %v4497_v29 = vpop.f32.mrf.mxu1 }
0x1dff   :  { %v7438_v59 = vpop.f32.mrf.mxu1 }
0x1e00   :  { %v4513_v28 = vpack.c.bf16 %v7438_v59, %v7437_v3 }
0x1e01   :  { %v4500_v60 = vpop.f32.mrf.mxu1 }
0x1e02   :  { %v4512_v38 = vpack.c.bf16 %v4500_v60, %v4497_v29 }
0x1e04   :  { %7467 = vmatprep.mubr.msk.bf16.mxu0 %vm976_vm0, %v4512_v38 }
0x1e05   :  { %7468 = vmatmul.mubr.msk.bf16.vlgmr.msra.gmra.mxu0 %vm976_vm0, %v4513_v28 }
0x1e6e   :  { %v7453_v18 = vpop.f32.mrf.mxu1 }
0x1e70   :  { %v4689_v56 = vpop.f32.mrf.mxu1 }
0x1e72   :  { %v7454_v9 = vpop.f32.mrf.mxu1 }
0x1e73   :  { %v4705_v50 = vpack.c.bf16 %v7454_v9, %v7453_v18 }
0x1e74   :  { %v4692_v53 = vpop.f32.mrf.mxu1 }
0x1e75   :  { %v4704_v39 = vpack.c.bf16 %v4692_v53, %v4689_v56 }
0x1e77   :  { %7459 = vmatprep.mubr.msk.bf16.mxu1 %vm976_vm0, %v4704_v39 }
0x1e78   :  { %7460 = vmatmul.mubr.msk.bf16.vlgmr.msra.gmra.mxu1 %vm976_vm0, %v4705_v50 }
0x1e79   :  { %7472 = vmatpush3.bf16.xpose.msra.mxu1 %v4858_v22  ;;  %7475 = vmatprep.mubr.msk.bf16.mxu1 %vm976_vm0, %v4841_v19 }
0x1e7a   :  { %7540 = vmatprep.subr.msk.bf16.mxu1 %vm976_vm0, %v4845_v30 }
0x1e81   :  { %7474 = vmatpush3.bf16.xpose.msra.mxu1 %v4855_v45 }
0x1e82   :  { %7541 = vmatprep.subr.msk.bf16.mxu1 %vm976_vm0, %v5104_v40 }
0x1e88   :  { %7476 = vmatmul.mubr.msk.bf16.vlgmr.msra.gmra.mxu1 %vm976_vm0, %v4843_v20 }
0x1e89   :  { %7496 = vmatpush3.bf16.xpose.msra.mxu1 %v5115_v25  ;;  %7499 = vmatprep.mubr.msk.bf16.mxu1 %vm976_vm0, %v5098_v11 }
0x1e8a   :  { %7542 = vmatprep.subr.msk.bf16.mxu1 %vm976_vm0, %v5102_v27 }
0x1e91   :  { %7498 = vmatpush3.bf16.xpose.msra.mxu1 %v5112_v61 }
0x1e98   :  { %7500 = vmatmul.mubr.msk.bf16.vlgmr.msra.gmra.mxu1 %vm976_vm0, %v5100_v44 }
0x1e99   :  { %5576 = vmatprep.mubr.bf16.mxu1 %v8941_v41 }
0x1f38   :  { %v10101_v49 = vpop.f32.mrf.mxu1 }
0x1f3a   :  { %v10103_v16 = vpop.f32.mrf.mxu1 }
0x1f3c   :  { %v10105_v63 = vpop.f32.mrf.mxu1 }
0x1f3e   :  { %v10107_v58 = vpop.f32.mrf.mxu1 }
0x1f48   :  { %v7477_v46 = vpop.f32.mrf.mxu1 }
0x1f49   :  { %v4911_v17 = vmul.f32 0.17677669, %v7477_v46 }
0x1f4a   :  { %v4894_v32 = vpop.f32.mrf.mxu1 }
0x1f4b   :  { %v4909_v1 = vmul.f32 0.17677669, %v4894_v32  ;;  %v4915_v42 = vadd.f32 %v4911_v17, %v9357_v10 }
0x1f4c   :  { %v7478_v43 = vpop.f32.mrf.mxu1 }
0x1f4d   :  { %v4913_v2 = vadd.f32 %v4909_v1, %v9349_v4  ;;  %v4912_v24 = vmul.f32 0.17677669, %v7478_v43  ;;  %v4923_v36 = vsel %vm976_vm0, %v4915_v42, -inf }
0x1f4e   :  { %v4897_v8 = vpop.f32.mrf.mxu1 }
0x1f4f   :  { %v4916_v48 = vadd.f32 %v4912_v24, %v9377_v26  ;;  %v4910_v34 = vmul.f32 0.17677669, %v4897_v8  ;;  %v4917_v54 = vsel %vm976_vm0, %v4913_v2, -inf }
0x1f50   :  { %4918 = vmax.xlane.f32.xlu1 %v4917_v54 }
0x1f51   :  { %v4914_v14 = vadd.f32 %v4910_v34, %v9370_v23  ;;  %v4926_v33 = vsel %vm976_vm0, %v4916_v48, -inf }
0x1f53   :  { %v4920_v57 = vsel %vm976_vm0, %v4914_v14, -inf }
0x1f54   :  { %4927 = vmax.xlane.f32.xlu1 %v4926_v33  ;;  %4921 = vmax.xlane.f32.xlu0 %v4920_v57 }
0x1f58   :  { %4924 = vmax.xlane.f32.xlu0 %v4923_v36  ;;  %v7501_v19 = vpop.f32.mrf.mxu1 }
0x1f59   :  { %v5168_v61 = vmul.f32 0.17677669, %v7501_v19 }
0x1f5a   :  { %v5151_v30 = vpop.f32.mrf.mxu1 }
0x1f5b   :  { %v5166_v40 = vmul.f32 0.17677669, %v5151_v30  ;;  %v5172_v1 = vadd.f32 %v5168_v61, %v9357_v10 }
0x1f5c   :  { %v7502_v45 = vpop.f32.mrf.mxu1 }
0x1f5d   :  { %v5170_v25 = vadd.f32 %v5166_v40, %v9349_v4  ;;  %v5169_v11 = vmul.f32 0.17677669, %v7502_v45  ;;  %v5180_v4 = vsel %vm976_vm0, %v5172_v1, -inf  ;;  %v7790_v45 = vld [vmem:[#allocation35 + $0x28] sm:$0xff]   ;;  %v7791_v40 = vld [vmem:[#allocation35 + $0x20] sm:$0xff]  }
0x1f5e   :  { %v5154_v20 = vpop.f32.mrf.mxu1 }
0x1f5f   :  { %v5167_v27 = vmul.f32 0.17677669, %v5154_v20  ;;  %v5173_v44 = vadd.f32 %v5169_v11, %v9377_v26  ;;  %v5174_v32 = vsel %vm976_vm0, %v5170_v25, -inf  ;;  %v7469_v20 = vpop.f32.mrf.mxu0 }
0x1f61   :  { %v5171_v46 = vadd.f32 %v5167_v27, %v9370_v23  ;;  %v5183_v43 = vsel %vm976_vm0, %v5173_v44, -inf }
0x1fd9   :  { %v4919_v31 = vpop.xlane.xlu1 %4918 }
0x1fda   :  { %v4929_v15 = vsub.f32 %v4913_v2, %v4919_v31  ;;  %v5177_v2 = vsel %vm976_vm0, %v5171_v46, -inf }
0x1fdc   :  { %v4933_v60 = vmul.f32 1.442695, %v4929_v15 }
0x1fdd   :  { %v4928_v12 = vpop.xlane.xlu1 %4927  ;;  %v4922_v55 = vpop.xlane.xlu0 %4921 }
0x1fde   :  { %v4932_v7 = vsub.f32 %v4916_v48, %v4928_v12  ;;  %v4930_v0 = vsub.f32 %v4914_v14, %v4922_v55 }
0x1fe0   :  { %v4939_v51 = vmul.f32 1.442695, %v4932_v7  ;;  %v4935_v3 = vmul.f32 1.442695, %v4930_v0 }
0x1fe1   :  { %v4925_v29 = vpop.xlane.xlu0 %4924 }
0x1fe2   :  { %8082 = vpow2.f32 %v4939_v51  ;;  %v4931_v59 = vsub.f32 %v4915_v42, %v4925_v29 }
0x1fe3   :  { %8084 = vpow2.f32 %v4935_v3 }
0x1fe4   :  { %v4937_v38 = vmul.f32 1.442695, %v4931_v59 }
0x1fe6   :  { %8086 = vpow2.f32 %v4937_v38 }
0x1fe7   :  { %8088 = vpow2.f32 %v4933_v60 }
0x1fef   :  { %v8083_v28 = vpop.eup %8082 }
0x1ff0   :  { %v4950_v18 = vsel %vm976_vm0, %v8083_v28, 0.0  ;;  %v8085_v56 = vpop.eup %8084 }
0x1ff1   :  { %4951 = vadd.xlane.f32.xlu1 %v4950_v18  ;;  %v4944_v53 = vsel %vm976_vm0, %v8085_v56, 0.0 }
0x1ff3   :  { %v8087_v9 = vpop.eup %8086 }
0x1ff4   :  { %v4947_v39 = vsel %vm976_vm0, %v8087_v9, 0.0  ;;  %v8089_v50 = vpop.eup %8088 }
0x1ff5   :  { %4945 = vadd.xlane.f32.xlu1 %v4944_v53  ;;  %4948 = vadd.xlane.f32.xlu0 %v4947_v39  ;;  %v4941_v22 = vsel %vm976_vm0, %v8089_v50, 0.0 }
0x1ff9   :  { %4942 = vadd.xlane.f32.xlu0 %v4941_v22 }
0x2006   :  { %4963 = vrot.lane.b32.xlu1 %v9988_v13, %s8905_s18 }
0x200f   :  { %4965 = vrot.lane.b32.xlu0 %v9980_v47, %s8905_s18 }
0x202a   :  { %5175 = vmax.xlane.f32.xlu1 %v5174_v32 }
0x202e   :  { %5184 = vmax.xlane.f32.xlu1 %v5183_v43  ;;  %5178 = vmax.xlane.f32.xlu0 %v5177_v2 }
0x2032   :  { %5181 = vmax.xlane.f32.xlu0 %v5180_v4 }
0x207a   :  { %v4952_v24 = vpop.xlane.xlu1 %4951 }
0x207e   :  { %v4946_v8 = vpop.xlane.xlu1 %4945  ;;  %v4949_v17 = vpop.xlane.xlu0 %4948 }
0x207f   :  { %8090 = vrcp.f32 %v4949_v17 }
0x2080   :  { %8092 = vrcp.f32 %v4946_v8 }
0x2081   :  { %8094 = vrcp.f32 %v4952_v24 }
0x2082   :  { %v4943_v23 = vpop.xlane.xlu0 %4942  ;;  %v4964_v10 = vpop.permute.xlu1 %4963 }
0x2083   :  { %8096 = vrcp.f32 %v4943_v23 }
0x2086   :  { %v4966_v26 = vpop.permute.xlu0 %4965 }
0x2087   :  { %7479 = vmatprep.subr.bf16.mxu0 %v4966_v26 }
0x2088   :  { %7480 = vmatpush3.bf16.msra.mxu0 %v4966_v26 }
0x2089   :  { %7481 = vmatprep.subr.bf16.mxu0 %v4964_v10 }
0x208c   :  { %7482 = vmatpush3.bf16.msra.mxu0 %v4964_v10  ;;  %v8091_v48 = vpop.eup %8090 }
0x208d   :  { %v8093_v34 = vpop.eup %8092  ;;  %v4959_v42 = vmul.f32 %v8091_v48, %v8087_v9  ;;  %7487 = vmatprep.subr.bf16.mxu0 %v7790_v45 }
0x208e   :  { %v8095_v54 = vpop.eup %8094  ;;  %v4958_v57 = vmul.f32 %v8093_v34, %v8085_v56 }
0x208f   :  { %v4960_v36 = vmul.f32 %v8095_v54, %v8083_v28 }
0x2090   :  { %v8097_v14 = vpop.eup %8096 }
0x2091   :  { %v4957_v33 = vmul.f32 %v8097_v14, %v8089_v50  ;;  %v4962_v12 = vpack.c.bf16 %v4960_v36, %v4959_v42  ;;  %v7793_v36 = vld [vmem:[#allocation35 + $0x30] sm:$0xff]  }
0x2093   :  { %v4961_v31 = vpack.c.bf16 %v4958_v57, %v4957_v33  ;;  %v7792_v57 = vld [vmem:[#allocation35 + $0x38] sm:$0xff]  }
0x2095   :  { %7483 = vmatprep.mubr.msk.bf16.mxu0 %vm976_vm0, %v4961_v31  ;;  %v4834_v31 = vadd.f32 %v7469_v20, %v10101_v49 }
0x2096   :  { %7484 = vmatmul.mubr.msk.bf16.vlgmr.msra.gmra.mxu0 %vm976_vm0, %v4962_v12 }
0x2097   :  { %7488 = vmatpush3.bf16.msra.mxu0 %v7790_v45 }
0x2098   :  { %7489 = vmatprep.subr.bf16.mxu0 %v7791_v40 }
0x209b   :  { %7490 = vmatpush3.bf16.msra.mxu0 %v7791_v40 }
0x20b3   :  { %v5176_v55 = vpop.xlane.xlu1 %5175 }
0x20b4   :  { %v5186_v3 = vsub.f32 %v5170_v25, %v5176_v55  ;;  %v4825_v25 = vpop.f32.mrf.mxu0 }
0x20b5   :  { %v4826_v55 = vadd.f32 %v4825_v25, %v10103_v16 }
0x20b6   :  { %v5190_v18 = vmul.f32 1.442695, %v5186_v3  ;;  %v7470_v11 = vpop.f32.mrf.mxu0 }
0x20b7   :  { %v5185_v7 = vpop.xlane.xlu1 %5184  ;;  %v5179_v0 = vpop.xlane.xlu0 %5178 }
0x20b8   :  { %v5189_v15 = vsub.f32 %v5173_v44, %v5185_v7  ;;  %v5187_v51 = vsub.f32 %v5171_v46, %v5179_v0  ;;  %v4828_v27 = vpop.f32.mrf.mxu0 }
0x20ba   :  { %v5196_v29 = vmul.f32 1.442695, %v5189_v15  ;;  %v5192_v59 = vmul.f32 1.442695, %v5187_v51  ;;  %v4837_v15 = vadd.f32 %v7470_v11, %v10105_v63 }
0x20bb   :  { %v5182_v60 = vpop.xlane.xlu0 %5181 }
0x20bc   :  { %8098 = vpow2.f32 %v5196_v29  ;;  %v5188_v38 = vsub.f32 %v5172_v1, %v5182_v60  ;;  %v4829_v29 = vadd.f32 %v4828_v27, %v10107_v58 }
0x20bd   :  { %8100 = vpow2.f32 %v5192_v59 }
0x20be   :  { %v5194_v28 = vmul.f32 1.442695, %v5188_v38 }
0x20c0   :  { %8102 = vpow2.f32 %v5194_v28 }
0x20c1   :  { %8104 = vpow2.f32 %v5190_v18 }
0x20c9   :  { %v8099_v56 = vpop.eup %8098 }
0x20ca   :  { %v5207_v9 = vsel %vm976_vm0, %v8099_v56, 0.0  ;;  %v8101_v53 = vpop.eup %8100 }
0x20cb   :  { %5208 = vadd.xlane.f32.xlu1 %v5207_v9  ;;  %v5201_v50 = vsel %vm976_vm0, %v8101_v53, 0.0 }
0x20cd   :  { %v8103_v39 = vpop.eup %8102 }
0x20ce   :  { %v5204_v22 = vsel %vm976_vm0, %v8103_v39, 0.0  ;;  %v8105_v19 = vpop.eup %8104 }
0x20cf   :  { %5202 = vadd.xlane.f32.xlu1 %v5201_v50  ;;  %5205 = vadd.xlane.f32.xlu0 %v5204_v22  ;;  %v5198_v30 = vsel %vm976_vm0, %v8105_v19, 0.0  ;;  %v6809_v50 = vld [vmem:[#allocation37] ss:$0 sm:$0xff] }
0x20d3   :  { %5199 = vadd.xlane.f32.xlu0 %v5198_v30 }
0x20e0   :  { %5220 = vrot.lane.b32.xlu1 %v9988_v13, %s8944_s23 }
0x20e9   :  { %5222 = vrot.lane.b32.xlu0 %v9980_v47, %s8944_s23 }
0x2154   :  { %v5209_v61 = vpop.xlane.xlu1 %5208 }
0x2156   :  { %v7485_v44 = vpop.f32.mrf.mxu0 }
0x2158   :  { %v5009_v46 = vpop.f32.mrf.mxu0  ;;  %v5203_v32 = vpop.xlane.xlu1 %5202 }
0x2159   :  { %v5206_v1 = vpop.xlane.xlu0 %5205 }
0x215a   :  { %v7486_v43 = vpop.f32.mrf.mxu0  ;;  %8106 = vrcp.f32 %v5206_v1  ;;  %v7796_v1 = vld [vmem:[#allocation41 + $0x74] ss:$8 sps:$4 sm:$0xff]  }
0x215b   :  { %8108 = vrcp.f32 %v5203_v32  ;;  %v5025_v13 = vpack.c.bf16 %v7486_v43, %v7485_v44  ;;  %v7794_v32 = vld [vmem:[#allocation41 + $0x70] ss:$8 sps:$4 sm:$0xff]   ;;  %5544 = vmatprep.subr.bf16.mxu1 %v7796_v1 }
0x215c   :  { %v5012_v2 = vpop.f32.mrf.mxu0  ;;  %8110 = vrcp.f32 %v5209_v61  ;;  %v5221_v8 = vpop.permute.xlu1 %5220  ;;  %5545 = vmatpush1.bf16.msra.mxu1 %v7794_v32 }
0x215d   :  { %v5024_v4 = vpack.c.bf16 %v5012_v2, %v5009_v46  ;;  %v5200_v24 = vpop.xlane.xlu0 %5199 }
0x215e   :  { %8112 = vrcp.f32 %v5200_v24 }
0x215f   :  { %7491 = vmatprep.mubr.msk.bf16.mxu0 %vm976_vm0, %v5024_v4 }
0x2160   :  { %7492 = vmatmul.mubr.msk.bf16.vlgmr.msra.gmra.mxu0 %vm976_vm0, %v5025_v13 }
0x2161   :  { %v5223_v47 = vpop.permute.xlu0 %5222 }
0x2162   :  { %7503 = vmatprep.subr.bf16.mxu0 %v5223_v47 }
0x2163   :  { %7504 = vmatpush3.bf16.msra.mxu0 %v5223_v47 }
0x2164   :  { %7505 = vmatprep.subr.bf16.mxu0 %v5221_v8 }
0x2167   :  { %7506 = vmatpush3.bf16.msra.mxu0 %v5221_v8  ;;  %v8107_v17 = vpop.eup %8106 }
0x2168   :  { %v8109_v23 = vpop.eup %8108  ;;  %v5216_v48 = vmul.f32 %v8107_v17, %v8103_v39  ;;  %7511 = vmatprep.subr.bf16.mxu0 %v7792_v57 }
0x2169   :  { %v8111_v26 = vpop.eup %8110  ;;  %v5215_v54 = vmul.f32 %v8109_v23, %v8101_v53 }
0x216a   :  { %v5217_v14 = vmul.f32 %v8111_v26, %v8099_v56 }
0x216b   :  { %v8113_v10 = vpop.eup %8112 }
0x216c   :  { %v5214_v34 = vmul.f32 %v8113_v10, %v8105_v19  ;;  %v5219_v33 = vpack.c.bf16 %v5217_v14, %v5216_v48  ;;  %v7802_v14 = vld [vmem:[#allocation41 + $0x54] ss:$8 sps:$4 sm:$0xff]  }
0x216e   :  { %v5218_v42 = vpack.c.bf16 %v5215_v54, %v5214_v34  ;;  %v7799_v34 = vld [vmem:[#allocation41 + $0x64] ss:$8 sps:$4 sm:$0xff]   ;;  %v7797_v54 = vld [vmem:[#allocation41 + $0x60] ss:$8 sps:$4 sm:$0xff]  }
0x216f   :  { %5546 = vmatprep.subr.bf16.mxu1 %v7799_v34  ;;  %v7833_v34 = vld [vmem:[#allocation44] sm:$0xff]  }
0x2170   :  { %7507 = vmatprep.mubr.msk.bf16.mxu0 %vm976_vm0, %v5218_v42  ;;  %5547 = vmatpush1.bf16.msra.mxu1 %v7797_v54  ;;  %v7800_v42 = vld [vmem:[#allocation41 + $0x50] ss:$8 sps:$4 sm:$0xff]   ;;  %v5452_v54 = vld [vmem:[#allocation43] sm:$0x3] }
0x2171   :  { %7508 = vmatmul.mubr.msk.bf16.vlgmr.msra.gmra.mxu0 %vm976_vm0, %v5219_v33  ;;  %5548 = vmatprep.subr.bf16.mxu1 %v7802_v14  ;;  %v7805_v33 = vld [vmem:[#allocation41 + $0x44] ss:$8 sps:$4 sm:$0xff]   ;;  %v5457_v14 = vrot.slane %v5452_v54, %v9293_v21 }
0x2172   :  { %7512 = vmatpush3.bf16.msra.mxu0 %v7792_v57  ;;  %v7803_v57 = vld [vmem:[#allocation41 + $0x40] ss:$8 sps:$4 sm:$0xff]  }
0x2173   :  { %7513 = vmatprep.subr.bf16.mxu0 %v7793_v36 }
0x2174   :  { %5549 = vmatpush1.bf16.msra.mxu1 %v7800_v42  ;;  %v5461_v42 = vrot.slane %v5452_v54, %v9303_v37 }
0x2175   :  { %5550 = vmatprep.subr.bf16.mxu1 %v7805_v33 }
0x2176   :  { %7514 = vmatpush3.bf16.msra.mxu0 %v7793_v36  ;;  %v7806_v36 = vld [vmem:[#allocation41 + $0x30] ss:$8 sps:$4 sm:$0xff]  }
0x2178   :  { %5551 = vmatpush1.bf16.msra.mxu1 %v7803_v57 }
0x2220   :  { %v7493_v12 = vpop.f32.mrf.mxu0 }
0x2221   :  { %v5095_v7 = vadd.f32 %v7493_v12, %v4834_v31  ;;  %v7808_v31 = vld [vmem:[#allocation41 + $0x34] ss:$8 sps:$4 sm:$0xff]   ;;  %v7811_v12 = vld [vmem:[#allocation41 + $0x24] ss:$8 sps:$4 sm:$0xff]  }
0x2222   :  { %v5078_v0 = vpop.f32.mrf.mxu0  ;;  %5552 = vmatprep.subr.bf16.mxu1 %v7808_v31 }
0x2223   :  { %v5093_v51 = vadd.f32 %v5078_v0, %v4826_v55  ;;  %5553 = vmatpush1.bf16.msra.mxu1 %v7806_v36  ;;  %v7809_v55 = vld [vmem:[#allocation41 + $0x20] ss:$8 sps:$4 sm:$0xff]   ;;  %v7812_v0 = vld [vmem:[#allocation41 + $0x10] ss:$8 sps:$4 sm:$0xff]  }
0x2224   :  { %v7494_v3 = vpop.f32.mrf.mxu0  ;;  %5554 = vmatprep.subr.bf16.mxu1 %v7811_v12 }
0x2225   :  { %v5096_v59 = vadd.f32 %v7494_v3, %v4837_v15  ;;  %v7817_v15 = vld [vmem:[#allocation41 + $0x4] ss:$8 sps:$4 sm:$0xff]  }
0x2226   :  { %v5081_v60 = vpop.f32.mrf.mxu0 }
0x2227   :  { %v5094_v38 = vadd.f32 %v5081_v60, %v4829_v29  ;;  %5555 = vmatpush1.bf16.msra.mxu1 %v7809_v55 }
0x2231   :  { %v7509_v18 = vpop.f32.mrf.mxu0 }
0x2233   :  { %v5266_v28 = vpop.f32.mrf.mxu0 }
0x2235   :  { %v7510_v56 = vpop.f32.mrf.mxu0 }
0x2236   :  { %v5282_v49 = vpack.c.bf16 %v7510_v56, %v7509_v18 }
0x2237   :  { %v5269_v9 = vpop.f32.mrf.mxu0 }
0x2238   :  { %v5281_v53 = vpack.c.bf16 %v5269_v9, %v5266_v28 }
0x223a   :  { %7515 = vmatprep.mubr.msk.bf16.mxu0 %vm976_vm0, %v5281_v53 }
0x223b   :  { %7516 = vmatmul.mubr.msk.bf16.vlgmr.msra.gmra.mxu0 %vm976_vm0, %v5282_v49 }
0x22fb   :  { %v7517_v16 = vpop.f32.mrf.mxu0 }
0x22fc   :  { %v5352_v45 = vadd.f32 %v7517_v16, %v5095_v7  ;;  %v7814_v7 = vld [vmem:[#allocation41 + $0x14] ss:$8 sps:$4 sm:$0xff]  }
0x22fd   :  { %v5335_v39 = vpop.f32.mrf.mxu0  ;;  %5556 = vmatprep.subr.bf16.mxu1 %v7814_v7 }
0x22fe   :  { %v5350_v63 = vadd.f32 %v5335_v39, %v5093_v51  ;;  %v5362_v27 = vadd.f32 %v6809_v50, %v5352_v45  ;;  %5557 = vmatpush1.bf16.msra.mxu1 %v7812_v0  ;;  %v7815_v51 = vld [vmem:[#allocation41] ss:$8 sps:$4 sm:$0xff]  }
0x22ff   :  { %v7518_v22 = vpop.f32.mrf.mxu0  ;;  %5558 = vmatprep.subr.bf16.mxu1 %v7817_v15 }
0x2300   :  { %v5360_v19 = vadd.f32 %v6809_v50, %v5350_v63  ;;  %v5353_v58 = vadd.f32 %v7518_v22, %v5096_v59  ;;  %v5366_v46 = vadd.f32 %v5362_v27, %v9966_v35 }
0x2301   :  { %v5338_v30 = vpop.f32.mrf.mxu0 }
0x2302   :  { %v5363_v40 = vadd.f32 %v6809_v50, %v5353_v58  ;;  %v5351_v20 = vadd.f32 %v5338_v30, %v5094_v38  ;;  %v5364_v25 = vadd.f32 %v5360_v19, %v9959_v52  ;;  %5559 = vmatpush1.bf16.msra.mxu1 %v7815_v51  ;;  %v6811_v30 = vld [vmem:[#allocation40] ss:$0 sm:$0xff] }
0x2304   :  { %v5361_v11 = vadd.f32 %v6809_v50, %v5351_v20  ;;  %5370 = vadd.xlane.f32.xlu1 %v5364_v25  ;;  %v5367_v61 = vadd.f32 %v5363_v40, %v9968_v62  ;;  %v6810_v50 = vld [vmem:[#allocation38] ss:$0 sm:$0xff] }
0x2306   :  { %v5365_v44 = vadd.f32 %v5361_v11, %v9961_v6 }
0x2308   :  { %5376 = vadd.xlane.f32.xlu1 %v5367_v61  ;;  %5372 = vadd.xlane.f32.xlu0 %v5365_v44 }
0x230c   :  { %5374 = vadd.xlane.f32.xlu0 %v5366_v46 }
0x238d   :  { %v5371_v43 = vpop.xlane.xlu1 %5370 }
0x238e   :  { %v5378_v2 = vmul.f32 0.0078125, %v5371_v43 }
0x2390   :  { %v10157_v4 = vsub.f32 %v5364_v25, %v5378_v2 }
0x2391   :  { %v5377_v52 = vpop.xlane.xlu1 %5376  ;;  %v5373_v24 = vpop.xlane.xlu0 %5372 }
0x2392   :  { %v5381_v13 = vmul.f32 0.0078125, %v5377_v52  ;;  %v5379_v47 = vmul.f32 0.0078125, %v5373_v24  ;;  %v5386_v6 = vmul.f32 %v10157_v4, %v10157_v4  ;;  %v7819_v52 = vld [vmem:[#allocation44 + $0x38] sm:$0xff]   ;;  %v7820_v24 = vld [vmem:[#allocation44 + $0x70] sm:$0xff]  }
0x2394   :  { %v5383_v62 = vsub.f32 %v5365_v44, %v5379_v47  ;;  %5390 = vadd.xlane.f32.xlu0 %v5386_v6  ;;  %v10161_v35 = vsub.f32 %v5367_v61, %v5381_v13  ;;  %v7821_v13 = vld [vmem:[#allocation44 + $0x30] sm:$0xff]   ;;  %v7822_v47 = vld [vmem:[#allocation44 + $0x68] sm:$0xff]  }
0x2395   :  { %v5375_v8 = vpop.xlane.xlu0 %5374  ;;  %v7823_v6 = vld [vmem:[#allocation44 + $0x28] sm:$0xff]  }
0x2396   :  { %v5380_v17 = vmul.f32 0.0078125, %v5375_v8  ;;  %v5387_v23 = vmul.f32 %v5383_v62, %v5383_v62  ;;  %v5389_v10 = vmul.f32 %v10161_v35, %v10161_v35  ;;  %v7826_v8 = vld [vmem:[#allocation44 + $0x58] sm:$0xff]  }
0x2398   :  { %v10163_v26 = vsub.f32 %v5366_v46, %v5380_v17  ;;  %5392 = vadd.xlane.f32.xlu1 %v5387_v23  ;;  %v7828_v17 = vld [vmem:[#allocation44 + $0x50] sm:$0xff]  }
0x2399   :  { %v7829_v23 = vld [vmem:[#allocation44 + $0x10] sm:$0xff]  }
0x239a   :  { %v5388_v48 = vmul.f32 %v10163_v26, %v10163_v26 }
0x239c   :  { %5396 = vadd.xlane.f32.xlu1 %v5389_v10  ;;  %5394 = vadd.xlane.f32.xlu0 %v5388_v48  ;;  %v7831_v10 = vld [vmem:[#allocation44 + $0x8] sm:$0xff]   ;;  %v7832_v48 = vld [vmem:[#allocation44 + $0x40] sm:$0xff]  }
0x241d   :  { %v5391_v3 = vpop.xlane.xlu0 %5390 }
0x241e   :  { %v5398_v29 = vmul.f32 0.0078125, %v5391_v3 }
0x2420   :  { %v5402_v59 = vadd.f32 1e-05, %v5398_v29 }
0x2421   :  { %v5393_v60 = vpop.xlane.xlu1 %5392 }
0x2422   :  { %8114 = vrsqrt.f32 %v5402_v59  ;;  %v5399_v38 = vmul.f32 0.0078125, %v5393_v60 }
0x2424   :  { %v5403_v18 = vadd.f32 1e-05, %v5399_v38 }
0x2425   :  { %v5397_v28 = vpop.xlane.xlu1 %5396  ;;  %v5395_v56 = vpop.xlane.xlu0 %5394 }
0x2426   :  { %8116 = vrsqrt.f32 %v5403_v18  ;;  %v5401_v9 = vmul.f32 0.0078125, %v5397_v28  ;;  %v5400_v53 = vmul.f32 0.0078125, %v5395_v56 }
0x2428   :  { %v5405_v49 = vadd.f32 1e-05, %v5401_v9  ;;  %v5404_v16 = vadd.f32 1e-05, %v5400_v53 }
0x242a   :  { %8118 = vrsqrt.f32 %v5405_v49 }
0x242b   :  { %8120 = vrsqrt.f32 %v5404_v16 }
0x242f   :  { %v8115_v39 = vpop.eup %8114 }
0x2430   :  { %v5410_v63 = vmul.f32 %v8115_v39, %v10157_v4  ;;  %v7818_v4 = vld [vmem:[#allocation44 + $0x78] sm:$0xff]  }
0x2431   :  { %7103 = vmatprep.subr.bf16.mxu0 %v7818_v4 }
0x2432   :  { %v5420_v58 = vmul.f32 %v6810_v50, %v5410_v63  ;;  %7104 = vmatpush3.bf16.msra.mxu0 %v7819_v52 }
0x2433   :  { %v8117_v22 = vpop.eup %8116  ;;  %7105 = vmatprep.subr.bf16.mxu0 %v7820_v24 }
0x2434   :  { %v5411_v19 = vmul.f32 %v8117_v22, %v5383_v62  ;;  %v10170_v25 = vadd.f32 %v6811_v30, %v5420_v58  ;;  %v7825_v62 = vld [vmem:[#allocation44 + $0x20] sm:$0xff]  }
0x2436   :  { %v5421_v45 = vmul.f32 %v6810_v50, %v5411_v19  ;;  %7106 = vmatpush3.bf16.msra.mxu0 %v7821_v13 }
0x2437   :  { %v8119_v40 = vpop.eup %8118  ;;  %7107 = vmatprep.subr.bf16.mxu0 %v7822_v47 }
0x2438   :  { %v8121_v20 = vpop.eup %8120  ;;  %v10172_v11 = vadd.f32 %v6811_v30, %v5421_v45  ;;  %v5413_v27 = vmul.f32 %v8119_v40, %v10161_v35  ;;  %v7827_v35 = vld [vmem:[#allocation44 + $0x18] sm:$0xff]  }
0x2439   :  { %v5412_v61 = vmul.f32 %v8121_v20, %v10163_v26  ;;  %v7830_v26 = vld [vmem:[#allocation44 + $0x48] sm:$0xff]  }
0x243a   :  { %v5450_v44 = vpack.c.bf16 %v10172_v11, %v10170_v25  ;;  %v5423_v46 = vmul.f32 %v6810_v50, %v5413_v27  ;;  %7108 = vmatpush3.bf16.msra.mxu0 %v7823_v6 }
0x243b   :  { %v5422_v32 = vmul.f32 %v6810_v50, %v5412_v61 }
0x243c   :  { %5577 = vmatmul.mubr.bf16.vlgmr.msra.gmra.mxu1 %v5450_v44  ;;  %v10181_v43 = vadd.f32 %v6811_v30, %v5423_v46 }
0x243d   :  { %5586 = vmatprep.mubr.bf16.mxu1 %v8941_v41  ;;  %v10179_v1 = vadd.f32 %v6811_v30, %v5422_v32  ;;  %v7824_v41 = vld [vmem:[#allocation44 + $0x60] sm:$0xff]  }
0x243e   :  { %7109 = vmatprep.subr.bf16.mxu0 %v7824_v41 }
0x243f   :  { %v5451_v2 = vpack.c.bf16 %v10181_v43, %v10179_v1  ;;  %7110 = vmatpush3.bf16.msra.mxu0 %v7825_v62 }
0x2440   :  { %7111 = vmatprep.subr.bf16.mxu0 %v7826_v8 }
0x2443   :  { %7112 = vmatpush3.bf16.msra.mxu0 %v7827_v35 }
0x2444   :  { %5587 = vmatmul.mubr.bf16.gmra.mxu1 %v5451_v2  ;;  %7113 = vmatprep.subr.bf16.mxu0 %v7828_v17 }
0x2447   :  { %7114 = vmatpush3.bf16.msra.mxu0 %v7829_v23 }
0x2448   :  { %7115 = vmatprep.subr.bf16.mxu0 %v7830_v26 }
0x244b   :  { %7116 = vmatpush3.bf16.msra.mxu0 %v7831_v10 }
0x244c   :  { %7117 = vmatprep.subr.bf16.mxu0 %v7832_v48 }
0x244f   :  { %7118 = vmatpush3.bf16.msra.mxu0 %v7833_v34 }
0x24fc   :  { %v5578_v33 = vpop.f32.mrf.mxu1 }
0x24fd   :  { %v10187_v57 = vadd.f32 %v5578_v33, %v5457_v14 }
0x24fe   :  { %v5580_v36 = vpop.f32.mrf.mxu1 }
0x24ff   :  { %v5597_v31 = vmul.f32 %v10187_v57, %v10187_v57  ;;  %v10191_v12 = vadd.f32 %v5580_v36, %v5461_v42 }
0x2500   :  { %v5582_v55 = vpop.f32.mrf.mxu1 }
0x2501   :  { %v5605_v7 = vmul.f32 %v5597_v31, %v10187_v57  ;;  %v5598_v0 = vmul.f32 %v10191_v12, %v10191_v12  ;;  %v10196_v15 = vadd.f32 %v5582_v55, %v5457_v14 }
0x2502   :  { %v5584_v21 = vpop.f32.mrf.mxu1 }
0x2503   :  { %v5613_v51 = vmul.f32 0.044715, %v5605_v7  ;;  %v5606_v37 = vmul.f32 %v5598_v0, %v10191_v12  ;;  %v5599_v3 = vmul.f32 %v10196_v15, %v10196_v15  ;;  %v10201_v29 = vadd.f32 %v5584_v21, %v5461_v42 }
0x2504   :  { %v5588_v59 = vpop.f32.mrf.mxu1 }
0x2505   :  { %v5621_v60 = vadd.f32 %v5613_v51, %v10187_v57  ;;  %v5614_v38 = vmul.f32 0.044715, %v5606_v37  ;;  %v5607_v18 = vmul.f32 %v5599_v3, %v10196_v15  ;;  %v5600_v28 = vmul.f32 %v10201_v29, %v10201_v29 }
0x2506   :  { %v10207_v56 = vadd.f32 %v5588_v59, %v5457_v14  ;;  %v5590_v9 = vpop.f32.mrf.mxu1 }
0x2507   :  { %v5629_v53 = vmul.f32 0.7978846, %v5621_v60  ;;  %v5622_v49 = vadd.f32 %v5614_v38, %v10191_v12  ;;  %v5615_v16 = vmul.f32 0.044715, %v5607_v18  ;;  %v5608_v39 = vmul.f32 %v5600_v28, %v10201_v29 }
0x2508   :  { %v5601_v63 = vmul.f32 %v10207_v56, %v10207_v56  ;;  %v10213_v50 = vadd.f32 %v5590_v9, %v5461_v42  ;;  %v5592_v22 = vpop.f32.mrf.mxu1 }
0x2509   :  { %v5630_v19 = vmul.f32 0.7978846, %v5622_v49  ;;  %v5623_v58 = vadd.f32 %v5615_v16, %v10196_v15  ;;  %v5616_v30 = vmul.f32 0.044715, %v5608_v39  ;;  %8122 = vtanh.f32 %v5629_v53 }
0x250a   :  { %v5609_v45 = vmul.f32 %v5601_v63, %v10207_v56  ;;  %v5602_v40 = vmul.f32 %v10213_v50, %v10213_v50  ;;  %v5593_v20 = vadd.f32 %v5592_v22, %v5457_v14  ;;  %v5594_v27 = vpop.f32.mrf.mxu1 }
0x250b   :  { %8124 = vtanh.f32 %v5630_v19  ;;  %v5631_v61 = vmul.f32 0.7978846, %v5623_v58  ;;  %v5624_v44 = vadd.f32 %v5616_v30, %v10201_v29  ;;  %v5595_v46 = vadd.f32 %v5594_v27, %v5461_v42 }
0x250c   :  { %v5617_v32 = vmul.f32 0.044715, %v5609_v45  ;;  %v5610_v2 = vmul.f32 %v5602_v40, %v10213_v50  ;;  %v5603_v4 = vmul.f32 %v5593_v20, %v5593_v20 }
0x250d   :  { %8126 = vtanh.f32 %v5631_v61  ;;  %v5632_v52 = vmul.f32 0.7978846, %v5624_v44  ;;  %v5604_v24 = vmul.f32 %v5595_v46, %v5595_v46 }
0x250e   :  { %v5625_v13 = vadd.f32 %v5617_v32, %v10207_v56  ;;  %v5618_v47 = vmul.f32 0.044715, %v5610_v2  ;;  %v5611_v6 = vmul.f32 %v5603_v4, %v5593_v20  ;;  %v6828_v32 = vld [vmem:[#allocation46] ss:$0 sm:$0xff] }
0x250f   :  { %8128 = vtanh.f32 %v5632_v52  ;;  %v5612_v41 = vmul.f32 %v5604_v24, %v5595_v46 }
0x2510   :  { %v5633_v62 = vmul.f32 0.7978846, %v5625_v13  ;;  %v5626_v8 = vadd.f32 %v5618_v47, %v10213_v50  ;;  %v5619_v35 = vmul.f32 0.044715, %v5611_v6 }
0x2511   :  { %v5620_v17 = vmul.f32 0.044715, %v5612_v41 }
0x2512   :  { %8130 = vtanh.f32 %v5633_v62  ;;  %v5634_v23 = vmul.f32 0.7978846, %v5626_v8  ;;  %v5627_v26 = vadd.f32 %v5619_v35, %v5593_v20 }
0x2513   :  { %v5628_v10 = vadd.f32 %v5620_v17, %v5595_v46 }
0x2514   :  { %8132 = vtanh.f32 %v5634_v23  ;;  %v5635_v48 = vmul.f32 0.7978846, %v5627_v26 }
0x2515   :  { %v5636_v34 = vmul.f32 0.7978846, %v5628_v10  ;;  %v7834_v10 = vld [vmem:[%s9160_s29 + $0x78] sm:$0xff]  }
0x2516   :  { %8134 = vtanh.f32 %v5635_v48  ;;  %v8123_v54 = vpop.eup %8122  ;;  %v7835_v48 = vld [vmem:[%s9160_s29 + $0xf8] sm:$0xff]   ;;  %7131 = vmatprep.subr.bf16.mxu1 %v7834_v10 }
0x2517   :  { %8136 = vtanh.f32 %v5636_v34  ;;  %v5645_v36 = vadd.f32 1.0, %v8123_v54  ;;  %v7837_v34 = vld [vmem:[%s9160_s29 + $0xb8] sm:$0xff]   ;;  %v7838_v54 = vld [vmem:[%s9160_s29 + $0x70] sm:$0xff]   ;;  %7151 = vmatprep.subr.bf16.mxu0 %v7835_v48 }
0x2518   :  { %v8125_v14 = vpop.eup %8124 }
0x2519   :  { %v5646_v42 = vadd.f32 1.0, %v8125_v14  ;;  %v5653_v51 = vmul.f32 0.5, %v5645_v36  ;;  %v7839_v14 = vld [vmem:[%s9160_s29 + $0xf0] sm:$0xff]   ;;  %v7844_v36 = vld [vmem:[%s9160_s29 + $0x28] sm:$0xff]  }
0x251a   :  { %v8127_v33 = vpop.eup %8126 }
0x251b   :  { %v5647_v31 = vadd.f32 1.0, %v8127_v33  ;;  %v5654_v21 = vmul.f32 0.5, %v5646_v42  ;;  %v5661_v28 = vmul.f32 %v5653_v51, %v10187_v57  ;;  %v7842_v42 = vld [vmem:[%s9160_s29 + $0x68] sm:$0xff]   ;;  %v7850_v51 = vld [vmem:[%s9160_s29 + $0x58] sm:$0xff]  }
0x251c   :  { %v8129_v55 = vpop.eup %8128  ;;  %v7843_v33 = vld [vmem:[%s9160_s29 + $0xe8] sm:$0xff]  }
0x251d   :  { %v5655_v7 = vmul.f32 0.5, %v5647_v31  ;;  %v5648_v0 = vadd.f32 1.0, %v8129_v55  ;;  %v5662_v38 = vmul.f32 %v5654_v21, %v10191_v12  ;;  %v7845_v31 = vld [vmem:[%s9160_s29 + $0xa8] sm:$0xff]   ;;  %v7846_v55 = vld [vmem:[%s9160_s29 + $0x60] sm:$0xff]  }
0x251e   :  { %v7849_v21 = vld [vmem:[%s9160_s29 + $0xa0] sm:$0xff]  }
0x251f   :  { %v8131_v37 = vpop.eup %8130  ;;  %v5656_v3 = vmul.f32 0.5, %v5648_v0  ;;  %v5663_v59 = vmul.f32 %v5655_v7, %v10196_v15  ;;  %v7847_v7 = vld [vmem:[%s9160_s29 + $0xe0] sm:$0xff]  }
0x2520   :  { %v5649_v53 = vadd.f32 1.0, %v8131_v37  ;;  %v7848_v0 = vld [vmem:[%s9160_s29 + $0x20] sm:$0xff]   ;;  %v7851_v37 = vld [vmem:[%s9160_s29 + $0xd8] sm:$0xff]  }
0x2521   :  { %v8133_v60 = vpop.eup %8132  ;;  %v5664_v18 = vmul.f32 %v5656_v3, %v10201_v29  ;;  %v5701_v63 = vpack.c.bf16 %v5663_v59, %v5661_v28 }
0x2522   :  { %v5650_v9 = vadd.f32 1.0, %v8133_v60  ;;  %v5657_v30 = vmul.f32 0.5, %v5649_v53 }
0x2523   :  { %v8135_v49 = vpop.eup %8134  ;;  %v5702_v16 = vpack.c.bf16 %v5664_v18, %v5662_v38 }
0x2524   :  { %v8137_v39 = vpop.eup %8136  ;;  %v5651_v22 = vadd.f32 1.0, %v8135_v49  ;;  %v5658_v58 = vmul.f32 0.5, %v5650_v9  ;;  %v5665_v57 = vmul.f32 %v5657_v30, %v10207_v56  ;;  %v7852_v30 = vld [vmem:[%s9160_s29 + $0x18] sm:$0xff]  }
0x2525   :  { %5840 = vmatprep.mubr.bf16.mxu0 %v5702_v16  ;;  %v5652_v19 = vadd.f32 1.0, %v8137_v39 }
0x2526   :  { %5841 = vmatmul.mubr.bf16.vlgmr.msra.gmra.mxu0 %v5701_v63  ;;  %v5659_v15 = vmul.f32 0.5, %v5651_v22  ;;  %v5666_v12 = vmul.f32 %v5658_v58, %v10213_v50 }
0x2527   :  { %v5660_v45 = vmul.f32 0.5, %v5652_v19  ;;  %7152 = vmatpush3.bf16.xpose.msra.mxu0 %v7837_v34  ;;  %v6846_v34 = vld [vmem:[#allocation49] ss:$0 sm:$0xff] }
0x2528   :  { %v5667_v40 = vmul.f32 %v5659_v15, %v5593_v20  ;;  %7153 = vmatprep.subr.bf16.mxu0 %v7839_v14  ;;  %v7853_v15 = vld [vmem:[%s9160_s29 + $0x98] sm:$0xff]  }
0x2529   :  { %v5668_v29 = vmul.f32 %v5660_v45, %v5595_v46 }
0x252a   :  { %v5703_v61 = vpack.c.bf16 %v5667_v40, %v5665_v57  ;;  %v7854_v40 = vld [vmem:[%s9160_s29 + $0x50] sm:$0xff]  }
0x252b   :  { %v5704_v27 = vpack.c.bf16 %v5668_v29, %v5666_v12  ;;  %v7855_v12 = vld [vmem:[%s9160_s29 + $0xd0] sm:$0xff]  }
0x252c   :  { %v7856_v29 = vld [vmem:[%s9160_s29 + $0x10] sm:$0xff]  }
0x252d   :  { %5848 = vmatprep.mubr.bf16.mxu0 %v5704_v27  ;;  %v7857_v57 = vld [vmem:[%s9160_s29 + $0x90] sm:$0xff]   ;;  %v7858_v27 = vld [vmem:[%s9160_s29 + $0x48] sm:$0xff]  }
0x252e   :  { %5849 = vmatmul.mubr.bf16.gmra.mxu0 %v5703_v61  ;;  %v7859_v61 = vld [vmem:[%s9160_s29 + $0xc8] sm:$0xff]  }
0x25e6   :  { %v7119_v44 = vpop.f32.mrf.mxu0 }
0x25e8   :  { %v7120_v2 = vpop.f32.mrf.mxu0 }
0x25e9   :  { %v7121_v4 = vadd.f32 %v7120_v2, %v7119_v44  ;;  %v7860_v44 = vld [vmem:[%s9160_s29 + $0x8] sm:$0xff]   ;;  %v7862_v2 = vld [vmem:[%s9160_s29 + $0x40] sm:$0xff]  }
0x25ea   :  { %v7122_v52 = vpop.f32.mrf.mxu0 }
0x25eb   :  { %v5843_v24 = vadd.f32 %v7121_v4, %v6828_v32  ;;  %v7863_v4 = vld [vmem:[%s9160_s29 + $0xc0] sm:$0xff]  }
0x25ec   :  { %v7123_v13 = vpop.f32.mrf.mxu0 }
0x25ed   :  { %v7124_v47 = vadd.f32 %v7123_v13, %v7122_v52  ;;  %v5857_v6 = vadd.f32 %v5843_v24, %v10170_v25  ;;  %v7864_v52 = vld [vmem:[%s9160_s29] sm:$0xff]  }
0x25ee   :  { %v7125_v20 = vpop.f32.mrf.mxu0  ;;  %v7865_v24 = vld [vmem:[%s9160_s29 + $0x80] sm:$0xff]  }
0x25ef   :  { %v5846_v50 = vadd.f32 %v7124_v47, %v6828_v32  ;;  %5863 = vadd.xlane.f32.xlu0 %v5857_v6 }
0x25f0   :  { %v7126_v56 = vpop.f32.mrf.mxu0 }
0x25f1   :  { %v7127_v46 = vadd.f32 %v7126_v56, %v7125_v20  ;;  %v5858_v41 = vadd.f32 %v5846_v50, %v10172_v11  ;;  %v7836_v11 = vld [vmem:[%s9160_s29 + $0x38] sm:$0xff]  }
0x25f2   :  { %v7128_v62 = vpop.f32.mrf.mxu0  ;;  %7132 = vmatpush3.bf16.xpose.msra.mxu1 %v7836_v11 }
0x25f3   :  { %v5851_v8 = vadd.f32 %v7127_v46, %v6828_v32  ;;  %5865 = vadd.xlane.f32.xlu1 %v5858_v41  ;;  %7133 = vmatprep.subr.bf16.mxu1 %v7838_v54 }
0x25f4   :  { %v7129_v35 = vpop.f32.mrf.mxu0 }
0x25f5   :  { %v7130_v17 = vadd.f32 %v7129_v35, %v7128_v62  ;;  %v5859_v25 = vadd.f32 %v5851_v8, %v10179_v1  ;;  %v7840_v1 = vld [vmem:[%s9160_s29 + $0x30] sm:$0xff]  }
0x25f7   :  { %v5854_v23 = vadd.f32 %v7130_v17, %v6828_v32  ;;  %5867 = vadd.xlane.f32.xlu0 %v5859_v25  ;;  %v7861_v32 = vld [vmem:[%s9160_s29 + $0x88] sm:$0xff]  }
0x25f9   :  { %v5860_v26 = vadd.f32 %v5854_v23, %v10181_v43  ;;  %v7841_v43 = vld [vmem:[%s9160_s29 + $0xb0] sm:$0xff]   ;;  %s10507_s29 = sld [smem:[#allocation70_spill]] }
0x25fa   :  { %7134 = vmatpush3.bf16.xpose.msra.mxu1 %v7840_v1  ;;  %7154 = vmatpush3.bf16.xpose.msra.mxu0 %v7841_v43 }
0x25fb   :  { %5869 = vadd.xlane.f32.xlu1 %v5860_v26  ;;  %7135 = vmatprep.subr.bf16.mxu1 %v7842_v42 }
0x25fc   :  { %7155 = vmatprep.subr.bf16.mxu0 %v7843_v33 }
0x2602   :  { %7136 = vmatpush3.bf16.xpose.msra.mxu1 %v7844_v36  ;;  %7156 = vmatpush3.bf16.xpose.msra.mxu0 %v7845_v31 }
0x2603   :  { %7137 = vmatprep.subr.bf16.mxu1 %v7846_v55  ;;  %7157 = vmatprep.subr.bf16.mxu0 %v7847_v7 }
0x260a   :  { %7138 = vmatpush3.bf16.xpose.msra.mxu1 %v7848_v0  ;;  %7158 = vmatpush3.bf16.xpose.msra.mxu0 %v7849_v21 }
0x260b   :  { %7139 = vmatprep.subr.bf16.mxu1 %v7850_v51  ;;  %7159 = vmatprep.subr.bf16.mxu0 %v7851_v37 }
0x2612   :  { %7140 = vmatpush3.bf16.xpose.msra.mxu1 %v7852_v30  ;;  %7160 = vmatpush3.bf16.xpose.msra.mxu0 %v7853_v15 }
0x2613   :  { %7141 = vmatprep.subr.bf16.mxu1 %v7854_v40  ;;  %7161 = vmatprep.subr.bf16.mxu0 %v7855_v12 }
0x261a   :  { %7142 = vmatpush3.bf16.xpose.msra.mxu1 %v7856_v29  ;;  %7162 = vmatpush3.bf16.xpose.msra.mxu0 %v7857_v57 }
0x261b   :  { %7143 = vmatprep.subr.bf16.mxu1 %v7858_v27  ;;  %7163 = vmatprep.subr.bf16.mxu0 %v7859_v61 }
0x2622   :  { %7144 = vmatpush3.bf16.xpose.msra.mxu1 %v7860_v44  ;;  %7164 = vmatpush3.bf16.xpose.msra.mxu0 %v7861_v32 }
0x2623   :  { %7145 = vmatprep.subr.bf16.mxu1 %v7862_v2  ;;  %7165 = vmatprep.subr.bf16.mxu0 %v7863_v4  ;;  %v10329_v4 = vld [vmem:[%s10507_s29 + $0x8] sm:$0xff] }
0x262a   :  { %7146 = vmatpush3.bf16.xpose.msra.mxu1 %v7864_v52  ;;  %7166 = vmatpush3.bf16.xpose.msra.mxu0 %v7865_v24  ;;  %v10332_v52 = vld [vmem:[%s10507_s29] sm:$0xff]  ;;  %v10337_v24 = vld [vmem:[%s10507_s29 + $0x10] sm:$0xff] }
0x2678   :  { %v5864_v3 = vpop.xlane.xlu0 %5863 }
0x2679   :  { %v5871_v59 = vmul.f32 0.0078125, %v5864_v3 }
0x267b   :  { %v10251_v60 = vsub.f32 %v5857_v6, %v5871_v59 }
0x267c   :  { %v5866_v38 = vpop.xlane.xlu1 %5865 }
0x267d   :  { %v5872_v18 = vmul.f32 0.0078125, %v5866_v38  ;;  %v5879_v28 = vmul.f32 %v10251_v60, %v10251_v60 }
0x267f   :  { %v5876_v9 = vsub.f32 %v5858_v41, %v5872_v18  ;;  %5883 = vadd.xlane.f32.xlu0 %v5879_v28 }
0x2680   :  { %v5868_v53 = vpop.xlane.xlu0 %5867 }
0x2681   :  { %v5873_v49 = vmul.f32 0.0078125, %v5868_v53  ;;  %v5880_v16 = vmul.f32 %v5876_v9, %v5876_v9 }
0x2683   :  { %v10255_v39 = vsub.f32 %v5859_v25, %v5873_v49  ;;  %5885 = vadd.xlane.f32.xlu1 %v5880_v16 }
0x2684   :  { %v5870_v63 = vpop.xlane.xlu1 %5869 }
0x2685   :  { %v5874_v22 = vmul.f32 0.0078125, %v5870_v63  ;;  %v5881_v19 = vmul.f32 %v10255_v39, %v10255_v39 }
0x2687   :  { %v10259_v58 = vsub.f32 %v5860_v26, %v5874_v22  ;;  %5887 = vadd.xlane.f32.xlu0 %v5881_v19  ;;  %v6845_v26 = vld [vmem:[#allocation47] ss:$0 sm:$0xff] }
0x2689   :  { %v5882_v45 = vmul.f32 %v10259_v58, %v10259_v58 }
0x268b   :  { %5889 = vadd.xlane.f32.xlu1 %v5882_v45 }
0x2708   :  { %v5884_v13 = vpop.xlane.xlu0 %5883 }
0x2709   :  { %v5891_v47 = vmul.f32 0.0078125, %v5884_v13  ;;  %v10340_v13 = vld [vmem:[%s10507_s29 + $0x18] sm:$0xff] }
0x270b   :  { %v5895_v6 = vadd.f32 1e-05, %v5891_v47 }
0x270c   :  { %v5886_v20 = vpop.xlane.xlu1 %5885 }
0x270d   :  { %8138 = vrsqrt.f32 %v5895_v6  ;;  %v5892_v50 = vmul.f32 0.0078125, %v5886_v20 }
0x270f   :  { %v5896_v56 = vadd.f32 1e-05, %v5892_v50 }
0x2710   :  { %v5888_v46 = vpop.xlane.xlu0 %5887 }
0x2711   :  { %8140 = vrsqrt.f32 %v5896_v56  ;;  %v5893_v41 = vmul.f32 0.0078125, %v5888_v46 }
0x2713   :  { %v5897_v62 = vadd.f32 1e-05, %v5893_v41 }
0x2714   :  { %v5890_v8 = vpop.xlane.xlu1 %5889 }
0x2715   :  { %8142 = vrsqrt.f32 %v5897_v62  ;;  %v5894_v35 = vmul.f32 0.0078125, %v5890_v8 }
0x2717   :  { %v5898_v17 = vadd.f32 1e-05, %v5894_v35 }
0x2719   :  { %8144 = vrsqrt.f32 %v5898_v17 }
0x271a   :  { %v8139_v25 = vpop.eup %8138 }
0x271b   :  { %v5903_v23 = vmul.f32 %v8139_v25, %v10251_v60 }
0x271d   :  { %v5913_v11 = vmul.f32 %v6845_v26, %v5903_v23 }
0x271e   :  { %v8141_v10 = vpop.eup %8140 }
0x271f   :  { %v5904_v48 = vmul.f32 %v8141_v10, %v5876_v9  ;;  %v5923_v1 = vadd.f32 %v6846_v34, %v5913_v11 }
0x2721   :  { %v5914_v54 = vmul.f32 %v6845_v26, %v5904_v48 }
0x2722   :  { %v8143_v14 = vpop.eup %8142 }
0x2723   :  { %v5924_v43 = vadd.f32 %v6846_v34, %v5914_v54  ;;  %v5905_v42 = vmul.f32 %v8143_v14, %v10255_v39 }
0x2725   :  { %v5991_v33 = vpack.c.bf16 %v5924_v43, %v5923_v1  ;;  %v5915_v55 = vmul.f32 %v6845_v26, %v5905_v42 }
0x2726   :  { %v8145_v36 = vpop.eup %8144 }
0x2727   :  { %7147 = vmatprep.mubr.bf16.mxu1 %v5991_v33  ;;  %7167 = vmatprep.mubr.bf16.mxu0 %v5991_v33  ;;  %v5906_v31 = vmul.f32 %v8145_v36, %v10259_v58  ;;  %v5925_v0 = vadd.f32 %v6846_v34, %v5915_v55 }
0x2728   :  { %7148 = vmatmul.mubr.bf16.vlgmr.msra.gmra.mxu1 %v5991_v33  ;;  %7168 = vmatmul.mubr.bf16.vlgmr.msra.gmra.mxu0 %v5991_v33 }
0x2729   :  { %v5916_v7 = vmul.f32 %v6845_v26, %v5906_v31 }
0x272b   :  { %v5926_v21 = vadd.f32 %v6846_v34, %v5916_v7 }
0x272d   :  { %v5992_v51 = vpack.c.bf16 %v5926_v21, %v5925_v0 }
0x272f   :  { %7149 = vmatprep.mubr.bf16.mxu1 %v5992_v51  ;;  %7169 = vmatprep.mubr.bf16.mxu0 %v5992_v51 }
0x2730   :  { %7150 = vmatmul.mubr.bf16.gmra.mxu1 %v5992_v51  ;;  %7170 = vmatmul.mubr.bf16.gmra.mxu0 %v5992_v51 }
0x27e8   :  { %v10280_v37 = vpop.f32.mrf.mxu1  ;;  %v10282_v3 = vpop.f32.mrf.mxu0 }
0x27ea   :  { %v10284_v59 = vpop.f32.mrf.mxu1  ;;  %v10286_v60 = vpop.f32.mrf.mxu0 }
0x27eb   :  { %v6291_v38 = vmax.f32 %v10280_v37, %v10284_v59 }
0x27ec   :  { %v10290_v18 = vpop.f32.mrf.mxu1  ;;  %v10292_v28 = vpop.f32.mrf.mxu0 }
0x27ed   :  { %v6292_v9 = vmax.f32 %v6291_v38, %v10282_v3 }
0x27ee   :  { %v10295_v53 = vpop.f32.mrf.mxu1  ;;  %v10297_v49 = vpop.f32.mrf.mxu0 }
0x27ef   :  { %v6293_v16 = vmax.f32 %v6292_v9, %v10286_v60  ;;  %v6296_v39 = vmax.f32 %v10290_v18, %v10295_v53 }
0x27f0   :  { %v10302_v63 = vpop.f32.mrf.mxu1  ;;  %v10304_v22 = vpop.f32.mrf.mxu0 }
0x27f1   :  { %v6297_v19 = vmax.f32 %v6296_v39, %v10292_v28  ;;  %6294 = vmax.xlane.f32.xlu0 %v6293_v16 }
0x27f2   :  { %v10307_v58 = vpop.f32.mrf.mxu1  ;;  %v10309_v30 = vpop.f32.mrf.mxu0 }
0x27f3   :  { %v6298_v15 = vmax.f32 %v6297_v19, %v10297_v49  ;;  %v6301_v45 = vmax.f32 %v10302_v63, %v10307_v58 }
0x27f4   :  { %v10314_v40 = vpop.f32.mrf.mxu1  ;;  %v10317_v29 = vpop.f32.mrf.mxu0 }
0x27f5   :  { %v6302_v12 = vmax.f32 %v6301_v45, %v10304_v22  ;;  %6299 = vmax.xlane.f32.xlu1 %v6298_v15 }
0x27f6   :  { %v10319_v57 = vpop.f32.mrf.mxu1  ;;  %v10325_v32 = vpop.f32.mrf.mxu0 }
0x27f7   :  { %v6303_v27 = vmax.f32 %v6302_v12, %v10309_v30  ;;  %v6306_v61 = vmax.f32 %v10314_v40, %v10319_v57  ;;  %v6395_v12 = vadd.s32 128, %v9707_v5 }
0x27f9   :  { %v6307_v44 = vmax.f32 %v6306_v61, %v10317_v29  ;;  %6304 = vmax.xlane.f32.xlu0 %v6303_v27 }
0x27fb   :  { %v6308_v2 = vmax.f32 %v6307_v44, %v10325_v32 }
0x27fd   :  { %6309 = vmax.xlane.f32.xlu1 %v6308_v2 }
0x280e   :  { %6402 = vperm.xlu1 %7633, %v10329_v4  }
0x280f   :  { %6399 = vperm.xlu0 %7632, %v10332_v52  }
0x2812   :  { %6405 = vperm.xlu1 %7633, %v10337_v24  }
0x2813   :  { %6408 = vperm.xlu0 %7632, %v10340_v13  }
0x287a   :  { %v10344_v47 = vpop.xlane.xlu0 %6294 }
0x287b   :  { %v6311_v6 = vsub.f32 %v10280_v37, %v10344_v47  ;;  %v6312_v20 = vsub.f32 %v10284_v59, %v10344_v47  ;;  %v6313_v50 = vsub.f32 %v10282_v3, %v10344_v47  ;;  %v6314_v56 = vsub.f32 %v10286_v60, %v10344_v47 }
0x287d   :  { %v6327_v46 = vmul.f32 1.442695, %v6311_v6  ;;  %v6329_v41 = vmul.f32 1.442695, %v6312_v20  ;;  %v6331_v62 = vmul.f32 1.442695, %v6313_v50 }
0x287e   :  { %v6333_v8 = vmul.f32 1.442695, %v6314_v56  ;;  %v10354_v35 = vpop.xlane.xlu1 %6299 }
0x287f   :  { %8146 = vpow2.f32 %v6327_v46  ;;  %v6315_v17 = vsub.f32 %v10290_v18, %v10354_v35  ;;  %v6316_v25 = vsub.f32 %v10295_v53, %v10354_v35  ;;  %v6317_v23 = vsub.f32 %v10292_v28, %v10354_v35 }
0x2880   :  { %8148 = vpow2.f32 %v6329_v41  ;;  %v6318_v26 = vsub.f32 %v10297_v49, %v10354_v35  ;;  %v6396_v46 = vadd.s32 256, %v9707_v5 }
0x2881   :  { %8150 = vpow2.f32 %v6331_v62  ;;  %v6335_v10 = vmul.f32 1.442695, %v6315_v17  ;;  %v6337_v48 = vmul.f32 1.442695, %v6316_v25  ;;  %v6339_v11 = vmul.f32 1.442695, %v6317_v23 }
0x2882   :  { %8152 = vpow2.f32 %v6333_v8  ;;  %v6341_v34 = vmul.f32 1.442695, %v6318_v26  ;;  %v10364_v54 = vpop.xlane.xlu0 %6304 }
0x2883   :  { %8154 = vpow2.f32 %v6335_v10  ;;  %v6319_v14 = vsub.f32 %v10302_v63, %v10364_v54  ;;  %v6320_v1 = vsub.f32 %v10307_v58, %v10364_v54  ;;  %v6321_v43 = vsub.f32 %v10304_v22, %v10364_v54 }
0x2884   :  { %8156 = vpow2.f32 %v6337_v48  ;;  %v6322_v42 = vsub.f32 %v10309_v30, %v10364_v54  ;;  %v6397_v10 = vadd.s32 384, %v9707_v5 }
0x2885   :  { %8158 = vpow2.f32 %v6339_v11  ;;  %v6343_v33 = vmul.f32 1.442695, %v6319_v14  ;;  %v6345_v36 = vmul.f32 1.442695, %v6320_v1  ;;  %v6347_v31 = vmul.f32 1.442695, %v6321_v43 }
0x2886   :  { %8160 = vpow2.f32 %v6341_v34  ;;  %v6349_v55 = vmul.f32 1.442695, %v6322_v42  ;;  %v10374_v7 = vpop.xlane.xlu1 %6309 }
0x2887   :  { %8162 = vpow2.f32 %v6343_v33  ;;  %v6323_v0 = vsub.f32 %v10314_v40, %v10374_v7  ;;  %v6324_v21 = vsub.f32 %v10319_v57, %v10374_v7  ;;  %v6325_v51 = vsub.f32 %v10317_v29, %v10374_v7 }
0x2888   :  { %8164 = vpow2.f32 %v6345_v36  ;;  %v6326_v38 = vsub.f32 %v10325_v32, %v10374_v7 }
0x2889   :  { %8166 = vpow2.f32 %v6347_v31  ;;  %v6351_v9 = vmul.f32 1.442695, %v6323_v0  ;;  %v6353_v16 = vmul.f32 1.442695, %v6324_v21  ;;  %v6355_v39 = vmul.f32 1.442695, %v6325_v51 }
0x288a   :  { %8168 = vpow2.f32 %v6349_v55  ;;  %v6357_v15 = vmul.f32 1.442695, %v6326_v38  ;;  %v10385_v27 = vpop.permute.xlu1 %6402  ;;  %v10387_v44 = vpop.permute.xlu0 %6399 }
0x288b   :  { %8170 = vpow2.f32 %v6351_v9  ;;  %vm6410_vm13 = vcmp.eq.s32.totalorder %v9707_v5, %v10387_v44  ;;  %vm6411_vm14 = vcmp.eq.s32.totalorder %v6395_v12, %v10387_v44  ;;  %vm6414_vm15 = vcmp.eq.s32.totalorder %v9707_v5, %v10385_v27 }
0x288c   :  { %v8147_v19 = vpop.eup %8146  ;;  %8172 = vpow2.f32 %v6353_v16  ;;  %vm6415_vm0 = vcmp.eq.s32.totalorder %v6395_v12, %v10385_v27  ;;  %v6426_v17 = vsel %vm6410_vm13, %v10280_v37, 0.0  ;;  %v6427_v25 = vsel %vm6411_vm14, %v10284_v59, 0.0 }
0x288d   :  { %v8149_v45 = vpop.eup %8148  ;;  %8174 = vpow2.f32 %v6355_v39  ;;  %v6430_v48 = vsel %vm6414_vm15, %v10290_v18, 0.0  ;;  %v6431_v37 = vsel %vm6415_vm0, %v10295_v53, 0.0  ;;  %vm6412_vm3 = vcmp.eq.s32.totalorder %v6396_v46, %v10387_v44 }
0x288e   :  { %v8151_v61 = vpop.eup %8150  ;;  %8176 = vpow2.f32 %v6357_v15  ;;  %v10395_v41 = vpop.permute.xlu1 %6405  ;;  %v6359_v62 = vadd.f32 %v8149_v45, %v8147_v19  ;;  %v6442_v59 = vadd.f32 %v6427_v25, %v6426_v17  ;;  %vm6416_vm6 = vcmp.eq.s32.totalorder %v6396_v46, %v10385_v27 }
0x288f   :  { %v8153_v2 = vpop.eup %8152  ;;  %v6409_v11 = vpop.permute.xlu0 %6408  ;;  %vm6418_vm1 = vcmp.eq.s32.totalorder %v9707_v5, %v10395_v41  ;;  %vm6419_vm2 = vcmp.eq.s32.totalorder %v6395_v12, %v10395_v41  ;;  %v6447_v51 = vadd.f32 %v6431_v37, %v6430_v48  ;;  %vm6413_vm7 = vcmp.eq.s32.totalorder %v6397_v10, %v10387_v44 }
0x2890   :  { %v8155_v6 = vpop.eup %8154  ;;  %v6360_v34 = vadd.f32 %v8151_v61, %v6359_v62  ;;  %vm6422_vm4 = vcmp.eq.s32.totalorder %v9707_v5, %v6409_v11  ;;  %vm6423_vm5 = vcmp.eq.s32.totalorder %v6395_v12, %v6409_v11  ;;  %v6434_v0 = vsel %vm6418_vm1, %v10302_v63, 0.0 }
0x2891   :  { %v8157_v20 = vpop.eup %8156  ;;  %v6435_v21 = vsel %vm6419_vm2, %v10307_v58, 0.0  ;;  %v6428_v16 = vsel %vm6412_vm3, %v10282_v3, 0.0  ;;  %v6438_v63 = vsel %vm6422_vm4, %v10314_v40, 0.0  ;;  %v6439_v58 = vsel %vm6423_vm5, %v10319_v57, 0.0 }
0x2892   :  { %v8159_v50 = vpop.eup %8158  ;;  %v6364_v23 = vadd.f32 %v8157_v20, %v8155_v6  ;;  %v6361_v33 = vadd.f32 %v8153_v2, %v6360_v34  ;;  %vm6420_vm8 = vcmp.eq.s32.totalorder %v6396_v46, %v10395_v41  ;;  %v6452_v39 = vadd.f32 %v6435_v21, %v6434_v0 }
0x2893   :  { %v8161_v56 = vpop.eup %8160  ;;  %v6443_v15 = vadd.f32 %v6442_v59, %v6428_v16  ;;  %vm6417_vm9 = vcmp.eq.s32.totalorder %v6397_v10, %v10385_v27  ;;  %v6432_v61 = vsel %vm6416_vm6, %v10292_v28, 0.0  ;;  %vm6424_vm10 = vcmp.eq.s32.totalorder %v6396_v46, %v6409_v11 }
0x2894   :  { %v8163_v8 = vpop.eup %8162  ;;  %v6365_v1 = vadd.f32 %v8159_v50, %v6364_v23  ;;  %6362 = vadd.xlane.f32.xlu1 %v6361_v33  ;;  %v6457_v3 = vadd.f32 %v6439_v58, %v6438_v63  ;;  %v6448_v40 = vadd.f32 %v6447_v51, %v6432_v61  ;;  %v6436_v12 = vsel %vm6420_vm8, %v10304_v22, 0.0 }
0x2895   :  { %v8165_v26 = vpop.eup %8164  ;;  %v6429_v57 = vsel %vm6413_vm7, %v10286_v60, 0.0  ;;  %vm6421_vm11 = vcmp.eq.s32.totalorder %v6397_v10, %v10395_v41  ;;  %v6453_v6 = vadd.f32 %v6452_v39, %v6436_v12  ;;  %v6440_v20 = vsel %vm6424_vm10, %v10317_v29, 0.0 }
0x2896   :  { %v8167_v14 = vpop.eup %8166  ;;  %v6369_v43 = vadd.f32 %v8165_v26, %v8163_v8  ;;  %v6366_v18 = vadd.f32 %v8161_v56, %v6365_v1  ;;  %v6444_v2 = vadd.f32 %v6443_v15, %v6429_v57  ;;  %v6433_v28 = vsel %vm6417_vm9, %v10297_v49, 0.0 }
0x2897   :  { %v8169_v42 = vpop.eup %8168  ;;  %vm6425_vm12 = vcmp.eq.s32.totalorder %v6397_v10, %v6409_v11  ;;  %v6449_v27 = vadd.f32 %v6448_v40, %v6433_v28  ;;  %v6458_v50 = vadd.f32 %v6457_v3, %v6440_v20  ;;  %v6437_v56 = vsel %vm6421_vm11, %v10309_v30, 0.0 }
0x2898   :  { %v8171_v36 = vpop.eup %8170  ;;  %v6370_v31 = vadd.f32 %v8167_v14, %v6369_v43  ;;  %6367 = vadd.xlane.f32.xlu0 %v6366_v18  ;;  %v6454_v22 = vadd.f32 %v6453_v6, %v6437_v56  ;;  %v6441_v44 = vsel %vm6425_vm12, %v10325_v32, 0.0  ;;  %vm6462_vm13 = vcmp.ne.s32.totalorder %v10332_v52, 4294967196 }
0x2899   :  { %v8173_v55 = vpop.eup %8172  ;;  %v6459_v60 = vadd.f32 %v6458_v50, %v6441_v44  ;;  %v8945_v46 = vmov 0.0   ;;  %vm6482_vm14 = vcmask 7168   ;;  %vm6463_vm15 = vcmp.ne.s32.totalorder %v10329_v4, 4294967196 }
0x289a   :  { %v6371_v53 = vadd.f32 %v8169_v42, %v6370_v31  ;;  %v6374_v38 = vadd.f32 %v8173_v55, %v8171_v36  ;;  %v8175_v9 = vpop.eup %8174  ;;  %v6879_v41 = vsel %vm6462_vm13, 1.0, %v8945_v46  ;;  %v6880_v29 = vsel %vm6463_vm15, 1.0, %v8945_v46 }
0x289b   :  { %v8177_v45 = vpop.eup %8176  ;;  %v6500_v49 = vsel %vm6482_vm14, %v6879_v41, 0.0  ;;  %v6501_v62 = vsel %vm6482_vm14, %v6880_v29, 0.0  ;;  %vm6464_vm0 = vcmp.ne.s32.totalorder %v10337_v24, 4294967196  ;;  %vm6465_vm1 = vcmp.ne.s32.totalorder %v10340_v13, 4294967196 }
0x289c   :  { %v6375_v19 = vadd.f32 %v8175_v9, %v6374_v38  ;;  %6372 = vadd.xlane.f32.xlu0 %v6371_v53  ;;  %v6502_v30 = vadd.f32 %v6501_v62, %v6500_v49  ;;  %v6881_v8 = vsel %vm6464_vm0, 1.0, %v8945_v46  ;;  %v6882_v52 = vsel %vm6465_vm1, 1.0, %v8945_v46 }
0x289d   :  { %v6503_v32 = vsel %vm6482_vm14, %v6881_v8, 0.0  ;;  %v6505_v25 = vsel %vm6482_vm14, %v6882_v52, 0.0  ;;  %vm6520_vm2 = vcmask 0  }
0x289e   :  { %v6376_v5 = vadd.f32 %v8177_v45, %v6375_v19  ;;  %v6504_v17 = vadd.f32 %v6503_v32, %v6502_v30 }
0x28a0   :  { %6377 = vadd.xlane.f32.xlu1 %v6376_v5  ;;  %6445 = vadd.xlane.f32.xlu0 %v6444_v2  ;;  %v6506_v23 = vadd.f32 %v6505_v25, %v6504_v17 }
0x28a4   :  { %6450 = vadd.xlane.f32.xlu1 %v6449_v27  ;;  %6455 = vadd.xlane.f32.xlu0 %v6454_v22 }
0x28a8   :  { %6460 = vadd.xlane.f32.xlu1 %v6459_v60 }
0x28ac   :  { %6507 = vadd.xlane.f32.xlu1 %v6506_v23 }
0x291d   :  { %v6363_v4 = vpop.xlane.xlu1 %6362 }
0x291e   :  { %8178 = vlog2.f32 %v6363_v4 }
0x2921   :  { %v6368_v26 = vpop.xlane.xlu0 %6367 }
0x2922   :  { %8180 = vlog2.f32 %v6368_v26 }
0x2925   :  { %v6373_v10 = vpop.xlane.xlu0 %6372 }
0x2926   :  { %8182 = vlog2.f32 %v6373_v10 }
0x2929   :  { %v6378_v48 = vpop.xlane.xlu1 %6377  ;;  %v6446_v13 = vpop.xlane.xlu0 %6445 }
0x292a   :  { %8184 = vlog2.f32 %v6378_v48 }
0x292b   :  { %v8179_v24 = vpop.eup %8178 }
0x292c   :  { %v6380_v34 = vmul.f32 0.6931472, %v8179_v24 }
0x292d   :  { %v6451_v59 = vpop.xlane.xlu1 %6450  ;;  %v6456_v51 = vpop.xlane.xlu0 %6455 }
0x292e   :  { %v6387_v1 = vadd.f32 %v6380_v34, %v10344_v47 }
0x292f   :  { %v8181_v11 = vpop.eup %8180 }
0x2930   :  { %v6382_v14 = vmul.f32 0.6931472, %v8181_v11  ;;  %v6474_v37 = vsub.f32 %v6387_v1, %v6446_v13 }
0x2931   :  { %v6461_v9 = vpop.xlane.xlu1 %6460 }
0x2932   :  { %v6388_v43 = vadd.f32 %v6382_v14, %v10354_v35  ;;  %v6478_v55 = vmul.f32 %v6879_v41, %v6474_v37 }
0x2933   :  { %v8183_v42 = vpop.eup %8182 }
0x2934   :  { %v6384_v33 = vmul.f32 0.6931472, %v8183_v42  ;;  %v6475_v36 = vsub.f32 %v6388_v43, %v6451_v59  ;;  %v6483_v35 = vsel %vm6482_vm14, %v6478_v55, 0.0 }
0x2936   :  { %v6479_v0 = vmul.f32 %v6880_v29, %v6475_v36  ;;  %v6389_v21 = vadd.f32 %v6384_v33, %v10364_v54  ;;  %v6508_v54 = vpop.xlane.xlu1 %6507 }
0x2937   :  { %v8185_v18 = vpop.eup %8184  ;;  %v6509_v3 = vrot.slane %v6508_v54, 4 }
0x2938   :  { %v6386_v31 = vmul.f32 0.6931472, %v8185_v18  ;;  %v6484_v53 = vsel %vm6482_vm14, %v6479_v0, 0.0  ;;  %v6476_v38 = vsub.f32 %v6389_v21, %v6456_v51 }
0x2939   :  { %v6485_v58 = vadd.f32 %v6484_v53, %v6483_v35  ;;  %v6510_v5 = vadd.f32 %v6509_v3, %v6508_v54 }
0x293a   :  { %v6390_v47 = vadd.f32 %v6386_v31, %v10374_v7  ;;  %v6480_v16 = vmul.f32 %v6881_v8, %v6476_v38 }
0x293b   :  { %v6511_v40 = vrot.slane %v6510_v5, 2 }
0x293c   :  { %v6477_v63 = vsub.f32 %v6390_v47, %v6461_v9  ;;  %v6486_v39 = vsel %vm6482_vm14, %v6480_v16, 0.0 }
0x293d   :  { %v6487_v15 = vadd.f32 %v6486_v39, %v6485_v58  ;;  %v6512_v2 = vadd.f32 %v6511_v40, %v6510_v5 }
0x293e   :  { %v6481_v19 = vmul.f32 %v6882_v52, %v6477_v63 }
0x293f   :  { %v6513_v28 = vrot.slane %v6512_v2, 1 }
0x2940   :  { %v6488_v45 = vsel %vm6482_vm14, %v6481_v19, 0.0 }
0x2941   :  { %v6489_v61 = vadd.f32 %v6488_v45, %v6487_v15  ;;  %v6514_v56 = vadd.f32 %v6513_v28, %v6512_v2 }
0x2943   :  { %6490 = vadd.xlane.f32.xlu0 %v6489_v61 }
0x29cc   :  { %v6491_v12 = vpop.xlane.xlu0 %6490 }
0x29cd   :  { %v6492_v7 = vrot.slane %v6491_v12, 4 }
0x29cf   :  { %v6493_v57 = vadd.f32 %v6492_v7, %v6491_v12 }
0x29d1   :  { %v6494_v6 = vrot.slane %v6493_v57, 2 }
0x29d3   :  { %v6495_v20 = vadd.f32 %v6494_v6, %v6493_v57 }
0x29d5   :  { %v6496_v27 = vrot.slane %v6495_v20, 1 }
0x29d7   :  { %v6497_v50 = vadd.f32 %v6496_v27, %v6495_v20 }
0x29d9   :  { %7543 = vpush %v6497_v50 }
0x29da   :  { %7545 = vpush %v6514_v56 }
0x2a0a   :  { %s7544_s18 = spop %7543 }
0x2a0b   :  { %s7546_s3 = spop %7545  ;;  %v6499_v46 = vstv %s7544_s18 }
0x2a0c   :  { %v6516_v22 = vstv %s7546_s3 }
0x2a0d   :  { %v6517_v44 = vmax.f32 %v6516_v22, 1.0 }
0x2a0f   :  { %8186 = vrcp.f32 %v6517_v44 }
0x2a1c   :  { %v8187_v60 = vpop.eup %8186 }
0x2a1d   :  { %v6519_v41 = vmul.f32 %v8187_v60, %v6499_v46 }
0x2a1f   :  { %6521 = vst.msk [vmem:[#allocation50] sm:$0x1] %vm6520_vm2, %v6519_v41 }
0x2a20   :  { %8819 = shalt.err (!%p8816_p5)
}
0x2a21   :  { %6531 = dma.vmem_to_hbm [thread:$0]  %s6529_s12, 16, %s9165_s8, [#allocation4]  }
0x2a22   :  { %8860 = dma.done.wait [#allocation4], 16  }
0x2a23   :  { %8861 = vsyncadd [#allocation4], 4294967280 }
0x2a24   :  { %6535 = vsyncpa [#allocation3], 1 }
0x2a25   :  { %6536 = vsyncpa [#allocation6], 1 }
0x2a26   :  { %6537 = vsyncpa [#allocation9], 1 }
0x2a27   :  { %6538 = vsyncpa [#allocation12], 1 }
0x2a28   :  { %6539 = vsyncpa [#allocation15], 1 }
0x2a29   :  { %6540 = vsyncpa [#allocation18], 1 }
0x2a2a   :  { %6541 = vsyncpa [#allocation21], 1 }
0x2a2b   :  { %6542 = vsyncpa [#allocation24], 1 }
0x2a2c   :  { %6543 = vsyncpa [#allocation27], 1 }
0x2a2d   :  { %6544 = vsyncpa [#allocation30], 1 }
0x2a2e   :  { %6545 = vsyncpa [#allocation33], 1 }
0x2a2f   :  { %6546 = vsyncpa [#allocation36], 1 }
0x2a30   :  { %6547 = vsyncpa [#allocation39], 1 }
0x2a31   :  { %6548 = vsyncpa [#allocation42], 1 }
0x2a32   :  { %6549 = vsyncpa [#allocation45], 1 }
0x2a33   :  { %6550 = vsyncpa [#allocation48], 1 }
0x2a34   :  { %6551 = vsyncpa [#allocation4], 1 }

</bundles_post_ra>
